<compile_context>
chip_gen: v5e
topology: v5e:2x2
jax: 0.10.0
libtpu: 0.0.40
codegen_flags: <defaults>
</compile_context>

<pallas_src>
import jax
import jax.numpy as jnp
from jax.experimental import pallas as pl
from jax.experimental.pallas import tpu as pltpu


# ----------------------------- helpers --------------------------------------

def _round_up(n, m):
    return ((n + m - 1) // m) * m


def _pad2(a, rows, cols, dtype=None):
    a = jnp.pad(a, ((0, rows - a.shape[0]), (0, cols - a.shape[1])))
    return a.astype(dtype) if dtype is not None else a


def _tpu_caps():
    """Best-effort (num_tensorcores, physical_vmem_bytes) for the local device."""
    kind = ""
    try:
        kind = (jax.devices()[0].device_kind or "").lower()
    except Exception:
        pass
    cores = 2 if any(t in kind for t in ("v7", "v4", "v5p")) else 1
    vmem_phys = None
    try:
        info = pltpu.get_tpu_info()
        v = int(getattr(info, "vmem_capacity_bytes", 0) or 0)
        vmem_phys = v if v > 0 else None
    except Exception:
        vmem_phys = None
    if vmem_phys is None:
        vmem_phys = (64 << 20) if "v7" in kind else (128 << 20)
    return cores, vmem_phys


def _pick_block_batch(Bp, T, per_sample_bytes, fixed_bytes, vmem_budget,
                      num_cores, row_cap=2048):
    """Largest Bb (multiple of 8, divisor of Bp) whose per-step VMEM estimate fits.

    On multi-TC chips prefer grid lengths that are a multiple of (or at least
    cover) the core count; on single-TC chips one big grid step is optimal.
    """
    cands = [bb for bb in range(8, Bp + 1, 8) if Bp % bb == 0]
    if not cands:
        cands = [Bp]
    fitting = [bb for bb in cands
               if bb * T <= row_cap
               and fixed_bytes + bb * per_sample_bytes <= vmem_budget]
    if not fitting:
        fitting = [min(cands)]
    if num_cores > 1:
        even = [bb for bb in fitting if (Bp // bb) % num_cores == 0]
        multi = [bb for bb in fitting if (Bp // bb) >= num_cores]
        pool = even or multi or fitting
    else:
        pool = fitting
    return max(pool)


# ----------------------------- kernel ---------------------------------------

def _make_kernel(T, mm_dtype):
    def kernel(p_ref, wpos_ref, bpos_ref, w0_ref, b0_ref,
               wa_ref, wb_ref, b123_ref, wh_ref, bh_ref, out_ref):
        f32 = jnp.float32
        relu = lambda v: jnp.maximum(v, 0.0)
        cast = lambda v: v.astype(mm_dtype)

        x = p_ref[...]                     # (M, Dp) f32, M = Bb*T
        M = x.shape[0]
        Bb = M // T
        N2 = w0_ref.shape[1]               # padded hidden width

        # fc_pos + fc_0 over all Bb*T points at once (bf16 MXU, f32 accumulate).
        net = jnp.dot(cast(x), wpos_ref[...],
                      preferred_element_type=f32) + bpos_ref[...]
        h = jnp.dot(cast(relu(net)), w0_ref[...],
                    preferred_element_type=f32) + b0_ref[...]       # (M, N2) f32

        # Three (pool -> concat -> linear) blocks in split-weight form.
        for i in range(3):
            r = relu(h)                                          # f32, reused for pool
            pooled = jnp.max(r.reshape(Bb, T, N2), axis=1)       # (Bb, N2) (relu/max commute)
            main = jnp.dot(cast(r), wa_ref[i],
                           preferred_element_type=f32)                          # (M, N2)
            side = jnp.dot(cast(pooled), wb_ref[i],
                           preferred_element_type=f32) + b123_ref[i]            # (Bb, N2)
            h = (main.reshape(Bb, T, N2) + side.reshape(Bb, 1, N2)).reshape(M, N2)

        # Final pool per sample, then fused mean/std head (one matmul, one store).
        g = relu(jnp.max(h.reshape(Bb, T, N2), axis=1))          # (Bb, N2)
        out_ref[...] = jnp.dot(cast(g), wh_ref[...],
                               preferred_element_type=f32) + bh_ref[...]

    return kernel


# ----------------------------- wrapper --------------------------------------

def pointnet_vae_pallas(p, params, *, hidden_dim, c_dim, block_batch=None,
                        matmul_dtype=jnp.bfloat16):
    B, T, D = p.shape
    H = hidden_dim
    f32 = jnp.float32
    mmd = matmul_dtype
    mm_bytes = jnp.dtype(mmd).itemsize

    Dp = _round_up(D, 8)
    N1 = _round_up(2 * H, 128)         # fc_pos output width (padded)
    N2 = _round_up(H, 128)             # hidden width (padded)
    NH = _round_up(2 * c_dim, 128)     # fused head output width (padded)

    # ---- pack / zero-pad parameters (weights in matmul dtype, biases in f32) ----
    wpos = _pad2(params["wpos"], Dp, N1, mmd)
    bpos = _pad2(params["bpos"].reshape(1, -1), 1, N1)
    w0 = _pad2(params["w0"], N1, N2, mmd)
    b0 = _pad2(params["b0"].reshape(1, -1), 1, N2)
    # Split each (2H, H) block weight into "net" half (rows :H) and "pooled" half
    # (rows H:), stack the three blocks.
    wa = jnp.stack([_pad2(params[f"w{i}"][:H], N2, N2, mmd) for i in (1, 2, 3)])
    wb = jnp.stack([_pad2(params[f"w{i}"][H:], N2, N2, mmd) for i in (1, 2, 3)])
    b123 = jnp.stack([_pad2(params[f"b{i}"].reshape(1, -1), 1, N2) for i in (1, 2, 3)])
    # Fused head: [fc_mean | fc_std].
    whead = _pad2(jnp.concatenate([params["wm"], params["ws"]], axis=1), N2, NH, mmd)
    bhead = _pad2(jnp.concatenate([params["bm"], params["bs"]]).reshape(1, -1), 1, NH)

    param_arrays = [wpos, bpos, w0, b0, wa, wb, b123, whead, bhead]
    param_bytes = sum(int(a.size) * a.dtype.itemsize for a in param_arrays)

    # ---- pad T (duplicate a real point -> max-pool unchanged) and B (zeros) ----
    Tp = _round_up(T, 8)
    if Tp != T:
        p = jnp.concatenate(
            [p, jnp.broadcast_to(p[:, :1, :], (B, Tp - T, D))], axis=1)
    Bp = _round_up(B, 8)
    if Bp != B:
        p = jnp.pad(p, ((0, Bp - B), (0, 0), (0, 0)))

    # Flatten points; keep input f32 (first matmul K is tiny), pad coord dim.
    x = jnp.pad(p.reshape(Bp * Tp, D).astype(f32), ((0, 0), (0, Dp - D)))

    # ---- generation-aware block-batch choice & VMEM budget ----
    num_cores, vmem_phys = _tpu_caps()
    vmem_budget = int(vmem_phys * 0.40)
    # Per-sample per-step bytes: f32 activations + matmul-dtype casts
    # + lane-padded double-buffered input block + double-buffered output rows.
    per_sample = Tp * (N1 + 3 * N2) * 4 + Tp * (N1 + N2) * mm_bytes
    per_sample += 2 * Tp * 128 * 4 + 2 * NH * 4
    fixed = 2 * param_bytes + (1 << 20)   # assume double-buffered params (conservative)

    if block_batch is None:
        block_batch = _pick_block_batch(Bp, Tp, per_sample, fixed,
                                        vmem_budget, num_cores)
    Bb = block_batch
    assert Bp % Bb == 0, "block_batch must divide the (padded) batch size"
    grid = (Bp // Bb,)

    est_vmem = fixed + Bb * per_sample
    vmem_limit = int(min(int(vmem_phys * 0.85),
                         max(32 << 20, int(est_vmem * 1.4))))

    out_shape = jax.ShapeDtypeStruct((Bp, NH), f32)
    out_specs = pl.BlockSpec((Bb, NH), lambda b: (b, 0))

    # Advisory cost estimate for the XLA scheduler.
    flops = 2 * B * (T * (D * 2 * H + 2 * H * H + 3 * 2 * H * H) + H * 2 * c_dim)
    bytes_acc = int(x.size) * 4 + param_bytes + Bp * NH * 4
    try:
        cost = pl.CostEstimate(flops=int(flops), transcendentals=0,
                               bytes_accessed=int(bytes_acc))
    except Exception:
        cost = None

    def _const_spec(a, single_buffer):
        nd = a.ndim
        idx = lambda b, nd=nd: (0,) * nd
        if single_buffer:
            try:
                # Invariant slabs: no re-DMA across grid steps, so a single
                # buffer halves their resident VMEM.
                return pl.BlockSpec(a.shape, idx, pipeline_mode=pl.Buffered(1))
            except Exception:
                pass
        return pl.BlockSpec(a.shape, idx)

    def _build(single_buffer_params):
        in_specs = [pl.BlockSpec((Bb * Tp, Dp), lambda b: (b, 0))]
        in_specs += [_const_spec(a, single_buffer_params) for a in param_arrays]
        return pl.pallas_call(
            _make_kernel(Tp, mmd),
            out_shape=out_shape,
            grid_spec=pl.GridSpec(grid=grid, in_specs=in_specs,
                                  out_specs=out_specs),
            compiler_params=pltpu.CompilerParams(
                dimension_semantics=("parallel",),
                vmem_limit_bytes=vmem_limit),
            cost_estimate=cost,
        )

    try:
        out = jax.block_until_ready(_build(True)(x, *param_arrays))
    except Exception:
        # Fallback: default double-buffered parameter slabs (always-runs path).
        out = jax.block_until_ready(_build(False)(x, *param_arrays))

    c_mean = out[:B, :c_dim]
    c_std = out[:B, c_dim:2 * c_dim]
    return c_mean, c_std


# ----------------------------- params / reference ----------------------------

def init_params(key, dim=3, hidden_dim=128, c_dim=128):
    """Raw params in (in_features, out_features) layout; y = x @ W + b."""
    H = hidden_dim

    def lin(k, fan_in, fan_out):
        kw, kb = jax.random.split(k)
        bound = 1.0 / (fan_in ** 0.5)
        W = jax.random.uniform(kw, (fan_in, fan_out), jnp.float32, -bound, bound)
        b = jax.random.uniform(kb, (fan_out,), jnp.float32, -bound, bound)
        return W, b

    ks = jax.random.split(key, 5)
    wpos, bpos = lin(ks[0], dim, 2 * H)
    w0, b0 = lin(ks[1], 2 * H, H)
    w1, b1 = lin(ks[2], 2 * H, H)
    w2, b2 = lin(ks[3], 2 * H, H)
    w3, b3 = lin(ks[4], 2 * H, H)

    # fc_mean: weight=0, bias=0 ; fc_std: weight=0, bias=-10 (as in PyTorch __init__)
    wm = jnp.zeros((H, c_dim), jnp.float32)
    bm = jnp.zeros((c_dim,), jnp.float32)
    ws = jnp.zeros((H, c_dim), jnp.float32)
    bs = jnp.full((c_dim,), -10.0, jnp.float32)

    return dict(wpos=wpos, bpos=bpos, w0=w0, b0=b0,
                w1=w1, b1=b1, w2=w2, b2=b2, w3=w3, b3=b3,
                wm=wm, bm=bm, ws=ws, bs=bs)


def pointnet_vae_reference(p, params):
    """Pure-JAX reference mirroring the PyTorch forward exactly (f32)."""
    relu = jax.nn.relu
    net = p @ params["wpos"] + params["bpos"]
    net = relu(net) @ params["w0"] + params["b0"]
    for i in (1, 2, 3):
        pooled = jnp.max(net, axis=1, keepdims=True)
        cat = jnp.concatenate([net, jnp.broadcast_to(pooled, net.shape)], axis=-1)
        net = relu(cat) @ params[f"w{i}"] + params[f"b{i}"]
    net = jnp.max(net, axis=1)
    c_mean = relu(net) @ params["wm"] + params["bm"]
    c_std = relu(net) @ params["ws"] + params["bs"]
    return c_mean, c_std


# ----------------------------- test -----------------------------------------

if __name__ == "__main__":
    # Small shapes that exercise the T-padding (11 -> 16) and B-padding (20 -> 24).
    B, T, D = 20, 11, 3
    HIDDEN, C_DIM = 32, 16

    key = jax.random.PRNGKey(0)
    k_p, k_w, k_h = jax.random.split(key, 3)
    p = jax.random.normal(k_p, (B, T, D), jnp.float32)
    params = init_params(k_w, dim=D, hidden_dim=HIDDEN, c_dim=C_DIM)

    # 1) Faithful PyTorch init (zero head weights, bias 0 / -10): head output is
    #    bias-only, so the comparison is essentially exact even on the bf16 path.
    c_mean, c_std = pointnet_vae_pallas(p, params, hidden_dim=HIDDEN, c_dim=C_DIM)
    jax.block_until_ready((c_mean, c_std))
    ref_mean, ref_std = pointnet_vae_reference(p, params)
    assert jnp.allclose(c_mean, ref_mean, atol=1e-5, rtol=1e-5)
    assert jnp.allclose(c_std, ref_std, atol=1e-5, rtol=1e-5)

    # Non-trivial head weights so the fused head matmul is exercised.
    k1, k2, k3, k4 = jax.random.split(k_h, 4)
    params2 = dict(params)
    params2["wm"] = 0.1 * jax.random.normal(k1, (HIDDEN, C_DIM), jnp.float32)
    params2["bm"] = 0.1 * jax.random.normal(k2, (C_DIM,), jnp.float32)
    params2["ws"] = 0.1 * jax.random.normal(k3, (HIDDEN, C_DIM), jnp.float32)
    params2["bs"] = 0.1 * jax.random.normal(k4, (C_DIM,), jnp.float32)
    rm2, rs2 = pointnet_vae_reference(p, params2)

    # 2) f32 matmul path: tight tolerance against the f32 reference.
    m32, s32 = pointnet_vae_pallas(p, params2, hidden_dim=HIDDEN, c_dim=C_DIM,
                                   matmul_dtype=jnp.float32)
    jax.block_until_ready((m32, s32))
    assert jnp.allclose(m32, rm2, atol=1e-3, rtol=1e-3)
    assert jnp.allclose(s32, rs2, atol=1e-3, rtol=1e-3)

    # 3) Default bf16 matmul path: looser tolerance (bf16 operand rounding).
    mbf, sbf = pointnet_vae_pallas(p, params2, hidden_dim=HIDDEN, c_dim=C_DIM)
    jax.block_until_ready((mbf, sbf))
    assert jnp.allclose(mbf, rm2, atol=5e-2, rtol=5e-2)
    assert jnp.allclose(sbf, rs2, atol=5e-2, rtol=5e-2)

    print("KERNEL_OK")
</pallas_src>

<mosaic_0001>
module attributes {stable_mosaic.version = 11 : i64} {
  func.func @kernel(%arg0: i32, %arg1: memref<384x8xf32, #tpu.memory_space<vmem>>, %arg2: memref<8x128xbf16, #tpu.memory_space<vmem>>, %arg3: memref<1x128xf32, #tpu.memory_space<vmem>>, %arg4: memref<128x128xbf16, #tpu.memory_space<vmem>>, %arg5: memref<1x128xf32, #tpu.memory_space<vmem>>, %arg6: memref<3x128x128xbf16, #tpu.memory_space<vmem>>, %arg7: memref<3x128x128xbf16, #tpu.memory_space<vmem>>, %arg8: memref<3x1x128xf32, #tpu.memory_space<vmem>>, %arg9: memref<128x128xbf16, #tpu.memory_space<vmem>>, %arg10: memref<1x128xf32, #tpu.memory_space<vmem>>, %arg11: memref<24x128xf32, #tpu.memory_space<vmem>>) attributes {dimension_semantics = [#tpu.dimension_semantics<parallel>], iteration_bounds = array<i64: 1>, scalar_prefetch = 0 : i64, scratch_operands = 0 : i64, tpu.core_type = #tpu.core_type<tc>, window_params = [{transform_indices = @transform_0, window_bounds = array<i64: 384, 8>}, {pipeline_mode = #tpu.pipeline_mode<synchronous>, transform_indices = @transform_1, window_bounds = array<i64: 8, 128>}, {pipeline_mode = #tpu.pipeline_mode<synchronous>, transform_indices = @transform_2, window_bounds = array<i64: 1, 128>}, {pipeline_mode = #tpu.pipeline_mode<synchronous>, transform_indices = @transform_3, window_bounds = array<i64: 128, 128>}, {pipeline_mode = #tpu.pipeline_mode<synchronous>, transform_indices = @transform_4, window_bounds = array<i64: 1, 128>}, {pipeline_mode = #tpu.pipeline_mode<synchronous>, transform_indices = @transform_5, window_bounds = array<i64: 3, 128, 128>}, {pipeline_mode = #tpu.pipeline_mode<synchronous>, transform_indices = @transform_6, window_bounds = array<i64: 3, 128, 128>}, {pipeline_mode = #tpu.pipeline_mode<synchronous>, transform_indices = @transform_7, window_bounds = array<i64: 3, 1, 128>}, {pipeline_mode = #tpu.pipeline_mode<synchronous>, transform_indices = @transform_8, window_bounds = array<i64: 128, 128>}, {pipeline_mode = #tpu.pipeline_mode<synchronous>, transform_indices = @transform_9, window_bounds = array<i64: 1, 128>}, {transform_indices = @transform_10, window_bounds = array<i64: 24, 128>}]} {
    %c0 = arith.constant 0 : index
    %c0_0 = arith.constant 0 : index
    %0 = vector.load %arg1[%c0, %c0_0] : memref<384x8xf32, #tpu.memory_space<vmem>>, vector<384x8xf32>
    %1 = arith.truncf %0 : vector<384x8xf32> to vector<384x8xbf16>
    %c0_1 = arith.constant 0 : index
    %c0_2 = arith.constant 0 : index
    %2 = vector.load %arg2[%c0_1, %c0_2] : memref<8x128xbf16, #tpu.memory_space<vmem>>, vector<8x128xbf16>
    %cst = arith.constant dense<0.000000e+00> : vector<384x128xf32>
    %3 = tpu.matmul %1, %2, %cst {dimension_numbers = #tpu.dot_dimension_numbers<[1], [0], [0], [1], [0, 0, 1, 1], [], []>} : vector<384x8xbf16>, vector<8x128xbf16>, vector<384x128xf32> -> vector<384x128xf32>
    %c0_3 = arith.constant 0 : index
    %c0_4 = arith.constant 0 : index
    %4 = vector.load %arg3[%c0_3, %c0_4] : memref<1x128xf32, #tpu.memory_space<vmem>>, vector<1x128xf32>
    %5 = vector.broadcast %4 : vector<1x128xf32> to vector<384x128xf32>
    %6 = arith.addf %3, %5 : vector<384x128xf32>
    %cst_5 = arith.constant 0.000000e+00 : f32
    %7 = vector.broadcast %cst_5 : f32 to vector<384x128xf32>
    %8 = arith.maximumf %6, %7 : vector<384x128xf32>
    %9 = arith.truncf %8 : vector<384x128xf32> to vector<384x128xbf16>
    %c0_6 = arith.constant 0 : index
    %c0_7 = arith.constant 0 : index
    %10 = vector.load %arg4[%c0_6, %c0_7] : memref<128x128xbf16, #tpu.memory_space<vmem>>, vector<128x128xbf16>
    %cst_8 = arith.constant dense<0.000000e+00> : vector<384x128xf32>
    %11 = tpu.matmul %9, %10, %cst_8 {dimension_numbers = #tpu.dot_dimension_numbers<[1], [0], [0], [1], [0, 0, 1, 1], [], []>} : vector<384x128xbf16>, vector<128x128xbf16>, vector<384x128xf32> -> vector<384x128xf32>
    %c0_9 = arith.constant 0 : index
    %c0_10 = arith.constant 0 : index
    %12 = vector.load %arg5[%c0_9, %c0_10] : memref<1x128xf32, #tpu.memory_space<vmem>>, vector<1x128xf32>
    %13 = vector.broadcast %12 : vector<1x128xf32> to vector<384x128xf32>
    %14 = arith.addf %11, %13 : vector<384x128xf32>
    %cst_11 = arith.constant 0.000000e+00 : f32
    %15 = vector.broadcast %cst_11 : f32 to vector<384x128xf32>
    %16 = arith.maximumf %14, %15 : vector<384x128xf32>
    %17 = vector.shape_cast %16 : vector<384x128xf32> to vector<24x16x128xf32>
    %cst_12 = arith.constant dense<0xFF800000> : vector<24x128xf32>
    %18 = vector.multi_reduction <maximumf>, %17, %cst_12 [1] : vector<24x16x128xf32> to vector<24x128xf32>
    %19 = arith.truncf %16 : vector<384x128xf32> to vector<384x128xbf16>
    %c0_13 = arith.constant 0 : index
    %c0_14 = arith.constant 0 : index
    %c0_15 = arith.constant 0 : index
    %20 = vector.load %arg6[%c0_13, %c0_14, %c0_15] : memref<3x128x128xbf16, #tpu.memory_space<vmem>>, vector<1x128x128xbf16>
    %21 = vector.shape_cast %20 : vector<1x128x128xbf16> to vector<128x128xbf16>
    %cst_16 = arith.constant dense<0.000000e+00> : vector<384x128xf32>
    %22 = tpu.matmul %19, %21, %cst_16 {dimension_numbers = #tpu.dot_dimension_numbers<[1], [0], [0], [1], [0, 0, 1, 1], [], []>} : vector<384x128xbf16>, vector<128x128xbf16>, vector<384x128xf32> -> vector<384x128xf32>
    %23 = arith.truncf %18 : vector<24x128xf32> to vector<24x128xbf16>
    %c0_17 = arith.constant 0 : index
    %c0_18 = arith.constant 0 : index
    %c0_19 = arith.constant 0 : index
    %24 = vector.load %arg7[%c0_17, %c0_18, %c0_19] : memref<3x128x128xbf16, #tpu.memory_space<vmem>>, vector<1x128x128xbf16>
    %25 = vector.shape_cast %24 : vector<1x128x128xbf16> to vector<128x128xbf16>
    %cst_20 = arith.constant dense<0.000000e+00> : vector<24x128xf32>
    %26 = tpu.matmul %23, %25, %cst_20 {dimension_numbers = #tpu.dot_dimension_numbers<[1], [0], [0], [1], [0, 0, 1, 1], [], []>} : vector<24x128xbf16>, vector<128x128xbf16>, vector<24x128xf32> -> vector<24x128xf32>
    %c0_21 = arith.constant 0 : index
    %c0_22 = arith.constant 0 : index
    %c0_23 = arith.constant 0 : index
    %27 = vector.load %arg8[%c0_21, %c0_22, %c0_23] : memref<3x1x128xf32, #tpu.memory_space<vmem>>, vector<1x1x128xf32>
    %28 = vector.shape_cast %27 : vector<1x1x128xf32> to vector<1x128xf32>
    %29 = vector.broadcast %28 : vector<1x128xf32> to vector<24x128xf32>
    %30 = arith.addf %26, %29 : vector<24x128xf32>
    %31 = vector.shape_cast %22 : vector<384x128xf32> to vector<24x16x128xf32>
    %32 = vector.shape_cast %30 : vector<24x128xf32> to vector<24x1x128xf32>
    %33 = vector.broadcast %32 : vector<24x1x128xf32> to vector<24x16x128xf32>
    %34 = arith.addf %31, %33 : vector<24x16x128xf32>
    %35 = vector.shape_cast %34 : vector<24x16x128xf32> to vector<384x128xf32>
    %cst_24 = arith.constant 0.000000e+00 : f32
    %36 = vector.broadcast %cst_24 : f32 to vector<384x128xf32>
    %37 = arith.maximumf %35, %36 : vector<384x128xf32>
    %38 = vector.shape_cast %37 : vector<384x128xf32> to vector<24x16x128xf32>
    %cst_25 = arith.constant dense<0xFF800000> : vector<24x128xf32>
    %39 = vector.multi_reduction <maximumf>, %38, %cst_25 [1] : vector<24x16x128xf32> to vector<24x128xf32>
    %40 = arith.truncf %37 : vector<384x128xf32> to vector<384x128xbf16>
    %c1 = arith.constant 1 : index
    %c0_26 = arith.constant 0 : index
    %c0_27 = arith.constant 0 : index
    %41 = vector.load %arg6[%c1, %c0_26, %c0_27] : memref<3x128x128xbf16, #tpu.memory_space<vmem>>, vector<1x128x128xbf16>
    %42 = vector.shape_cast %41 : vector<1x128x128xbf16> to vector<128x128xbf16>
    %cst_28 = arith.constant dense<0.000000e+00> : vector<384x128xf32>
    %43 = tpu.matmul %40, %42, %cst_28 {dimension_numbers = #tpu.dot_dimension_numbers<[1], [0], [0], [1], [0, 0, 1, 1], [], []>} : vector<384x128xbf16>, vector<128x128xbf16>, vector<384x128xf32> -> vector<384x128xf32>
    %44 = arith.truncf %39 : vector<24x128xf32> to vector<24x128xbf16>
    %c1_29 = arith.constant 1 : index
    %c0_30 = arith.constant 0 : index
    %c0_31 = arith.constant 0 : index
    %45 = vector.load %arg7[%c1_29, %c0_30, %c0_31] : memref<3x128x128xbf16, #tpu.memory_space<vmem>>, vector<1x128x128xbf16>
    %46 = vector.shape_cast %45 : vector<1x128x128xbf16> to vector<128x128xbf16>
    %cst_32 = arith.constant dense<0.000000e+00> : vector<24x128xf32>
    %47 = tpu.matmul %44, %46, %cst_32 {dimension_numbers = #tpu.dot_dimension_numbers<[1], [0], [0], [1], [0, 0, 1, 1], [], []>} : vector<24x128xbf16>, vector<128x128xbf16>, vector<24x128xf32> -> vector<24x128xf32>
    %c1_33 = arith.constant 1 : index
    %c0_34 = arith.constant 0 : index
    %c0_35 = arith.constant 0 : index
    %48 = vector.load %arg8[%c1_33, %c0_34, %c0_35] : memref<3x1x128xf32, #tpu.memory_space<vmem>>, vector<1x1x128xf32>
    %49 = vector.shape_cast %48 : vector<1x1x128xf32> to vector<1x128xf32>
    %50 = vector.broadcast %49 : vector<1x128xf32> to vector<24x128xf32>
    %51 = arith.addf %47, %50 : vector<24x128xf32>
    %52 = vector.shape_cast %43 : vector<384x128xf32> to vector<24x16x128xf32>
    %53 = vector.shape_cast %51 : vector<24x128xf32> to vector<24x1x128xf32>
    %54 = vector.broadcast %53 : vector<24x1x128xf32> to vector<24x16x128xf32>
    %55 = arith.addf %52, %54 : vector<24x16x128xf32>
    %56 = vector.shape_cast %55 : vector<24x16x128xf32> to vector<384x128xf32>
    %cst_36 = arith.constant 0.000000e+00 : f32
    %57 = vector.broadcast %cst_36 : f32 to vector<384x128xf32>
    %58 = arith.maximumf %56, %57 : vector<384x128xf32>
    %59 = vector.shape_cast %58 : vector<384x128xf32> to vector<24x16x128xf32>
    %cst_37 = arith.constant dense<0xFF800000> : vector<24x128xf32>
    %60 = vector.multi_reduction <maximumf>, %59, %cst_37 [1] : vector<24x16x128xf32> to vector<24x128xf32>
    %61 = arith.truncf %58 : vector<384x128xf32> to vector<384x128xbf16>
    %c2 = arith.constant 2 : index
    %c0_38 = arith.constant 0 : index
    %c0_39 = arith.constant 0 : index
    %62 = vector.load %arg6[%c2, %c0_38, %c0_39] : memref<3x128x128xbf16, #tpu.memory_space<vmem>>, vector<1x128x128xbf16>
    %63 = vector.shape_cast %62 : vector<1x128x128xbf16> to vector<128x128xbf16>
    %cst_40 = arith.constant dense<0.000000e+00> : vector<384x128xf32>
    %64 = tpu.matmul %61, %63, %cst_40 {dimension_numbers = #tpu.dot_dimension_numbers<[1], [0], [0], [1], [0, 0, 1, 1], [], []>} : vector<384x128xbf16>, vector<128x128xbf16>, vector<384x128xf32> -> vector<384x128xf32>
    %65 = arith.truncf %60 : vector<24x128xf32> to vector<24x128xbf16>
    %c2_41 = arith.constant 2 : index
    %c0_42 = arith.constant 0 : index
    %c0_43 = arith.constant 0 : index
    %66 = vector.load %arg7[%c2_41, %c0_42, %c0_43] : memref<3x128x128xbf16, #tpu.memory_space<vmem>>, vector<1x128x128xbf16>
    %67 = vector.shape_cast %66 : vector<1x128x128xbf16> to vector<128x128xbf16>
    %cst_44 = arith.constant dense<0.000000e+00> : vector<24x128xf32>
    %68 = tpu.matmul %65, %67, %cst_44 {dimension_numbers = #tpu.dot_dimension_numbers<[1], [0], [0], [1], [0, 0, 1, 1], [], []>} : vector<24x128xbf16>, vector<128x128xbf16>, vector<24x128xf32> -> vector<24x128xf32>
    %c2_45 = arith.constant 2 : index
    %c0_46 = arith.constant 0 : index
    %c0_47 = arith.constant 0 : index
    %69 = vector.load %arg8[%c2_45, %c0_46, %c0_47] : memref<3x1x128xf32, #tpu.memory_space<vmem>>, vector<1x1x128xf32>
    %70 = vector.shape_cast %69 : vector<1x1x128xf32> to vector<1x128xf32>
    %71 = vector.broadcast %70 : vector<1x128xf32> to vector<24x128xf32>
    %72 = arith.addf %68, %71 : vector<24x128xf32>
    %73 = vector.shape_cast %64 : vector<384x128xf32> to vector<24x16x128xf32>
    %74 = vector.shape_cast %72 : vector<24x128xf32> to vector<24x1x128xf32>
    %75 = vector.broadcast %74 : vector<24x1x128xf32> to vector<24x16x128xf32>
    %76 = arith.addf %73, %75 : vector<24x16x128xf32>
    %77 = vector.shape_cast %76 : vector<24x16x128xf32> to vector<384x128xf32>
    %78 = vector.shape_cast %77 : vector<384x128xf32> to vector<24x16x128xf32>
    %cst_48 = arith.constant dense<0xFF800000> : vector<24x128xf32>
    %79 = vector.multi_reduction <maximumf>, %78, %cst_48 [1] : vector<24x16x128xf32> to vector<24x128xf32>
    %cst_49 = arith.constant 0.000000e+00 : f32
    %80 = vector.broadcast %cst_49 : f32 to vector<24x128xf32>
    %81 = arith.maximumf %79, %80 : vector<24x128xf32>
    %82 = arith.truncf %81 : vector<24x128xf32> to vector<24x128xbf16>
    %c0_50 = arith.constant 0 : index
    %c0_51 = arith.constant 0 : index
    %83 = vector.load %arg9[%c0_50, %c0_51] : memref<128x128xbf16, #tpu.memory_space<vmem>>, vector<128x128xbf16>
    %cst_52 = arith.constant dense<0.000000e+00> : vector<24x128xf32>
    %84 = tpu.matmul %82, %83, %cst_52 {dimension_numbers = #tpu.dot_dimension_numbers<[1], [0], [0], [1], [0, 0, 1, 1], [], []>} : vector<24x128xbf16>, vector<128x128xbf16>, vector<24x128xf32> -> vector<24x128xf32>
    %c0_53 = arith.constant 0 : index
    %c0_54 = arith.constant 0 : index
    %85 = vector.load %arg10[%c0_53, %c0_54] : memref<1x128xf32, #tpu.memory_space<vmem>>, vector<1x128xf32>
    %86 = vector.broadcast %85 : vector<1x128xf32> to vector<24x128xf32>
    %87 = arith.addf %84, %86 : vector<24x128xf32>
    %c0_55 = arith.constant 0 : index
    %c0_56 = arith.constant 0 : index
    %88 = vector.load %arg11[%c0_55, %c0_56] : memref<24x128xf32, #tpu.memory_space<vmem>>, vector<24x128xf32>
    tpu.vector_store %arg11[%c0_55, %c0_56], %87 {strides = array<i32>} : memref<24x128xf32, #tpu.memory_space<vmem>>, vector<24x128xf32>,
    return
  }
  func.func @transform_0(%arg0: i32) -> (i32, i32) {
    %c0_i32 = arith.constant 0 : i32
    %c0_i32_0 = arith.constant 0 : i32
    return %arg0, %c0_i32 : i32, i32
  }
  func.func @transform_1(%arg0: i32) -> (i32, i32) {
    %c0_i32 = arith.constant 0 : i32
    %c0_i32_0 = arith.constant 0 : i32
    %c0_i32_1 = arith.constant 0 : i32
    return %c0_i32, %c0_i32_0 : i32, i32
  }
  func.func @transform_2(%arg0: i32) -> (i32, i32) {
    %c0_i32 = arith.constant 0 : i32
    %c0_i32_0 = arith.constant 0 : i32
    %c0_i32_1 = arith.constant 0 : i32
    return %c0_i32, %c0_i32_0 : i32, i32
  }
  func.func @transform_3(%arg0: i32) -> (i32, i32) {
    %c0_i32 = arith.constant 0 : i32
    %c0_i32_0 = arith.constant 0 : i32
    %c0_i32_1 = arith.constant 0 : i32
    return %c0_i32, %c0_i32_0 : i32, i32
  }
  func.func @transform_4(%arg0: i32) -> (i32, i32) {
    %c0_i32 = arith.constant 0 : i32
    %c0_i32_0 = arith.constant 0 : i32
    %c0_i32_1 = arith.constant 0 : i32
    return %c0_i32, %c0_i32_0 : i32, i32
  }
  func.func @transform_5(%arg0: i32) -> (i32, i32, i32) {
    %c0_i32 = arith.constant 0 : i32
    %c0_i32_0 = arith.constant 0 : i32
    %c0_i32_1 = arith.constant 0 : i32
    %c0_i32_2 = arith.constant 0 : i32
    return %c0_i32, %c0_i32_0, %c0_i32_1 : i32, i32, i32
  }
  func.func @transform_6(%arg0: i32) -> (i32, i32, i32) {
    %c0_i32 = arith.constant 0 : i32
    %c0_i32_0 = arith.constant 0 : i32
    %c0_i32_1 = arith.constant 0 : i32
    %c0_i32_2 = arith.constant 0 : i32
    return %c0_i32, %c0_i32_0, %c0_i32_1 : i32, i32, i32
  }
  func.func @transform_7(%arg0: i32) -> (i32, i32, i32) {
    %c0_i32 = arith.constant 0 : i32
    %c0_i32_0 = arith.constant 0 : i32
    %c0_i32_1 = arith.constant 0 : i32
    %c0_i32_2 = arith.constant 0 : i32
    return %c0_i32, %c0_i32_0, %c0_i32_1 : i32, i32, i32
  }
  func.func @transform_8(%arg0: i32) -> (i32, i32) {
    %c0_i32 = arith.constant 0 : i32
    %c0_i32_0 = arith.constant 0 : i32
    %c0_i32_1 = arith.constant 0 : i32
    return %c0_i32, %c0_i32_0 : i32, i32
  }
  func.func @transform_9(%arg0: i32) -> (i32, i32) {
    %c0_i32 = arith.constant 0 : i32
    %c0_i32_0 = arith.constant 0 : i32
    %c0_i32_1 = arith.constant 0 : i32
    return %c0_i32, %c0_i32_0 : i32, i32
  }
  func.func @transform_10(%arg0: i32) -> (i32, i32) {
    %c0_i32 = arith.constant 0 : i32
    %c0_i32_0 = arith.constant 0 : i32
    return %arg0, %c0_i32 : i32, i32
  }
}

module attributes {stable_mosaic.version = 11 : i64} {
  func.func @kernel(%arg0: i32, %arg1: memref<384x8xf32, #tpu.memory_space<vmem>>, %arg2: memref<8x128xbf16, #tpu.memory_space<vmem>>, %arg3: memref<1x128xf32, #tpu.memory_space<vmem>>, %arg4: memref<128x128xbf16, #tpu.memory_space<vmem>>, %arg5: memref<1x128xf32, #tpu.memory_space<vmem>>, %arg6: memref<3x128x128xbf16, #tpu.memory_space<vmem>>, %arg7: memref<3x128x128xbf16, #tpu.memory_space<vmem>>, %arg8: memref<3x1x128xf32, #tpu.memory_space<vmem>>, %arg9: memref<128x128xbf16, #tpu.memory_space<vmem>>, %arg10: memref<1x128xf32, #tpu.memory_space<vmem>>, %arg11: memref<24x128xf32, #tpu.memory_space<vmem>>) attributes {dimension_semantics = [#tpu.dimension_semantics<parallel>], iteration_bounds = array<i64: 1>, scalar_prefetch = 0 : i64, scratch_operands = 0 : i64, tpu.core_type = #tpu.core_type<tc>, window_params = [{transform_indices = @transform_0, window_bounds = array<i64: 384, 8>}, {pipeline_mode = #tpu.pipeline_mode<synchronous>, transform_indices = @transform_1, window_bounds = array<i64: 8, 128>}, {pipeline_mode = #tpu.pipeline_mode<synchronous>, transform_indices = @transform_2, window_bounds = array<i64: 1, 128>}, {pipeline_mode = #tpu.pipeline_mode<synchronous>, transform_indices = @transform_3, window_bounds = array<i64: 128, 128>}, {pipeline_mode = #tpu.pipeline_mode<synchronous>, transform_indices = @transform_4, window_bounds = array<i64: 1, 128>}, {pipeline_mode = #tpu.pipeline_mode<synchronous>, transform_indices = @transform_5, window_bounds = array<i64: 3, 128, 128>}, {pipeline_mode = #tpu.pipeline_mode<synchronous>, transform_indices = @transform_6, window_bounds = array<i64: 3, 128, 128>}, {pipeline_mode = #tpu.pipeline_mode<synchronous>, transform_indices = @transform_7, window_bounds = array<i64: 3, 1, 128>}, {pipeline_mode = #tpu.pipeline_mode<synchronous>, transform_indices = @transform_8, window_bounds = array<i64: 128, 128>}, {pipeline_mode = #tpu.pipeline_mode<synchronous>, transform_indices = @transform_9, window_bounds = array<i64: 1, 128>}, {transform_indices = @transform_10, window_bounds = array<i64: 24, 128>}]} {
    %c0 = arith.constant 0 : index
    %c0_0 = arith.constant 0 : index
    %0 = vector.load %arg1[%c0, %c0_0] : memref<384x8xf32, #tpu.memory_space<vmem>>, vector<384x8xf32>
    %1 = arith.truncf %0 : vector<384x8xf32> to vector<384x8xbf16>
    %c0_1 = arith.constant 0 : index
    %c0_2 = arith.constant 0 : index
    %2 = vector.load %arg2[%c0_1, %c0_2] : memref<8x128xbf16, #tpu.memory_space<vmem>>, vector<8x128xbf16>
    %cst = arith.constant dense<0.000000e+00> : vector<384x128xf32>
    %3 = tpu.matmul %1, %2, %cst {dimension_numbers = #tpu.dot_dimension_numbers<[1], [0], [0], [1], [0, 0, 1, 1], [], []>} : vector<384x8xbf16>, vector<8x128xbf16>, vector<384x128xf32> -> vector<384x128xf32>
    %c0_3 = arith.constant 0 : index
    %c0_4 = arith.constant 0 : index
    %4 = vector.load %arg3[%c0_3, %c0_4] : memref<1x128xf32, #tpu.memory_space<vmem>>, vector<1x128xf32>
    %5 = vector.broadcast %4 : vector<1x128xf32> to vector<384x128xf32>
    %6 = arith.addf %3, %5 : vector<384x128xf32>
    %cst_5 = arith.constant 0.000000e+00 : f32
    %7 = vector.broadcast %cst_5 : f32 to vector<384x128xf32>
    %8 = arith.maximumf %6, %7 : vector<384x128xf32>
    %9 = arith.truncf %8 : vector<384x128xf32> to vector<384x128xbf16>
    %c0_6 = arith.constant 0 : index
    %c0_7 = arith.constant 0 : index
    %10 = vector.load %arg4[%c0_6, %c0_7] : memref<128x128xbf16, #tpu.memory_space<vmem>>, vector<128x128xbf16>
    %cst_8 = arith.constant dense<0.000000e+00> : vector<384x128xf32>
    %11 = tpu.matmul %9, %10, %cst_8 {dimension_numbers = #tpu.dot_dimension_numbers<[1], [0], [0], [1], [0, 0, 1, 1], [], []>} : vector<384x128xbf16>, vector<128x128xbf16>, vector<384x128xf32> -> vector<384x128xf32>
    %c0_9 = arith.constant 0 : index
    %c0_10 = arith.constant 0 : index
    %12 = vector.load %arg5[%c0_9, %c0_10] : memref<1x128xf32, #tpu.memory_space<vmem>>, vector<1x128xf32>
    %13 = vector.broadcast %12 : vector<1x128xf32> to vector<384x128xf32>
    %14 = arith.addf %11, %13 : vector<384x128xf32>
    %cst_11 = arith.constant 0.000000e+00 : f32
    %15 = vector.broadcast %cst_11 : f32 to vector<384x128xf32>
    %16 = arith.maximumf %14, %15 : vector<384x128xf32>
    %17 = vector.shape_cast %16 : vector<384x128xf32> to vector<24x16x128xf32>
    %cst_12 = arith.constant dense<0xFF800000> : vector<24x128xf32>
    %18 = vector.multi_reduction <maximumf>, %17, %cst_12 [1] : vector<24x16x128xf32> to vector<24x128xf32>
    %19 = arith.truncf %16 : vector<384x128xf32> to vector<384x128xbf16>
    %c0_13 = arith.constant 0 : index
    %c0_14 = arith.constant 0 : index
    %c0_15 = arith.constant 0 : index
    %20 = vector.load %arg6[%c0_13, %c0_14, %c0_15] : memref<3x128x128xbf16, #tpu.memory_space<vmem>>, vector<1x128x128xbf16>
    %21 = vector.shape_cast %20 : vector<1x128x128xbf16> to vector<128x128xbf16>
    %cst_16 = arith.constant dense<0.000000e+00> : vector<384x128xf32>
    %22 = tpu.matmul %19, %21, %cst_16 {dimension_numbers = #tpu.dot_dimension_numbers<[1], [0], [0], [1], [0, 0, 1, 1], [], []>} : vector<384x128xbf16>, vector<128x128xbf16>, vector<384x128xf32> -> vector<384x128xf32>
    %23 = arith.truncf %18 : vector<24x128xf32> to vector<24x128xbf16>
    %c0_17 = arith.constant 0 : index
    %c0_18 = arith.constant 0 : index
    %c0_19 = arith.constant 0 : index
    %24 = vector.load %arg7[%c0_17, %c0_18, %c0_19] : memref<3x128x128xbf16, #tpu.memory_space<vmem>>, vector<1x128x128xbf16>
    %25 = vector.shape_cast %24 : vector<1x128x128xbf16> to vector<128x128xbf16>
    %cst_20 = arith.constant dense<0.000000e+00> : vector<24x128xf32>
    %26 = tpu.matmul %23, %25, %cst_20 {dimension_numbers = #tpu.dot_dimension_numbers<[1], [0], [0], [1], [0, 0, 1, 1], [], []>} : vector<24x128xbf16>, vector<128x128xbf16>, vector<24x128xf32> -> vector<24x128xf32>
    %c0_21 = arith.constant 0 : index
    %c0_22 = arith.constant 0 : index
    %c0_23 = arith.constant 0 : index
    %27 = vector.load %arg8[%c0_21, %c0_22, %c0_23] : memref<3x1x128xf32, #tpu.memory_space<vmem>>, vector<1x1x128xf32>
    %28 = vector.shape_cast %27 : vector<1x1x128xf32> to vector<1x128xf32>
    %29 = vector.broadcast %28 : vector<1x128xf32> to vector<24x128xf32>
    %30 = arith.addf %26, %29 : vector<24x128xf32>
    %31 = vector.shape_cast %22 : vector<384x128xf32> to vector<24x16x128xf32>
    %32 = vector.shape_cast %30 : vector<24x128xf32> to vector<24x1x128xf32>
    %33 = vector.broadcast %32 : vector<24x1x128xf32> to vector<24x16x128xf32>
    %34 = arith.addf %31, %33 : vector<24x16x128xf32>
    %35 = vector.shape_cast %34 : vector<24x16x128xf32> to vector<384x128xf32>
    %cst_24 = arith.constant 0.000000e+00 : f32
    %36 = vector.broadcast %cst_24 : f32 to vector<384x128xf32>
    %37 = arith.maximumf %35, %36 : vector<384x128xf32>
    %38 = vector.shape_cast %37 : vector<384x128xf32> to vector<24x16x128xf32>
    %cst_25 = arith.constant dense<0xFF800000> : vector<24x128xf32>
    %39 = vector.multi_reduction <maximumf>, %38, %cst_25 [1] : vector<24x16x128xf32> to vector<24x128xf32>
    %40 = arith.truncf %37 : vector<384x128xf32> to vector<384x128xbf16>
    %c1 = arith.constant 1 : index
    %c0_26 = arith.constant 0 : index
    %c0_27 = arith.constant 0 : index
    %41 = vector.load %arg6[%c1, %c0_26, %c0_27] : memref<3x128x128xbf16, #tpu.memory_space<vmem>>, vector<1x128x128xbf16>
    %42 = vector.shape_cast %41 : vector<1x128x128xbf16> to vector<128x128xbf16>
    %cst_28 = arith.constant dense<0.000000e+00> : vector<384x128xf32>
    %43 = tpu.matmul %40, %42, %cst_28 {dimension_numbers = #tpu.dot_dimension_numbers<[1], [0], [0], [1], [0, 0, 1, 1], [], []>} : vector<384x128xbf16>, vector<128x128xbf16>, vector<384x128xf32> -> vector<384x128xf32>
    %44 = arith.truncf %39 : vector<24x128xf32> to vector<24x128xbf16>
    %c1_29 = arith.constant 1 : index
    %c0_30 = arith.constant 0 : index
    %c0_31 = arith.constant 0 : index
    %45 = vector.load %arg7[%c1_29, %c0_30, %c0_31] : memref<3x128x128xbf16, #tpu.memory_space<vmem>>, vector<1x128x128xbf16>
    %46 = vector.shape_cast %45 : vector<1x128x128xbf16> to vector<128x128xbf16>
    %cst_32 = arith.constant dense<0.000000e+00> : vector<24x128xf32>
    %47 = tpu.matmul %44, %46, %cst_32 {dimension_numbers = #tpu.dot_dimension_numbers<[1], [0], [0], [1], [0, 0, 1, 1], [], []>} : vector<24x128xbf16>, vector<128x128xbf16>, vector<24x128xf32> -> vector<24x128xf32>
    %c1_33 = arith.constant 1 : index
    %c0_34 = arith.constant 0 : index
    %c0_35 = arith.constant 0 : index
    %48 = vector.load %arg8[%c1_33, %c0_34, %c0_35] : memref<3x1x128xf32, #tpu.memory_space<vmem>>, vector<1x1x128xf32>
    %49 = vector.shape_cast %48 : vector<1x1x128xf32> to vector<1x128xf32>
    %50 = vector.broadcast %49 : vector<1x128xf32> to vector<24x128xf32>
    %51 = arith.addf %47, %50 : vector<24x128xf32>
    %52 = vector.shape_cast %43 : vector<384x128xf32> to vector<24x16x128xf32>
    %53 = vector.shape_cast %51 : vector<24x128xf32> to vector<24x1x128xf32>
    %54 = vector.broadcast %53 : vector<24x1x128xf32> to vector<24x16x128xf32>
    %55 = arith.addf %52, %54 : vector<24x16x128xf32>
    %56 = vector.shape_cast %55 : vector<24x16x128xf32> to vector<384x128xf32>
    %cst_36 = arith.constant 0.000000e+00 : f32
    %57 = vector.broadcast %cst_36 : f32 to vector<384x128xf32>
    %58 = arith.maximumf %56, %57 : vector<384x128xf32>
    %59 = vector.shape_cast %58 : vector<384x128xf32> to vector<24x16x128xf32>
    %cst_37 = arith.constant dense<0xFF800000> : vector<24x128xf32>
    %60 = vector.multi_reduction <maximumf>, %59, %cst_37 [1] : vector<24x16x128xf32> to vector<24x128xf32>
    %61 = arith.truncf %58 : vector<384x128xf32> to vector<384x128xbf16>
    %c2 = arith.constant 2 : index
    %c0_38 = arith.constant 0 : index
    %c0_39 = arith.constant 0 : index
    %62 = vector.load %arg6[%c2, %c0_38, %c0_39] : memref<3x128x128xbf16, #tpu.memory_space<vmem>>, vector<1x128x128xbf16>
    %63 = vector.shape_cast %62 : vector<1x128x128xbf16> to vector<128x128xbf16>
    %cst_40 = arith.constant dense<0.000000e+00> : vector<384x128xf32>
    %64 = tpu.matmul %61, %63, %cst_40 {dimension_numbers = #tpu.dot_dimension_numbers<[1], [0], [0], [1], [0, 0, 1, 1], [], []>} : vector<384x128xbf16>, vector<128x128xbf16>, vector<384x128xf32> -> vector<384x128xf32>
    %65 = arith.truncf %60 : vector<24x128xf32> to vector<24x128xbf16>
    %c2_41 = arith.constant 2 : index
    %c0_42 = arith.constant 0 : index
    %c0_43 = arith.constant 0 : index
    %66 = vector.load %arg7[%c2_41, %c0_42, %c0_43] : memref<3x128x128xbf16, #tpu.memory_space<vmem>>, vector<1x128x128xbf16>
    %67 = vector.shape_cast %66 : vector<1x128x128xbf16> to vector<128x128xbf16>
    %cst_44 = arith.constant dense<0.000000e+00> : vector<24x128xf32>
    %68 = tpu.matmul %65, %67, %cst_44 {dimension_numbers = #tpu.dot_dimension_numbers<[1], [0], [0], [1], [0, 0, 1, 1], [], []>} : vector<24x128xbf16>, vector<128x128xbf16>, vector<24x128xf32> -> vector<24x128xf32>
    %c2_45 = arith.constant 2 : index
    %c0_46 = arith.constant 0 : index
    %c0_47 = arith.constant 0 : index
    %69 = vector.load %arg8[%c2_45, %c0_46, %c0_47] : memref<3x1x128xf32, #tpu.memory_space<vmem>>, vector<1x1x128xf32>
    %70 = vector.shape_cast %69 : vector<1x1x128xf32> to vector<1x128xf32>
    %71 = vector.broadcast %70 : vector<1x128xf32> to vector<24x128xf32>
    %72 = arith.addf %68, %71 : vector<24x128xf32>
    %73 = vector.shape_cast %64 : vector<384x128xf32> to vector<24x16x128xf32>
    %74 = vector.shape_cast %72 : vector<24x128xf32> to vector<24x1x128xf32>
    %75 = vector.broadcast %74 : vector<24x1x128xf32> to vector<24x16x128xf32>
    %76 = arith.addf %73, %75 : vector<24x16x128xf32>
    %77 = vector.shape_cast %76 : vector<24x16x128xf32> to vector<384x128xf32>
    %78 = vector.shape_cast %77 : vector<384x128xf32> to vector<24x16x128xf32>
    %cst_48 = arith.constant dense<0xFF800000> : vector<24x128xf32>
    %79 = vector.multi_reduction <maximumf>, %78, %cst_48 [1] : vector<24x16x128xf32> to vector<24x128xf32>
    %cst_49 = arith.constant 0.000000e+00 : f32
    %80 = vector.broadcast %cst_49 : f32 to vector<24x128xf32>
    %81 = arith.maximumf %79, %80 : vector<24x128xf32>
    %82 = arith.truncf %81 : vector<24x128xf32> to vector<24x128xbf16>
    %c0_50 = arith.constant 0 : index
    %c0_51 = arith.constant 0 : index
    %83 = vector.load %arg9[%c0_50, %c0_51] : memref<128x128xbf16, #tpu.memory_space<vmem>>, vector<128x128xbf16>
    %cst_52 = arith.constant dense<0.000000e+00> : vector<24x128xf32>
    %84 = tpu.matmul %82, %83, %cst_52 {dimension_numbers = #tpu.dot_dimension_numbers<[1], [0], [0], [1], [0, 0, 1, 1], [], []>} : vector<24x128xbf16>, vector<128x128xbf16>, vector<24x128xf32> -> vector<24x128xf32>
    %c0_53 = arith.constant 0 : index
    %c0_54 = arith.constant 0 : index
    %85 = vector.load %arg10[%c0_53, %c0_54] : memref<1x128xf32, #tpu.memory_space<vmem>>, vector<1x128xf32>
    %86 = vector.broadcast %85 : vector<1x128xf32> to vector<24x128xf32>
    %87 = arith.addf %84, %86 : vector<24x128xf32>
    %c0_55 = arith.constant 0 : index
    %c0_56 = arith.constant 0 : index
    %88 = vector.load %arg11[%c0_55, %c0_56] : memref<24x128xf32, #tpu.memory_space<vmem>>, vector<24x128xf32>
    tpu.vector_store %arg11[%c0_55, %c0_56], %87 {strides = array<i32>} : memref<24x128xf32, #tpu.memory_space<vmem>>, vector<24x128xf32>,
    return
  }
  func.func @transform_0(%arg0: i32) -> (i32, i32) {
    %c0_i32 = arith.constant 0 : i32
    %c0_i32_0 = arith.constant 0 : i32
    return %arg0, %c0_i32 : i32, i32
  }
  func.func @transform_1(%arg0: i32) -> (i32, i32) {
    %c0_i32 = arith.constant 0 : i32
    %c0_i32_0 = arith.constant 0 : i32
    %c0_i32_1 = arith.constant 0 : i32
    return %c0_i32, %c0_i32_0 : i32, i32
  }
  func.func @transform_2(%arg0: i32) -> (i32, i32) {
    %c0_i32 = arith.constant 0 : i32
    %c0_i32_0 = arith.constant 0 : i32
    %c0_i32_1 = arith.constant 0 : i32
    return %c0_i32, %c0_i32_0 : i32, i32
  }
  func.func @transform_3(%arg0: i32) -> (i32, i32) {
    %c0_i32 = arith.constant 0 : i32
    %c0_i32_0 = arith.constant 0 : i32
    %c0_i32_1 = arith.constant 0 : i32
    return %c0_i32, %c0_i32_0 : i32, i32
  }
  func.func @transform_4(%arg0: i32) -> (i32, i32) {
    %c0_i32 = arith.constant 0 : i32
    %c0_i32_0 = arith.constant 0 : i32
    %c0_i32_1 = arith.constant 0 : i32
    return %c0_i32, %c0_i32_0 : i32, i32
  }
  func.func @transform_5(%arg0: i32) -> (i32, i32, i32) {
    %c0_i32 = arith.constant 0 : i32
    %c0_i32_0 = arith.constant 0 : i32
    %c0_i32_1 = arith.constant 0 : i32
    %c0_i32_2 = arith.constant 0 : i32
    return %c0_i32, %c0_i32_0, %c0_i32_1 : i32, i32, i32
  }
  func.func @transform_6(%arg0: i32) -> (i32, i32, i32) {
    %c0_i32 = arith.constant 0 : i32
    %c0_i32_0 = arith.constant 0 : i32
    %c0_i32_1 = arith.constant 0 : i32
    %c0_i32_2 = arith.constant 0 : i32
    return %c0_i32, %c0_i32_0, %c0_i32_1 : i32, i32, i32
  }
  func.func @transform_7(%arg0: i32) -> (i32, i32, i32) {
    %c0_i32 = arith.constant 0 : i32
    %c0_i32_0 = arith.constant 0 : i32
    %c0_i32_1 = arith.constant 0 : i32
    %c0_i32_2 = arith.constant 0 : i32
    return %c0_i32, %c0_i32_0, %c0_i32_1 : i32, i32, i32
  }
  func.func @transform_8(%arg0: i32) -> (i32, i32) {
    %c0_i32 = arith.constant 0 : i32
    %c0_i32_0 = arith.constant 0 : i32
    %c0_i32_1 = arith.constant 0 : i32
    return %c0_i32, %c0_i32_0 : i32, i32
  }
  func.func @transform_9(%arg0: i32) -> (i32, i32) {
    %c0_i32 = arith.constant 0 : i32
    %c0_i32_0 = arith.constant 0 : i32
    %c0_i32_1 = arith.constant 0 : i32
    return %c0_i32, %c0_i32_0 : i32, i32
  }
  func.func @transform_10(%arg0: i32) -> (i32, i32) {
    %c0_i32 = arith.constant 0 : i32
    %c0_i32_0 = arith.constant 0 : i32
    return %arg0, %c0_i32 : i32, i32
  }
}

</mosaic_0001>

<bundles_post_ra>
// kernel: tpu_custom_call.1
= control target key start
LH: loop header
LB: loop body
LE: loop exit
PB: predicated region body
PF: predicated region fallthrough
CT: control target
= control target key end

     0   :  { %15 = vsyncpa [#allocation3], 0  ;;  %s5237_s0 = inlined_call_operand.vmem [shape: f32[384,8], index: 0, kind: input, shape index: {}]   ;;  %s5238_s1 = inlined_call_operand.vmem [shape: bf16[8,128], index: 1, kind: input, shape index: {}]   ;;  %s5239_s2 = inlined_call_operand.vmem [shape: f32[1,128], index: 2, kind: input, shape index: {}]   ;;  %s5240_s3 = inlined_call_operand.hbm [shape: bf16[128,128], index: 3, kind: input, shape index: {}]   ;;  %s5241_s4 = inlined_call_operand.vmem [shape: f32[1,128], index: 4, kind: input, shape index: {}]   ;;  %s5242_s5 = inlined_call_operand.vmem [shape: bf16[3,128,128], index: 5, kind: input, shape index: {}]   ;;  %s5243_s6 = inlined_call_operand.vmem [shape: bf16[3,128,128], index: 6, kind: input, shape index: {}]   ;;  %s5244_s7 = inlined_call_operand.vmem [shape: f32[3,1,128], index: 7, kind: input, shape index: {}]   ;;  %s5245_s8 = inlined_call_operand.hbm [shape: bf16[128,128], index: 8, kind: input, shape index: {}]   ;;  %s5246_s9 = inlined_call_operand.vmem [shape: f32[1,128], index: 9, kind: input, shape index: {}]   ;;  %s5247_s10 = inlined_call_operand.hbm [shape: f32[24,128], index: 10, kind: output, shape index: {}]  }
   0x1   :  { %16 = vsyncpa [#allocation6], 0 }
   0x2   :  { %17 = vsyncpa [#allocation4], 0  ;;  %s28_s15 = sshll.u32 %s5240_s3, 4  ;;  %s3765_s16 = smov [#allocation2]   ;;  %s29_s15 = int_to_ptr.hbm [resolvable:$true] %s28_s15 }
   0x3   :  { %s30_s17 = sshll.u32 %s3765_s16, 4  ;;  %s49_s20 = sshll.u32 %s5245_s8, 4  ;;  %s31_s17 = int_to_ptr.vmem [resolvable:$true] %s30_s17  ;;  %s50_s20 = int_to_ptr.hbm [resolvable:$true] %s49_s20 }
   0x4   :  { %s3766_s21 = smov 64   ;;  %s3767_s22 = smov 4  }
   0x5   :  { %36 = dma.hbm_to_vmem [thread:$0]  %s29_s15, 1024, %s31_s17, [#allocation3], %s3766_s21, %s3766_s21, %s3767_s22  }
   0x6   :  { %s3768_s23 = smov [#allocation5]  }
   0x7   :  { %s51_s24 = sshll.u32 %s3768_s23, 4  ;;  %s52_s24 = int_to_ptr.vmem [resolvable:$true] %s51_s24 }
   0x8   :  { %57 = dma.hbm_to_vmem [thread:$0]  %s50_s20, 1024, %s52_s24, [#allocation6], %s3766_s21, %s3766_s21, %s3767_s22  }
   0x9   :  { %3759 = dma.done.wait [#allocation3], 1024  }
   0xa   :  { %3760 = vsyncadd [#allocation3], 4294966272 }
   0xb   :  { %3761 = dma.done.wait [#allocation6], 1024  }
   0xc   :  { %3762 = vsyncadd [#allocation6], 4294966272  ;;  %vm219_vm0 = vcmask 1043456   ;;  %v141_v0 = vld [vmem:[%s5238_s1] sm:$0xf]  ;;  %v70_v2 = vld [vmem:[%s5237_s0 + $0x8] sm:$0xff] }
   0xd   :  { %v69_v1 = vld [vmem:[%s5237_s0] sm:$0xff]  ;;  %v221_v3 = vsel %vm219_vm0, %v141_v0, 0  ;;  %v3593_v5 = vld [vmem:[#allocation2 + $0x38] sm:$0xff]  ;;  %vm146_vm1 = vcmask 64512   ;;  %v71_v6 = vld [vmem:[%s5237_s0 + $0x10] sm:$0xff]  ;;  %vm1146_vm2 = vcmask 1041409  }
   0xe   :  { %v117_v4 = vpack.c.bf16 %v70_v2, %v69_v1  ;;  %230 = vmatpush.bf16.msra.mxu0 %v221_v3  ;;  %3650 = vmatpush.bf16.msra.mxu1 %v3593_v5  ;;  %v72_v7 = vld [vmem:[%s5237_s0 + $0x18] sm:$0xff]  ;;  %v3592_v9 = vld [vmem:[#allocation2 + $0x30] sm:$0xff]  ;;  %v73_v10 = vld [vmem:[%s5237_s0 + $0x20] sm:$0xff]  ;;  %vm1148_vm3 = vcmask 1042434   ;;  %vm1150_vm4 = vcmask 1043459   ;;  %vm1152_vm5 = vcmask 1044484  }
   0xf   :  { %3651 = vmatpush.bf16.msra.mxu2 %v3593_v5  ;;  %3652 = vmatpush.bf16.msra.mxu3 %v3593_v5  ;;  %v118_v8 = vpack.c.bf16 %v72_v7, %v71_v6  ;;  %v74_v11 = vld [vmem:[%s5237_s0 + $0x28] sm:$0xff]  ;;  %v75_v13 = vld [vmem:[%s5237_s0 + $0x30] sm:$0xff]  ;;  %v76_v14 = vld [vmem:[%s5237_s0 + $0x38] sm:$0xff]  ;;  %vm1154_vm6 = vcmask 1045509   ;;  %vm1156_vm7 = vcmask 1046534   ;;  %vm1158_vm8 = vcmask 1047559  }
  0x10   :  { %v119_v12 = vpack.c.bf16 %v74_v11, %v73_v10  ;;  %v120_v15 = vpack.c.bf16 %v76_v14, %v75_v13  ;;  %v77_v16 = vld [vmem:[%s5237_s0 + $0x40] sm:$0xff]  ;;  %v78_v17 = vld [vmem:[%s5237_s0 + $0x48] sm:$0xff]  ;;  %v79_v20 = vld [vmem:[%s5237_s0 + $0x50] sm:$0xff]  ;;  %s3769_s8 = smov [#allocation7]   ;;  %s3226_s1 = sshll.u32 %s5247_s10, 4  ;;  %s3227_s1 = int_to_ptr.hbm [resolvable:$true] %s3226_s1 }
  0x11   :  { %3240 = vmatmul.msk.bf16.vlgmr.msra.gmra.mxu0 %vm146_vm1, %v117_v4  ;;  %v121_v18 = vpack.c.bf16 %v78_v17, %v77_v16  ;;  %v3591_v19 = vld [vmem:[#allocation2 + $0x28] sm:$0xff]  ;;  %v80_v21 = vld [vmem:[%s5237_s0 + $0x58] sm:$0xff]  ;;  %v81_v23 = vld [vmem:[%s5237_s0 + $0x60] sm:$0xff]  ;;  %s3771_s29 = smov 8  }
  0x12   :  { %492 = vmatpush.bf16.msrb.mxu0 %v3593_v5  ;;  %3653 = vmatpush.bf16.msra.mxu1 %v3592_v9  ;;  %v122_v22 = vpack.c.bf16 %v80_v21, %v79_v20  ;;  %v82_v24 = vld [vmem:[%s5237_s0 + $0x68] sm:$0xff]  ;;  %v83_v26 = vld [vmem:[%s5237_s0 + $0x70] sm:$0xff]  ;;  %v84_v27 = vld [vmem:[%s5237_s0 + $0x78] sm:$0xff] }
  0x13   :  { %3654 = vmatpush.bf16.msra.mxu2 %v3592_v9  ;;  %3655 = vmatpush.bf16.msra.mxu3 %v3592_v9  ;;  %v123_v25 = vpack.c.bf16 %v82_v24, %v81_v23  ;;  %v124_v28 = vpack.c.bf16 %v84_v27, %v83_v26  ;;  %v3590_v29 = vld [vmem:[#allocation2 + $0x20] sm:$0xff]  ;;  %v86_v31 = vld [vmem:[%s5237_s0 + $0x88] sm:$0xff]  ;;  %v87_v40 = vld [vmem:[%s5237_s0 + $0x90] sm:$0xff] }
  0x14   :  { %v85_v30 = vld [vmem:[%s5237_s0 + $0x80] sm:$0xff]  ;;  %v88_v41 = vld [vmem:[%s5237_s0 + $0x98] sm:$0xff]  ;;  %v90_v51 = vld [vmem:[%s5237_s0 + $0xa8] sm:$0xff] }
  0x15   :  { %v125_v32 = vpack.c.bf16 %v86_v31, %v85_v30  ;;  %v3901_v34 = vld [vmem:[%s5239_s2] ss:$0 sm:$0xff]  ;;  %v126_v43 = vpack.c.bf16 %v88_v41, %v87_v40  ;;  %v3589_v53 = vld [vmem:[#allocation2 + $0x18] sm:$0xff]  ;;  %v3588_v56 = vld [vmem:[#allocation2 + $0x10] sm:$0xff] }
  0x16   :  { %493 = vmatpush.bf16.msrb.mxu0 %v3592_v9  ;;  %3656 = vmatpush.bf16.msra.mxu1 %v3591_v19  ;;  %v89_v50 = vld [vmem:[%s5237_s0 + $0xa0] sm:$0xff]  ;;  %v3587_v57 = vld [vmem:[#allocation2 + $0x8] sm:$0xff]  ;;  %v91_v0 = vld [vmem:[%s5237_s0 + $0xb0] sm:$0xff] }
  0x17   :  { %3657 = vmatpush.bf16.msra.mxu2 %v3591_v19  ;;  %3658 = vmatpush.bf16.msra.mxu3 %v3591_v19  ;;  %v127_v54 = vpack.c.bf16 %v90_v51, %v89_v50  ;;  %v3586_v61 = vld [vmem:[#allocation2] sm:$0xff]  ;;  %v92_v1 = vld [vmem:[%s5237_s0 + $0xb8] sm:$0xff]  ;;  %v94_v11 = vld [vmem:[%s5237_s0 + $0xc8] sm:$0xff] }
  0x18   :  { %v128_v3 = vpack.c.bf16 %v92_v1, %v91_v0  ;;  %v93_v10 = vld [vmem:[%s5237_s0 + $0xc0] sm:$0xff]  ;;  %v95_v20 = vld [vmem:[%s5237_s0 + $0xd0] sm:$0xff]  ;;  %v96_v21 = vld [vmem:[%s5237_s0 + $0xd8] sm:$0xff] }
  0x19   :  { %v129_v13 = vpack.c.bf16 %v94_v11, %v93_v10  ;;  %v130_v23 = vpack.c.bf16 %v96_v21, %v95_v20  ;;  %v97_v30 = vld [vmem:[%s5237_s0 + $0xe0] sm:$0xff]  ;;  %v98_v31 = vld [vmem:[%s5237_s0 + $0xe8] sm:$0xff]  ;;  %v99_v41 = vld [vmem:[%s5237_s0 + $0xf0] sm:$0xff] }
  0x1a   :  { %494 = vmatpush.bf16.msrb.mxu0 %v3591_v19  ;;  %3659 = vmatpush.bf16.msra.mxu1 %v3590_v29  ;;  %v104_v0 = vld [vmem:[%s5237_s0 + $0x118] sm:$0xff]  ;;  %v105_v10 = vld [vmem:[%s5237_s0 + $0x120] sm:$0xff]  ;;  %v106_v11 = vld [vmem:[%s5237_s0 + $0x128] sm:$0xff] }
  0x1b   :  { %3660 = vmatpush.bf16.msra.mxu2 %v3590_v29  ;;  %3661 = vmatpush.bf16.msra.mxu3 %v3590_v29  ;;  %v107_v21 = vld [vmem:[%s5237_s0 + $0x130] sm:$0xff] }
  0x1e   :  { %495 = vmatpush.bf16.msrb.mxu0 %v3590_v29  ;;  %3662 = vmatpush.bf16.msra.mxu1 %v3589_v53 }
  0x1f   :  { %3663 = vmatpush.bf16.msra.mxu2 %v3589_v53  ;;  %3664 = vmatpush.bf16.msra.mxu3 %v3589_v53 }
  0x21   :  { %3241 = vmatmul.msk.bf16.gmra.mxu0 %vm146_vm1, %v118_v8 }
  0x22   :  { %496 = vmatpush.bf16.msrb.mxu0 %v3589_v53  ;;  %3665 = vmatpush.bf16.msra.mxu1 %v3588_v56  ;;  %v101_v53 = vld [vmem:[%s5237_s0 + $0x100] sm:$0xff] }
  0x23   :  { %3666 = vmatpush.bf16.msra.mxu2 %v3588_v56  ;;  %3667 = vmatpush.bf16.msra.mxu3 %v3588_v56 }
  0x26   :  { %497 = vmatpush.bf16.msrb.mxu0 %v3588_v56  ;;  %3668 = vmatpush.bf16.msra.mxu1 %v3587_v57 }
  0x27   :  { %3669 = vmatpush.bf16.msra.mxu2 %v3587_v57  ;;  %3670 = vmatpush.bf16.msra.mxu3 %v3587_v57 }
  0x2a   :  { %498 = vmatpush.bf16.msrb.mxu0 %v3587_v57  ;;  %3671 = vmatpush.bf16.msra.mxu1 %v3586_v61 }
  0x2b   :  { %3672 = vmatpush.bf16.msra.mxu2 %v3586_v61  ;;  %3673 = vmatpush.bf16.msra.mxu3 %v3586_v61 }
  0x2e   :  { %499 = vmatpush.bf16.msrb.mxu0 %v3586_v61 }
  0x31   :  { %3242 = vmatmul.msk.bf16.gmra.mxu0 %vm146_vm1, %v119_v12 }
  0x41   :  { %3243 = vmatmul.msk.bf16.gmra.mxu0 %vm146_vm1, %v120_v15 }
  0x51   :  { %3244 = vmatmul.msk.bf16.gmra.mxu0 %vm146_vm1, %v121_v18 }
  0x61   :  { %3245 = vmatmul.msk.bf16.gmra.mxu0 %vm146_vm1, %v122_v22 }
  0x71   :  { %3246 = vmatmul.msk.bf16.gmra.mxu0 %vm146_vm1, %v123_v25 }
  0x81   :  { %3247 = vmatmul.msk.bf16.gmra.mxu0 %vm146_vm1, %v124_v28 }
  0x8e   :  { %v232_v33 = vpop.f32.mrf.mxu0 }
  0x8f   :  { %v233_v35 = vadd.f32 %v3901_v34, %v232_v33  ;;  %v131_v33 = vpack.c.bf16 %v98_v31, %v97_v30  ;;  %v109_v31 = vld [vmem:[%s5237_s0 + $0x140] sm:$0xff] }
  0x91   :  { %3248 = vmatmul.msk.bf16.gmra.mxu0 %vm146_vm1, %v125_v32  ;;  %v352_v38 = vmax.f32 %v233_v35, 0.0 }
  0x96   :  { %v234_v36 = vpop.f32.mrf.mxu0 }
  0x97   :  { %v235_v37 = vadd.f32 %v3901_v34, %v234_v36 }
  0x99   :  { %v353_v39 = vmax.f32 %v235_v37, 0.0 }
  0x9b   :  { %v3912_v42 = vpack.c.bf16 %v353_v39, %v352_v38 }
  0x9e   :  { %v237_v44 = vpop.f32.mrf.mxu0 }
  0x9f   :  { %v238_v45 = vadd.f32 %v3901_v34, %v237_v44 }
  0xa1   :  { %3249 = vmatmul.msk.bf16.gmra.mxu0 %vm146_vm1, %v126_v43  ;;  %v354_v48 = vmax.f32 %v238_v45, 0.0  ;;  %v100_v43 = vld [vmem:[%s5237_s0 + $0xf8] sm:$0xff] }
  0xa2   :  { %v132_v45 = vpack.c.bf16 %v100_v43, %v99_v41 }
  0xa6   :  { %v239_v46 = vpop.f32.mrf.mxu0 }
  0xa7   :  { %v240_v47 = vadd.f32 %v3901_v34, %v239_v46 }
  0xa9   :  { %v355_v49 = vmax.f32 %v240_v47, 0.0 }
  0xab   :  { %v3923_v52 = vpack.c.bf16 %v355_v49, %v354_v48 }
  0xae   :  { %v242_v55 = vpop.f32.mrf.mxu0 }
  0xaf   :  { %v243_v58 = vadd.f32 %v3901_v34, %v242_v55 }
  0xb1   :  { %3250 = vmatmul.msk.bf16.gmra.mxu0 %vm146_vm1, %v127_v54  ;;  %v356_v62 = vmax.f32 %v243_v58, 0.0  ;;  %v102_v54 = vld [vmem:[%s5237_s0 + $0x108] sm:$0xff] }
  0xb2   :  { %v133_v56 = vpack.c.bf16 %v102_v54, %v101_v53 }
  0xb6   :  { %v244_v59 = vpop.f32.mrf.mxu0 }
  0xb7   :  { %v245_v60 = vadd.f32 %v3901_v34, %v244_v59 }
  0xb9   :  { %v357_v63 = vmax.f32 %v245_v60, 0.0 }
  0xbb   :  { %v3934_v2 = vpack.c.bf16 %v357_v63, %v356_v62  ;;  %v103_v63 = vld [vmem:[%s5237_s0 + $0x110] sm:$0xff] }
  0xbe   :  { %v247_v4 = vpop.f32.mrf.mxu0 }
  0xbf   :  { %v248_v5 = vadd.f32 %v3901_v34, %v247_v4 }
  0xc1   :  { %3251 = vmatmul.msk.bf16.gmra.mxu0 %vm146_vm1, %v128_v3  ;;  %v358_v8 = vmax.f32 %v248_v5, 0.0  ;;  %v134_v3 = vpack.c.bf16 %v104_v0, %v103_v63 }
  0xc6   :  { %v249_v6 = vpop.f32.mrf.mxu0 }
  0xc7   :  { %v250_v7 = vadd.f32 %v3901_v34, %v249_v6 }
  0xc9   :  { %v359_v9 = vmax.f32 %v250_v7, 0.0 }
  0xcb   :  { %v3945_v12 = vpack.c.bf16 %v359_v9, %v358_v8 }
  0xce   :  { %v252_v14 = vpop.f32.mrf.mxu0 }
  0xcf   :  { %v253_v15 = vadd.f32 %v3901_v34, %v252_v14  ;;  %v135_v14 = vpack.c.bf16 %v106_v11, %v105_v10 }
  0xd1   :  { %3252 = vmatmul.msk.bf16.gmra.mxu0 %vm146_vm1, %v129_v13  ;;  %v360_v18 = vmax.f32 %v253_v15, 0.0 }
  0xd6   :  { %v254_v16 = vpop.f32.mrf.mxu0 }
  0xd7   :  { %v255_v17 = vadd.f32 %v3901_v34, %v254_v16 }
  0xd9   :  { %v361_v19 = vmax.f32 %v255_v17, 0.0 }
  0xdb   :  { %v404_v22 = vpack.c.bf16 %v361_v19, %v360_v18 }
  0xdd   :  { %520 = vmatmul.bf16.vlgmr.msra.gmra.mxu1 %v404_v22  ;;  %v108_v22 = vld [vmem:[%s5237_s0 + $0x138] sm:$0xff] }
  0xde   :  { %v257_v24 = vpop.f32.mrf.mxu0 }
  0xdf   :  { %v258_v25 = vadd.f32 %v3901_v34, %v257_v24  ;;  %v136_v24 = vpack.c.bf16 %v108_v22, %v107_v21 }
  0xe1   :  { %3253 = vmatmul.msk.bf16.gmra.mxu0 %vm146_vm1, %v130_v23  ;;  %v362_v28 = vmax.f32 %v258_v25, 0.0 }
  0xe6   :  { %v259_v26 = vpop.f32.mrf.mxu0 }
  0xe7   :  { %v260_v27 = vadd.f32 %v3901_v34, %v259_v26 }
  0xe9   :  { %v363_v29 = vmax.f32 %v260_v27, 0.0 }
  0xeb   :  { %v405_v32 = vpack.c.bf16 %v363_v29, %v362_v28 }
  0xed   :  { %525 = vmatmul.bf16.gmra.mxu1 %v405_v32  ;;  %v110_v32 = vld [vmem:[%s5237_s0 + $0x148] sm:$0xff] }
  0xee   :  { %v262_v35 = vpop.f32.mrf.mxu0 }
  0xef   :  { %v263_v36 = vadd.f32 %v3901_v34, %v262_v35  ;;  %v137_v35 = vpack.c.bf16 %v110_v32, %v109_v31 }
  0xf1   :  { %3254 = vmatmul.msk.bf16.gmra.mxu0 %vm146_vm1, %v131_v33  ;;  %v364_v39 = vmax.f32 %v263_v36, 0.0 }
  0xf6   :  { %v264_v37 = vpop.f32.mrf.mxu0 }
  0xf7   :  { %v265_v38 = vadd.f32 %v3901_v34, %v264_v37 }
  0xf9   :  { %v365_v40 = vmax.f32 %v265_v38, 0.0 }
  0xfb   :  { %v406_v44 = vpack.c.bf16 %v365_v40, %v364_v39 }
  0xfd   :  { %530 = vmatmul.bf16.gmra.mxu1 %v406_v44  ;;  %v111_v44 = vld [vmem:[%s5237_s0 + $0x150] sm:$0xff] }
  0xfe   :  { %v267_v46 = vpop.f32.mrf.mxu0 }
  0xff   :  { %v268_v47 = vadd.f32 %v3901_v34, %v267_v46 }
 0x101   :  { %3255 = vmatmul.msk.bf16.gmra.mxu0 %vm146_vm1, %v132_v45  ;;  %v366_v50 = vmax.f32 %v268_v47, 0.0  ;;  %v112_v45 = vld [vmem:[%s5237_s0 + $0x158] sm:$0xff] }
 0x102   :  { %v138_v47 = vpack.c.bf16 %v112_v45, %v111_v44 }
 0x106   :  { %v269_v48 = vpop.f32.mrf.mxu0 }
 0x107   :  { %v270_v49 = vadd.f32 %v3901_v34, %v269_v48 }
 0x109   :  { %v367_v51 = vmax.f32 %v270_v49, 0.0 }
 0x10b   :  { %v407_v55 = vpack.c.bf16 %v367_v51, %v366_v50 }
 0x10d   :  { %535 = vmatmul.bf16.gmra.mxu1 %v407_v55 }
 0x10e   :  { %v272_v57 = vpop.f32.mrf.mxu0 }
 0x10f   :  { %v273_v58 = vadd.f32 %v3901_v34, %v272_v57  ;;  %v113_v57 = vld [vmem:[%s5237_s0 + $0x160] sm:$0xff] }
 0x111   :  { %3256 = vmatmul.msk.bf16.gmra.mxu0 %vm146_vm1, %v133_v56  ;;  %v368_v61 = vmax.f32 %v273_v58, 0.0  ;;  %v114_v58 = vld [vmem:[%s5237_s0 + $0x168] sm:$0xff] }
 0x116   :  { %v274_v59 = vpop.f32.mrf.mxu0 }
 0x117   :  { %v275_v60 = vadd.f32 %v3901_v34, %v274_v59 }
 0x119   :  { %v369_v62 = vmax.f32 %v275_v60, 0.0  ;;  %v139_v60 = vpack.c.bf16 %v114_v58, %v113_v57 }
 0x11b   :  { %v408_v1 = vpack.c.bf16 %v369_v62, %v368_v61 }
 0x11d   :  { %540 = vmatmul.bf16.gmra.mxu1 %v408_v1 }
 0x11e   :  { %v277_v4 = vpop.f32.mrf.mxu0 }
 0x11f   :  { %v278_v5 = vadd.f32 %v3901_v34, %v277_v4 }
 0x121   :  { %3257 = vmatmul.msk.bf16.gmra.mxu0 %vm146_vm1, %v134_v3  ;;  %v370_v8 = vmax.f32 %v278_v5, 0.0 }
 0x126   :  { %v279_v6 = vpop.f32.mrf.mxu0 }
 0x127   :  { %v280_v7 = vadd.f32 %v3901_v34, %v279_v6  ;;  %v115_v6 = vld [vmem:[%s5237_s0 + $0x170] sm:$0xff] }
 0x129   :  { %v371_v9 = vmax.f32 %v280_v7, 0.0  ;;  %v116_v7 = vld [vmem:[%s5237_s0 + $0x178] sm:$0xff]  ;;  %s3224_s0 = sshll.u32 %s3769_s8, 4  ;;  %s3225_s0 = int_to_ptr.vmem [resolvable:$true] %s3224_s0 }
 0x12b   :  { %v409_v13 = vpack.c.bf16 %v371_v9, %v370_v8  ;;  %v140_v9 = vpack.c.bf16 %v116_v7, %v115_v6 }
 0x12d   :  { %545 = vmatmul.bf16.gmra.mxu1 %v409_v13 }
 0x12e   :  { %v282_v15 = vpop.f32.mrf.mxu0 }
 0x12f   :  { %v283_v16 = vadd.f32 %v3901_v34, %v282_v15 }
 0x131   :  { %3258 = vmatmul.msk.bf16.gmra.mxu0 %vm146_vm1, %v135_v14  ;;  %v372_v19 = vmax.f32 %v283_v16, 0.0 }
 0x136   :  { %v284_v17 = vpop.f32.mrf.mxu0 }
 0x137   :  { %v285_v18 = vadd.f32 %v3901_v34, %v284_v17 }
 0x139   :  { %v373_v20 = vmax.f32 %v285_v18, 0.0 }
 0x13b   :  { %v410_v23 = vpack.c.bf16 %v373_v20, %v372_v19 }
 0x13d   :  { %550 = vmatmul.bf16.gmra.mxu1 %v410_v23 }
 0x13e   :  { %v287_v25 = vpop.f32.mrf.mxu0 }
 0x13f   :  { %v288_v26 = vadd.f32 %v3901_v34, %v287_v25 }
 0x141   :  { %3259 = vmatmul.msk.bf16.gmra.mxu0 %vm146_vm1, %v136_v24  ;;  %v374_v29 = vmax.f32 %v288_v26, 0.0 }
 0x146   :  { %v289_v27 = vpop.f32.mrf.mxu0 }
 0x147   :  { %v290_v28 = vadd.f32 %v3901_v34, %v289_v27 }
 0x149   :  { %v375_v30 = vmax.f32 %v290_v28, 0.0 }
 0x14b   :  { %v411_v33 = vpack.c.bf16 %v375_v30, %v374_v29  ;;  %v4071_v30 = vld [vmem:[%s5241_s4] ss:$0 sm:$0xff] }
 0x14d   :  { %555 = vmatmul.bf16.gmra.mxu1 %v411_v33 }
 0x14e   :  { %v292_v36 = vpop.f32.mrf.mxu0 }
 0x14f   :  { %v293_v37 = vadd.f32 %v3901_v34, %v292_v36 }
 0x151   :  { %3260 = vmatmul.msk.bf16.gmra.mxu0 %vm146_vm1, %v137_v35  ;;  %v376_v40 = vmax.f32 %v293_v37, 0.0 }
 0x156   :  { %v294_v38 = vpop.f32.mrf.mxu0 }
 0x157   :  { %v295_v39 = vadd.f32 %v3901_v34, %v294_v38 }
 0x159   :  { %v377_v41 = vmax.f32 %v295_v39, 0.0 }
 0x15a   :  { %v4022_v43 = vpop.f32.mrf.mxu1 }
 0x15b   :  { %v412_v46 = vpack.c.bf16 %v377_v41, %v376_v40  ;;  %v3601_v41 = vld [vmem:[%s5242_s5 + $0x38] sm:$0xff] }
 0x15c   :  { %925 = vmatpush.bf16.msrb.mxu2 %v3601_v41 }
 0x15d   :  { %560 = vmatmul.bf16.vlgmr.msra.gmra.mxu2 %v412_v46 }
 0x15e   :  { %v297_v48 = vpop.f32.mrf.mxu0 }
 0x15f   :  { %v298_v50 = vadd.f32 %v3901_v34, %v297_v48 }
 0x161   :  { %3261 = vmatmul.msk.bf16.gmra.mxu0 %vm146_vm1, %v138_v47  ;;  %v378_v54 = vmax.f32 %v298_v50, 0.0 }
 0x162   :  { %v4031_v49 = vpop.f32.mrf.mxu1 }
 0x166   :  { %v299_v51 = vpop.f32.mrf.mxu0 }
 0x167   :  { %v300_v53 = vadd.f32 %v3901_v34, %v299_v51 }
 0x169   :  { %v379_v55 = vmax.f32 %v300_v53, 0.0 }
 0x16a   :  { %v4035_v56 = vpop.f32.mrf.mxu1 }
 0x16b   :  { %v413_v59 = vpack.c.bf16 %v379_v55, %v378_v54 }
 0x16d   :  { %565 = vmatmul.bf16.gmra.mxu2 %v413_v59 }
 0x16e   :  { %v302_v61 = vpop.f32.mrf.mxu0 }
 0x16f   :  { %v303_v63 = vadd.f32 %v3901_v34, %v302_v61 }
 0x171   :  { %3262 = vmatmul.msk.bf16.gmra.mxu0 %vm146_vm1, %v139_v60  ;;  %v380_v3 = vmax.f32 %v303_v63, 0.0  ;;  %v3600_v60 = vld [vmem:[%s5242_s5 + $0x30] sm:$0xff] }
 0x172   :  { %v4044_v62 = vpop.f32.mrf.mxu1  ;;  %926 = vmatpush.bf16.msrb.mxu2 %v3600_v60 }
 0x176   :  { %v304_v0 = vpop.f32.mrf.mxu0 }
 0x177   :  { %v305_v1 = vadd.f32 %v3901_v34, %v304_v0 }
 0x179   :  { %v381_v4 = vmax.f32 %v305_v1, 0.0 }
 0x17a   :  { %v4048_v5 = vpop.f32.mrf.mxu1 }
 0x17b   :  { %v414_v8 = vpack.c.bf16 %v381_v4, %v380_v3 }
 0x17d   :  { %570 = vmatmul.bf16.gmra.mxu2 %v414_v8 }
 0x17e   :  { %v307_v10 = vpop.f32.mrf.mxu0 }
 0x17f   :  { %v308_v13 = vadd.f32 %v3901_v34, %v307_v10 }
 0x181   :  { %3263 = vmatmul.msk.bf16.gmra.mxu0 %vm146_vm1, %v140_v9  ;;  %v382_v16 = vmax.f32 %v308_v13, 0.0  ;;  %v3599_v13 = vld [vmem:[%s5242_s5 + $0x28] sm:$0xff] }
 0x182   :  { %v4057_v11 = vpop.f32.mrf.mxu1  ;;  %927 = vmatpush.bf16.msrb.mxu2 %v3599_v13 }
 0x186   :  { %v309_v14 = vpop.f32.mrf.mxu0 }
 0x187   :  { %v310_v15 = vadd.f32 %v3901_v34, %v309_v14 }
 0x189   :  { %v383_v17 = vmax.f32 %v310_v15, 0.0 }
 0x18a   :  { %v4061_v18 = vpop.f32.mrf.mxu1 }
 0x18b   :  { %v415_v19 = vpack.c.bf16 %v383_v17, %v382_v16  ;;  %v3598_v16 = vld [vmem:[%s5242_s5 + $0x20] sm:$0xff] }
 0x18c   :  { %928 = vmatpush.bf16.msrb.mxu2 %v3598_v16 }
 0x18d   :  { %575 = vmatmul.bf16.gmra.mxu2 %v415_v19 }
 0x18e   :  { %v312_v20 = vpop.f32.mrf.mxu0 }
 0x18f   :  { %v313_v22 = vadd.f32 %v3901_v34, %v312_v20 }
 0x191   :  { %500 = vmatmul.bf16.vlgmr.msrb.gmra.mxu0 %v3912_v42  ;;  %v384_v25 = vmax.f32 %v313_v22, 0.0 }
 0x192   :  { %v4064_v21 = vpop.f32.mrf.mxu1 }
 0x196   :  { %v314_v23 = vpop.f32.mrf.mxu0 }
 0x197   :  { %v315_v24 = vadd.f32 %v3901_v34, %v314_v23 }
 0x199   :  { %v385_v26 = vmax.f32 %v315_v24, 0.0 }
 0x19a   :  { %v541_v27 = vpop.f32.mrf.mxu1 }
 0x19b   :  { %v416_v28 = vpack.c.bf16 %v385_v26, %v384_v25  ;;  %v4075_v42 = vadd.f32 %v4071_v30, %v541_v27 }
 0x19d   :  { %580 = vmatmul.bf16.gmra.mxu2 %v416_v28  ;;  %v637_v36 = vmax.f32 %v4075_v42, 0.0 }
 0x19e   :  { %v317_v29 = vpop.f32.mrf.mxu0 }
 0x19f   :  { %v318_v33 = vadd.f32 %v3901_v34, %v317_v29 }
 0x1a1   :  { %505 = vmatmul.bf16.gmra.mxu0 %v3923_v52  ;;  %v386_v39 = vmax.f32 %v318_v33, 0.0 }
 0x1a2   :  { %v543_v31 = vpop.f32.mrf.mxu1 }
 0x1a3   :  { %v4078_v32 = vadd.f32 %v4071_v30, %v543_v31 }
 0x1a5   :  { %v638_v35 = vmax.f32 %v4078_v32, 0.0 }
 0x1a6   :  { %v319_v37 = vpop.f32.mrf.mxu0 }
 0x1a7   :  { %v320_v38 = vadd.f32 %v3901_v34, %v319_v37  ;;  %v4088_v52 = vpack.c.bf16 %v638_v35, %v637_v36 }
 0x1a9   :  { %v387_v40 = vmax.f32 %v320_v38, 0.0 }
 0x1aa   :  { %v546_v44 = vpop.f32.mrf.mxu1 }
 0x1ab   :  { %v417_v45 = vpack.c.bf16 %v387_v40, %v386_v39  ;;  %v4095_v47 = vadd.f32 %v4071_v30, %v546_v44  ;;  %v3597_v39 = vld [vmem:[%s5242_s5 + $0x18] sm:$0xff] }
 0x1ac   :  { %929 = vmatpush.bf16.msrb.mxu2 %v3597_v39 }
 0x1ad   :  { %585 = vmatmul.bf16.gmra.mxu2 %v417_v45  ;;  %v639_v54 = vmax.f32 %v4095_v47, 0.0  ;;  %v3608_v47 = vld [vmem:[%s5243_s6 + $0x30] sm:$0xff] }
 0x1ae   :  { %v322_v46 = vpop.f32.mrf.mxu0 }
 0x1af   :  { %v323_v51 = vadd.f32 %v3901_v34, %v322_v46 }
 0x1b1   :  { %510 = vmatmul.bf16.gmra.mxu0 %v3934_v2  ;;  %v388_v58 = vmax.f32 %v323_v51, 0.0 }
 0x1b2   :  { %v548_v48 = vpop.f32.mrf.mxu1 }
 0x1b3   :  { %v4098_v50 = vadd.f32 %v4071_v30, %v548_v48 }
 0x1b5   :  { %v640_v53 = vmax.f32 %v4098_v50, 0.0 }
 0x1b6   :  { %v324_v55 = vpop.f32.mrf.mxu0 }
 0x1b7   :  { %v325_v57 = vadd.f32 %v3901_v34, %v324_v55  ;;  %v4108_v2 = vpack.c.bf16 %v640_v53, %v639_v54 }
 0x1b9   :  { %v389_v59 = vmax.f32 %v325_v57, 0.0 }
 0x1ba   :  { %v551_v61 = vpop.f32.mrf.mxu1 }
 0x1bb   :  { %v418_v63 = vpack.c.bf16 %v389_v59, %v388_v58  ;;  %v4114_v1 = vadd.f32 %v4071_v30, %v551_v61 }
 0x1bd   :  { %590 = vmatmul.bf16.vlgmr.msra.gmra.mxu3 %v418_v63  ;;  %v641_v6 = vmax.f32 %v4114_v1, 0.0  ;;  %v3596_v63 = vld [vmem:[%s5242_s5 + $0x10] sm:$0xff] }
 0x1be   :  { %v327_v0 = vpop.f32.mrf.mxu0  ;;  %930 = vmatpush.bf16.msrb.mxu2 %v3596_v63 }
 0x1bf   :  { %v328_v7 = vadd.f32 %v3901_v34, %v327_v0 }
 0x1c1   :  { %515 = vmatmul.bf16.gmra.mxu0 %v3945_v12  ;;  %v390_v14 = vmax.f32 %v328_v7, 0.0  ;;  %v3595_v7 = vld [vmem:[%s5242_s5 + $0x8] sm:$0xff] }
 0x1c2   :  { %v553_v3 = vpop.f32.mrf.mxu1  ;;  %931 = vmatpush.bf16.msrb.mxu2 %v3595_v7 }
 0x1c3   :  { %v4118_v4 = vadd.f32 %v4071_v30, %v553_v3 }
 0x1c5   :  { %v642_v8 = vmax.f32 %v4118_v4, 0.0 }
 0x1c6   :  { %v329_v9 = vpop.f32.mrf.mxu0 }
 0x1c7   :  { %v330_v10 = vadd.f32 %v3901_v34, %v329_v9  ;;  %v4131_v12 = vpack.c.bf16 %v642_v8, %v641_v6 }
 0x1c9   :  { %v391_v15 = vmax.f32 %v330_v10, 0.0 }
 0x1ca   :  { %v556_v17 = vpop.f32.mrf.mxu1 }
 0x1cb   :  { %v419_v19 = vpack.c.bf16 %v391_v15, %v390_v14  ;;  %v4137_v22 = vadd.f32 %v4071_v30, %v556_v17  ;;  %v3594_v17 = vld [vmem:[%s5242_s5] sm:$0xff] }
 0x1cc   :  { %932 = vmatpush.bf16.msrb.mxu2 %v3594_v17 }
 0x1cd   :  { %595 = vmatmul.bf16.gmra.mxu3 %v419_v19  ;;  %v643_v25 = vmax.f32 %v4137_v22, 0.0 }
 0x1ce   :  { %v332_v20 = vpop.f32.mrf.mxu0 }
 0x1cf   :  { %v333_v26 = vadd.f32 %v3901_v34, %v332_v20 }
 0x1d1   :  { %v392_v33 = vmax.f32 %v333_v26, 0.0 }
 0x1d2   :  { %v558_v23 = vpop.f32.mrf.mxu1 }
 0x1d3   :  { %v4140_v24 = vadd.f32 %v4071_v30, %v558_v23 }
 0x1d5   :  { %v644_v27 = vmax.f32 %v4140_v24, 0.0 }
 0x1d6   :  { %v334_v28 = vpop.f32.mrf.mxu0 }
 0x1d7   :  { %v335_v29 = vadd.f32 %v3901_v34, %v334_v28  ;;  %v4150_v31 = vpack.c.bf16 %v644_v27, %v643_v25 }
 0x1d9   :  { %v393_v37 = vmax.f32 %v335_v29, 0.0 }
 0x1db   :  { %v420_v38 = vpack.c.bf16 %v393_v37, %v392_v33 }
 0x1dd   :  { %600 = vmatmul.bf16.gmra.mxu3 %v420_v38 }
 0x1de   :  { %v337_v40 = vpop.f32.mrf.mxu0 }
 0x1df   :  { %v338_v44 = vadd.f32 %v3901_v34, %v337_v40 }
 0x1e0   :  { %v561_v41 = vpop.f32.mrf.mxu2 }
 0x1e1   :  { %v4157_v46 = vadd.f32 %v4071_v30, %v561_v41  ;;  %v394_v55 = vmax.f32 %v338_v44, 0.0 }
 0x1e3   :  { %v5260_v59 = vmax.f32 %v4157_v46, 0.0 }
 0x1e6   :  { %v339_v45 = vpop.f32.mrf.mxu0 }
 0x1e7   :  { %v340_v48 = vadd.f32 %v3901_v34, %v339_v45 }
 0x1e8   :  { %v563_v51 = vpop.f32.mrf.mxu2 }
 0x1e9   :  { %v395_v57 = vmax.f32 %v340_v48, 0.0  ;;  %v4161_v58 = vadd.f32 %v4071_v30, %v563_v51 }
 0x1eb   :  { %v646_v60 = vmax.f32 %v4161_v58, 0.0  ;;  %v421_v61 = vpack.c.bf16 %v395_v57, %v394_v55 }
 0x1ed   :  { %605 = vmatmul.bf16.gmra.mxu3 %v421_v61  ;;  %v4172_v0 = vpack.c.bf16 %v646_v60, %v5260_v59 }
 0x1ee   :  { %v342_v3 = vpop.f32.mrf.mxu0 }
 0x1ef   :  { %v343_v10 = vadd.f32 %v3901_v34, %v342_v3 }
 0x1f0   :  { %v566_v9 = vpop.f32.mrf.mxu2 }
 0x1f1   :  { %v4179_v14 = vadd.f32 %v4071_v30, %v566_v9  ;;  %v396_v19 = vmax.f32 %v343_v10, 0.0  ;;  %v4217_v10 = vadd.f32 %v4071_v30, %v4031_v49  ;;  %v4239_v49 = vadd.f32 %v4071_v30, %v4035_v56 }
 0x1f3   :  { %v5258_v26 = vmax.f32 %v4179_v14, 0.0 }
 0x1f6   :  { %v344_v13 = vpop.f32.mrf.mxu0 }
 0x1f7   :  { %v345_v15 = vadd.f32 %v3901_v34, %v344_v13  ;;  %v4221_v13 = vadd.f32 %v4071_v30, %v4044_v62 }
 0x1f8   :  { %v568_v16 = vpop.f32.mrf.mxu2 }
 0x1f9   :  { %v397_v20 = vmax.f32 %v345_v15, 0.0  ;;  %v4186_v23 = vadd.f32 %v4071_v30, %v568_v16  ;;  %v4225_v16 = vadd.f32 %v4071_v30, %v4057_v11 }
 0x1fb   :  { %v5259_v28 = vmax.f32 %v4186_v23, 0.0  ;;  %v422_v29 = vpack.c.bf16 %v397_v20, %v396_v19  ;;  %v4235_v20 = vadd.f32 %v4071_v30, %v4022_v43  ;;  %v5254_v43 = vmax.f32 %v4221_v13, 0.0 }
 0x1fd   :  { %610 = vmatmul.bf16.gmra.mxu3 %v422_v29  ;;  %v4194_v33 = vpack.c.bf16 %v5259_v28, %v5258_v26  ;;  %v4243_v29 = vadd.f32 %v4071_v30, %v4048_v5 }
 0x1fe   :  { %v347_v37 = vpop.f32.mrf.mxu0 }
 0x1ff   :  { %v348_v39 = vadd.f32 %v3901_v34, %v347_v37 }
 0x200   :  { %v571_v38 = vpop.f32.mrf.mxu2 }
 0x201   :  { %v4198_v41 = vadd.f32 %v4071_v30, %v571_v38  ;;  %v398_v48 = vmax.f32 %v348_v39, 0.0  ;;  %v5251_v39 = vmax.f32 %v4217_v10, 0.0 }
 0x203   :  { %v5250_v57 = vmax.f32 %v4198_v41, 0.0 }
 0x206   :  { %v349_v40 = vpop.f32.mrf.mxu0 }
 0x207   :  { %v350_v44 = vadd.f32 %v3901_v34, %v349_v40  ;;  %v5255_v40 = vmax.f32 %v4225_v16, 0.0 }
 0x208   :  { %v573_v45 = vpop.f32.mrf.mxu2 }
 0x209   :  { %v399_v51 = vmax.f32 %v350_v44, 0.0  ;;  %v4202_v55 = vadd.f32 %v4071_v30, %v573_v45  ;;  %v5252_v45 = vmax.f32 %v4235_v20, 0.0 }
 0x20b   :  { %v5253_v61 = vmax.f32 %v4202_v55, 0.0  ;;  %v423_v63 = vpack.c.bf16 %v399_v51, %v398_v48  ;;  %v5257_v48 = vmax.f32 %v4239_v49, 0.0  ;;  %v4263_v51 = vadd.f32 %v4071_v30, %v4064_v21 }
 0x20d   :  { %615 = vmatmul.bf16.gmra.mxu3 %v423_v63  ;;  %v4210_v3 = vpack.c.bf16 %v5253_v61, %v5250_v57  ;;  %v5256_v63 = vmax.f32 %v4243_v29, 0.0  ;;  %v704_v21 = vmax.f32 %v5257_v48, %v5254_v43  ;;  %v725_v43 = vmax.f32 %v637_v36, %v638_v35 }
 0x20e   :  { %v501_v7 = vpop.f32.mrf.mxu0 }
 0x20f   :  { %v4213_v9 = vadd.f32 %v4071_v30, %v501_v7  ;;  %v726_v36 = vrot.slane %v725_v43, 4 }
 0x210   :  { %v576_v34 = vpop.f32.mrf.mxu2 }
 0x211   :  { %v4228_v17 = vadd.f32 %v4071_v30, %v576_v34  ;;  %v621_v11 = vmax.f32 %v4213_v9, 0.0  ;;  %v697_v34 = vmax.f32 %v5252_v45, %v5251_v39  ;;  %v705_v39 = vrot.slane %v704_v21, 4 }
 0x212   :  { %v5275_v9 = vmax.f32 %v4157_v46, 0.0 }
 0x213   :  { %v5248_v56 = vmax.f32 %v4228_v17, 0.0  ;;  %v698_v57 = vrot.slane %v697_v34, 4  ;;  %v706_v28 = vmax.f32 %v704_v21, %v705_v39  ;;  %v5281_v46 = vmax.f32 %v4228_v17, 0.0 }
 0x215   :  { %v699_v26 = vmax.f32 %v697_v34, %v698_v57 }
 0x216   :  { %v503_v15 = vpop.f32.mrf.mxu0 }
 0x217   :  { %v4231_v19 = vadd.f32 %v4071_v30, %v503_v15  ;;  %v4282_v15 = vadd.f32 %v4071_v30, %v4061_v18  ;;  %v700_v39 = vrot.slane %v699_v26, 2 }
 0x218   :  { %v578_v62 = vpop.f32.mrf.mxu2 }
 0x219   :  { %v622_v37 = vmax.f32 %v4231_v19, 0.0  ;;  %v4248_v38 = vadd.f32 %v4071_v30, %v578_v62  ;;  %v5262_v45 = vmax.f32 %v4282_v15, 0.0  ;;  %v701_v4 = vmax.f32 %v699_v26, %v700_v39 }
 0x21a   :  { %v746_v26 = vmax.f32 %v643_v25, %v644_v27  ;;  %v753_v19 = vmax.f32 %v5275_v9, %v646_v60 }
 0x21b   :  { %v837_v5 = vpack.c.bf16 %v622_v37, %v621_v11  ;;  %v5249_v44 = vmax.f32 %v4248_v38, 0.0  ;;  %v5280_v58 = vmax.f32 %v4248_v38, 0.0 }
 0x21d   :  { %933 = vmatmul.bf16.vlgmr.msrb.gmra.mxu2 %v837_v5  ;;  %v4270_v7 = vpack.c.bf16 %v5249_v44, %v5248_v56  ;;  %v711_v5 = vmax.f32 %v5256_v63, %v5255_v40  ;;  %v5261_v56 = vmax.f32 %v4263_v51, 0.0  ;;  %v3609_v40 = vld [vmem:[%s5243_s6 + $0x38] sm:$0xff]  ;;  %v732_v63 = vmax.f32 %v639_v54, %v640_v53 }
 0x21e   :  { %v506_v62 = vpop.f32.mrf.mxu0  ;;  %1226 = vmatpush.bf16.msrb.mxu3 %v3609_v40  ;;  %v774_v60 = vmax.f32 %v5281_v46, %v5280_v58 }
 0x21f   :  { %v712_v61 = vrot.slane %v711_v5, 4  ;;  %v718_v18 = vmax.f32 %v5262_v45, %v5261_v56  ;;  %v507_v48 = vadd.f32 %v4071_v30, %v506_v62  ;;  %v733_v50 = vrot.slane %v732_v63, 4 }
 0x220   :  { %v581_v44 = vpop.f32.mrf.mxu2 }
 0x221   :  { %v713_v56 = vmax.f32 %v711_v5, %v712_v61  ;;  %v4307_v32 = vadd.f32 %v4071_v30, %v581_v44  ;;  %v719_v35 = vrot.slane %v718_v18, 4  ;;  %v623_v53 = vmax.f32 %v507_v48, 0.0 }
 0x222   :  { %v707_v61 = vrot.slane %v706_v28, 2  ;;  %1227 = vmatpush.bf16.msrb.mxu3 %v3608_v47  ;;  %v727_v48 = vmax.f32 %v725_v43, %v726_v36  ;;  %v734_v5 = vmax.f32 %v732_v63, %v733_v50  ;;  %v3606_v63 = vld [vmem:[%s5243_s6 + $0x20] sm:$0xff]  ;;  %v702_v50 = vrot.slane %v701_v4, 1 }
 0x223   :  { %v714_v40 = vrot.slane %v713_v56, 2  ;;  %v5263_v44 = vmax.f32 %v4307_v32, 0.0  ;;  %v720_v62 = vmax.f32 %v718_v18, %v719_v35 }
 0x224   :  { %v728_v43 = vrot.slane %v727_v48, 2  ;;  %v735_v36 = vrot.slane %v734_v5, 2 }
 0x225   :  { %v715_v47 = vmax.f32 %v713_v56, %v714_v40  ;;  %v721_v18 = vrot.slane %v720_v62, 2 }
 0x226   :  { %v508_v59 = vpop.f32.mrf.mxu0  ;;  %v729_v56 = vmax.f32 %v727_v48, %v728_v43  ;;  %v736_v40 = vmax.f32 %v734_v5, %v735_v36  ;;  %v669_v5 = vmax.f32 %v621_v11, %v622_v37  ;;  %v5276_v11 = vmax.f32 %v4186_v23, 0.0 }
 0x227   :  { %v509_v42 = vadd.f32 %v4071_v30, %v508_v59  ;;  %v739_v59 = vmax.f32 %v641_v6, %v642_v8  ;;  %v5277_v37 = vmax.f32 %v4179_v14, 0.0 }
 0x228   :  { %v583_v45 = vpop.f32.mrf.mxu2 }
 0x229   :  { %v624_v54 = vmax.f32 %v509_v42, 0.0  ;;  %v4314_v57 = vadd.f32 %v4071_v30, %v583_v45  ;;  %v3607_v45 = vld [vmem:[%s5243_s6 + $0x28] sm:$0xff]  ;;  %v740_v6 = vrot.slane %v739_v59, 4  ;;  %v708_v42 = vmax.f32 %v706_v28, %v707_v61  ;;  %v3605_v61 = vld [vmem:[%s5243_s6 + $0x18] sm:$0xff] }
 0x22a   :  { %1228 = vmatpush.bf16.msrb.mxu3 %v3607_v45  ;;  %v716_v45 = vrot.slane %v715_v47, 1  ;;  %v722_v28 = vmax.f32 %v720_v62, %v721_v18  ;;  %v730_v18 = vrot.slane %v729_v56, 1 }
 0x22b   :  { %v5264_v34 = vmax.f32 %v4314_v57, 0.0  ;;  %v838_v21 = vpack.c.bf16 %v624_v54, %v623_v53  ;;  %v709_v39 = vrot.slane %v708_v42, 1  ;;  %v676_v27 = vmax.f32 %v623_v53, %v624_v54 }
 0x22c   :  { %v4344_v25 = vmax.f32 %v715_v47, %v716_v45  ;;  %v723_v48 = vrot.slane %v722_v28, 1  ;;  %v737_v47 = vrot.slane %v736_v40, 1 }
 0x22d   :  { %938 = vmatmul.bf16.gmra.mxu2 %v838_v21  ;;  %v4329_v1 = vpack.c.bf16 %v5264_v34, %v5263_v44  ;;  %v741_v21 = vmax.f32 %v739_v59, %v740_v6  ;;  %v4342_v34 = vmax.f32 %v701_v4, %v702_v50  ;;  %v747_v6 = vrot.slane %v746_v26, 4 }
 0x22e   :  { %v511_v8 = vpop.f32.mrf.mxu0  ;;  %1229 = vmatpush.bf16.msrb.mxu3 %v3606_v63  ;;  %v710_v22 = vmax.f32 %v708_v42, %v709_v39  ;;  %v3604_v42 = vld [vmem:[%s5243_s6 + $0x10] sm:$0xff]  ;;  %v5278_v50 = vmax.f32 %v4202_v55, 0.0  ;;  %v677_v45 = vrot.slane %v676_v27, 4  ;;  %v3603_v55 = vld [vmem:[%s5243_s6 + $0x8] sm:$0xff] }
 0x22f   :  { %v512_v44 = vadd.f32 %v4071_v30, %v511_v8  ;;  %v742_v59 = vrot.slane %v741_v21, 2  ;;  %v748_v36 = vmax.f32 %v746_v26, %v747_v6  ;;  %v670_v26 = vrot.slane %v669_v5, 4 }
 0x230   :  { %v586_v35 = vpop.f32.mrf.mxu2  ;;  %v738_v6 = vmax.f32 %v736_v40, %v737_v47  ;;  %v1058_v38 = vpack.c.bf16 %v4342_v34, %v4342_v34  ;;  %v775_v40 = vrot.slane %v774_v60, 4  ;;  %v3602_v47 = vld [vmem:[%s5243_s6] sm:$0xff]  ;;  %v5284_v34 = vmax.f32 %v4217_v10, 0.0 }
 0x231   :  { %v4352_v4 = vadd.f32 %v4071_v30, %v586_v35  ;;  %v625_v43 = vmax.f32 %v512_v44, 0.0  ;;  %v743_v63 = vmax.f32 %v741_v21, %v742_v59  ;;  %v760_v35 = vmax.f32 %v5277_v37, %v5276_v11 }
 0x232   :  { %1230 = vmatpush.bf16.msrb.mxu3 %v3605_v61  ;;  %v5279_v44 = vmax.f32 %v4198_v41, 0.0  ;;  %v724_v59 = vmax.f32 %v722_v28, %v723_v48  ;;  %v731_v41 = vmax.f32 %v729_v56, %v730_v18  ;;  %v671_v56 = vmax.f32 %v669_v5, %v670_v26 }
 0x233   :  { %v655_v23 = vmax.f32 %v4352_v4, 0.0  ;;  %v1059_v4 = vpack.c.bf16 %v710_v22, %v710_v22  ;;  %v1060_v11 = vpack.c.bf16 %v4344_v25, %v4344_v25  ;;  %v4398_v26 = vunpack.c.l.b16 %v1058_v38 }
 0x234   :  { %v767_v39 = vmax.f32 %v5279_v44, %v5278_v50  ;;  %v1062_v37 = vpack.c.bf16 %v731_v41, %v731_v41  ;;  %v5283_v50 = vmax.f32 %v4235_v20, 0.0  ;;  %v1063_v44 = vpack.c.bf16 %v738_v6, %v738_v6 }
 0x235   :  { %v4400_v58 = vunpack.c.l.b16 %v1059_v4  ;;  %v776_v41 = vmax.f32 %v774_v60, %v775_v40 }
 0x236   :  { %v513_v24 = vpop.f32.mrf.mxu0  ;;  %1231 = vmatpush.bf16.msrb.mxu3 %v3604_v42  ;;  %v761_v42 = vrot.slane %v760_v35, 4  ;;  %v768_v28 = vrot.slane %v767_v39, 4  ;;  %v4396_v22 = vpack.c.bf16 %v5284_v34, %v5283_v50  ;;  %v1130_v10 = vunpack.c.l.b16 %v1062_v37 }
 0x237   :  { %v514_v62 = vadd.f32 %v4071_v30, %v513_v24 }
 0x238   :  { %v588_v8 = vpop.f32.mrf.mxu2  ;;  %v769_v25 = vmax.f32 %v767_v39, %v768_v28 }
 0x239   :  { %v626_v53 = vmax.f32 %v514_v62, 0.0  ;;  %v4358_v54 = vadd.f32 %v4071_v30, %v588_v8  ;;  %v749_v62 = vrot.slane %v748_v36, 2  ;;  %v754_v8 = vrot.slane %v753_v19, 4 }
 0x23a   :  { %1232 = vmatpush.bf16.msrb.mxu3 %v3603_v55  ;;  %v672_v55 = vrot.slane %v671_v56, 2  ;;  %v770_v38 = vrot.slane %v769_v25, 2 }
 0x23b   :  { %v683_v61 = vmax.f32 %v625_v43, %v626_v53  ;;  %v656_v21 = vmax.f32 %v4358_v54, 0.0  ;;  %v839_v14 = vpack.c.bf16 %v626_v53, %v625_v43  ;;  %v744_v43 = vrot.slane %v743_v63, 1 }
 0x23c   :  { %v678_v53 = vmax.f32 %v676_v27, %v677_v45  ;;  %v1061_v27 = vpack.c.bf16 %v724_v59, %v724_v59  ;;  %v750_v5 = vmax.f32 %v748_v36, %v749_v62  ;;  %v755_v45 = vmax.f32 %v753_v19, %v754_v8 }
 0x23d   :  { %v684_v24 = vrot.slane %v683_v61, 4  ;;  %943 = vmatmul.bf16.gmra.mxu2 %v839_v14  ;;  %v4383_v17 = vpack.c.bf16 %v656_v21, %v655_v23  ;;  %v745_v46 = vmax.f32 %v743_v63, %v744_v43  ;;  %v1131_v36 = vunpack.c.l.b16 %v1063_v44 }
 0x23e   :  { %v516_v9 = vpop.f32.mrf.mxu0  ;;  %1233 = vmatpush.bf16.msrb.mxu3 %v3602_v47  ;;  %v679_v14 = vrot.slane %v678_v53, 2  ;;  %v4405_v6 = vunpack.c.l.b16 %v1061_v27  ;;  %v751_v19 = vrot.slane %v750_v5, 1  ;;  %v673_v4 = vmax.f32 %v671_v56, %v672_v55 }
 0x23f   :  { %5282 = vst [vmem:[#allocation11_spill] sm:$0xff] %v4383_v17  ;;  %v685_v48 = vmax.f32 %v683_v61, %v684_v24  ;;  %v762_v61 = vmax.f32 %v760_v35, %v761_v42  ;;  %v4402_v24 = vunpack.c.l.b16 %v1060_v11  ;;  %v517_v59 = vadd.f32 %v4071_v30, %v516_v9 }
 0x240   :  { %v591_v18 = vpop.f32.mrf.mxu3  ;;  %v756_v35 = vrot.slane %v755_v45, 2  ;;  %v1064_v42 = vpack.c.bf16 %v745_v46, %v745_v46  ;;  %v680_v63 = vmax.f32 %v678_v53, %v679_v14  ;;  %v777_v43 = vrot.slane %v776_v41, 2 }
 0x241   :  { %v686_v20 = vrot.slane %v685_v48, 2  ;;  %v763_v62 = vrot.slane %v762_v61, 2  ;;  %v592_v39 = vadd.f32 %v4071_v30, %v591_v18  ;;  %v788_v9 = vmax.f32 %v655_v23, %v656_v21 }
 0x242   :  { %v627_v47 = vmax.f32 %v517_v59, 0.0  ;;  %v752_v50 = vmax.f32 %v750_v5, %v751_v19  ;;  %v757_v34 = vmax.f32 %v755_v45, %v756_v35  ;;  %v5285_v18 = vmax.f32 %v4314_v57, 0.0 }
 0x243   :  { %v687_v28 = vmax.f32 %v685_v48, %v686_v20  ;;  %v764_v53 = vmax.f32 %v762_v61, %v763_v62  ;;  %v5286_v27 = vmax.f32 %v4307_v32, 0.0  ;;  %v681_v56 = vrot.slane %v680_v63, 1 }
 0x244   :  { %v657_v46 = vmax.f32 %v592_v39, 0.0  ;;  %v771_v55 = vmax.f32 %v769_v25, %v770_v38  ;;  %v778_v20 = vmax.f32 %v776_v41, %v777_v43  ;;  %v674_v23 = vrot.slane %v673_v4, 1 }
 0x245   :  { %v781_v44 = vmax.f32 %v5286_v27, %v5285_v18  ;;  %v688_v54 = vrot.slane %v687_v28, 1  ;;  %v789_v59 = vrot.slane %v788_v9, 4  ;;  %v758_v5 = vrot.slane %v757_v34, 1 }
 0x246   :  { %v518_v8 = vpop.f32.mrf.mxu0  ;;  %v765_v45 = vrot.slane %v764_v53, 1  ;;  %v1065_v32 = vpack.c.bf16 %v752_v50, %v752_v50  ;;  %v682_v19 = vmax.f32 %v680_v63, %v681_v56  ;;  %v1132_v39 = vunpack.c.l.b16 %v1064_v42 }
 0x247   :  { %v519_v60 = vadd.f32 %v4071_v30, %v518_v8  ;;  %v782_v61 = vrot.slane %v781_v44, 4  ;;  %v779_v25 = vrot.slane %v778_v20, 1  ;;  %v689_v41 = vmax.f32 %v687_v28, %v688_v54 }
 0x248   :  { %v593_v40 = vpop.f32.mrf.mxu3  ;;  %v1160_v43 = vsel %vm1146_vm2, %v1131_v36, %v1130_v10  ;;  %v759_v18 = vmax.f32 %v757_v34, %v758_v5  ;;  %v766_v27 = vmax.f32 %v764_v53, %v765_v45 }
 0x249   :  { %v628_v11 = vmax.f32 %v519_v60, 0.0  ;;  %v594_v37 = vadd.f32 %v4071_v30, %v593_v40  ;;  %v772_v40 = vrot.slane %v771_v55, 1  ;;  %v783_v17 = vmax.f32 %v781_v44, %v782_v61 }
 0x24a   :  { %v1161_v63 = vsel %vm1148_vm3, %v1132_v39, %v1160_v43  ;;  %v780_v56 = vmax.f32 %v778_v20, %v779_v25  ;;  %v1066_v10 = vpack.c.bf16 %v759_v18, %v759_v18  ;;  %v1067_v36 = vpack.c.bf16 %v766_v27, %v766_v27 }
 0x24b   :  { %v690_v48 = vmax.f32 %v627_v47, %v628_v11  ;;  %v658_v14 = vmax.f32 %v594_v37, 0.0  ;;  %v840_v21 = vpack.c.bf16 %v628_v11, %v627_v47  ;;  %v675_v47 = vmax.f32 %v673_v4, %v674_v23 }
 0x24c   :  { %v790_v11 = vmax.f32 %v788_v9, %v789_v59  ;;  %v773_v42 = vmax.f32 %v771_v55, %v772_v40  ;;  %v784_v4 = vrot.slane %v783_v17, 2  ;;  %v1069_v55 = vpack.c.bf16 %v780_v56, %v780_v56 }
 0x24d   :  { %v691_v8 = vrot.slane %v690_v48, 4  ;;  %v795_v60 = vmax.f32 %v657_v46, %v658_v14  ;;  %948 = vmatmul.bf16.gmra.mxu2 %v840_v21  ;;  %v4416_v57 = vpack.c.bf16 %v658_v14, %v657_v46  ;;  %v1133_v46 = vunpack.c.l.b16 %v1065_v32 }
 0x24e   :  { %v1055_v14 = vpack.c.bf16 %v682_v19, %v682_v19  ;;  %v1054_v28 = vpack.c.bf16 %v675_v47, %v675_v47  ;;  %v791_v54 = vrot.slane %v790_v11, 2  ;;  %v1068_v59 = vpack.c.bf16 %v773_v42, %v773_v42 }
 0x24f   :  { %v692_v35 = vmax.f32 %v690_v48, %v691_v8  ;;  %v796_v62 = vrot.slane %v795_v60, 4  ;;  %v1056_v48 = vpack.c.bf16 %v689_v41, %v689_v41  ;;  %v1162_v23 = vsel %vm1150_vm4, %v1133_v46, %v1161_v63 }
 0x250   :  { %v596_v38 = vpop.f32.mrf.mxu3  ;;  %v1123_v34 = vunpack.c.l.b16 %v1055_v14  ;;  %v1122_v20 = vunpack.c.l.b16 %v1054_v28  ;;  %v792_v45 = vmax.f32 %v790_v11, %v791_v54  ;;  %v1134_v19 = vunpack.c.l.b16 %v1066_v10 }
 0x251   :  { %v693_v37 = vrot.slane %v692_v35, 2  ;;  %v797_v21 = vmax.f32 %v795_v60, %v796_v62  ;;  %v597_v44 = vadd.f32 %v4071_v30, %v596_v38  ;;  %v1124_v60 = vunpack.c.l.b16 %v1056_v48 }
 0x252   :  { %v785_v62 = vmax.f32 %v783_v17, %v784_v4  ;;  %v1147_v40 = vsel %vm1146_vm2, %v1123_v34, %v1122_v20  ;;  %v1136_v43 = vunpack.c.l.b16 %v1068_v59  ;;  %v793_v18 = vrot.slane %v792_v45, 1 }
 0x253   :  { %v694_v50 = vmax.f32 %v692_v35, %v693_v37  ;;  %v798_v9 = vrot.slane %v797_v21, 2  ;;  %v1135_v35 = vunpack.c.l.b16 %v1067_v36  ;;  %v659_v41 = vmax.f32 %v597_v44, 0.0 }
 0x254   :  { %v1149_v47 = vsel %vm1148_vm3, %v1124_v60, %v1147_v40  ;;  %v1137_v37 = vunpack.c.l.b16 %v1069_v55 }
 0x255   :  { %v695_v8 = vrot.slane %v694_v50, 1  ;;  %v799_v39 = vmax.f32 %v797_v21, %v798_v9  ;;  %v1163_v21 = vsel %vm1152_vm5, %v1134_v19, %v1162_v23 }
 0x256   :  { %v1164_v56 = vsel %vm1154_vm6, %v1135_v35, %v1163_v21  ;;  %v5287_v35 = vmax.f32 %v4239_v49, 0.0 }
 0x257   :  { %v696_v53 = vmax.f32 %v694_v50, %v695_v8  ;;  %v800_v14 = vrot.slane %v799_v39, 1  ;;  %v786_v50 = vrot.slane %v785_v62, 1  ;;  %v1165_v54 = vsel %vm1156_vm7, %v1136_v43, %v1164_v56 }
 0x258   :  { %v598_v5 = vpop.f32.mrf.mxu3  ;;  %v1166_v10 = vsel %vm1158_vm8, %v1137_v37, %v1165_v54 }
 0x259   :  { %v1057_v61 = vpack.c.bf16 %v696_v53, %v696_v53  ;;  %v599_v32 = vadd.f32 %v4071_v30, %v598_v5  ;;  %v801_v36 = vmax.f32 %v799_v39, %v800_v14  ;;  %v787_v9 = vmax.f32 %v785_v62, %v786_v50 }
 0x25a   :  { %v5288_v62 = vmax.f32 %v4221_v13, 0.0  ;;  %v5290_v14 = vmax.f32 %v4225_v16, 0.0 }
 0x25b   :  { %v1125_v25 = vunpack.c.l.b16 %v1057_v61  ;;  %v660_v38 = vmax.f32 %v599_v32, 0.0  ;;  %v1072_v44 = vpack.c.bf16 %v801_v36, %v801_v36  ;;  %v1070_v23 = vpack.c.bf16 %v787_v9, %v787_v9 }
 0x25c   :  { %v842_v39 = vpack.c.bf16 %v5288_v62, %v5287_v35 }
 0x25d   :  { %v802_v27 = vmax.f32 %v659_v41, %v660_v38  ;;  %v1151_v11 = vsel %vm1150_vm4, %v1125_v25, %v1149_v47  ;;  %v4426_v46 = vpack.c.bf16 %v660_v38, %v659_v41  ;;  %953 = vmatmul.bf16.gmra.mxu2 %v4396_v22  ;;  %v794_v22 = vmax.f32 %v792_v45, %v793_v18 }
 0x25e   :  { %v1153_v17 = vsel %vm1152_vm5, %v4398_v26, %v1151_v11  ;;  %v1138_v45 = vunpack.c.l.b16 %v1070_v23  ;;  %v5289_v11 = vmax.f32 %v4243_v29, 0.0  ;;  %v5292_v29 = vmax.f32 %v4263_v51, 0.0 }
 0x25f   :  { %v803_v63 = vrot.slane %v802_v27, 4  ;;  %v1155_v42 = vsel %vm1154_vm6, %v4400_v58, %v1153_v17  ;;  %v1071_v58 = vpack.c.bf16 %v794_v22, %v794_v22 }
 0x260   :  { %v601_v48 = vpop.f32.mrf.mxu3  ;;  %v1157_v28 = vsel %vm1156_vm7, %v4402_v24, %v1155_v42  ;;  %v843_v17 = vpack.c.bf16 %v5290_v14, %v5289_v11 }
 0x261   :  { %v804_v8 = vmax.f32 %v802_v27, %v803_v63  ;;  %v1159_v26 = vsel %vm1158_vm8, %v4405_v6, %v1157_v28  ;;  %v602_v24 = vadd.f32 %v4071_v30, %v601_v48  ;;  %v1139_v5 = vunpack.c.l.b16 %v1071_v58 }
 0x262   :  { %v1174_v4 = vpack.c.b16 %v1166_v10, %v1159_v26  ;;  %v1140_v6 = vunpack.c.l.b16 %v1072_v44  ;;  %v5291_v26 = vmax.f32 %v4282_v15, 0.0 }
 0x263   :  { %v805_v34 = vrot.slane %v804_v8, 2  ;;  %v661_v32 = vmax.f32 %v602_v24, 0.0  ;;  %v1167_v25 = vsel %vm1146_vm2, %v1139_v5, %v1138_v45 }
 0x264   :  { %1234 = vmatmul.bf16.vlgmr.msrb.gmra.mxu3 %v1174_v4  ;;  %v1168_v38 = vsel %vm1148_vm3, %v1140_v6, %v1167_v25  ;;  %v844_v16 = vpack.c.bf16 %v5292_v29, %v5291_v26  ;;  %v3617_v29 = vld [vmem:[%s5242_s5 + $0x78] sm:$0xff] }
 0x265   :  { %v806_v53 = vmax.f32 %v804_v8, %v805_v34  ;;  %1669 = vmatpush.bf16.msra.mxu3 %v3617_v29 }
 0x267   :  { %v807_v59 = vrot.slane %v806_v53, 1 }
 0x268   :  { %v603_v60 = vpop.f32.mrf.mxu3 }
 0x269   :  { %v808_v55 = vmax.f32 %v806_v53, %v807_v59  ;;  %v604_v20 = vadd.f32 %v4071_v30, %v603_v60 }
 0x26b   :  { %v1073_v61 = vpack.c.bf16 %v808_v55, %v808_v55  ;;  %v662_v19 = vmax.f32 %v604_v20, 0.0 }
 0x26d   :  { %v1141_v40 = vunpack.c.l.b16 %v1073_v61  ;;  %v4448_v41 = vpack.c.bf16 %v662_v19, %v661_v32  ;;  %958 = vmatmul.bf16.gmra.mxu2 %v842_v39  ;;  %v809_v42 = vmax.f32 %v661_v32, %v662_v19 }
 0x26f   :  { %v4452_v43 = vsel %vm1150_vm4, %v1141_v40, %v1168_v38  ;;  %v810_v8 = vrot.slane %v809_v42, 4 }
 0x270   :  { %v606_v47 = vpop.f32.mrf.mxu3 }
 0x271   :  { %v607_v37 = vadd.f32 %v4071_v30, %v606_v47  ;;  %v811_v34 = vmax.f32 %v809_v42, %v810_v8 }
 0x273   :  { %v663_v27 = vmax.f32 %v607_v37, 0.0  ;;  %v812_v23 = vrot.slane %v811_v34, 2 }
 0x275   :  { %v813_v5 = vmax.f32 %v811_v34, %v812_v23  ;;  %v3612_v34 = vld [vmem:[%s5242_s5 + $0x50] sm:$0xff] }
 0x277   :  { %v814_v61 = vrot.slane %v813_v5, 1 }
 0x278   :  { %v608_v18 = vpop.f32.mrf.mxu3 }
 0x279   :  { %v609_v49 = vadd.f32 %v4071_v30, %v608_v18  ;;  %v815_v40 = vmax.f32 %v813_v5, %v814_v61 }
 0x27b   :  { %v664_v13 = vmax.f32 %v609_v49, 0.0  ;;  %v1074_v49 = vpack.c.bf16 %v815_v40, %v815_v40 }
 0x27d   :  { %v4460_v21 = vpack.c.bf16 %v664_v13, %v663_v27  ;;  %963 = vmatmul.bf16.gmra.mxu2 %v843_v17  ;;  %v816_v48 = vmax.f32 %v663_v27, %v664_v13  ;;  %v1142_v14 = vunpack.c.l.b16 %v1074_v49 }
 0x27f   :  { %v817_v10 = vrot.slane %v816_v48, 4 }
 0x280   :  { %v611_v50 = vpop.f32.mrf.mxu3 }
 0x281   :  { %v612_v63 = vadd.f32 %v4071_v30, %v611_v50  ;;  %v818_v53 = vmax.f32 %v816_v48, %v817_v10  ;;  %v3614_v10 = vld [vmem:[%s5242_s5 + $0x60] sm:$0xff] }
 0x283   :  { %v665_v54 = vmax.f32 %v612_v63, 0.0  ;;  %v819_v59 = vrot.slane %v818_v53, 2 }
 0x285   :  { %v820_v55 = vmax.f32 %v818_v53, %v819_v59  ;;  %v3610_v53 = vld [vmem:[%s5242_s5 + $0x40] sm:$0xff] }
 0x287   :  { %v821_v32 = vrot.slane %v820_v55, 1 }
 0x288   :  { %v613_v56 = vpop.f32.mrf.mxu3 }
 0x289   :  { %v614_v28 = vadd.f32 %v4071_v30, %v613_v56  ;;  %v822_v38 = vmax.f32 %v820_v55, %v821_v32 }
 0x28b   :  { %v666_v22 = vmax.f32 %v614_v28, 0.0 }
 0x28d   :  { %v823_v36 = vmax.f32 %v665_v54, %v666_v22  ;;  %v4468_v4 = vpack.c.bf16 %v666_v22, %v665_v54  ;;  %968 = vmatmul.bf16.gmra.mxu2 %v844_v16 }
 0x28f   :  { %v824_v9 = vrot.slane %v823_v36, 4 }
 0x290   :  { %v616_v58 = vpop.f32.mrf.mxu3 }
 0x291   :  { %v825_v44 = vmax.f32 %v823_v36, %v824_v9  ;;  %v617_v60 = vadd.f32 %v4071_v30, %v616_v58  ;;  %v3613_v9 = vld [vmem:[%s5242_s5 + $0x58] sm:$0xff] }
 0x293   :  { %v826_v24 = vrot.slane %v825_v44, 2  ;;  %v667_v6 = vmax.f32 %v617_v60, 0.0 }
 0x295   :  { %v827_v20 = vmax.f32 %v825_v44, %v826_v24  ;;  %v4511_v24 = vld [vmem:[%s5244_s7] ss:$0 sm:$0xff] }
 0x297   :  { %v828_v62 = vrot.slane %v827_v20, 1 }
 0x298   :  { %v618_v15 = vpop.f32.mrf.mxu3 }
 0x299   :  { %v619_v51 = vadd.f32 %v4071_v30, %v618_v15  ;;  %v829_v37 = vmax.f32 %v827_v20, %v828_v62  ;;  %v1075_v30 = vpack.c.bf16 %v822_v38, %v822_v38 }
 0x29b   :  { %v668_v45 = vmax.f32 %v619_v51, 0.0  ;;  %v1076_v13 = vpack.c.bf16 %v829_v37, %v829_v37  ;;  %v1143_v63 = vunpack.c.l.b16 %v1075_v30 }
 0x29d   :  { %v830_v19 = vmax.f32 %v667_v6, %v668_v45  ;;  %v4472_v35 = vpack.c.bf16 %v668_v45, %v667_v6  ;;  %973 = vmatmul.bf16.gmra.mxu2 %v4088_v52  ;;  %v1144_v42 = vunpack.c.l.b16 %v1076_v13  ;;  %v1170_v52 = vsel %vm1152_vm5, %v1142_v14, %v4452_v43  ;;  %v3616_v43 = vld [vmem:[%s5242_s5 + $0x70] sm:$0xff] }
 0x29e   :  { %v1171_v28 = vsel %vm1154_vm6, %v1143_v63, %v1170_v52  ;;  %1670 = vmatpush.bf16.msra.mxu3 %v3616_v43 }
 0x29f   :  { %v831_v39 = vrot.slane %v830_v19, 4  ;;  %v1172_v54 = vsel %vm1156_vm7, %v1144_v42, %v1171_v28 }
 0x2a0   :  { %v934_v25 = vpop.f32.mrf.mxu2 }
 0x2a1   :  { %v832_v47 = vmax.f32 %v830_v19, %v831_v39 }
 0x2a3   :  { %v833_v18 = vrot.slane %v832_v47, 2 }
 0x2a5   :  { %v834_v27 = vmax.f32 %v832_v47, %v833_v18 }
 0x2a7   :  { %v835_v11 = vrot.slane %v834_v27, 1 }
 0x2a8   :  { %v936_v17 = vpop.f32.mrf.mxu2 }
 0x2a9   :  { %v836_v50 = vmax.f32 %v834_v27, %v835_v11 }
 0x2ab   :  { %v1077_v56 = vpack.c.bf16 %v836_v50, %v836_v50 }
 0x2ad   :  { %v1145_v48 = vunpack.c.l.b16 %v1077_v56  ;;  %978 = vmatmul.bf16.gmra.mxu2 %v4108_v2  ;;  %v3615_v2 = vld [vmem:[%s5242_s5 + $0x68] sm:$0xff] }
 0x2ae   :  { %1671 = vmatpush.bf16.msra.mxu3 %v3615_v2 }
 0x2af   :  { %v1173_v22 = vsel %vm1158_vm8, %v1145_v48, %v1172_v54 }
 0x2b0   :  { %v939_v8 = vpop.f32.mrf.mxu2  ;;  %v1175_v26 = vpack.c.b16 %v1173_v22, %v1173_v22 }
 0x2b2   :  { %1239 = vmatmul.bf16.gmra.mxu3 %v1175_v26 }
 0x2b3   :  { %1672 = vmatpush.bf16.msra.mxu3 %v3614_v10 }
 0x2b7   :  { %1673 = vmatpush.bf16.msra.mxu3 %v3613_v9 }
 0x2b8   :  { %v941_v16 = vpop.f32.mrf.mxu2 }
 0x2bb   :  { %1674 = vmatpush.bf16.msra.mxu3 %v3612_v34 }
 0x2bd   :  { %983 = vmatmul.bf16.gmra.mxu2 %v4131_v12  ;;  %v3611_v12 = vld [vmem:[%s5242_s5 + $0x48] sm:$0xff] }
 0x2bf   :  { %1675 = vmatpush.bf16.msra.mxu3 %v3611_v12 }
 0x2c0   :  { %v944_v36 = vpop.f32.mrf.mxu2 }
 0x2c3   :  { %1676 = vmatpush.bf16.msra.mxu3 %v3610_v53 }
 0x2c8   :  { %v946_v58 = vpop.f32.mrf.mxu2 }
 0x2cd   :  { %988 = vmatmul.bf16.gmra.mxu2 %v4150_v31 }
 0x2d0   :  { %v949_v44 = vpop.f32.mrf.mxu2 }
 0x2d8   :  { %v951_v23 = vpop.f32.mrf.mxu2 }
 0x2dd   :  { %993 = vmatmul.bf16.gmra.mxu2 %v4172_v0 }
 0x2e0   :  { %v954_v59 = vpop.f32.mrf.mxu2 }
 0x2e7   :  { %v1235_v60 = vpop.f32.mrf.mxu3 }
 0x2e8   :  { %v4514_v5 = vadd.f32 %v4511_v24, %v1235_v60  ;;  %v956_v31 = vpop.f32.mrf.mxu2 }
 0x2ea   :  { %v1250_v15 = vrot.slane %v4514_v5, 4  ;;  %v1268_v55 = vperm.slane %v4514_v5, 0  ;;  %v1247_v51 = vrot.slane %v4514_v5, 1  ;;  %v1248_v20 = vrot.slane %v4514_v5, 2 }
 0x2eb   :  { %v1251_v6 = vrot.slane %v4514_v5, 5  ;;  %v1249_v62 = vrot.slane %v4514_v5, 3 }
 0x2ec   :  { %v1272_v0 = vperm.slane %v1250_v15, 0  ;;  %v1316_v45 = vadd.f32 %v1268_v55, %v934_v25  ;;  %v1317_v61 = vadd.f32 %v1268_v55, %v936_v17  ;;  %v1269_v32 = vperm.slane %v1247_v51, 0 }
 0x2ed   :  { %v1270_v19 = vperm.slane %v1248_v20, 0  ;;  %998 = vmatmul.bf16.gmra.mxu2 %v4194_v33  ;;  %v1273_v11 = vperm.slane %v1251_v6, 0  ;;  %v1271_v22 = vperm.slane %v1249_v62, 0 }
 0x2ee   :  { %v1324_v39 = vadd.f32 %v1272_v0, %v954_v59  ;;  %v1325_v40 = vadd.f32 %v1272_v0, %v956_v31  ;;  %v1364_v38 = vmax.f32 %v1316_v45, 0.0  ;;  %v1365_v47 = vmax.f32 %v1317_v61, 0.0 }
 0x2ef   :  { %v1318_v37 = vadd.f32 %v1269_v32, %v939_v8  ;;  %v1319_v18 = vadd.f32 %v1269_v32, %v941_v16  ;;  %v1320_v49 = vadd.f32 %v1270_v19, %v944_v36  ;;  %v1321_v30 = vadd.f32 %v1270_v19, %v946_v58 }
 0x2f0   :  { %v1372_v27 = vmax.f32 %v1324_v39, 0.0  ;;  %v1373_v13 = vmax.f32 %v1325_v40, 0.0  ;;  %v1412_v14 = vmax.f32 %v1364_v38, %v1365_v47  ;;  %v959_v25 = vpop.f32.mrf.mxu2  ;;  %v1580_v17 = vpack.c.bf16 %v1365_v47, %v1364_v38 }
 0x2f1   :  { %v1366_v50 = vmax.f32 %v1318_v37, 0.0  ;;  %v1367_v63 = vmax.f32 %v1319_v18, 0.0  ;;  %v1368_v42 = vmax.f32 %v1320_v49, 0.0  ;;  %v1326_v52 = vadd.f32 %v1273_v11, %v959_v25 }
 0x2f2   :  { %v1440_v56 = vmax.f32 %v1372_v27, %v1373_v13  ;;  %v1413_v48 = vrot.slane %v1412_v14, 4  ;;  %v1369_v28 = vmax.f32 %v1321_v30, 0.0  ;;  %1677 = vmatmul.bf16.vlgmr.msra.gmra.mxu3 %v1580_v17  ;;  %v1322_v2 = vadd.f32 %v1271_v22, %v949_v44 }
 0x2f3   :  { %v1419_v33 = vmax.f32 %v1366_v50, %v1367_v63  ;;  %v1581_v54 = vpack.c.bf16 %v1367_v63, %v1366_v50  ;;  %v1323_v10 = vadd.f32 %v1271_v22, %v951_v23  ;;  %v4525_v59 = vpack.c.bf16 %v1373_v13, %v1372_v27 }
 0x2f4   :  { %v1441_v8 = vrot.slane %v1440_v56, 4  ;;  %v1414_v26 = vmax.f32 %v1412_v14, %v1413_v48  ;;  %v1426_v29 = vmax.f32 %v1368_v42, %v1369_v28  ;;  %v4523_v16 = vpack.c.bf16 %v1369_v28, %v1368_v42 }
 0x2f5   :  { %v1420_v43 = vrot.slane %v1419_v33, 4  ;;  %v1370_v12 = vmax.f32 %v1322_v2, 0.0  ;;  %v1371_v53 = vmax.f32 %v1323_v10, 0.0  ;;  %v1252_v61 = vrot.slane %v4514_v5, 6 }
 0x2f6   :  { %v1442_v36 = vmax.f32 %v1440_v56, %v1441_v8  ;;  %v1415_v9 = vrot.slane %v1414_v26, 2  ;;  %v1427_v34 = vrot.slane %v1426_v29, 4  ;;  %v1374_v62 = vmax.f32 %v1326_v52, 0.0 }
 0x2f7   :  { %v1421_v58 = vmax.f32 %v1419_v33, %v1420_v43  ;;  %v1433_v20 = vmax.f32 %v1370_v12, %v1371_v53  ;;  %v4527_v0 = vpack.c.bf16 %v1371_v53, %v1370_v12  ;;  %v1274_v17 = vperm.slane %v1252_v61, 0 }
 0x2f8   :  { %v1443_v60 = vrot.slane %v1442_v36, 2  ;;  %v1416_v31 = vmax.f32 %v1414_v26, %v1415_v9  ;;  %v1428_v15 = vmax.f32 %v1426_v29, %v1427_v34  ;;  %v961_v55 = vpop.f32.mrf.mxu2 }
 0x2f9   :  { %v1422_v51 = vrot.slane %v1421_v58, 2  ;;  %v1327_v44 = vadd.f32 %v1273_v11, %v961_v55  ;;  %v1434_v19 = vrot.slane %v1433_v20, 4 }
 0x2fa   :  { %v1444_v6 = vmax.f32 %v1442_v36, %v1443_v60  ;;  %v1417_v45 = vrot.slane %v1416_v31, 1  ;;  %v1429_v23 = vrot.slane %v1428_v15, 2 }
 0x2fb   :  { %v1423_v32 = vmax.f32 %v1421_v58, %v1422_v51  ;;  %v1375_v40 = vmax.f32 %v1327_v44, 0.0  ;;  %v1435_v37 = vmax.f32 %v1433_v20, %v1434_v19 }
 0x2fc   :  { %v1418_v39 = vmax.f32 %v1416_v31, %v1417_v45  ;;  %v1430_v38 = vmax.f32 %v1428_v15, %v1429_v23  ;;  %v1445_v18 = vrot.slane %v1444_v6, 1 }
 0x2fd   :  { %v1424_v47 = vrot.slane %v1423_v32, 1  ;;  %v1447_v49 = vmax.f32 %v1374_v62, %v1375_v40  ;;  %1003 = vmatmul.bf16.gmra.mxu2 %v4210_v3  ;;  %v1436_v14 = vrot.slane %v1435_v37, 2  ;;  %v4531_v11 = vpack.c.bf16 %v1375_v40, %v1374_v62 }
 0x2fe   :  { %v1431_v30 = vrot.slane %v1430_v38, 1  ;;  %v1798_v27 = vpack.c.bf16 %v1418_v39, %v1418_v39  ;;  %v1446_v52 = vmax.f32 %v1444_v6, %v1445_v18 }
 0x2ff   :  { %v1425_v13 = vmax.f32 %v1423_v32, %v1424_v47  ;;  %v1448_v25 = vrot.slane %v1447_v49, 4  ;;  %v1437_v56 = vmax.f32 %v1435_v37, %v1436_v14 }
 0x300   :  { %v1432_v50 = vmax.f32 %v1430_v38, %v1431_v30  ;;  %v964_v63 = vpop.f32.mrf.mxu2  ;;  %v1868_v22 = vunpack.c.l.b16 %v1798_v27  ;;  %v1802_v10 = vpack.c.bf16 %v1446_v52, %v1446_v52 }
 0x301   :  { %v1799_v42 = vpack.c.bf16 %v1425_v13, %v1425_v13  ;;  %v1449_v48 = vmax.f32 %v1447_v49, %v1448_v25  ;;  %v1328_v28 = vadd.f32 %v1274_v17, %v964_v63  ;;  %v1438_v3 = vrot.slane %v1437_v56, 1 }
 0x302   :  { %v1800_v33 = vpack.c.bf16 %v1432_v50, %v1432_v50  ;;  %1682 = vmatmul.bf16.gmra.mxu3 %v1581_v54  ;;  %v1872_v60 = vunpack.c.l.b16 %v1802_v10  ;;  %v1253_v54 = vrot.slane %v4514_v5, 7  ;;  %v1237_v50 = vpop.f32.mrf.mxu3 }
 0x303   :  { %v1869_v8 = vunpack.c.l.b16 %v1799_v42  ;;  %v1450_v26 = vrot.slane %v1449_v48, 2  ;;  %v1439_v2 = vmax.f32 %v1437_v56, %v1438_v3  ;;  %v1376_v20 = vmax.f32 %v1328_v28, 0.0 }
 0x304   :  { %v1870_v29 = vunpack.c.l.b16 %v1800_v33  ;;  %v1275_v19 = vperm.slane %v1253_v54, 0  ;;  %v4548_v56 = vadd.f32 %v4511_v24, %v1237_v50 }
 0x305   :  { %v1892_v43 = vsel %vm1146_vm2, %v1869_v8, %v1868_v22  ;;  %v1451_v36 = vmax.f32 %v1449_v48, %v1450_v26  ;;  %v1801_v34 = vpack.c.bf16 %v1439_v2, %v1439_v2 }
 0x306   :  { %v1893_v9 = vsel %vm1148_vm3, %v1870_v29, %v1892_v43  ;;  %v1276_v33 = vperm.slane %v4548_v56, 0 }
 0x307   :  { %v1452_v58 = vrot.slane %v1451_v36, 1  ;;  %v1871_v53 = vunpack.c.l.b16 %v1801_v34 }
 0x308   :  { %v966_v12 = vpop.f32.mrf.mxu2 }
 0x309   :  { %v1453_v31 = vmax.f32 %v1451_v36, %v1452_v58  ;;  %v1329_v15 = vadd.f32 %v1274_v17, %v966_v12  ;;  %v1894_v55 = vsel %vm1150_vm4, %v1871_v53, %v1893_v9  ;;  %v5293_v9 = vld [vmem:[#allocation11_spill] sm:$0xff]  ;;  %v1254_v53 = vrot.slane %v4548_v56, 1 }
 0x30a   :  { %v1895_v45 = vsel %vm1152_vm5, %v1872_v60, %v1894_v55 }
 0x30b   :  { %v1803_v51 = vpack.c.bf16 %v1453_v31, %v1453_v31  ;;  %v1377_v6 = vmax.f32 %v1329_v15, 0.0  ;;  %v1277_v15 = vperm.slane %v1254_v53, 0 }
 0x30d   :  { %v1873_v44 = vunpack.c.l.b16 %v1803_v51  ;;  %v1454_v23 = vmax.f32 %v1376_v20, %v1377_v6  ;;  %1008 = vmatmul.bf16.gmra.mxu2 %v4270_v7  ;;  %v4539_v61 = vpack.c.bf16 %v1377_v6, %v1376_v20 }
 0x30f   :  { %v1455_v32 = vrot.slane %v1454_v23, 4  ;;  %v1896_v62 = vsel %vm1154_vm6, %v1873_v44, %v1895_v45 }
 0x310   :  { %v969_v39 = vpop.f32.mrf.mxu2 }
 0x311   :  { %v1456_v40 = vmax.f32 %v1454_v23, %v1455_v32  ;;  %v1330_v5 = vadd.f32 %v1275_v19, %v969_v39 }
 0x312   :  { %1687 = vmatmul.bf16.gmra.mxu3 %v4523_v16 }
 0x313   :  { %v1457_v38 = vrot.slane %v1456_v40, 2  ;;  %v1378_v13 = vmax.f32 %v1330_v5, 0.0  ;;  %v1255_v5 = vrot.slane %v4548_v56, 2 }
 0x315   :  { %v1458_v47 = vmax.f32 %v1456_v40, %v1457_v38 }
 0x317   :  { %v1459_v37 = vrot.slane %v1458_v47, 1 }
 0x318   :  { %v971_v18 = vpop.f32.mrf.mxu2 }
 0x319   :  { %v1460_v49 = vmax.f32 %v1458_v47, %v1459_v37  ;;  %v1331_v30 = vadd.f32 %v1275_v19, %v971_v18  ;;  %v1278_v18 = vperm.slane %v1255_v5, 0 }
 0x31b   :  { %v1804_v27 = vpack.c.bf16 %v1460_v49, %v1460_v49  ;;  %v1379_v7 = vmax.f32 %v1331_v30, 0.0 }
 0x31d   :  { %v1874_v14 = vunpack.c.l.b16 %v1804_v27  ;;  %v1461_v25 = vmax.f32 %v1378_v13, %v1379_v7  ;;  %1013 = vmatmul.bf16.gmra.mxu2 %v4329_v1  ;;  %v4544_v17 = vpack.c.bf16 %v1379_v7, %v1378_v13 }
 0x31f   :  { %v1462_v63 = vrot.slane %v1461_v25, 4  ;;  %v1897_v42 = vsel %vm1156_vm7, %v1874_v14, %v1896_v62 }
 0x320   :  { %v974_v16 = vpop.f32.mrf.mxu2 }
 0x321   :  { %v1463_v52 = vmax.f32 %v1461_v25, %v1462_v63  ;;  %v1332_v8 = vadd.f32 %v1276_v33, %v974_v16 }
 0x322   :  { %1692 = vmatmul.bf16.gmra.mxu3 %v4527_v0 }
 0x323   :  { %v1464_v48 = vrot.slane %v1463_v52, 2  ;;  %v1380_v43 = vmax.f32 %v1332_v8, 0.0 }
 0x325   :  { %v1465_v28 = vmax.f32 %v1463_v52, %v1464_v48 }
 0x327   :  { %v1466_v22 = vrot.slane %v1465_v28, 1 }
 0x328   :  { %v976_v1 = vpop.f32.mrf.mxu2 }
 0x329   :  { %v1467_v3 = vmax.f32 %v1465_v28, %v1466_v22  ;;  %v1333_v26 = vadd.f32 %v1276_v33, %v976_v1  ;;  %v1256_v22 = vrot.slane %v4548_v56, 3 }
 0x32b   :  { %v1805_v29 = vpack.c.bf16 %v1467_v3, %v1467_v3  ;;  %v1381_v2 = vmax.f32 %v1333_v26, 0.0  ;;  %v1279_v3 = vperm.slane %v1256_v22, 0 }
 0x32d   :  { %v1875_v10 = vunpack.c.l.b16 %v1805_v29  ;;  %v1468_v36 = vmax.f32 %v1380_v43, %v1381_v2  ;;  %1018 = vmatmul.bf16.gmra.mxu2 %v5293_v9  ;;  %v4553_v34 = vpack.c.bf16 %v1381_v2, %v1380_v43 }
 0x32f   :  { %v4556_v0 = vsel %vm1158_vm8, %v1875_v10, %v1897_v42  ;;  %v1469_v12 = vrot.slane %v1468_v36, 4 }
 0x330   :  { %v979_v58 = vpop.f32.mrf.mxu2 }
 0x331   :  { %v1470_v31 = vmax.f32 %v1468_v36, %v1469_v12  ;;  %v1334_v54 = vadd.f32 %v1277_v15, %v979_v58 }
 0x332   :  { %1697 = vmatmul.bf16.gmra.mxu3 %v4525_v59 }
 0x333   :  { %v1471_v51 = vrot.slane %v1470_v31, 2  ;;  %v1382_v6 = vmax.f32 %v1334_v54, 0.0 }
 0x335   :  { %v4560_v60 = vpop.f32.mrf.mxu3  ;;  %v1472_v23 = vmax.f32 %v1470_v31, %v1471_v51  ;;  %v3625_v31 = vld [vmem:[%s5243_s6 + $0x78] sm:$0xff] }
 0x336   :  { %1965 = vmatpush.bf16.msra.mxu0 %v3625_v31 }
 0x337   :  { %v1473_v59 = vrot.slane %v1472_v23, 1 }
 0x338   :  { %v981_v55 = vpop.f32.mrf.mxu2 }
 0x339   :  { %v1335_v20 = vadd.f32 %v1277_v15, %v981_v55  ;;  %v1474_v47 = vmax.f32 %v1472_v23, %v1473_v59 }
 0x33b   :  { %v1383_v45 = vmax.f32 %v1335_v20, 0.0  ;;  %v1806_v13 = vpack.c.bf16 %v1474_v47, %v1474_v47 }
 0x33d   :  { %v1242_v44 = vpop.f32.mrf.mxu3  ;;  %v1475_v32 = vmax.f32 %v1382_v6, %v1383_v45  ;;  %1023 = vmatmul.bf16.gmra.mxu2 %v4416_v57  ;;  %v4563_v19 = vpack.c.bf16 %v1383_v45, %v1382_v6  ;;  %v1876_v63 = vunpack.c.l.b16 %v1806_v13 }
 0x33f   :  { %v1476_v62 = vrot.slane %v1475_v32, 4 }
 0x340   :  { %v984_v39 = vpop.f32.mrf.mxu2 }
 0x341   :  { %v1477_v40 = vmax.f32 %v1475_v32, %v1476_v62  ;;  %v1336_v30 = vadd.f32 %v1278_v18, %v984_v39  ;;  %v3624_v32 = vld [vmem:[%s5243_s6 + $0x70] sm:$0xff] }
 0x342   :  { %1702 = vmatmul.bf16.gmra.mxu3 %v4531_v11  ;;  %1966 = vmatpush.bf16.msra.mxu0 %v3624_v32  ;;  %v4662_v32 = vadd.f32 %v4511_v24, %v4560_v60 }
 0x343   :  { %v1478_v38 = vrot.slane %v1477_v40, 2  ;;  %v1384_v25 = vmax.f32 %v1336_v30, 0.0  ;;  %v1259_v30 = vrot.slane %v4548_v56, 6 }
 0x345   :  { %v1479_v37 = vmax.f32 %v1477_v40, %v1478_v38  ;;  %v1258_v40 = vrot.slane %v4548_v56, 5 }
 0x347   :  { %v1480_v49 = vrot.slane %v1479_v37, 1  ;;  %v1281_v47 = vperm.slane %v1258_v40, 0 }
 0x348   :  { %v986_v27 = vpop.f32.mrf.mxu2 }
 0x349   :  { %v1481_v7 = vmax.f32 %v1479_v37, %v1480_v49  ;;  %v1337_v57 = vadd.f32 %v1278_v18, %v986_v27  ;;  %v3622_v37 = vld [vmem:[%s5243_s6 + $0x60] sm:$0xff] }
 0x34b   :  { %v1807_v14 = vpack.c.bf16 %v1481_v7, %v1481_v7  ;;  %v1385_v50 = vmax.f32 %v1337_v57, 0.0 }
 0x34d   :  { %v1877_v42 = vunpack.c.l.b16 %v1807_v14  ;;  %v1482_v16 = vmax.f32 %v1384_v25, %v1385_v50  ;;  %1028 = vmatmul.bf16.gmra.mxu2 %v4426_v46  ;;  %v4568_v52 = vpack.c.bf16 %v1385_v50, %v1384_v25  ;;  %v1282_v14 = vperm.slane %v1259_v30, 0 }
 0x34f   :  { %v1899_v11 = vsel %vm1146_vm2, %v1877_v42, %v1876_v63  ;;  %v1483_v48 = vrot.slane %v1482_v16, 4 }
 0x350   :  { %v989_v28 = vpop.f32.mrf.mxu2 }
 0x351   :  { %v1484_v33 = vmax.f32 %v1482_v16, %v1483_v48  ;;  %v4573_v29 = vadd.f32 %v1279_v3, %v989_v28 }
 0x352   :  { %1707 = vmatmul.bf16.gmra.mxu3 %v4539_v61 }
 0x353   :  { %v1485_v8 = vrot.slane %v1484_v33, 2  ;;  %v1386_v36 = vmax.f32 %v4573_v29, 0.0 }
 0x355   :  { %v1486_v1 = vmax.f32 %v1484_v33, %v1485_v8 }
 0x357   :  { %v1487_v26 = vrot.slane %v1486_v1, 1 }
 0x358   :  { %v991_v43 = vpop.f32.mrf.mxu2 }
 0x359   :  { %v1488_v2 = vmax.f32 %v1486_v1, %v1487_v26  ;;  %v4575_v46 = vadd.f32 %v1279_v3, %v991_v43  ;;  %v3620_v26 = vld [vmem:[%s5243_s6 + $0x50] sm:$0xff] }
 0x35b   :  { %v1808_v10 = vpack.c.bf16 %v1488_v2, %v1488_v2  ;;  %v1387_v9 = vmax.f32 %v4575_v46, 0.0  ;;  %v3619_v2 = vld [vmem:[%s5243_s6 + $0x48] sm:$0xff] }
 0x35d   :  { %v1878_v58 = vunpack.c.l.b16 %v1808_v10  ;;  %v1489_v61 = vmax.f32 %v1386_v36, %v1387_v9  ;;  %1033 = vmatmul.bf16.gmra.mxu2 %v4448_v41  ;;  %v1591_v30 = vpack.c.bf16 %v1387_v9, %v1386_v36 }
 0x35f   :  { %v1900_v12 = vsel %vm1148_vm3, %v1878_v58, %v1899_v11  ;;  %v1490_v53 = vrot.slane %v1489_v61, 4 }
 0x360   :  { %v994_v15 = vpop.f32.mrf.mxu2 }
 0x361   :  { %v1491_v54 = vmax.f32 %v1489_v61, %v1490_v53 }
 0x362   :  { %1712 = vmatmul.bf16.gmra.mxu3 %v4544_v17  ;;  %v3623_v17 = vld [vmem:[%s5243_s6 + $0x68] sm:$0xff] }
 0x363   :  { %v1492_v55 = vrot.slane %v1491_v54, 2  ;;  %1967 = vmatpush.bf16.msra.mxu0 %v3623_v17 }
 0x365   :  { %v1493_v51 = vmax.f32 %v1491_v54, %v1492_v55 }
 0x367   :  { %v1494_v20 = vrot.slane %v1493_v51, 1  ;;  %1968 = vmatpush.bf16.msra.mxu0 %v3622_v37 }
 0x368   :  { %v996_v6 = vpop.f32.mrf.mxu2 }
 0x369   :  { %v1495_v45 = vmax.f32 %v1493_v51, %v1494_v20 }
 0x36b   :  { %v1809_v44 = vpack.c.bf16 %v1495_v45, %v1495_v45 }
 0x36d   :  { %v1879_v23 = vunpack.c.l.b16 %v1809_v44  ;;  %1038 = vmatmul.bf16.gmra.mxu2 %v4460_v21  ;;  %v1257_v21 = vrot.slane %v4548_v56, 4 }
 0x36f   :  { %v4591_v41 = vsel %vm1150_vm4, %v1879_v23, %v1900_v12  ;;  %v1280_v38 = vperm.slane %v1257_v21, 0  ;;  %v1260_v12 = vrot.slane %v4548_v56, 7 }
 0x370   :  { %v999_v62 = vpop.f32.mrf.mxu2 }
 0x371   :  { %v4610_v18 = vadd.f32 %v1280_v38, %v996_v6  ;;  %v4618_v27 = vadd.f32 %v1280_v38, %v994_v15  ;;  %v4621_v13 = vadd.f32 %v1281_v47, %v999_v62  ;;  %v1283_v15 = vperm.slane %v1260_v12, 0  ;;  %v3618_v38 = vld [vmem:[%s5243_s6 + $0x40] sm:$0xff] }
 0x372   :  { %1717 = vmatmul.bf16.gmra.mxu3 %v4553_v34 }
 0x373   :  { %v1389_v7 = vmax.f32 %v4610_v18, 0.0  ;;  %v1388_v50 = vmax.f32 %v4618_v27, 0.0  ;;  %v1390_v63 = vmax.f32 %v4621_v13, 0.0  ;;  %v1262_v27 = vrot.slane %v4662_v32, 2 }
 0x375   :  { %v4600_v39 = vpop.f32.mrf.mxu3 }
 0x378   :  { %v1001_v59 = vpop.f32.mrf.mxu2 }
 0x379   :  { %v4612_v49 = vadd.f32 %v1281_v47, %v1001_v59 }
 0x37b   :  { %v1391_v57 = vmax.f32 %v4612_v49, 0.0  ;;  %v1263_v49 = vrot.slane %v4662_v32, 3 }
 0x37d   :  { %1043 = vmatmul.bf16.gmra.mxu2 %v4468_v4  ;;  %v4605_v5 = vpop.f32.mrf.mxu3  ;;  %v3621_v4 = vld [vmem:[%s5243_s6 + $0x58] sm:$0xff]  ;;  %v1503_v11 = vmax.f32 %v1390_v63, %v1391_v57 }
 0x37e   :  { %1969 = vmatpush.bf16.msra.mxu0 %v3621_v4 }
 0x37f   :  { %v1504_v8 = vrot.slane %v1503_v11, 4 }
 0x380   :  { %v1004_v34 = vpop.f32.mrf.mxu2 }
 0x381   :  { %v4629_v42 = vadd.f32 %v1282_v14, %v1004_v34  ;;  %v1505_v61 = vmax.f32 %v1503_v11, %v1504_v8  ;;  %v1284_v34 = vperm.slane %v4662_v32, 0 }
 0x382   :  { %1722 = vmatmul.bf16.gmra.mxu3 %v4563_v19  ;;  %v1496_v19 = vmax.f32 %v1388_v50, %v1389_v7  ;;  %1970 = vmatpush.bf16.msra.mxu0 %v3620_v26 }
 0x383   :  { %v1392_v28 = vmax.f32 %v4629_v42, 0.0  ;;  %v1506_v31 = vrot.slane %v1505_v61, 2 }
 0x384   :  { %v1497_v22 = vrot.slane %v1496_v19, 4 }
 0x385   :  { %v4625_v25 = vpop.f32.mrf.mxu3  ;;  %v1507_v45 = vmax.f32 %v1505_v61, %v1506_v31 }
 0x386   :  { %v1498_v10 = vmax.f32 %v1496_v19, %v1497_v22  ;;  %1971 = vmatpush.bf16.msra.mxu0 %v3619_v2 }
 0x387   :  { %v1508_v17 = vrot.slane %v1507_v45, 1 }
 0x388   :  { %v1006_v16 = vpop.f32.mrf.mxu2 }
 0x389   :  { %v4639_v48 = vadd.f32 %v1282_v14, %v1006_v16  ;;  %v1509_v4 = vmax.f32 %v1507_v45, %v1508_v17 }
 0x38a   :  { %1972 = vmatpush.bf16.msra.mxu0 %v3618_v38 }
 0x38b   :  { %v1393_v33 = vmax.f32 %v4639_v48, 0.0  ;;  %v1811_v8 = vpack.c.bf16 %v1509_v4, %v1509_v4 }
 0x38d   :  { %v1510_v1 = vmax.f32 %v1392_v28, %v1393_v33  ;;  %1048 = vmatmul.bf16.gmra.mxu2 %v4472_v35  ;;  %v4648_v3 = vpop.f32.mrf.mxu3  ;;  %v1499_v35 = vrot.slane %v1498_v10, 2  ;;  %v1881_v61 = vunpack.c.l.b16 %v1811_v8 }
 0x38f   :  { %v1511_v43 = vrot.slane %v1510_v1, 4  ;;  %v1500_v20 = vmax.f32 %v1498_v10, %v1499_v35  ;;  %v1261_v35 = vrot.slane %v4662_v32, 1 }
 0x390   :  { %v1009_v58 = vpop.f32.mrf.mxu2 }
 0x391   :  { %v1512_v53 = vmax.f32 %v1510_v1, %v1511_v43  ;;  %v1346_v51 = vadd.f32 %v1283_v15, %v1009_v58 }
 0x392   :  { %1727 = vmatmul.bf16.gmra.mxu3 %v4568_v52  ;;  %v1501_v52 = vrot.slane %v1500_v20, 1 }
 0x393   :  { %v1513_v55 = vrot.slane %v1512_v53, 2  ;;  %v1394_v56 = vmax.f32 %v1346_v51, 0.0 }
 0x394   :  { %v1502_v24 = vmax.f32 %v1500_v20, %v1501_v52 }
 0x395   :  { %v4658_v54 = vpop.f32.mrf.mxu3  ;;  %v1514_v23 = vmax.f32 %v1512_v53, %v1513_v55 }
 0x396   :  { %v1810_v22 = vpack.c.bf16 %v1502_v24, %v1502_v24 }
 0x397   :  { %v1515_v47 = vrot.slane %v1514_v23, 1 }
 0x398   :  { %v1011_v6 = vpop.f32.mrf.mxu2  ;;  %v1880_v10 = vunpack.c.l.b16 %v1810_v22 }
 0x399   :  { %v1347_v44 = vadd.f32 %v1283_v15, %v1011_v6  ;;  %v1516_v16 = vmax.f32 %v1514_v23, %v1515_v47 }
 0x39a   :  { %v1902_v31 = vsel %vm1152_vm5, %v1880_v10, %v4591_v41  ;;  %v1592_v41 = vpack.c.bf16 %v1389_v7, %v1388_v50 }
 0x39b   :  { %v1395_v62 = vmax.f32 %v1347_v44, 0.0  ;;  %v1812_v43 = vpack.c.bf16 %v1516_v16, %v1516_v16  ;;  %v1903_v15 = vsel %vm1154_vm6, %v1881_v61, %v1902_v31  ;;  %v1285_v44 = vperm.slane %v1261_v35, 0 }
 0x39d   :  { %v1517_v59 = vmax.f32 %v1394_v56, %v1395_v62  ;;  %v4664_v21 = vpack.c.bf16 %v1395_v62, %v1394_v56  ;;  %v4666_v40 = vpop.f32.mrf.mxu3  ;;  %v1882_v46 = vunpack.c.l.b16 %v1812_v43  ;;  %v3633_v56 = vld [vmem:[%s5242_s5 + $0xb8] sm:$0xff] }
 0x39e   :  { %2408 = vmatpush.bf16.msrb.mxu1 %v3633_v56 }
 0x39f   :  { %v1518_v37 = vrot.slane %v1517_v59, 4  ;;  %v1904_v45 = vsel %vm1156_vm7, %v1882_v46, %v1903_v15 }
 0x3a0   :  { %v1014_v60 = vpop.f32.mrf.mxu2 }
 0x3a1   :  { %v1519_v14 = vmax.f32 %v1517_v59, %v1518_v37  ;;  %v1348_v19 = vadd.f32 %v1284_v34, %v1014_v60 }
 0x3a2   :  { %1732 = vmatmul.bf16.gmra.mxu3 %v1591_v30 }
 0x3a3   :  { %v1520_v11 = vrot.slane %v1519_v14, 2  ;;  %v1396_v9 = vmax.f32 %v1348_v19, 0.0  ;;  %v3632_v19 = vld [vmem:[%s5242_s5 + $0xb0] sm:$0xff] }
 0x3a4   :  { %2409 = vmatpush.bf16.msrb.mxu1 %v3632_v19 }
 0x3a5   :  { %v1521_v1 = vmax.f32 %v1519_v14, %v1520_v11  ;;  %v4676_v26 = vpop.f32.mrf.mxu3  ;;  %v1286_v14 = vperm.slane %v1262_v27, 0  ;;  %v1593_v11 = vpack.c.bf16 %v1391_v57, %v1390_v63 }
 0x3a7   :  { %v1522_v2 = vrot.slane %v1521_v1, 1 }
 0x3a8   :  { %v1016_v58 = vpop.f32.mrf.mxu2 }
 0x3a9   :  { %v1523_v29 = vmax.f32 %v1521_v1, %v1522_v2  ;;  %v1349_v12 = vadd.f32 %v1284_v34, %v1016_v58 }
 0x3ab   :  { %v1813_v36 = vpack.c.bf16 %v1523_v29, %v1523_v29  ;;  %v1397_v53 = vmax.f32 %v1349_v12, 0.0 }
 0x3ad   :  { %v1883_v55 = vunpack.c.l.b16 %v1813_v36  ;;  %v1524_v51 = vmax.f32 %v1396_v9, %v1397_v53  ;;  %v4682_v20 = vpack.c.bf16 %v1397_v53, %v1396_v9  ;;  %v4684_v6 = vpop.f32.mrf.mxu3 }
 0x3af   :  { %v1905_v23 = vsel %vm1158_vm8, %v1883_v55, %v1904_v45  ;;  %v1525_v17 = vrot.slane %v1524_v51, 4  ;;  %v3631_v55 = vld [vmem:[%s5242_s5 + $0xa8] sm:$0xff] }
 0x3b0   :  { %v1019_v62 = vpop.f32.mrf.mxu2  ;;  %v1913_v52 = vpack.c.b16 %v1905_v23, %v4556_v0  ;;  %2410 = vmatpush.bf16.msrb.mxu1 %v3631_v55  ;;  %v1594_v23 = vpack.c.bf16 %v1393_v33, %v1392_v28  ;;  %v3630_v28 = vld [vmem:[%s5242_s5 + $0xa0] sm:$0xff]  ;;  %v1265_v55 = vrot.slane %v4662_v32, 5 }
 0x3b1   :  { %v1350_v59 = vadd.f32 %v1285_v44, %v1019_v62  ;;  %v1526_v38 = vmax.f32 %v1524_v51, %v1525_v17 }
 0x3b2   :  { %1737 = vmatmul.bf16.gmra.mxu3 %v1592_v41  ;;  %1973 = vmatmul.bf16.vlgmr.msra.gmra.mxu0 %v1913_v52 }
 0x3b3   :  { %v1527_v34 = vrot.slane %v1526_v38, 2  ;;  %v1398_v60 = vmax.f32 %v1350_v59, 0.0 }
 0x3b4   :  { %2411 = vmatpush.bf16.msrb.mxu1 %v3630_v28 }
 0x3b5   :  { %v4696_v47 = vpop.f32.mrf.mxu3  ;;  %v1528_v4 = vmax.f32 %v1526_v38, %v1527_v34 }
 0x3b7   :  { %v1529_v22 = vrot.slane %v1528_v4, 1 }
 0x3b8   :  { %v1021_v37 = vpop.f32.mrf.mxu2 }
 0x3b9   :  { %v1351_v24 = vadd.f32 %v1285_v44, %v1021_v37  ;;  %v1530_v2 = vmax.f32 %v1528_v4, %v1529_v22  ;;  %v1287_v44 = vperm.slane %v1263_v49, 0 }
 0x3bb   :  { %v1399_v30 = vmax.f32 %v1351_v24, 0.0  ;;  %v1814_v12 = vpack.c.bf16 %v1530_v2, %v1530_v2 }
 0x3bd   :  { %v1531_v18 = vmax.f32 %v1398_v60, %v1399_v30  ;;  %v4699_v7 = vpack.c.bf16 %v1399_v30, %v1398_v60  ;;  %v4701_v0 = vpop.f32.mrf.mxu3  ;;  %v1884_v57 = vunpack.c.l.b16 %v1814_v12 }
 0x3bf   :  { %v1532_v50 = vrot.slane %v1531_v18, 4 }
 0x3c0   :  { %v1024_v16 = vpop.f32.mrf.mxu2 }
 0x3c1   :  { %v1533_v8 = vmax.f32 %v1531_v18, %v1532_v50  ;;  %v1352_v1 = vadd.f32 %v1286_v14, %v1024_v16  ;;  %v1264_v16 = vrot.slane %v4662_v32, 4 }
 0x3c2   :  { %1742 = vmatmul.bf16.gmra.mxu3 %v1593_v11 }
 0x3c3   :  { %v1534_v43 = vrot.slane %v1533_v8, 2  ;;  %v1400_v13 = vmax.f32 %v1352_v1, 0.0 }
 0x3c5   :  { %v1535_v10 = vmax.f32 %v1533_v8, %v1534_v43  ;;  %v4710_v58 = vpop.f32.mrf.mxu3  ;;  %v1288_v8 = vperm.slane %v1264_v16, 0 }
 0x3c7   :  { %v1536_v61 = vrot.slane %v1535_v10, 1 }
 0x3c8   :  { %v1026_v29 = vpop.f32.mrf.mxu2 }
 0x3c9   :  { %v1537_v46 = vmax.f32 %v1535_v10, %v1536_v61  ;;  %v1353_v36 = vadd.f32 %v1286_v14, %v1026_v29 }
 0x3cb   :  { %v1815_v9 = vpack.c.bf16 %v1537_v46, %v1537_v46  ;;  %v1401_v53 = vmax.f32 %v1353_v36, 0.0 }
 0x3cd   :  { %v1885_v63 = vunpack.c.l.b16 %v1815_v9  ;;  %v1538_v35 = vmax.f32 %v1400_v13, %v1401_v53  ;;  %v4713_v31 = vpack.c.bf16 %v1401_v53, %v1400_v13  ;;  %v4715_v15 = vpop.f32.mrf.mxu3  ;;  %v3629_v53 = vld [vmem:[%s5242_s5 + $0x98] sm:$0xff] }
 0x3ce   :  { %2412 = vmatpush.bf16.msrb.mxu1 %v3629_v53  ;;  %v3626_v53 = vld [vmem:[%s5242_s5 + $0x80] sm:$0xff] }
 0x3cf   :  { %v1906_v51 = vsel %vm1146_vm2, %v1885_v63, %v1884_v57  ;;  %v1539_v45 = vrot.slane %v1538_v35, 4 }
 0x3d0   :  { %v1029_v56 = vpop.f32.mrf.mxu2 }
 0x3d1   :  { %v1540_v62 = vmax.f32 %v1538_v35, %v1539_v45  ;;  %v1354_v41 = vadd.f32 %v1287_v44, %v1029_v56 }
 0x3d2   :  { %1747 = vmatmul.bf16.gmra.mxu3 %v1594_v23 }
 0x3d3   :  { %v1541_v52 = vrot.slane %v1540_v62, 2  ;;  %v1402_v30 = vmax.f32 %v1354_v41, 0.0 }
 0x3d5   :  { %v1542_v17 = vmax.f32 %v1540_v62, %v1541_v52  ;;  %v4725_v59 = vpop.f32.mrf.mxu3 }
 0x3d7   :  { %v1543_v38 = vrot.slane %v1542_v17, 1 }
 0x3d8   :  { %v1031_v37 = vpop.f32.mrf.mxu2 }
 0x3d9   :  { %v1544_v34 = vmax.f32 %v1542_v17, %v1543_v38  ;;  %v1355_v24 = vadd.f32 %v1287_v44, %v1031_v37  ;;  %v1289_v44 = vperm.slane %v1265_v55, 0 }
 0x3db   :  { %v1816_v60 = vpack.c.bf16 %v1544_v34, %v1544_v34  ;;  %v1403_v27 = vmax.f32 %v1355_v24, 0.0 }
 0x3dd   :  { %v1886_v4 = vunpack.c.l.b16 %v1816_v60  ;;  %v1545_v42 = vmax.f32 %v1402_v30, %v1403_v27  ;;  %v4727_v18 = vpack.c.bf16 %v1403_v27, %v1402_v30  ;;  %v4729_v48 = vpop.f32.mrf.mxu3  ;;  %v3641_v30 = vld [vmem:[%s5243_s6 + $0xb8] sm:$0xff]  ;;  %v3628_v27 = vld [vmem:[%s5242_s5 + $0x90] sm:$0xff] }
 0x3de   :  { %2704 = vmatpush.bf16.msra.mxu2 %v3641_v30  ;;  %2413 = vmatpush.bf16.msrb.mxu1 %v3628_v27 }
 0x3df   :  { %v1907_v33 = vsel %vm1148_vm3, %v1886_v4, %v1906_v51  ;;  %v1546_v50 = vrot.slane %v1545_v42, 4 }
 0x3e0   :  { %v1034_v14 = vpop.f32.mrf.mxu2 }
 0x3e1   :  { %v1547_v19 = vmax.f32 %v1545_v42, %v1546_v50  ;;  %v4739_v2 = vadd.f32 %v1288_v8, %v1034_v14  ;;  %v1266_v50 = vrot.slane %v4662_v32, 6 }
 0x3e2   :  { %1752 = vmatmul.bf16.gmra.mxu3 %v4664_v21 }
 0x3e3   :  { %v1548_v11 = vrot.slane %v1547_v19, 2  ;;  %v1404_v46 = vmax.f32 %v4739_v2, 0.0  ;;  %v1290_v16 = vperm.slane %v1266_v50, 0 }
 0x3e5   :  { %v1549_v22 = vmax.f32 %v1547_v19, %v1548_v11  ;;  %v4737_v1 = vpop.f32.mrf.mxu3 }
 0x3e7   :  { %v1550_v43 = vrot.slane %v1549_v22, 1 }
 0x3e8   :  { %v1036_v10 = vpop.f32.mrf.mxu2 }
 0x3e9   :  { %v1551_v61 = vmax.f32 %v1549_v22, %v1550_v43  ;;  %v4741_v29 = vadd.f32 %v1288_v8, %v1036_v10 }
 0x3eb   :  { %v1817_v12 = vpack.c.bf16 %v1551_v61, %v1551_v61  ;;  %v1405_v36 = vmax.f32 %v4741_v29, 0.0 }
 0x3ed   :  { %v1887_v9 = vunpack.c.l.b16 %v1817_v12  ;;  %v1552_v21 = vmax.f32 %v1404_v46, %v1405_v36  ;;  %v4749_v13 = vpop.f32.mrf.mxu3  ;;  %v3627_v12 = vld [vmem:[%s5242_s5 + $0x88] sm:$0xff] }
 0x3ee   :  { %2414 = vmatpush.bf16.msrb.mxu1 %v3627_v12 }
 0x3ef   :  { %v1553_v49 = vrot.slane %v1552_v21, 4  ;;  %v1908_v57 = vsel %vm1150_vm4, %v1887_v9, %v1907_v33 }
 0x3f0   :  { %v1039_v63 = vpop.f32.mrf.mxu2 }
 0x3f1   :  { %v1554_v35 = vmax.f32 %v1552_v21, %v1553_v49  ;;  %v4759_v62 = vadd.f32 %v1289_v44, %v1039_v63 }
 0x3f2   :  { %1757 = vmatmul.bf16.gmra.mxu3 %v4682_v20  ;;  %2415 = vmatpush.bf16.msrb.mxu1 %v3626_v53 }
 0x3f3   :  { %v1555_v51 = vrot.slane %v1554_v35, 2  ;;  %v1406_v37 = vmax.f32 %v4759_v62, 0.0 }
 0x3f5   :  { %v1556_v45 = vmax.f32 %v1554_v35, %v1555_v51  ;;  %v4757_v23 = vpop.f32.mrf.mxu3 }
 0x3f7   :  { %v1557_v56 = vrot.slane %v1556_v45, 1 }
 0x3f8   :  { %v1041_v41 = vpop.f32.mrf.mxu2 }
 0x3f9   :  { %v1558_v52 = vmax.f32 %v1556_v45, %v1557_v56  ;;  %v4761_v17 = vadd.f32 %v1289_v44, %v1041_v41  ;;  %v1267_v44 = vrot.slane %v4662_v32, 7 }
 0x3fb   :  { %v1818_v38 = vpack.c.bf16 %v1558_v52, %v1558_v52  ;;  %v1407_v34 = vmax.f32 %v4761_v17, 0.0  ;;  %v1291_v52 = vperm.slane %v1267_v44, 0 }
 0x3fd   :  { %v1888_v24 = vunpack.c.l.b16 %v1818_v38  ;;  %v1559_v20 = vmax.f32 %v1406_v37, %v1407_v34  ;;  %v4769_v60 = vpop.f32.mrf.mxu3 }
 0x3ff   :  { %v1560_v4 = vrot.slane %v1559_v20, 4  ;;  %v1909_v42 = vsel %vm1152_vm5, %v1888_v24, %v1908_v57 }
 0x400   :  { %v1044_v28 = vpop.f32.mrf.mxu2 }
 0x401   :  { %v1561_v33 = vmax.f32 %v1559_v20, %v1560_v4  ;;  %v4782_v8 = vadd.f32 %v1290_v16, %v1044_v28 }
 0x402   :  { %1762 = vmatmul.bf16.gmra.mxu3 %v4699_v7 }
 0x403   :  { %v1562_v14 = vrot.slane %v1561_v33, 2  ;;  %v1408_v21 = vmax.f32 %v4782_v8, 0.0 }
 0x405   :  { %v1563_v19 = vmax.f32 %v1561_v33, %v1562_v14  ;;  %v4780_v11 = vpop.f32.mrf.mxu3 }
 0x407   :  { %v1564_v22 = vrot.slane %v1563_v19, 1 }
 0x408   :  { %v1046_v43 = vpop.f32.mrf.mxu2 }
 0x409   :  { %v1565_v10 = vmax.f32 %v1563_v19, %v1564_v22  ;;  %v4784_v61 = vadd.f32 %v1290_v16, %v1046_v43 }
 0x40b   :  { %v1819_v9 = vpack.c.bf16 %v1565_v10, %v1565_v10  ;;  %v1409_v7 = vmax.f32 %v4784_v61, 0.0 }
 0x40d   :  { %v1889_v49 = vunpack.c.l.b16 %v1819_v9  ;;  %v1566_v57 = vmax.f32 %v1408_v21, %v1409_v7  ;;  %v4798_v63 = vpop.f32.mrf.mxu3 }
 0x40f   :  { %v1567_v35 = vrot.slane %v1566_v57, 4  ;;  %v1910_v55 = vsel %vm1154_vm6, %v1889_v49, %v1909_v42 }
 0x410   :  { %v1049_v51 = vpop.f32.mrf.mxu2 }
 0x411   :  { %v1568_v45 = vmax.f32 %v1566_v57, %v1567_v35  ;;  %v1362_v20 = vadd.f32 %v1291_v52, %v1049_v51  ;;  %v4815_v35 = vld [vmem:[%s5244_s7 + $0x1] ss:$0 sm:$0xff] }
 0x412   :  { %1767 = vmatmul.bf16.gmra.mxu3 %v4713_v31  ;;  %v3640_v31 = vld [vmem:[%s5243_s6 + $0xb0] sm:$0xff] }
 0x413   :  { %v1569_v56 = vrot.slane %v1568_v45, 2  ;;  %v1410_v33 = vmax.f32 %v1362_v20, 0.0  ;;  %2705 = vmatpush.bf16.msra.mxu2 %v3640_v31 }
 0x415   :  { %v1570_v41 = vmax.f32 %v1568_v45, %v1569_v56  ;;  %v4803_v38 = vpop.f32.mrf.mxu3 }
 0x417   :  { %v1571_v24 = vrot.slane %v1570_v41, 1 }
 0x418   :  { %v1051_v30 = vpop.f32.mrf.mxu2 }
 0x419   :  { %v1572_v27 = vmax.f32 %v1570_v41, %v1571_v24  ;;  %v1363_v4 = vadd.f32 %v1291_v52, %v1051_v30 }
 0x41b   :  { %v1820_v28 = vpack.c.bf16 %v1572_v27, %v1572_v27  ;;  %v1411_v50 = vmax.f32 %v1363_v4, 0.0 }
 0x41d   :  { %v1890_v42 = vunpack.c.l.b16 %v1820_v28  ;;  %v1573_v14 = vmax.f32 %v1410_v33, %v1411_v50  ;;  %v4805_v19 = vpack.c.bf16 %v1411_v50, %v1410_v33  ;;  %v1730_v32 = vpop.f32.mrf.mxu3 }
 0x41f   :  { %v1574_v16 = vrot.slane %v1573_v14, 4  ;;  %v1911_v22 = vsel %vm1156_vm7, %v1890_v42, %v1910_v55 }
 0x421   :  { %v1575_v43 = vmax.f32 %v1573_v14, %v1574_v16 }
 0x422   :  { %1772 = vmatmul.bf16.gmra.mxu3 %v4727_v18  ;;  %v1600_v18 = vpack.c.bf16 %v1405_v36, %v1404_v46 }
 0x423   :  { %v1576_v10 = vrot.slane %v1575_v43, 2 }
 0x425   :  { %v1577_v12 = vmax.f32 %v1575_v43, %v1576_v10  ;;  %v1733_v9 = vpop.f32.mrf.mxu3 }
 0x427   :  { %v1578_v53 = vrot.slane %v1577_v12, 1 }
 0x429   :  { %v1579_v49 = vmax.f32 %v1577_v12, %v1578_v53 }
 0x42b   :  { %v1821_v57 = vpack.c.bf16 %v1579_v49, %v1579_v49 }
 0x42d   :  { %v1735_v51 = vpop.f32.mrf.mxu3  ;;  %v1891_v45 = vunpack.c.l.b16 %v1821_v57 }
 0x42f   :  { %v1974_v44 = vpop.f32.mrf.mxu0  ;;  %v1912_v55 = vsel %vm1158_vm8, %v1891_v45, %v1911_v22 }
 0x430   :  { %v4823_v56 = vadd.f32 %v4815_v35, %v1974_v44  ;;  %v1914_v41 = vpack.c.b16 %v1912_v55, %v1912_v55 }
 0x432   :  { %1777 = vmatmul.bf16.gmra.mxu3 %v1600_v18  ;;  %1978 = vmatmul.bf16.gmra.mxu0 %v1914_v41  ;;  %v2007_v52 = vperm.slane %v4823_v56, 0  ;;  %v1986_v27 = vrot.slane %v4823_v56, 1  ;;  %v1987_v62 = vrot.slane %v4823_v56, 2 }
 0x434   :  { %v2055_v24 = vadd.f32 %v2007_v52, %v4600_v39  ;;  %v2056_v20 = vadd.f32 %v2007_v52, %v4605_v5  ;;  %v2008_v36 = vperm.slane %v1986_v27, 0  ;;  %v1601_v5 = vpack.c.bf16 %v1407_v34, %v1406_v37 }
 0x435   :  { %v1738_v30 = vpop.f32.mrf.mxu3  ;;  %v2009_v27 = vperm.slane %v1987_v62, 0 }
 0x436   :  { %v2103_v4 = vmax.f32 %v2055_v24, 0.0  ;;  %v2104_v2 = vmax.f32 %v2056_v20, 0.0  ;;  %v2057_v49 = vadd.f32 %v2008_v36, %v4625_v25  ;;  %v2058_v25 = vadd.f32 %v2008_v36, %v4648_v3 }
 0x437   :  { %v1976_v28 = vpop.f32.mrf.mxu0 }
 0x438   :  { %v4830_v29 = vadd.f32 %v4815_v35, %v1976_v28  ;;  %v2319_v46 = vpack.c.bf16 %v2104_v2, %v2103_v4  ;;  %v2105_v28 = vmax.f32 %v2057_v49, 0.0  ;;  %v1990_v49 = vrot.slane %v4823_v56, 5 }
 0x43a   :  { %v1993_v33 = vrot.slane %v4830_v29, 1  ;;  %v1994_v50 = vrot.slane %v4830_v29, 2  ;;  %v1995_v42 = vrot.slane %v4830_v29, 3  ;;  %v2015_v39 = vperm.slane %v4830_v29, 0  ;;  %2416 = vmatmul.bf16.vlgmr.msrb.gmra.mxu1 %v2319_v46 }
 0x43b   :  { %v1996_v14 = vrot.slane %v4830_v29, 4  ;;  %v2106_v46 = vmax.f32 %v2058_v25, 0.0 }
 0x43c   :  { %v2016_v31 = vperm.slane %v1993_v33, 0  ;;  %v2017_v16 = vperm.slane %v1994_v50, 0  ;;  %v4842_v22 = vadd.f32 %v2015_v39, %v4757_v23  ;;  %v4845_v43 = vadd.f32 %v2015_v39, %v4769_v60 }
 0x43d   :  { %v1740_v10 = vpop.f32.mrf.mxu3  ;;  %v2018_v12 = vperm.slane %v1995_v42, 0  ;;  %v2019_v53 = vperm.slane %v1996_v14, 0  ;;  %v1602_v39 = vpack.c.bf16 %v1409_v7, %v1408_v21  ;;  %v2158_v25 = vmax.f32 %v2105_v28, %v2106_v46 }
 0x43e   :  { %v4850_v17 = vadd.f32 %v2016_v31, %v4780_v11  ;;  %v4853_v37 = vadd.f32 %v2016_v31, %v4798_v63  ;;  %v4856_v34 = vadd.f32 %v2017_v16, %v4803_v38  ;;  %v4858_v23 = vadd.f32 %v2017_v16, %v1730_v32 }
 0x43f   :  { %v4860_v60 = vadd.f32 %v2018_v12, %v1733_v9  ;;  %v4862_v57 = vadd.f32 %v2018_v12, %v1735_v51  ;;  %v4864_v45 = vadd.f32 %v2019_v53, %v1738_v30  ;;  %v4867_v44 = vadd.f32 %v2019_v53, %v1740_v10 }
 0x440   :  { %v2119_v11 = vmax.f32 %v4842_v22, 0.0  ;;  %v5271_v63 = vmax.f32 %v4845_v43, 0.0  ;;  %v5270_v55 = vmax.f32 %v4850_v17, 0.0  ;;  %v2151_v38 = vmax.f32 %v2103_v4, %v2104_v2 }
 0x441   :  { %v5269_v32 = vmax.f32 %v4853_v37, 0.0  ;;  %v5268_v9 = vmax.f32 %v4856_v34, 0.0  ;;  %v5267_v51 = vmax.f32 %v4858_v23, 0.0  ;;  %v5266_v18 = vmax.f32 %v4860_v60, 0.0 }
 0x442   :  { %v5265_v41 = vmax.f32 %v4862_v57, 0.0  ;;  %v2127_v3 = vmax.f32 %v4864_v45, 0.0  ;;  %v2128_v52 = vmax.f32 %v4867_v44, 0.0  ;;  %1782 = vmatmul.bf16.gmra.mxu3 %v1601_v5  ;;  %v2207_v24 = vmax.f32 %v2119_v11, %v5271_v63 }
 0x443   :  { %v2214_v20 = vmax.f32 %v5270_v55, %v5269_v32  ;;  %v2221_v30 = vmax.f32 %v5268_v9, %v5267_v51  ;;  %v2152_v5 = vrot.slane %v2151_v38, 4  ;;  %v1997_v31 = vrot.slane %v4830_v29, 5 }
 0x444   :  { %v2228_v4 = vmax.f32 %v5266_v18, %v5265_v41  ;;  %v4899_v2 = vpack.c.bf16 %v2128_v52, %v2127_v3  ;;  %v2208_v36 = vrot.slane %v2207_v24, 4  ;;  %v1988_v53 = vrot.slane %v4823_v56, 3 }
 0x445   :  { %v2215_v33 = vrot.slane %v2214_v20, 4  ;;  %v2222_v50 = vrot.slane %v2221_v30, 4  ;;  %v1743_v42 = vpop.f32.mrf.mxu3  ;;  %v4909_v41 = vadd.f32 %v2009_v27, %v4658_v54  ;;  %v4912_v21 = vadd.f32 %v2009_v27, %v4666_v40 }
 0x446   :  { %v2229_v14 = vrot.slane %v2228_v4, 4  ;;  %v2209_v16 = vmax.f32 %v2207_v24, %v2208_v36  ;;  %v2153_v7 = vmax.f32 %v2151_v38, %v2152_v5  ;;  %v2020_v24 = vperm.slane %v1997_v31, 0 }
 0x447   :  { %v2216_v10 = vmax.f32 %v2214_v20, %v2215_v33  ;;  %v2223_v12 = vmax.f32 %v2221_v30, %v2222_v50  ;;  %v2320_v20 = vpack.c.bf16 %v2106_v46, %v2105_v28  ;;  %v2010_v50 = vperm.slane %v1988_v53, 0 }
 0x448   :  { %v2230_v62 = vmax.f32 %v2228_v4, %v2229_v14  ;;  %v2210_v8 = vrot.slane %v2209_v16, 2  ;;  %v4914_v4 = vadd.f32 %v2020_v24, %v1743_v42  ;;  %v2159_v14 = vrot.slane %v2158_v25, 4 }
 0x449   :  { %v2217_v18 = vrot.slane %v2216_v10, 2  ;;  %v2224_v61 = vrot.slane %v2223_v12, 2  ;;  %v2107_v54 = vmax.f32 %v4909_v41, 0.0  ;;  %v2108_v38 = vmax.f32 %v4912_v21, 0.0 }
 0x44a   :  { %v2231_v51 = vrot.slane %v2230_v62, 2  ;;  %v2211_v30 = vmax.f32 %v2209_v16, %v2210_v8  ;;  %2421 = vmatmul.bf16.gmra.mxu1 %v2320_v20  ;;  %v2154_v27 = vrot.slane %v2153_v7, 2  ;;  %v4920_v42 = vadd.f32 %v2010_v50, %v4676_v26 }
 0x44b   :  { %v2218_v36 = vmax.f32 %v2216_v10, %v2217_v18  ;;  %v2225_v33 = vmax.f32 %v2223_v12, %v2224_v61  ;;  %v1989_v18 = vrot.slane %v4823_v56, 4  ;;  %v2129_v41 = vmax.f32 %v4914_v4, 0.0 }
 0x44c   :  { %v2232_v9 = vmax.f32 %v2230_v62, %v2231_v51  ;;  %v2212_v32 = vrot.slane %v2211_v30, 1  ;;  %v2160_v10 = vmax.f32 %v2158_v25, %v2159_v14  ;;  %v2165_v61 = vmax.f32 %v2107_v54, %v2108_v38  ;;  %v3639_v25 = vld [vmem:[%s5243_s6 + $0xa8] sm:$0xff] }
 0x44d   :  { %v2219_v55 = vrot.slane %v2218_v36, 1  ;;  %v2226_v63 = vrot.slane %v2225_v33, 1  ;;  %v1745_v40 = vpop.f32.mrf.mxu3  ;;  %v2155_v21 = vmax.f32 %v2153_v7, %v2154_v27  ;;  %2706 = vmatpush.bf16.msra.mxu2 %v3639_v25  ;;  %v2012_v27 = vperm.slane %v1990_v49, 0 }
 0x44e   :  { %v2233_v5 = vrot.slane %v2232_v9, 1  ;;  %v2082_v28 = vadd.f32 %v2020_v24, %v1745_v40  ;;  %v2213_v46 = vmax.f32 %v2211_v30, %v2212_v32  ;;  %v4924_v24 = vadd.f32 %v2010_v50, %v4684_v6 }
 0x44f   :  { %v2220_v31 = vmax.f32 %v2218_v36, %v2219_v55  ;;  %v2227_v51 = vmax.f32 %v2225_v33, %v2226_v63  ;;  %v2011_v55 = vperm.slane %v1989_v18, 0  ;;  %v2109_v36 = vmax.f32 %v4920_v42, 0.0  ;;  %v3635_v42 = vld [vmem:[%s5243_s6 + $0x88] sm:$0xff] }
 0x450   :  { %v2234_v16 = vmax.f32 %v2232_v9, %v2233_v5  ;;  %v2130_v12 = vmax.f32 %v2082_v28, 0.0  ;;  %v2545_v53 = vpack.c.bf16 %v2213_v46, %v2213_v46  ;;  %v2161_v9 = vrot.slane %v2160_v10, 2 }
 0x451   :  { %v2546_v62 = vpack.c.bf16 %v2220_v31, %v2220_v31  ;;  %v2547_v8 = vpack.c.bf16 %v2227_v51, %v2227_v51  ;;  %v1998_v6 = vrot.slane %v4830_v29, 6  ;;  %v2166_v50 = vrot.slane %v2165_v61, 4 }
 0x452   :  { %v2548_v20 = vpack.c.bf16 %v2234_v16, %v2234_v16  ;;  %1787 = vmatmul.bf16.gmra.mxu3 %v1602_v39  ;;  %v2615_v63 = vunpack.c.l.b16 %v2545_v53  ;;  %v4926_v30 = vpack.c.bf16 %v2130_v12, %v2129_v41  ;;  %v2110_v14 = vmax.f32 %v4924_v24, 0.0 }
 0x453   :  { %v2616_v32 = vunpack.c.l.b16 %v2546_v62  ;;  %v2617_v26 = vunpack.c.l.b16 %v2547_v8  ;;  %v1991_v40 = vrot.slane %v4823_v56, 6  ;;  %v2156_v5 = vrot.slane %v2155_v21, 1 }
 0x454   :  { %v2618_v33 = vunpack.c.l.b16 %v2548_v20  ;;  %v4941_v18 = vadd.f32 %v2011_v55, %v4696_v47  ;;  %v2235_v46 = vmax.f32 %v2127_v3, %v2128_v52  ;;  %v2162_v31 = vmax.f32 %v2160_v10, %v2161_v9 }
 0x455   :  { %v2638_v7 = vsel %vm1146_vm2, %v2616_v32, %v2615_v63  ;;  %v1748_v39 = vpop.f32.mrf.mxu3  ;;  %v2172_v51 = vmax.f32 %v2109_v36, %v2110_v14  ;;  %v2021_v16 = vperm.slane %v1998_v6, 0  ;;  %v2167_v49 = vmax.f32 %v2165_v61, %v2166_v50 }
 0x456   :  { %v2639_v4 = vsel %vm1148_vm3, %v2617_v26, %v2638_v7  ;;  %v4952_v53 = vadd.f32 %v2011_v55, %v4701_v0  ;;  %v2111_v62 = vmax.f32 %v4941_v18, 0.0  ;;  %v2321_v47 = vpack.c.bf16 %v2108_v38, %v2107_v54 }
 0x457   :  { %v4938_v28 = vsel %vm1150_vm4, %v2618_v33, %v2639_v4  ;;  %v2173_v8 = vrot.slane %v2172_v51, 4  ;;  %v1992_v44 = vrot.slane %v4823_v56, 7  ;;  %v2013_v20 = vperm.slane %v1991_v40, 0 }
 0x458   :  { %v4956_v45 = vmax.f32 %v2155_v21, %v2156_v5  ;;  %v2112_v3 = vmax.f32 %v4952_v53, 0.0  ;;  %v4960_v52 = vadd.f32 %v2012_v27, %v4710_v58  ;;  %v2242_v10 = vmax.f32 %v2129_v41, %v2130_v12  ;;  %v3638_v5 = vld [vmem:[%s5243_s6 + $0xa0] sm:$0xff] }
 0x459   :  { %v2083_v63 = vadd.f32 %v2021_v16, %v1748_v39  ;;  %v2014_v61 = vperm.slane %v1992_v44, 0  ;;  %v4963_v0 = vadd.f32 %v2012_v27, %v4715_v15  ;;  %v2168_v55 = vrot.slane %v2167_v49, 2  ;;  %2707 = vmatpush.bf16.msra.mxu2 %v3638_v5 }
 0x45a   :  { %2426 = vmatmul.bf16.gmra.mxu1 %v2321_v47  ;;  %v2179_v56 = vmax.f32 %v2111_v62, %v2112_v3  ;;  %v4970_v38 = vadd.f32 %v2013_v20, %v4725_v59  ;;  %v4973_v58 = vadd.f32 %v2013_v20, %v4729_v48  ;;  %v2236_v41 = vrot.slane %v2235_v46, 4 }
 0x45b   :  { %v2163_v12 = vrot.slane %v2162_v31, 1  ;;  %v2174_v32 = vmax.f32 %v2172_v51, %v2173_v8  ;;  %v4976_v15 = vadd.f32 %v2014_v61, %v4737_v1  ;;  %v4979_v9 = vadd.f32 %v2014_v61, %v4749_v13 }
 0x45c   :  { %v2180_v26 = vrot.slane %v2179_v56, 4  ;;  %v2113_v25 = vmax.f32 %v4960_v52, 0.0  ;;  %v2243_v33 = vrot.slane %v2242_v10, 4  ;;  %v2131_v7 = vmax.f32 %v2083_v63, 0.0 }
 0x45d   :  { %v1750_v54 = vpop.f32.mrf.mxu3  ;;  %v2114_v39 = vmax.f32 %v4963_v0, 0.0  ;;  %v2169_v48 = vmax.f32 %v2167_v49, %v2168_v55  ;;  %v5273_v50 = vmax.f32 %v4970_v38, 0.0  ;;  %v5272_v4 = vmax.f32 %v4973_v58, 0.0 }
 0x45e   :  { %v2084_v21 = vadd.f32 %v2021_v16, %v1750_v54  ;;  %v2181_v6 = vmax.f32 %v2179_v56, %v2180_v26  ;;  %v2237_v40 = vmax.f32 %v2235_v46, %v2236_v41  ;;  %v2175_v13 = vrot.slane %v2174_v32, 2 }
 0x45f   :  { %v2164_v51 = vmax.f32 %v2162_v31, %v2163_v12  ;;  %v2117_v16 = vmax.f32 %v4976_v15, 0.0  ;;  %v5274_v49 = vmax.f32 %v4979_v9, 0.0  ;;  %v2186_v46 = vmax.f32 %v2113_v25, %v2114_v39 }
 0x460   :  { %v2132_v59 = vmax.f32 %v2084_v21, 0.0  ;;  %v2244_v47 = vmax.f32 %v2242_v10, %v2243_v33  ;;  %v1999_v44 = vrot.slane %v4830_v29, 7  ;;  %v2193_v31 = vmax.f32 %v5273_v50, %v5272_v4 }
 0x461   :  { %v2170_v20 = vrot.slane %v2169_v48, 1  ;;  %v2182_v61 = vrot.slane %v2181_v6, 2  ;;  %v2187_v55 = vrot.slane %v2186_v46, 4  ;;  %v2200_v10 = vmax.f32 %v2117_v16, %v5274_v49 }
 0x462   :  { %v2249_v27 = vmax.f32 %v2131_v7, %v2132_v59  ;;  %v4985_v1 = vpack.c.bf16 %v2132_v59, %v2131_v7  ;;  %1792 = vmatmul.bf16.gmra.mxu3 %v4805_v19  ;;  %v3637_v19 = vld [vmem:[%s5243_s6 + $0x98] sm:$0xff]  ;;  %v2176_v29 = vmax.f32 %v2174_v32, %v2175_v13  ;;  %v2194_v54 = vrot.slane %v2193_v31, 4  ;;  %v3636_v59 = vld [vmem:[%s5243_s6 + $0x90] sm:$0xff] }
 0x463   :  { %v2537_v56 = vpack.c.bf16 %v4956_v45, %v4956_v45  ;;  %v2188_v12 = vmax.f32 %v2186_v46, %v2187_v55  ;;  %v2201_v21 = vrot.slane %v2200_v10, 4  ;;  %v2238_v26 = vrot.slane %v2237_v40, 2  ;;  %2708 = vmatpush.bf16.msra.mxu2 %v3637_v19 }
 0x464   :  { %v2250_v8 = vrot.slane %v2249_v27, 4  ;;  %v2538_v33 = vpack.c.bf16 %v2164_v51, %v2164_v51  ;;  %v2022_v7 = vperm.slane %v1999_v44, 0  ;;  %v2195_v5 = vmax.f32 %v2193_v31, %v2194_v54 }
 0x465   :  { %v1753_v63 = vpop.f32.mrf.mxu3  ;;  %v2245_v4 = vrot.slane %v2244_v47, 2  ;;  %v2171_v50 = vmax.f32 %v2169_v48, %v2170_v20  ;;  %v2183_v49 = vmax.f32 %v2181_v6, %v2182_v61  ;;  %v2189_v32 = vrot.slane %v2188_v12, 2 }
 0x466   :  { %v2251_v41 = vmax.f32 %v2249_v27, %v2250_v8  ;;  %v2177_v13 = vrot.slane %v2176_v29, 1  ;;  %v2322_v45 = vpack.c.bf16 %v2110_v14, %v2109_v36  ;;  %v2202_v27 = vmax.f32 %v2200_v10, %v2201_v21 }
 0x467   :  { %v5294_v51 = vmax.f32 %v4845_v43, 0.0  ;;  %v2085_v44 = vadd.f32 %v2022_v7, %v1753_v63  ;;  %v2196_v19 = vrot.slane %v2195_v5, 2  ;;  %v5295_v48 = vmax.f32 %v4850_v17, 0.0  ;;  %2709 = vmatpush.bf16.msra.mxu2 %v3636_v59 }
 0x468   :  { %v2252_v8 = vrot.slane %v2251_v41, 2  ;;  %v5296_v6 = vmax.f32 %v4853_v37, 0.0  ;;  %v2190_v22 = vmax.f32 %v2188_v12, %v2189_v32  ;;  %v5297_v43 = vmax.f32 %v4856_v34, 0.0 }
 0x469   :  { %v5022_v46 = vpack.c.bf16 %v5294_v51, %v2119_v11  ;;  %v5298_v11 = vmax.f32 %v4858_v23, 0.0  ;;  %v5299_v36 = vmax.f32 %v4860_v60, 0.0  ;;  %v5300_v17 = vmax.f32 %v4862_v57, 0.0  ;;  %v3634_v60 = vld [vmem:[%s5243_s6 + $0x80] sm:$0xff] }
 0x46a   :  { %v5028_v31 = vpack.c.bf16 %v5296_v6, %v5295_v48  ;;  %2431 = vmatmul.bf16.gmra.mxu1 %v2322_v45  ;;  %v2608_v14 = vunpack.c.l.b16 %v2538_v33  ;;  %v2246_v20 = vmax.f32 %v2244_v47, %v2245_v4  ;;  %v2539_v63 = vpack.c.bf16 %v2171_v50, %v2171_v50 }
 0x46b   :  { %v5037_v24 = vpack.c.bf16 %v5298_v11, %v5297_v43  ;;  %v5043_v37 = vpack.c.bf16 %v5300_v17, %v5299_v36  ;;  %v2184_v55 = vrot.slane %v2183_v49, 1  ;;  %v2178_v10 = vmax.f32 %v2176_v29, %v2177_v13  ;;  %2710 = vmatpush.bf16.msra.mxu2 %v3635_v42 }
 0x46c   :  { %v2203_v12 = vrot.slane %v2202_v27, 2  ;;  %v2607_v21 = vunpack.c.l.b16 %v2537_v56  ;;  %v2239_v34 = vmax.f32 %v2237_v40, %v2238_v26  ;;  %v2253_v59 = vmax.f32 %v2251_v41, %v2252_v8 }
 0x46d   :  { %v1755_v61 = vpop.f32.mrf.mxu3  ;;  %v2197_v23 = vmax.f32 %v2195_v5, %v2196_v19  ;;  %v2133_v32 = vmax.f32 %v2085_v44, 0.0  ;;  %v2191_v57 = vrot.slane %v2190_v22, 1  ;;  %v2247_v50 = vrot.slane %v2246_v20, 1 }
 0x46e   :  { %v2086_v54 = vadd.f32 %v2022_v7, %v1755_v61  ;;  %v2631_v4 = vsel %vm1146_vm2, %v2608_v14, %v2607_v21  ;;  %v2609_v47 = vunpack.c.l.b16 %v2539_v63  ;;  %v2185_v33 = vmax.f32 %v2183_v49, %v2184_v55 }
 0x46f   :  { %v2540_v29 = vpack.c.bf16 %v2178_v10, %v2178_v10  ;;  %v2204_v40 = vmax.f32 %v2202_v27, %v2203_v12  ;;  %v2240_v56 = vrot.slane %v2239_v34, 1  ;;  %v2254_v41 = vrot.slane %v2253_v59, 1  ;;  %2711 = vmatpush.bf16.msra.mxu2 %v3634_v60 }
 0x470   :  { %v2134_v45 = vmax.f32 %v2086_v54, 0.0  ;;  %v2198_v26 = vrot.slane %v2197_v23, 1  ;;  %v2192_v51 = vmax.f32 %v2190_v22, %v2191_v57  ;;  %v2632_v8 = vsel %vm1148_vm3, %v2609_v47, %v2631_v4 }
 0x471   :  { %v2541_v19 = vpack.c.bf16 %v2185_v33, %v2185_v33  ;;  %v2248_v48 = vmax.f32 %v2246_v20, %v2247_v50  ;;  %v2610_v6 = vunpack.c.l.b16 %v2540_v29  ;;  %v2205_v49 = vrot.slane %v2204_v40, 1 }
 0x472   :  { %v2256_v7 = vmax.f32 %v2133_v32, %v2134_v45  ;;  %v5049_v13 = vpack.c.bf16 %v2134_v45, %v2133_v32  ;;  %v2241_v43 = vmax.f32 %v2239_v34, %v2240_v56  ;;  %v2255_v11 = vmax.f32 %v2253_v59, %v2254_v41 }
 0x473   :  { %v2199_v36 = vmax.f32 %v2197_v23, %v2198_v26  ;;  %v2633_v27 = vsel %vm1150_vm4, %v2610_v6, %v2632_v8  ;;  %v2542_v14 = vpack.c.bf16 %v2192_v51, %v2192_v51  ;;  %v2611_v63 = vunpack.c.l.b16 %v2541_v19 }
 0x474   :  { %v2257_v5 = vrot.slane %v2256_v7, 4  ;;  %v2550_v61 = vpack.c.bf16 %v2248_v48, %v2248_v48  ;;  %v2323_v22 = vpack.c.bf16 %v2112_v3, %v2111_v62  ;;  %v2206_v10 = vmax.f32 %v2204_v40, %v2205_v49 }
 0x475   :  { %v5052_v44 = vpop.f32.mrf.mxu3  ;;  %v2549_v20 = vpack.c.bf16 %v2241_v43, %v2241_v43  ;;  %v2551_v54 = vpack.c.bf16 %v2255_v11, %v2255_v11  ;;  %v2634_v12 = vsel %vm1152_vm5, %v2611_v63, %v2633_v27  ;;  %v2543_v21 = vpack.c.bf16 %v2199_v36, %v2199_v36 }
 0x476   :  { %v2258_v42 = vmax.f32 %v2256_v7, %v2257_v5  ;;  %v2612_v59 = vunpack.c.l.b16 %v2542_v14  ;;  %v2620_v32 = vunpack.c.l.b16 %v2550_v61  ;;  %v2544_v60 = vpack.c.bf16 %v2206_v10, %v2206_v10 }
 0x477   :  { %v2619_v4 = vunpack.c.l.b16 %v2549_v20  ;;  %v2621_v18 = vunpack.c.l.b16 %v2551_v54  ;;  %v2613_v50 = vunpack.c.l.b16 %v2543_v21  ;;  %v5301_v8 = vmax.f32 %v4970_v38, 0.0 }
 0x478   :  { %v2259_v17 = vrot.slane %v2258_v42, 2  ;;  %v2635_v57 = vsel %vm1154_vm6, %v2612_v59, %v2634_v12  ;;  %v2614_v29 = vunpack.c.l.b16 %v2544_v60  ;;  %v5302_v19 = vmax.f32 %v4973_v58, 0.0 }
 0x479   :  { %v2641_v62 = vsel %vm1152_vm5, %v2619_v4, %v4938_v28  ;;  %v2636_v3 = vsel %vm1156_vm7, %v2613_v50, %v2635_v57  ;;  %v2324_v28 = vpack.c.bf16 %v2114_v39, %v2113_v25  ;;  %v5303_v49 = vmax.f32 %v4979_v9, 0.0 }
 0x47a   :  { %v2260_v55 = vmax.f32 %v2258_v42, %v2259_v17  ;;  %2436 = vmatmul.bf16.gmra.mxu1 %v2323_v22  ;;  %v2642_v47 = vsel %vm1154_vm6, %v2620_v32, %v2641_v62  ;;  %v2637_v40 = vsel %vm1158_vm8, %v2614_v29, %v2636_v3  ;;  %v2325_v48 = vpack.c.bf16 %v5302_v19, %v5301_v8 }
 0x47b   :  { %v2643_v7 = vsel %vm1156_vm7, %v2621_v18, %v2642_v47  ;;  %v2326_v43 = vpack.c.bf16 %v5303_v49, %v2117_v16 }
 0x47c   :  { %v2261_v34 = vrot.slane %v2260_v55, 1 }
 0x47d   :  { %v1760_v23 = vpop.f32.mrf.mxu3 }
 0x47e   :  { %v2262_v45 = vmax.f32 %v2260_v55, %v2261_v34 }
 0x480   :  { %v2552_v53 = vpack.c.bf16 %v2262_v45, %v2262_v45 }
 0x482   :  { %v2622_v33 = vunpack.c.l.b16 %v2552_v53 }
 0x484   :  { %v2644_v56 = vsel %vm1158_vm8, %v2622_v33, %v2643_v7 }
 0x485   :  { %v1763_v41 = vpop.f32.mrf.mxu3  ;;  %v2652_v26 = vpack.c.b16 %v2644_v56, %v2637_v40 }
 0x487   :  { %2712 = vmatmul.bf16.vlgmr.msra.gmra.mxu2 %v2652_v26 }
 0x48a   :  { %2441 = vmatmul.bf16.gmra.mxu1 %v2324_v28 }
 0x48d   :  { %v1765_v5 = vpop.f32.mrf.mxu3 }
 0x495   :  { %v1768_v51 = vpop.f32.mrf.mxu3 }
 0x49a   :  { %2446 = vmatmul.bf16.gmra.mxu1 %v2325_v48 }
 0x49d   :  { %v1770_v6 = vpop.f32.mrf.mxu3 }
 0x4a5   :  { %v1773_v42 = vpop.f32.mrf.mxu3 }
 0x4aa   :  { %2451 = vmatmul.bf16.gmra.mxu1 %v2326_v43 }
 0x4ad   :  { %v1775_v52 = vpop.f32.mrf.mxu3 }
 0x4af   :  { %v1979_v0 = vpop.f32.mrf.mxu0 }
 0x4b0   :  { %v5081_v25 = vadd.f32 %v4815_v35, %v1979_v0 }
 0x4b2   :  { %v2003_v39 = vrot.slane %v5081_v25, 4  ;;  %v2000_v15 = vrot.slane %v5081_v25, 1  ;;  %v2023_v35 = vperm.slane %v5081_v25, 0  ;;  %v2001_v55 = vrot.slane %v5081_v25, 2 }
 0x4b3   :  { %v2002_v22 = vrot.slane %v5081_v25, 3  ;;  %v2004_v60 = vrot.slane %v5081_v25, 5 }
 0x4b4   :  { %v2027_v36 = vperm.slane %v2003_v39, 0  ;;  %v2024_v61 = vperm.slane %v2000_v15, 0  ;;  %v2025_v10 = vperm.slane %v2001_v55, 0  ;;  %v2087_v54 = vadd.f32 %v2023_v35, %v5052_v44 }
 0x4b5   :  { %v1778_v38 = vpop.f32.mrf.mxu3  ;;  %v2026_v20 = vperm.slane %v2002_v22, 0  ;;  %v2088_v12 = vadd.f32 %v2023_v35, %v1760_v23  ;;  %v2028_v40 = vperm.slane %v2004_v60, 0 }
 0x4b6   :  { %v5086_v27 = vadd.f32 %v2027_v36, %v1778_v38  ;;  %v2089_v34 = vadd.f32 %v2024_v61, %v1763_v41  ;;  %v2090_v59 = vadd.f32 %v2024_v61, %v1765_v5  ;;  %v2091_v32 = vadd.f32 %v2025_v10, %v1768_v51 }
 0x4b7   :  { %v1981_v11 = vpop.f32.mrf.mxu0  ;;  %v5084_v58 = vpop.f32.mrf.mxu1  ;;  %v2092_v45 = vadd.f32 %v2025_v10, %v1770_v6  ;;  %v2093_v57 = vadd.f32 %v2026_v20, %v1773_v42  ;;  %v2094_v4 = vadd.f32 %v2026_v20, %v1775_v52  ;;  %v2135_v18 = vmax.f32 %v2087_v54, 0.0 }
 0x4b8   :  { %v2143_v14 = vmax.f32 %v5086_v27, 0.0  ;;  %v2136_v50 = vmax.f32 %v2088_v12, 0.0  ;;  %v2137_v53 = vmax.f32 %v2089_v34, 0.0  ;;  %v2138_v62 = vmax.f32 %v2090_v59, 0.0 }
 0x4b9   :  { %v2139_v3 = vmax.f32 %v2091_v32, 0.0  ;;  %v2140_v47 = vmax.f32 %v2092_v45, 0.0  ;;  %v2141_v29 = vmax.f32 %v2093_v57, 0.0  ;;  %v2142_v44 = vmax.f32 %v2094_v4, 0.0 }
 0x4ba   :  { %2456 = vmatmul.bf16.gmra.mxu1 %v5022_v46  ;;  %v2263_v23 = vmax.f32 %v2135_v18, %v2136_v50  ;;  %v2270_v7 = vmax.f32 %v2137_v53, %v2138_v62  ;;  %v5109_v41 = vpack.c.bf16 %v2136_v50, %v2135_v18  ;;  %v5111_v26 = vpack.c.bf16 %v2138_v62, %v2137_v53 }
 0x4bb   :  { %v2277_v56 = vmax.f32 %v2139_v3, %v2140_v47  ;;  %v2284_v51 = vmax.f32 %v2141_v29, %v2142_v44  ;;  %v5113_v8 = vpack.c.bf16 %v2140_v47, %v2139_v3  ;;  %v5116_v6 = vpack.c.bf16 %v2142_v44, %v2141_v29 }
 0x4bc   :  { %v2264_v28 = vrot.slane %v2263_v23, 4  ;;  %v2271_v5 = vrot.slane %v2270_v7, 4  ;;  %v2005_v57 = vrot.slane %v5081_v25, 6  ;;  %v2006_v27 = vrot.slane %v5081_v25, 7 }
 0x4bd   :  { %v1780_v9 = vpop.f32.mrf.mxu3  ;;  %v2278_v48 = vrot.slane %v2277_v56, 4  ;;  %v2285_v52 = vrot.slane %v2284_v51, 4 }
 0x4be   :  { %v5090_v16 = vadd.f32 %v2027_v36, %v1780_v9  ;;  %v2265_v49 = vmax.f32 %v2263_v23, %v2264_v28  ;;  %v2272_v43 = vmax.f32 %v2270_v7, %v2271_v5  ;;  %v2029_v23 = vperm.slane %v2005_v57, 0 }
 0x4bf   :  { %v5092_v17 = vpop.f32.mrf.mxu1  ;;  %v2279_v39 = vmax.f32 %v2277_v56, %v2278_v48  ;;  %v2286_v36 = vmax.f32 %v2284_v51, %v2285_v52 }
 0x4c0   :  { %v2144_v63 = vmax.f32 %v5090_v16, 0.0  ;;  %v2266_v38 = vrot.slane %v2265_v49, 2  ;;  %v2273_v11 = vrot.slane %v2272_v43, 2 }
 0x4c1   :  { %v2280_v35 = vrot.slane %v2279_v39, 2 }
 0x4c2   :  { %v5103_v46 = vpack.c.bf16 %v2144_v63, %v2143_v14  ;;  %v2267_v55 = vmax.f32 %v2265_v49, %v2266_v38  ;;  %v2274_v22 = vmax.f32 %v2272_v43, %v2273_v11  ;;  %v2291_v51 = vmax.f32 %v2143_v14, %v2144_v63 }
 0x4c3   :  { %v2281_v20 = vmax.f32 %v2279_v39, %v2280_v35 }
 0x4c4   :  { %v2268_v54 = vrot.slane %v2267_v55, 1  ;;  %v2275_v12 = vrot.slane %v2274_v22, 1 }
 0x4c5   :  { %v1783_v21 = vpop.f32.mrf.mxu3  ;;  %v2282_v34 = vrot.slane %v2281_v20, 1 }
 0x4c6   :  { %v2097_v19 = vadd.f32 %v2028_v40, %v1783_v21  ;;  %v2269_v32 = vmax.f32 %v2267_v55, %v2268_v54  ;;  %v2276_v45 = vmax.f32 %v2274_v22, %v2275_v12 }
 0x4c7   :  { %v5107_v33 = vpop.f32.mrf.mxu1  ;;  %v2283_v4 = vmax.f32 %v2281_v20, %v2282_v34 }
 0x4c8   :  { %v2145_v15 = vmax.f32 %v2097_v19, 0.0  ;;  %v2553_v50 = vpack.c.bf16 %v2269_v32, %v2269_v32  ;;  %v2554_v53 = vpack.c.bf16 %v2276_v45, %v2276_v45 }
 0x4c9   :  { %v2555_v62 = vpack.c.bf16 %v2283_v4, %v2283_v4 }
 0x4ca   :  { %2461 = vmatmul.bf16.gmra.mxu1 %v5028_v31  ;;  %v2287_v31 = vrot.slane %v2286_v36, 2  ;;  %v2623_v29 = vunpack.c.l.b16 %v2553_v50  ;;  %v2624_v44 = vunpack.c.l.b16 %v2554_v53 }
 0x4cb   :  { %v2625_v7 = vunpack.c.l.b16 %v2555_v62 }
 0x4cc   :  { %v2288_v21 = vmax.f32 %v2286_v36, %v2287_v31  ;;  %v2645_v56 = vsel %vm1146_vm2, %v2624_v44, %v2623_v29 }
 0x4cd   :  { %v1785_v42 = vpop.f32.mrf.mxu3  ;;  %v2646_v5 = vsel %vm1148_vm3, %v2625_v7, %v2645_v56 }
 0x4ce   :  { %v2098_v0 = vadd.f32 %v2028_v40, %v1785_v42  ;;  %v2289_v60 = vrot.slane %v2288_v21, 1 }
 0x4cf   :  { %v5118_v61 = vpop.f32.mrf.mxu1 }
 0x4d0   :  { %v2146_v9 = vmax.f32 %v2098_v0, 0.0  ;;  %v2290_v18 = vmax.f32 %v2288_v21, %v2289_v60  ;;  %v2292_v0 = vrot.slane %v2291_v51, 4 }
 0x4d2   :  { %v5120_v10 = vpack.c.bf16 %v2146_v9, %v2145_v15  ;;  %v2556_v47 = vpack.c.bf16 %v2290_v18, %v2290_v18  ;;  %v2298_v42 = vmax.f32 %v2145_v15, %v2146_v9  ;;  %v2293_v35 = vmax.f32 %v2291_v51, %v2292_v0 }
 0x4d3   :  { %v2030_v9 = vperm.slane %v2006_v27, 0 }
 0x4d4   :  { %v2626_v40 = vunpack.c.l.b16 %v2556_v47  ;;  %v2299_v38 = vrot.slane %v2298_v42, 4  ;;  %v2294_v63 = vrot.slane %v2293_v35, 2 }
 0x4d5   :  { %v1788_v59 = vpop.f32.mrf.mxu3 }
 0x4d6   :  { %v2099_v28 = vadd.f32 %v2029_v23, %v1788_v59  ;;  %v2647_v48 = vsel %vm1150_vm4, %v2626_v40, %v2646_v5  ;;  %v2300_v55 = vmax.f32 %v2298_v42, %v2299_v38  ;;  %v2295_v54 = vmax.f32 %v2293_v35, %v2294_v63 }
 0x4d7   :  { %v5123_v3 = vpop.f32.mrf.mxu1 }
 0x4d8   :  { %v2147_v43 = vmax.f32 %v2099_v28, 0.0  ;;  %v2301_v15 = vrot.slane %v2300_v55, 2  ;;  %v2296_v60 = vrot.slane %v2295_v54, 1 }
 0x4da   :  { %2466 = vmatmul.bf16.gmra.mxu1 %v5037_v24  ;;  %v2302_v21 = vmax.f32 %v2300_v55, %v2301_v15  ;;  %v2297_v62 = vmax.f32 %v2295_v54, %v2296_v60 }
 0x4dc   :  { %v2303_v25 = vrot.slane %v2302_v21, 1 }
 0x4dd   :  { %v1790_v19 = vpop.f32.mrf.mxu3 }
 0x4de   :  { %v2100_v49 = vadd.f32 %v2029_v23, %v1790_v19  ;;  %v2304_v47 = vmax.f32 %v2302_v21, %v2303_v25  ;;  %v2557_v23 = vpack.c.bf16 %v2297_v62, %v2297_v62 }
 0x4df   :  { %v5133_v39 = vpop.f32.mrf.mxu1 }
 0x4e0   :  { %v2148_v52 = vmax.f32 %v2100_v49, 0.0  ;;  %v2558_v40 = vpack.c.bf16 %v2304_v47, %v2304_v47  ;;  %v2627_v51 = vunpack.c.l.b16 %v2557_v23 }
 0x4e2   :  { %v2305_v11 = vmax.f32 %v2147_v43, %v2148_v52  ;;  %v5135_v24 = vpack.c.bf16 %v2148_v52, %v2147_v43  ;;  %v2628_v19 = vunpack.c.l.b16 %v2558_v40  ;;  %v2648_v0 = vsel %vm1152_vm5, %v2627_v51, %v2647_v48 }
 0x4e4   :  { %v2306_v36 = vrot.slane %v2305_v11, 4 }
 0x4e5   :  { %v1793_v16 = vpop.f32.mrf.mxu3 }
 0x4e6   :  { %v2307_v14 = vmax.f32 %v2305_v11, %v2306_v36  ;;  %v2101_v20 = vadd.f32 %v2030_v9, %v1793_v16  ;;  %v2649_v11 = vsel %vm1154_vm6, %v2628_v19, %v2648_v0 }
 0x4e7   :  { %v5138_v22 = vpop.f32.mrf.mxu1 }
 0x4e8   :  { %v2308_v31 = vrot.slane %v2307_v14, 2  ;;  %v2149_v32 = vmax.f32 %v2101_v20, 0.0 }
 0x4ea   :  { %2471 = vmatmul.bf16.gmra.mxu1 %v5043_v37  ;;  %v2309_v59 = vmax.f32 %v2307_v14, %v2308_v31 }
 0x4ec   :  { %v2310_v50 = vrot.slane %v2309_v59, 1 }
 0x4ed   :  { %v1795_v12 = vpop.f32.mrf.mxu3 }
 0x4ee   :  { %v2102_v34 = vadd.f32 %v2030_v9, %v1795_v12  ;;  %v2311_v44 = vmax.f32 %v2309_v59, %v2310_v50 }
 0x4ef   :  { %v2434_v57 = vpop.f32.mrf.mxu1 }
 0x4f0   :  { %v2150_v45 = vmax.f32 %v2102_v34, 0.0  ;;  %v2559_v28 = vpack.c.bf16 %v2311_v44, %v2311_v44 }
 0x4f2   :  { %v2312_v4 = vmax.f32 %v2149_v32, %v2150_v45  ;;  %v5141_v18 = vpack.c.bf16 %v2150_v45, %v2149_v32  ;;  %v2629_v49 = vunpack.c.l.b16 %v2559_v28 }
 0x4f4   :  { %v2313_v53 = vrot.slane %v2312_v4, 4  ;;  %v2650_v36 = vsel %vm1156_vm7, %v2629_v49, %v2649_v11 }
 0x4f6   :  { %v2314_v29 = vmax.f32 %v2312_v4, %v2313_v53 }
 0x4f7   :  { %v2437_v7 = vpop.f32.mrf.mxu1 }
 0x4f8   :  { %v2315_v37 = vrot.slane %v2314_v29, 2 }
 0x4fa   :  { %v2316_v56 = vmax.f32 %v2314_v29, %v2315_v37  ;;  %2476 = vmatmul.bf16.gmra.mxu1 %v4899_v2  ;;  %v5151_v2 = vld [vmem:[%s5244_s7 + $0x2] ss:$0 sm:$0xff] }
 0x4fc   :  { %v2317_v5 = vrot.slane %v2316_v56, 1 }
 0x4fe   :  { %v2318_v42 = vmax.f32 %v2316_v56, %v2317_v5 }
 0x4ff   :  { %v2439_v52 = vpop.f32.mrf.mxu1 }
 0x500   :  { %v2560_v43 = vpack.c.bf16 %v2318_v42, %v2318_v42 }
 0x502   :  { %v2630_v38 = vunpack.c.l.b16 %v2560_v43 }
 0x504   :  { %v2651_v35 = vsel %vm1158_vm8, %v2630_v38, %v2650_v36 }
 0x505   :  { %v2653_v16 = vpack.c.b16 %v2651_v35, %v2651_v35 }
 0x507   :  { %2717 = vmatmul.bf16.gmra.mxu2 %v2653_v16  ;;  %v2442_v55 = vpop.f32.mrf.mxu1 }
 0x50a   :  { %v2713_v27 = vpop.f32.mrf.mxu2  ;;  %2481 = vmatmul.bf16.gmra.mxu1 %v4926_v30 }
 0x50b   :  { %v5154_v14 = vadd.f32 %v5151_v2, %v2713_v27 }
 0x50d   :  { %v2725_v48 = vrot.slane %v5154_v14, 1  ;;  %v2726_v63 = vrot.slane %v5154_v14, 2  ;;  %v2727_v15 = vrot.slane %v5154_v14, 3  ;;  %v2728_v9 = vrot.slane %v5154_v14, 4 }
 0x50e   :  { %v2746_v31 = vperm.slane %v5154_v14, 0  ;;  %v2729_v20 = vrot.slane %v5154_v14, 5  ;;  %v2730_v27 = vrot.slane %v5154_v14, 6 }
 0x50f   :  { %v2747_v54 = vperm.slane %v2725_v48, 0  ;;  %v2748_v12 = vperm.slane %v2726_v63, 0  ;;  %v2749_v21 = vperm.slane %v2727_v15, 0  ;;  %v2750_v34 = vperm.slane %v2728_v9, 0  ;;  %v2444_v50 = vpop.f32.mrf.mxu1 }
 0x510   :  { %v2794_v59 = vadd.f32 %v2746_v31, %v5084_v58  ;;  %v2795_v30 = vadd.f32 %v2746_v31, %v5092_v17  ;;  %v2751_v32 = vperm.slane %v2729_v20, 0 }
 0x511   :  { %v2796_v45 = vadd.f32 %v2747_v54, %v5107_v33  ;;  %v2797_v60 = vadd.f32 %v2747_v54, %v5118_v61  ;;  %v2798_v25 = vadd.f32 %v2748_v12, %v5123_v3  ;;  %v2799_v4 = vadd.f32 %v2748_v12, %v5133_v39 }
 0x512   :  { %v2842_v53 = vmax.f32 %v2794_v59, %v2795_v30  ;;  %v2800_v62 = vadd.f32 %v2749_v21, %v5138_v22  ;;  %v2801_v47 = vadd.f32 %v2749_v21, %v2434_v57  ;;  %v2802_v29 = vadd.f32 %v2750_v34, %v2437_v7 }
 0x513   :  { %v2803_v44 = vadd.f32 %v2750_v34, %v2439_v52  ;;  %v2804_v37 = vadd.f32 %v2751_v32, %v2442_v55  ;;  %v2805_v58 = vadd.f32 %v2751_v32, %v2444_v50  ;;  %v2849_v23 = vmax.f32 %v2796_v45, %v2797_v60 }
 0x514   :  { %v2843_v17 = vrot.slane %v2842_v53, 4  ;;  %v2856_v40 = vmax.f32 %v2798_v25, %v2799_v4  ;;  %v2863_v56 = vmax.f32 %v2800_v62, %v2801_v47  ;;  %v2752_v32 = vperm.slane %v2730_v27, 0 }
 0x515   :  { %v2850_v33 = vrot.slane %v2849_v23, 4  ;;  %v2870_v28 = vmax.f32 %v2802_v29, %v2803_v44  ;;  %v2877_v61 = vmax.f32 %v2804_v37, %v2805_v58 }
 0x516   :  { %v2844_v5 = vmax.f32 %v2842_v53, %v2843_v17  ;;  %v2857_v3 = vrot.slane %v2856_v40, 4  ;;  %v2864_v51 = vrot.slane %v2863_v56, 4 }
 0x517   :  { %v2851_v39 = vmax.f32 %v2849_v23, %v2850_v33  ;;  %v2871_v19 = vrot.slane %v2870_v28, 4  ;;  %v2878_v42 = vrot.slane %v2877_v61, 4  ;;  %v2447_v0 = vpop.f32.mrf.mxu1 }
 0x518   :  { %v2845_v49 = vrot.slane %v2844_v5, 2  ;;  %v2858_v22 = vmax.f32 %v2856_v40, %v2857_v3  ;;  %v2865_v57 = vmax.f32 %v2863_v56, %v2864_v51  ;;  %v2806_v62 = vadd.f32 %v2752_v32, %v2447_v0 }
 0x519   :  { %v2852_v7 = vrot.slane %v2851_v39, 2  ;;  %v2872_v43 = vmax.f32 %v2870_v28, %v2871_v19  ;;  %v2879_v52 = vmax.f32 %v2877_v61, %v2878_v42 }
 0x51a   :  { %v2846_v38 = vmax.f32 %v2844_v5, %v2845_v49  ;;  %v2859_v11 = vrot.slane %v2858_v22, 2  ;;  %v2866_v36 = vrot.slane %v2865_v57, 2  ;;  %2486 = vmatmul.bf16.gmra.mxu1 %v4985_v1 }
 0x51b   :  { %v2853_v35 = vmax.f32 %v2851_v39, %v2852_v7  ;;  %v2873_v16 = vrot.slane %v2872_v43, 2  ;;  %v2880_v55 = vrot.slane %v2879_v52, 2 }
 0x51c   :  { %v2847_v48 = vrot.slane %v2846_v38, 1  ;;  %v2860_v63 = vmax.f32 %v2858_v22, %v2859_v11  ;;  %v2867_v15 = vmax.f32 %v2865_v57, %v2866_v36  ;;  %v2731_v36 = vrot.slane %v5154_v14, 7 }
 0x51d   :  { %v2854_v9 = vrot.slane %v2853_v35, 1  ;;  %v2874_v31 = vmax.f32 %v2872_v43, %v2873_v16  ;;  %v2881_v20 = vmax.f32 %v2879_v52, %v2880_v55 }
 0x51e   :  { %v2848_v54 = vmax.f32 %v2846_v38, %v2847_v48  ;;  %v2861_v12 = vrot.slane %v2860_v63, 1  ;;  %v2868_v21 = vrot.slane %v2867_v15, 1  ;;  %v2753_v16 = vperm.slane %v2731_v36, 0 }
 0x51f   :  { %v2855_v34 = vmax.f32 %v2853_v35, %v2854_v9  ;;  %v2875_v59 = vrot.slane %v2874_v31, 1  ;;  %v2882_v30 = vrot.slane %v2881_v20, 1  ;;  %v2449_v47 = vpop.f32.mrf.mxu1 }
 0x520   :  { %v2862_v45 = vmax.f32 %v2860_v63, %v2861_v12  ;;  %v2869_v60 = vmax.f32 %v2867_v15, %v2868_v21  ;;  %v3010_v25 = vmax.f32 %v2848_v54, 0.0  ;;  %v2807_v37 = vadd.f32 %v2752_v32, %v2449_v47  ;;  %v2715_v54 = vpop.f32.mrf.mxu2 }
 0x521   :  { %v2876_v4 = vmax.f32 %v2874_v31, %v2875_v59  ;;  %v2883_v50 = vmax.f32 %v2881_v20, %v2882_v30  ;;  %v3011_v53 = vmax.f32 %v2855_v34, 0.0  ;;  %v5180_v59 = vadd.f32 %v5151_v2, %v2715_v54 }
 0x522   :  { %v3012_v29 = vmax.f32 %v2862_v45, 0.0  ;;  %v3013_v1 = vmax.f32 %v2869_v60, 0.0  ;;  %v3034_v44 = vpack.c.bf16 %v3010_v25, %v3010_v25  ;;  %v2884_v33 = vmax.f32 %v2806_v62, %v2807_v37 }
 0x523   :  { %v3014_v58 = vmax.f32 %v2876_v4, 0.0  ;;  %v3015_v23 = vmax.f32 %v2883_v50, 0.0  ;;  %v3035_v17 = vpack.c.bf16 %v3011_v53, %v3011_v53  ;;  %v2754_v30 = vperm.slane %v5180_v59, 0 }
 0x524   :  { %v3036_v40 = vpack.c.bf16 %v3012_v29, %v3012_v29  ;;  %v3037_v56 = vpack.c.bf16 %v3013_v1, %v3013_v1  ;;  %v3102_v5 = vunpack.c.l.b16 %v3034_v44  ;;  %v2885_v39 = vrot.slane %v2884_v33, 4 }
 0x525   :  { %v3038_v28 = vpack.c.bf16 %v3014_v58, %v3014_v58  ;;  %v3039_v61 = vpack.c.bf16 %v3015_v23, %v3015_v23  ;;  %v3103_v3 = vunpack.c.l.b16 %v3035_v17  ;;  %v2732_v37 = vrot.slane %v5180_v59, 1 }
 0x526   :  { %v3104_v51 = vunpack.c.l.b16 %v3036_v40  ;;  %v3105_v19 = vunpack.c.l.b16 %v3037_v56  ;;  %v2886_v57 = vmax.f32 %v2884_v33, %v2885_v39  ;;  %v2734_v54 = vrot.slane %v5180_v59, 3 }
 0x527   :  { %v3126_v42 = vsel %vm1146_vm2, %v3103_v3, %v3102_v5  ;;  %v3106_v49 = vunpack.c.l.b16 %v3038_v28  ;;  %v3107_v7 = vunpack.c.l.b16 %v3039_v61  ;;  %v2452_v52 = vpop.f32.mrf.mxu1  ;;  %v2755_v23 = vperm.slane %v2732_v37, 0 }
 0x528   :  { %v3127_v22 = vsel %vm1148_vm3, %v3104_v51, %v3126_v42  ;;  %v2887_v38 = vrot.slane %v2886_v57, 2  ;;  %v2808_v48 = vadd.f32 %v2753_v16, %v2452_v52 }
 0x529   :  { %v3128_v43 = vsel %vm1150_vm4, %v3105_v19, %v3127_v22 }
 0x52a   :  { %v3129_v0 = vsel %vm1152_vm5, %v3106_v49, %v3128_v43  ;;  %2491 = vmatmul.bf16.gmra.mxu1 %v5049_v13  ;;  %v2888_v35 = vmax.f32 %v2886_v57, %v2887_v38 }
 0x52b   :  { %v3130_v11 = vsel %vm1154_vm6, %v3107_v7, %v3129_v0 }
 0x52c   :  { %v2889_v55 = vrot.slane %v2888_v35, 1 }
 0x52e   :  { %v2890_v9 = vmax.f32 %v2888_v35, %v2889_v55 }
 0x52f   :  { %v2454_v27 = vpop.f32.mrf.mxu1 }
 0x530   :  { %v2809_v63 = vadd.f32 %v2753_v16, %v2454_v27  ;;  %v3016_v12 = vmax.f32 %v2890_v9, 0.0 }
 0x532   :  { %v2891_v15 = vmax.f32 %v2808_v48, %v2809_v63  ;;  %v3040_v13 = vpack.c.bf16 %v3016_v12, %v3016_v12 }
 0x534   :  { %v2892_v31 = vrot.slane %v2891_v15, 4  ;;  %v3108_v32 = vunpack.c.l.b16 %v3040_v13 }
 0x536   :  { %v2893_v20 = vmax.f32 %v2891_v15, %v2892_v31  ;;  %v3131_v62 = vsel %vm1156_vm7, %v3108_v32, %v3130_v11 }
 0x537   :  { %v2457_v21 = vpop.f32.mrf.mxu1 }
 0x538   :  { %v2894_v34 = vrot.slane %v2893_v20, 2  ;;  %v2810_v25 = vadd.f32 %v2754_v30, %v2457_v21 }
 0x53a   :  { %2496 = vmatmul.bf16.gmra.mxu1 %v5109_v41  ;;  %v2895_v14 = vmax.f32 %v2893_v20, %v2894_v34  ;;  %v2757_v34 = vperm.slane %v2734_v54, 0  ;;  %v3645_v54 = vld [vmem:[#allocation5 + $0x18] sm:$0xff] }
 0x53c   :  { %v2896_v45 = vrot.slane %v2895_v14, 1 }
 0x53e   :  { %v2897_v53 = vmax.f32 %v2895_v14, %v2896_v45 }
 0x53f   :  { %v2459_v60 = vpop.f32.mrf.mxu1 }
 0x540   :  { %v2811_v4 = vadd.f32 %v2754_v30, %v2459_v60  ;;  %v3017_v29 = vmax.f32 %v2897_v53, 0.0 }
 0x542   :  { %v2898_v50 = vmax.f32 %v2810_v25, %v2811_v4  ;;  %v3041_v41 = vpack.c.bf16 %v3017_v29, %v3017_v29 }
 0x544   :  { %v2899_v47 = vrot.slane %v2898_v50, 4  ;;  %v3109_v17 = vunpack.c.l.b16 %v3041_v41 }
 0x546   :  { %v2900_v44 = vmax.f32 %v2898_v50, %v2899_v47  ;;  %v5188_v5 = vsel %vm1158_vm8, %v3109_v17, %v3131_v62 }
 0x547   :  { %v2462_v1 = vpop.f32.mrf.mxu1 }
 0x548   :  { %v2901_v58 = vrot.slane %v2900_v44, 2  ;;  %v2812_v33 = vadd.f32 %v2755_v23, %v2462_v1 }
 0x54a   :  { %2501 = vmatmul.bf16.gmra.mxu1 %v5111_v26  ;;  %v2902_v56 = vmax.f32 %v2900_v44, %v2901_v58  ;;  %v2733_v26 = vrot.slane %v5180_v59, 2 }
 0x54c   :  { %v2903_v3 = vrot.slane %v2902_v56, 1  ;;  %v2756_v52 = vperm.slane %v2733_v26, 0 }
 0x54e   :  { %v2904_v42 = vmax.f32 %v2902_v56, %v2903_v3 }
 0x54f   :  { %v2464_v40 = vpop.f32.mrf.mxu1 }
 0x550   :  { %v2813_v28 = vadd.f32 %v2755_v23, %v2464_v40  ;;  %v3018_v57 = vmax.f32 %v2904_v42, 0.0 }
 0x552   :  { %v2905_v61 = vmax.f32 %v2812_v33, %v2813_v28  ;;  %v3042_v38 = vpack.c.bf16 %v3018_v57, %v3018_v57  ;;  %v2735_v28 = vrot.slane %v5180_v59, 4  ;;  %v2737_v57 = vrot.slane %v5180_v59, 6 }
 0x554   :  { %v2906_v51 = vrot.slane %v2905_v61, 4  ;;  %v3110_v27 = vunpack.c.l.b16 %v3042_v38 }
 0x556   :  { %v2907_v39 = vmax.f32 %v2905_v61, %v2906_v51  ;;  %v2736_v61 = vrot.slane %v5180_v59, 5  ;;  %v3649_v51 = vld [vmem:[#allocation5 + $0x38] sm:$0xff] }
 0x557   :  { %v2467_v19 = vpop.f32.mrf.mxu1  ;;  %3199 = vmatpush.bf16.msrb.mxu0 %v3649_v51 }
 0x558   :  { %v2908_v49 = vrot.slane %v2907_v39, 2  ;;  %v2814_v36 = vadd.f32 %v2756_v52, %v2467_v19  ;;  %v2759_v3 = vperm.slane %v2736_v61, 0 }
 0x55a   :  { %v2909_v22 = vmax.f32 %v2907_v39, %v2908_v49  ;;  %2506 = vmatmul.bf16.gmra.mxu1 %v5113_v8  ;;  %v3648_v49 = vld [vmem:[#allocation5 + $0x30] sm:$0xff] }
 0x55b   :  { %3200 = vmatpush.bf16.msrb.mxu0 %v3648_v49 }
 0x55c   :  { %v2910_v7 = vrot.slane %v2909_v22, 1 }
 0x55e   :  { %v2911_v43 = vmax.f32 %v2909_v22, %v2910_v7 }
 0x55f   :  { %v2469_v0 = vpop.f32.mrf.mxu1 }
 0x560   :  { %v3019_v11 = vmax.f32 %v2911_v43, 0.0  ;;  %v2815_v35 = vadd.f32 %v2756_v52, %v2469_v0  ;;  %v2760_v43 = vperm.slane %v2737_v57, 0 }
 0x562   :  { %v3043_v16 = vpack.c.bf16 %v3019_v11, %v3019_v11  ;;  %v2912_v55 = vmax.f32 %v2814_v36, %v2815_v35 }
 0x564   :  { %v3111_v48 = vunpack.c.l.b16 %v3043_v16  ;;  %v2913_v63 = vrot.slane %v2912_v55, 4 }
 0x566   :  { %v3133_v15 = vsel %vm1146_vm2, %v3111_v48, %v3110_v27  ;;  %v2914_v9 = vmax.f32 %v2912_v55, %v2913_v63  ;;  %v3647_v48 = vld [vmem:[#allocation5 + $0x28] sm:$0xff] }
 0x567   :  { %v2472_v31 = vpop.f32.mrf.mxu1  ;;  %3201 = vmatpush.bf16.msrb.mxu0 %v3647_v48 }
 0x568   :  { %v2915_v20 = vrot.slane %v2914_v9, 2  ;;  %v2816_v30 = vadd.f32 %v2757_v34, %v2472_v31 }
 0x56a   :  { %v2916_v8 = vmax.f32 %v2914_v9, %v2915_v20  ;;  %2511 = vmatmul.bf16.gmra.mxu1 %v5116_v6 }
 0x56c   :  { %v2917_v12 = vrot.slane %v2916_v8, 1 }
 0x56e   :  { %v2918_v21 = vmax.f32 %v2916_v8, %v2917_v12  ;;  %v2738_v8 = vrot.slane %v5180_v59, 7 }
 0x56f   :  { %v2474_v13 = vpop.f32.mrf.mxu1 }
 0x570   :  { %v3020_v14 = vmax.f32 %v2918_v21, 0.0  ;;  %v2817_v32 = vadd.f32 %v2757_v34, %v2474_v13  ;;  %v2761_v13 = vperm.slane %v2738_v8, 0 }
 0x572   :  { %v3044_v45 = vpack.c.bf16 %v3020_v14, %v3020_v14  ;;  %v2919_v60 = vmax.f32 %v2816_v30, %v2817_v32  ;;  %v3644_v14 = vld [vmem:[#allocation5 + $0x10] sm:$0xff] }
 0x574   :  { %v3112_v25 = vunpack.c.l.b16 %v3044_v45  ;;  %v2920_v4 = vrot.slane %v2919_v60, 4 }
 0x576   :  { %v3134_v50 = vsel %vm1148_vm3, %v3112_v25, %v3133_v15  ;;  %v2921_v53 = vmax.f32 %v2919_v60, %v2920_v4  ;;  %v3646_v15 = vld [vmem:[#allocation5 + $0x20] sm:$0xff] }
 0x577   :  { %v2477_v62 = vpop.f32.mrf.mxu1  ;;  %3202 = vmatpush.bf16.msrb.mxu0 %v3646_v15 }
 0x578   :  { %v2922_v47 = vrot.slane %v2921_v53, 2 }
 0x57a   :  { %v2923_v29 = vmax.f32 %v2921_v53, %v2922_v47  ;;  %2516 = vmatmul.bf16.gmra.mxu1 %v5103_v46  ;;  %v2758_v46 = vperm.slane %v2735_v28, 0  ;;  %v3643_v47 = vld [vmem:[#allocation5 + $0x8] sm:$0xff] }
 0x57b   :  { %3203 = vmatpush.bf16.msrb.mxu0 %v3645_v54 }
 0x57c   :  { %v2924_v6 = vrot.slane %v2923_v29, 1  ;;  %v2818_v22 = vadd.f32 %v2758_v46, %v2477_v62 }
 0x57e   :  { %v2925_v1 = vmax.f32 %v2923_v29, %v2924_v6 }
 0x57f   :  { %v2479_v44 = vpop.f32.mrf.mxu1  ;;  %3204 = vmatpush.bf16.msrb.mxu0 %v3644_v14 }
 0x580   :  { %v3021_v37 = vmax.f32 %v2925_v1, 0.0  ;;  %v2819_v39 = vadd.f32 %v2758_v46, %v2479_v44  ;;  %v3642_v44 = vld [vmem:[#allocation5] sm:$0xff] }
 0x582   :  { %v3045_v41 = vpack.c.bf16 %v3021_v37, %v3021_v37 }
 0x583   :  { %3205 = vmatpush.bf16.msrb.mxu0 %v3643_v47 }
 0x584   :  { %v3113_v58 = vunpack.c.l.b16 %v3045_v41 }
 0x586   :  { %v5198_v23 = vsel %vm1150_vm4, %v3113_v58, %v3134_v50 }
 0x587   :  { %v2482_v17 = vpop.f32.mrf.mxu1  ;;  %3206 = vmatpush.bf16.msrb.mxu0 %v3642_v44 }
 0x588   :  { %v2820_v26 = vadd.f32 %v2759_v3, %v2482_v17 }
 0x58a   :  { %v2718_v40 = vpop.f32.mrf.mxu2  ;;  %2521 = vmatmul.bf16.gmra.mxu1 %v5120_v10  ;;  %v2926_v10 = vmax.f32 %v2818_v22, %v2819_v39 }
 0x58b   :  { %v5208_v50 = vadd.f32 %v5151_v2, %v2718_v40 }
 0x58c   :  { %v2927_v52 = vrot.slane %v2926_v10, 4 }
 0x58d   :  { %v2762_v1 = vperm.slane %v5208_v50, 0 }
 0x58e   :  { %v2928_v16 = vmax.f32 %v2926_v10, %v2927_v52  ;;  %v2739_v10 = vrot.slane %v5208_v50, 1 }
 0x58f   :  { %v2484_v56 = vpop.f32.mrf.mxu1 }
 0x590   :  { %v2821_v42 = vadd.f32 %v2759_v3, %v2484_v56  ;;  %v2929_v9 = vrot.slane %v2928_v16, 2 }
 0x592   :  { %v2720_v33 = vpop.f32.mrf.mxu2  ;;  %v2933_v7 = vmax.f32 %v2820_v26, %v2821_v42  ;;  %v2930_v12 = vmax.f32 %v2928_v16, %v2929_v9 }
 0x594   :  { %v2934_v38 = vrot.slane %v2933_v7, 4  ;;  %v2931_v30 = vrot.slane %v2930_v12, 1 }
 0x596   :  { %v2935_v55 = vmax.f32 %v2933_v7, %v2934_v38 }
 0x597   :  { %v2487_v19 = vpop.f32.mrf.mxu1 }
 0x598   :  { %v2822_v11 = vadd.f32 %v2760_v43, %v2487_v19 }
 0x59a   :  { %2526 = vmatmul.bf16.gmra.mxu1 %v5135_v24  ;;  %v2936_v24 = vrot.slane %v2935_v55, 2 }
 0x59c   :  { %v2937_v21 = vmax.f32 %v2935_v55, %v2936_v24 }
 0x59e   :  { %v2938_v45 = vrot.slane %v2937_v21, 1 }
 0x59f   :  { %v2489_v0 = vpop.f32.mrf.mxu1 }
 0x5a0   :  { %v2823_v36 = vadd.f32 %v2760_v43, %v2489_v0  ;;  %v2939_v53 = vmax.f32 %v2937_v21, %v2938_v45 }
 0x5a2   :  { %v2940_v35 = vmax.f32 %v2822_v11, %v2823_v36  ;;  %v3023_v58 = vmax.f32 %v2939_v53, 0.0  ;;  %v2763_v11 = vperm.slane %v2739_v10, 0  ;;  %v2741_v53 = vrot.slane %v5208_v50, 3 }
 0x5a4   :  { %v2941_v27 = vrot.slane %v2940_v35, 4  ;;  %v3047_v28 = vpack.c.bf16 %v3023_v58, %v3023_v58  ;;  %v2765_v44 = vperm.slane %v2741_v53, 0 }
 0x5a6   :  { %v2942_v63 = vmax.f32 %v2940_v35, %v2941_v27  ;;  %v3115_v19 = vunpack.c.l.b16 %v3047_v28 }
 0x5a7   :  { %v2492_v31 = vpop.f32.mrf.mxu1 }
 0x5a8   :  { %v2943_v20 = vrot.slane %v2942_v63, 2  ;;  %v2824_v60 = vadd.f32 %v2761_v13, %v2492_v31  ;;  %v2740_v31 = vrot.slane %v5208_v50, 2 }
 0x5aa   :  { %2531 = vmatmul.bf16.gmra.mxu1 %v5141_v18  ;;  %v2944_v34 = vmax.f32 %v2942_v63, %v2943_v20  ;;  %v2932_v18 = vmax.f32 %v2930_v12, %v2931_v30  ;;  %v2764_v54 = vperm.slane %v2740_v31, 0 }
 0x5ac   :  { %v2945_v4 = vrot.slane %v2944_v34, 1  ;;  %v3022_v37 = vmax.f32 %v2932_v18, 0.0 }
 0x5ae   :  { %v2946_v29 = vmax.f32 %v2944_v34, %v2945_v4  ;;  %v3046_v40 = vpack.c.bf16 %v3022_v37, %v3022_v37 }
 0x5af   :  { %v2494_v32 = vpop.f32.mrf.mxu1 }
 0x5b0   :  { %v2825_v25 = vadd.f32 %v2761_v13, %v2494_v32  ;;  %v3024_v33 = vmax.f32 %v2946_v29, 0.0  ;;  %v3114_v51 = vunpack.c.l.b16 %v3046_v40 }
 0x5b2   :  { %v2947_v59 = vmax.f32 %v2824_v60, %v2825_v25  ;;  %v3048_v46 = vpack.c.bf16 %v3024_v33, %v3024_v33  ;;  %v3136_v7 = vsel %vm1152_vm5, %v3114_v51, %v5198_v23 }
 0x5b3   :  { %v3137_v43 = vsel %vm1154_vm6, %v3115_v19, %v3136_v7 }
 0x5b4   :  { %v2948_v62 = vrot.slane %v2947_v59, 4  ;;  %v3116_v22 = vunpack.c.l.b16 %v3048_v46 }
 0x5b6   :  { %v2949_v6 = vmax.f32 %v2947_v59, %v2948_v62  ;;  %v3138_v38 = vsel %vm1156_vm7, %v3116_v22, %v3137_v43  ;;  %v2742_v22 = vrot.slane %v5208_v50, 4 }
 0x5b7   :  { %v2497_v41 = vpop.f32.mrf.mxu1 }
 0x5b8   :  { %v2950_v17 = vrot.slane %v2949_v6, 2  ;;  %v2826_v56 = vadd.f32 %v2762_v1, %v2497_v41 }
 0x5ba   :  { %v2951_v2 = vmax.f32 %v2949_v6, %v2950_v17 }
 0x5bc   :  { %v2952_v61 = vrot.slane %v2951_v2, 1 }
 0x5be   :  { %v2953_v3 = vmax.f32 %v2951_v2, %v2952_v61 }
 0x5bf   :  { %v2499_v39 = vpop.f32.mrf.mxu1 }
 0x5c0   :  { %v3025_v42 = vmax.f32 %v2953_v3, 0.0  ;;  %v2827_v49 = vadd.f32 %v2762_v1, %v2499_v39 }
 0x5c2   :  { %v3049_v26 = vpack.c.bf16 %v3025_v42, %v3025_v42  ;;  %v2954_v57 = vmax.f32 %v2826_v56, %v2827_v49 }
 0x5c4   :  { %v3117_v52 = vunpack.c.l.b16 %v3049_v26  ;;  %v2955_v0 = vrot.slane %v2954_v57, 4 }
 0x5c6   :  { %v3139_v36 = vsel %vm1158_vm8, %v3117_v52, %v3138_v38  ;;  %v2956_v55 = vmax.f32 %v2954_v57, %v2955_v0  ;;  %v2766_v57 = vperm.slane %v2742_v22, 0 }
 0x5c7   :  { %v2502_v35 = vpop.f32.mrf.mxu1  ;;  %v3147_v16 = vpack.c.b16 %v3139_v36, %v5188_v5 }
 0x5c8   :  { %v2828_v27 = vadd.f32 %v2763_v11, %v2502_v35  ;;  %v2957_v48 = vrot.slane %v2956_v55, 2 }
 0x5c9   :  { %3207 = vmatmul.bf16.vlgmr.msrb.gmra.mxu0 %v3147_v16 }
 0x5ca   :  { %v2958_v15 = vmax.f32 %v2956_v55, %v2957_v48 }
 0x5cc   :  { %v2959_v24 = vrot.slane %v2958_v15, 1 }
 0x5ce   :  { %v2960_v21 = vmax.f32 %v2958_v15, %v2959_v24 }
 0x5cf   :  { %v2504_v63 = vpop.f32.mrf.mxu1 }
 0x5d0   :  { %v2829_v9 = vadd.f32 %v2763_v11, %v2504_v63  ;;  %v3026_v5 = vmax.f32 %v2960_v21, 0.0 }
 0x5d2   :  { %v2961_v23 = vmax.f32 %v2828_v27, %v2829_v9  ;;  %v3050_v60 = vpack.c.bf16 %v3026_v5, %v3026_v5  ;;  %v2743_v27 = vrot.slane %v5208_v50, 5 }
 0x5d4   :  { %v2962_v20 = vrot.slane %v2961_v23, 4  ;;  %v3118_v62 = vunpack.c.l.b16 %v3050_v60  ;;  %v2767_v15 = vperm.slane %v2743_v27, 0 }
 0x5d6   :  { %v2963_v8 = vmax.f32 %v2961_v23, %v2962_v20 }
 0x5d7   :  { %v2507_v12 = vpop.f32.mrf.mxu1 }
 0x5d8   :  { %v2964_v34 = vrot.slane %v2963_v8, 2  ;;  %v2830_v13 = vadd.f32 %v2764_v54, %v2507_v12 }
 0x5da   :  { %v2965_v14 = vmax.f32 %v2963_v8, %v2964_v34 }
 0x5dc   :  { %v2966_v30 = vrot.slane %v2965_v14, 1 }
 0x5de   :  { %v2967_v32 = vmax.f32 %v2965_v14, %v2966_v30 }
 0x5df   :  { %v2509_v45 = vpop.f32.mrf.mxu1 }
 0x5e0   :  { %v3027_v25 = vmax.f32 %v2967_v32, 0.0  ;;  %v2831_v4 = vadd.f32 %v2764_v54, %v2509_v45  ;;  %v2744_v32 = vrot.slane %v5208_v50, 6 }
 0x5e2   :  { %v3051_v59 = vpack.c.bf16 %v3027_v25, %v3027_v25  ;;  %v2968_v18 = vmax.f32 %v2830_v13, %v2831_v4  ;;  %v2768_v4 = vperm.slane %v2744_v32, 0 }
 0x5e4   :  { %v3119_v47 = vunpack.c.l.b16 %v3051_v59  ;;  %v2969_v29 = vrot.slane %v2968_v18, 4 }
 0x5e6   :  { %v3140_v6 = vsel %vm1146_vm2, %v3119_v47, %v3118_v62  ;;  %v2970_v1 = vmax.f32 %v2968_v18, %v2969_v29 }
 0x5e7   :  { %v2512_v37 = vpop.f32.mrf.mxu1 }
 0x5e8   :  { %v2971_v41 = vrot.slane %v2970_v1, 2  ;;  %v2832_v58 = vadd.f32 %v2765_v44, %v2512_v37 }
 0x5ea   :  { %v2972_v17 = vmax.f32 %v2970_v1, %v2971_v41 }
 0x5ec   :  { %v2973_v56 = vrot.slane %v2972_v17, 1 }
 0x5ee   :  { %v2974_v33 = vmax.f32 %v2972_v17, %v2973_v56 }
 0x5ef   :  { %v2514_v2 = vpop.f32.mrf.mxu1 }
 0x5f0   :  { %v3028_v40 = vmax.f32 %v2974_v33, 0.0  ;;  %v2833_v28 = vadd.f32 %v2765_v44, %v2514_v2  ;;  %v2745_v2 = vrot.slane %v5208_v50, 7 }
 0x5f2   :  { %v3052_v61 = vpack.c.bf16 %v3028_v40, %v3028_v40  ;;  %v2975_v46 = vmax.f32 %v2832_v58, %v2833_v28 }
 0x5f4   :  { %v3120_v3 = vunpack.c.l.b16 %v3052_v61  ;;  %v2976_v51 = vrot.slane %v2975_v46, 4  ;;  %v2769_v61 = vperm.slane %v2745_v2, 0 }
 0x5f6   :  { %v3141_v39 = vsel %vm1148_vm3, %v3120_v3, %v3140_v6  ;;  %v2977_v19 = vmax.f32 %v2975_v46, %v2976_v51 }
 0x5f7   :  { %v2517_v42 = vpop.f32.mrf.mxu1 }
 0x5f8   :  { %v2978_v49 = vrot.slane %v2977_v19, 2  ;;  %v2834_v43 = vadd.f32 %v2766_v57, %v2517_v42 }
 0x5fa   :  { %v2979_v26 = vmax.f32 %v2977_v19, %v2978_v49 }
 0x5fc   :  { %v2980_v10 = vrot.slane %v2979_v26, 1 }
 0x5fe   :  { %v2981_v38 = vmax.f32 %v2979_v26, %v2980_v10 }
 0x5ff   :  { %v2519_v7 = vpop.f32.mrf.mxu1 }
 0x600   :  { %v2835_v52 = vadd.f32 %v2766_v57, %v2519_v7  ;;  %v3029_v35 = vmax.f32 %v2981_v38, 0.0  ;;  %v3686_v38 = vld [vmem:[%s5246_s9] ss:$0 sm:$0xff]  ;;  %s3770_s9 = smov 128  }
 0x602   :  { %v2982_v0 = vmax.f32 %v2834_v43, %v2835_v52  ;;  %v3053_v48 = vpack.c.bf16 %v3029_v35, %v3029_v35 }
 0x604   :  { %v2983_v11 = vrot.slane %v2982_v0, 4  ;;  %v3121_v9 = vunpack.c.l.b16 %v3053_v48 }
 0x606   :  { %v2984_v36 = vmax.f32 %v2982_v0, %v2983_v11  ;;  %v3142_v12 = vsel %vm1150_vm4, %v3121_v9, %v3141_v39 }
 0x607   :  { %v2522_v16 = vpop.f32.mrf.mxu1 }
 0x608   :  { %v2985_v55 = vrot.slane %v2984_v36, 2  ;;  %v2836_v24 = vadd.f32 %v2767_v15, %v2522_v16 }
 0x60a   :  { %v2986_v63 = vmax.f32 %v2984_v36, %v2985_v55 }
 0x60c   :  { %v2987_v23 = vrot.slane %v2986_v63, 1 }
 0x60e   :  { %v2988_v54 = vmax.f32 %v2986_v63, %v2987_v23 }
 0x60f   :  { %v2524_v31 = vpop.f32.mrf.mxu1 }
 0x610   :  { %v2837_v20 = vadd.f32 %v2767_v15, %v2524_v31  ;;  %v3030_v13 = vmax.f32 %v2988_v54, 0.0 }
 0x612   :  { %v2989_v8 = vmax.f32 %v2836_v24, %v2837_v20  ;;  %v3054_v45 = vpack.c.bf16 %v3030_v13, %v3030_v13 }
 0x614   :  { %v2990_v21 = vrot.slane %v2989_v8, 4  ;;  %v3122_v59 = vunpack.c.l.b16 %v3054_v45 }
 0x616   :  { %v2991_v34 = vmax.f32 %v2989_v8, %v2990_v21  ;;  %v3143_v1 = vsel %vm1152_vm5, %v3122_v59, %v3142_v12 }
 0x617   :  { %v2527_v14 = vpop.f32.mrf.mxu1 }
 0x618   :  { %v2992_v5 = vrot.slane %v2991_v34, 2  ;;  %v2838_v62 = vadd.f32 %v2768_v4, %v2527_v14 }
 0x61a   :  { %v2993_v30 = vmax.f32 %v2991_v34, %v2992_v5 }
 0x61c   :  { %v2994_v60 = vrot.slane %v2993_v30, 1 }
 0x61e   :  { %v2995_v25 = vmax.f32 %v2993_v30, %v2994_v60 }
 0x61f   :  { %v2529_v18 = vpop.f32.mrf.mxu1 }
 0x620   :  { %v3031_v53 = vmax.f32 %v2995_v25, 0.0  ;;  %v2839_v47 = vadd.f32 %v2768_v4, %v2529_v18 }
 0x622   :  { %v3055_v29 = vpack.c.bf16 %v3031_v53, %v3031_v53  ;;  %v2996_v6 = vmax.f32 %v2838_v62, %v2839_v47 }
 0x624   :  { %v2997_v44 = vrot.slane %v2996_v6, 4  ;;  %v3123_v37 = vunpack.c.l.b16 %v3055_v29 }
 0x626   :  { %v2998_v41 = vmax.f32 %v2996_v6, %v2997_v44  ;;  %v3144_v56 = vsel %vm1154_vm6, %v3123_v37, %v3143_v1 }
 0x627   :  { %v2532_v58 = vpop.f32.mrf.mxu1 }
 0x628   :  { %v2999_v17 = vrot.slane %v2998_v41, 2  ;;  %v2840_v51 = vadd.f32 %v2769_v61, %v2532_v58 }
 0x62a   :  { %v3000_v33 = vmax.f32 %v2998_v41, %v2999_v17 }
 0x62c   :  { %v3001_v40 = vrot.slane %v3000_v33, 1 }
 0x62e   :  { %v3002_v28 = vmax.f32 %v3000_v33, %v3001_v40 }
 0x62f   :  { %v2534_v46 = vpop.f32.mrf.mxu1 }
 0x630   :  { %v3032_v3 = vmax.f32 %v3002_v28, 0.0  ;;  %v2841_v39 = vadd.f32 %v2769_v61, %v2534_v46 }
 0x632   :  { %v3056_v19 = vpack.c.bf16 %v3032_v3, %v3032_v3  ;;  %v3003_v42 = vmax.f32 %v2840_v51, %v2841_v39 }
 0x634   :  { %v3124_v49 = vunpack.c.l.b16 %v3056_v19  ;;  %v3004_v22 = vrot.slane %v3003_v42, 4 }
 0x636   :  { %v3005_v26 = vmax.f32 %v3003_v42, %v3004_v22  ;;  %v3145_v57 = vsel %vm1156_vm7, %v3124_v49, %v3144_v56 }
 0x638   :  { %v3006_v10 = vrot.slane %v3005_v26, 2 }
 0x63a   :  { %v3007_v7 = vmax.f32 %v3005_v26, %v3006_v10 }
 0x63c   :  { %v3008_v43 = vrot.slane %v3007_v7, 1 }
 0x63e   :  { %v3009_v52 = vmax.f32 %v3007_v7, %v3008_v43 }
 0x640   :  { %v3033_v0 = vmax.f32 %v3009_v52, 0.0 }
 0x642   :  { %v3057_v50 = vpack.c.bf16 %v3033_v0, %v3033_v0 }
 0x644   :  { %v3125_v11 = vunpack.c.l.b16 %v3057_v50 }
 0x646   :  { %v3208_v36 = vpop.f32.mrf.mxu0  ;;  %v3146_v35 = vsel %vm1158_vm8, %v3125_v11, %v3145_v57 }
 0x647   :  { %v3209_v16 = vadd.f32 %v3686_v38, %v3208_v36  ;;  %v3148_v55 = vpack.c.b16 %v3146_v35, %v3146_v35 }
 0x649   :  { %3217 = vst [vmem:[#allocation7] sm:$0xff] %v3209_v16  ;;  %3212 = vmatmul.bf16.gmra.mxu0 %v3148_v55 }
 0x64e   :  { %v3210_v27 = vpop.f32.mrf.mxu0 }
 0x64f   :  { %v3211_v48 = vadd.f32 %v3686_v38, %v3210_v27 }
 0x651   :  { %3218 = vst [vmem:[#allocation7 + $0x8] sm:$0xff] %v3211_v48 }
 0x6c6   :  { %v3213_v63 = vpop.f32.mrf.mxu0 }
 0x6c7   :  { %v3214_v15 = vadd.f32 %v3686_v38, %v3213_v63 }
 0x6c9   :  { %3219 = vst [vmem:[#allocation7 + $0x10] sm:$0xff] %v3214_v15 }
 0x6ca   :  { %3232 = dma.vmem_to_hbm [thread:$0]  %s3225_s0, 384, %s3227_s1, [#allocation4], %s3770_s9, %s3770_s9, %s3771_s29  }
 0x6ce   :  { %v3215_v9 = vpop.f32.mrf.mxu0 }
 0x6cf   :  { %3763 = dma.done.wait [#allocation4], 384  }
 0x6d0   :  { %3764 = vsyncadd [#allocation4], 4294966912 }
 0x6d1   :  { %3237 = vsyncpa [#allocation3], 1 }
 0x6d2   :  { %3238 = vsyncpa [#allocation6], 1 }
 0x6d3   :  { %3239 = vsyncpa [#allocation4], 1 }

// kernel: tpu_custom_call.1
= control target key start
LH: loop header
LB: loop body
LE: loop exit
PB: predicated region body
PF: predicated region fallthrough
CT: control target
= control target key end

     0   :  { %15 = vsyncpa [#allocation3], 0  ;;  %s5237_s0 = inlined_call_operand.vmem [shape: f32[384,8], index: 0, kind: input, shape index: {}]   ;;  %s5238_s1 = inlined_call_operand.vmem [shape: bf16[8,128], index: 1, kind: input, shape index: {}]   ;;  %s5239_s2 = inlined_call_operand.vmem [shape: f32[1,128], index: 2, kind: input, shape index: {}]   ;;  %s5240_s3 = inlined_call_operand.hbm [shape: bf16[128,128], index: 3, kind: input, shape index: {}]   ;;  %s5241_s4 = inlined_call_operand.vmem [shape: f32[1,128], index: 4, kind: input, shape index: {}]   ;;  %s5242_s5 = inlined_call_operand.vmem [shape: bf16[3,128,128], index: 5, kind: input, shape index: {}]   ;;  %s5243_s6 = inlined_call_operand.vmem [shape: bf16[3,128,128], index: 6, kind: input, shape index: {}]   ;;  %s5244_s7 = inlined_call_operand.vmem [shape: f32[3,1,128], index: 7, kind: input, shape index: {}]   ;;  %s5245_s8 = inlined_call_operand.hbm [shape: bf16[128,128], index: 8, kind: input, shape index: {}]   ;;  %s5246_s9 = inlined_call_operand.vmem [shape: f32[1,128], index: 9, kind: input, shape index: {}]   ;;  %s5247_s10 = inlined_call_operand.hbm [shape: f32[24,128], index: 10, kind: output, shape index: {}]  }
   0x1   :  { %16 = vsyncpa [#allocation6], 0 }
   0x2   :  { %17 = vsyncpa [#allocation4], 0  ;;  %s28_s15 = sshll.u32 %s5240_s3, 4  ;;  %s3765_s16 = smov [#allocation2]   ;;  %s29_s15 = int_to_ptr.hbm [resolvable:$true] %s28_s15 }
   0x3   :  { %s30_s17 = sshll.u32 %s3765_s16, 4  ;;  %s49_s20 = sshll.u32 %s5245_s8, 4  ;;  %s31_s17 = int_to_ptr.vmem [resolvable:$true] %s30_s17  ;;  %s50_s20 = int_to_ptr.hbm [resolvable:$true] %s49_s20 }
   0x4   :  { %s3766_s21 = smov 64   ;;  %s3767_s22 = smov 4  }
   0x5   :  { %36 = dma.hbm_to_vmem [thread:$0]  %s29_s15, 1024, %s31_s17, [#allocation3], %s3766_s21, %s3766_s21, %s3767_s22  }
   0x6   :  { %s3768_s23 = smov [#allocation5]  }
   0x7   :  { %s51_s24 = sshll.u32 %s3768_s23, 4  ;;  %s52_s24 = int_to_ptr.vmem [resolvable:$true] %s51_s24 }
   0x8   :  { %57 = dma.hbm_to_vmem [thread:$0]  %s50_s20, 1024, %s52_s24, [#allocation6], %s3766_s21, %s3766_s21, %s3767_s22  }
   0x9   :  { %3759 = dma.done.wait [#allocation3], 1024  }
   0xa   :  { %3760 = vsyncadd [#allocation3], 4294966272 }
   0xb   :  { %3761 = dma.done.wait [#allocation6], 1024  }
   0xc   :  { %3762 = vsyncadd [#allocation6], 4294966272  ;;  %vm219_vm0 = vcmask 1043456   ;;  %v141_v0 = vld [vmem:[%s5238_s1] sm:$0xf]  ;;  %v70_v2 = vld [vmem:[%s5237_s0 + $0x8] sm:$0xff] }
   0xd   :  { %v69_v1 = vld [vmem:[%s5237_s0] sm:$0xff]  ;;  %v221_v3 = vsel %vm219_vm0, %v141_v0, 0  ;;  %v3593_v5 = vld [vmem:[#allocation2 + $0x38] sm:$0xff]  ;;  %vm146_vm1 = vcmask 64512   ;;  %v71_v6 = vld [vmem:[%s5237_s0 + $0x10] sm:$0xff]  ;;  %vm1146_vm2 = vcmask 1041409  }
   0xe   :  { %v117_v4 = vpack.c.bf16 %v70_v2, %v69_v1  ;;  %230 = vmatpush.bf16.msra.mxu0 %v221_v3  ;;  %3650 = vmatpush.bf16.msra.mxu1 %v3593_v5  ;;  %v72_v7 = vld [vmem:[%s5237_s0 + $0x18] sm:$0xff]  ;;  %v3592_v9 = vld [vmem:[#allocation2 + $0x30] sm:$0xff]  ;;  %v73_v10 = vld [vmem:[%s5237_s0 + $0x20] sm:$0xff]  ;;  %vm1148_vm3 = vcmask 1042434   ;;  %vm1150_vm4 = vcmask 1043459   ;;  %vm1152_vm5 = vcmask 1044484  }
   0xf   :  { %3651 = vmatpush.bf16.msra.mxu2 %v3593_v5  ;;  %3652 = vmatpush.bf16.msra.mxu3 %v3593_v5  ;;  %v118_v8 = vpack.c.bf16 %v72_v7, %v71_v6  ;;  %v74_v11 = vld [vmem:[%s5237_s0 + $0x28] sm:$0xff]  ;;  %v75_v13 = vld [vmem:[%s5237_s0 + $0x30] sm:$0xff]  ;;  %v76_v14 = vld [vmem:[%s5237_s0 + $0x38] sm:$0xff]  ;;  %vm1154_vm6 = vcmask 1045509   ;;  %vm1156_vm7 = vcmask 1046534   ;;  %vm1158_vm8 = vcmask 1047559  }
  0x10   :  { %v119_v12 = vpack.c.bf16 %v74_v11, %v73_v10  ;;  %v120_v15 = vpack.c.bf16 %v76_v14, %v75_v13  ;;  %v77_v16 = vld [vmem:[%s5237_s0 + $0x40] sm:$0xff]  ;;  %v78_v17 = vld [vmem:[%s5237_s0 + $0x48] sm:$0xff]  ;;  %v79_v20 = vld [vmem:[%s5237_s0 + $0x50] sm:$0xff]  ;;  %s3769_s8 = smov [#allocation7]   ;;  %s3226_s1 = sshll.u32 %s5247_s10, 4  ;;  %s3227_s1 = int_to_ptr.hbm [resolvable:$true] %s3226_s1 }
  0x11   :  { %3240 = vmatmul.msk.bf16.vlgmr.msra.gmra.mxu0 %vm146_vm1, %v117_v4  ;;  %v121_v18 = vpack.c.bf16 %v78_v17, %v77_v16  ;;  %v3591_v19 = vld [vmem:[#allocation2 + $0x28] sm:$0xff]  ;;  %v80_v21 = vld [vmem:[%s5237_s0 + $0x58] sm:$0xff]  ;;  %v81_v23 = vld [vmem:[%s5237_s0 + $0x60] sm:$0xff]  ;;  %s3771_s29 = smov 8  }
  0x12   :  { %492 = vmatpush.bf16.msrb.mxu0 %v3593_v5  ;;  %3653 = vmatpush.bf16.msra.mxu1 %v3592_v9  ;;  %v122_v22 = vpack.c.bf16 %v80_v21, %v79_v20  ;;  %v82_v24 = vld [vmem:[%s5237_s0 + $0x68] sm:$0xff]  ;;  %v83_v26 = vld [vmem:[%s5237_s0 + $0x70] sm:$0xff]  ;;  %v84_v27 = vld [vmem:[%s5237_s0 + $0x78] sm:$0xff] }
  0x13   :  { %3654 = vmatpush.bf16.msra.mxu2 %v3592_v9  ;;  %3655 = vmatpush.bf16.msra.mxu3 %v3592_v9  ;;  %v123_v25 = vpack.c.bf16 %v82_v24, %v81_v23  ;;  %v124_v28 = vpack.c.bf16 %v84_v27, %v83_v26  ;;  %v3590_v29 = vld [vmem:[#allocation2 + $0x20] sm:$0xff]  ;;  %v86_v31 = vld [vmem:[%s5237_s0 + $0x88] sm:$0xff]  ;;  %v87_v40 = vld [vmem:[%s5237_s0 + $0x90] sm:$0xff] }
  0x14   :  { %v85_v30 = vld [vmem:[%s5237_s0 + $0x80] sm:$0xff]  ;;  %v88_v41 = vld [vmem:[%s5237_s0 + $0x98] sm:$0xff]  ;;  %v90_v51 = vld [vmem:[%s5237_s0 + $0xa8] sm:$0xff] }
  0x15   :  { %v125_v32 = vpack.c.bf16 %v86_v31, %v85_v30  ;;  %v3901_v34 = vld [vmem:[%s5239_s2] ss:$0 sm:$0xff]  ;;  %v126_v43 = vpack.c.bf16 %v88_v41, %v87_v40  ;;  %v3589_v53 = vld [vmem:[#allocation2 + $0x18] sm:$0xff]  ;;  %v3588_v56 = vld [vmem:[#allocation2 + $0x10] sm:$0xff] }
  0x16   :  { %493 = vmatpush.bf16.msrb.mxu0 %v3592_v9  ;;  %3656 = vmatpush.bf16.msra.mxu1 %v3591_v19  ;;  %v89_v50 = vld [vmem:[%s5237_s0 + $0xa0] sm:$0xff]  ;;  %v3587_v57 = vld [vmem:[#allocation2 + $0x8] sm:$0xff]  ;;  %v91_v0 = vld [vmem:[%s5237_s0 + $0xb0] sm:$0xff] }
  0x17   :  { %3657 = vmatpush.bf16.msra.mxu2 %v3591_v19  ;;  %3658 = vmatpush.bf16.msra.mxu3 %v3591_v19  ;;  %v127_v54 = vpack.c.bf16 %v90_v51, %v89_v50  ;;  %v3586_v61 = vld [vmem:[#allocation2] sm:$0xff]  ;;  %v92_v1 = vld [vmem:[%s5237_s0 + $0xb8] sm:$0xff]  ;;  %v94_v11 = vld [vmem:[%s5237_s0 + $0xc8] sm:$0xff] }
  0x18   :  { %v128_v3 = vpack.c.bf16 %v92_v1, %v91_v0  ;;  %v93_v10 = vld [vmem:[%s5237_s0 + $0xc0] sm:$0xff]  ;;  %v95_v20 = vld [vmem:[%s5237_s0 + $0xd0] sm:$0xff]  ;;  %v96_v21 = vld [vmem:[%s5237_s0 + $0xd8] sm:$0xff] }
  0x19   :  { %v129_v13 = vpack.c.bf16 %v94_v11, %v93_v10  ;;  %v130_v23 = vpack.c.bf16 %v96_v21, %v95_v20  ;;  %v97_v30 = vld [vmem:[%s5237_s0 + $0xe0] sm:$0xff]  ;;  %v98_v31 = vld [vmem:[%s5237_s0 + $0xe8] sm:$0xff]  ;;  %v99_v41 = vld [vmem:[%s5237_s0 + $0xf0] sm:$0xff] }
  0x1a   :  { %494 = vmatpush.bf16.msrb.mxu0 %v3591_v19  ;;  %3659 = vmatpush.bf16.msra.mxu1 %v3590_v29  ;;  %v104_v0 = vld [vmem:[%s5237_s0 + $0x118] sm:$0xff]  ;;  %v105_v10 = vld [vmem:[%s5237_s0 + $0x120] sm:$0xff]  ;;  %v106_v11 = vld [vmem:[%s5237_s0 + $0x128] sm:$0xff] }
  0x1b   :  { %3660 = vmatpush.bf16.msra.mxu2 %v3590_v29  ;;  %3661 = vmatpush.bf16.msra.mxu3 %v3590_v29  ;;  %v107_v21 = vld [vmem:[%s5237_s0 + $0x130] sm:$0xff] }
  0x1e   :  { %495 = vmatpush.bf16.msrb.mxu0 %v3590_v29  ;;  %3662 = vmatpush.bf16.msra.mxu1 %v3589_v53 }
  0x1f   :  { %3663 = vmatpush.bf16.msra.mxu2 %v3589_v53  ;;  %3664 = vmatpush.bf16.msra.mxu3 %v3589_v53 }
  0x21   :  { %3241 = vmatmul.msk.bf16.gmra.mxu0 %vm146_vm1, %v118_v8 }
  0x22   :  { %496 = vmatpush.bf16.msrb.mxu0 %v3589_v53  ;;  %3665 = vmatpush.bf16.msra.mxu1 %v3588_v56  ;;  %v101_v53 = vld [vmem:[%s5237_s0 + $0x100] sm:$0xff] }
  0x23   :  { %3666 = vmatpush.bf16.msra.mxu2 %v3588_v56  ;;  %3667 = vmatpush.bf16.msra.mxu3 %v3588_v56 }
  0x26   :  { %497 = vmatpush.bf16.msrb.mxu0 %v3588_v56  ;;  %3668 = vmatpush.bf16.msra.mxu1 %v3587_v57 }
  0x27   :  { %3669 = vmatpush.bf16.msra.mxu2 %v3587_v57  ;;  %3670 = vmatpush.bf16.msra.mxu3 %v3587_v57 }
  0x2a   :  { %498 = vmatpush.bf16.msrb.mxu0 %v3587_v57  ;;  %3671 = vmatpush.bf16.msra.mxu1 %v3586_v61 }
  0x2b   :  { %3672 = vmatpush.bf16.msra.mxu2 %v3586_v61  ;;  %3673 = vmatpush.bf16.msra.mxu3 %v3586_v61 }
  0x2e   :  { %499 = vmatpush.bf16.msrb.mxu0 %v3586_v61 }
  0x31   :  { %3242 = vmatmul.msk.bf16.gmra.mxu0 %vm146_vm1, %v119_v12 }
  0x41   :  { %3243 = vmatmul.msk.bf16.gmra.mxu0 %vm146_vm1, %v120_v15 }
  0x51   :  { %3244 = vmatmul.msk.bf16.gmra.mxu0 %vm146_vm1, %v121_v18 }
  0x61   :  { %3245 = vmatmul.msk.bf16.gmra.mxu0 %vm146_vm1, %v122_v22 }
  0x71   :  { %3246 = vmatmul.msk.bf16.gmra.mxu0 %vm146_vm1, %v123_v25 }
  0x81   :  { %3247 = vmatmul.msk.bf16.gmra.mxu0 %vm146_vm1, %v124_v28 }
  0x8e   :  { %v232_v33 = vpop.f32.mrf.mxu0 }
  0x8f   :  { %v233_v35 = vadd.f32 %v3901_v34, %v232_v33  ;;  %v131_v33 = vpack.c.bf16 %v98_v31, %v97_v30  ;;  %v109_v31 = vld [vmem:[%s5237_s0 + $0x140] sm:$0xff] }
  0x91   :  { %3248 = vmatmul.msk.bf16.gmra.mxu0 %vm146_vm1, %v125_v32  ;;  %v352_v38 = vmax.f32 %v233_v35, 0.0 }
  0x96   :  { %v234_v36 = vpop.f32.mrf.mxu0 }
  0x97   :  { %v235_v37 = vadd.f32 %v3901_v34, %v234_v36 }
  0x99   :  { %v353_v39 = vmax.f32 %v235_v37, 0.0 }
  0x9b   :  { %v3912_v42 = vpack.c.bf16 %v353_v39, %v352_v38 }
  0x9e   :  { %v237_v44 = vpop.f32.mrf.mxu0 }
  0x9f   :  { %v238_v45 = vadd.f32 %v3901_v34, %v237_v44 }
  0xa1   :  { %3249 = vmatmul.msk.bf16.gmra.mxu0 %vm146_vm1, %v126_v43  ;;  %v354_v48 = vmax.f32 %v238_v45, 0.0  ;;  %v100_v43 = vld [vmem:[%s5237_s0 + $0xf8] sm:$0xff] }
  0xa2   :  { %v132_v45 = vpack.c.bf16 %v100_v43, %v99_v41 }
  0xa6   :  { %v239_v46 = vpop.f32.mrf.mxu0 }
  0xa7   :  { %v240_v47 = vadd.f32 %v3901_v34, %v239_v46 }
  0xa9   :  { %v355_v49 = vmax.f32 %v240_v47, 0.0 }
  0xab   :  { %v3923_v52 = vpack.c.bf16 %v355_v49, %v354_v48 }
  0xae   :  { %v242_v55 = vpop.f32.mrf.mxu0 }
  0xaf   :  { %v243_v58 = vadd.f32 %v3901_v34, %v242_v55 }
  0xb1   :  { %3250 = vmatmul.msk.bf16.gmra.mxu0 %vm146_vm1, %v127_v54  ;;  %v356_v62 = vmax.f32 %v243_v58, 0.0  ;;  %v102_v54 = vld [vmem:[%s5237_s0 + $0x108] sm:$0xff] }
  0xb2   :  { %v133_v56 = vpack.c.bf16 %v102_v54, %v101_v53 }
  0xb6   :  { %v244_v59 = vpop.f32.mrf.mxu0 }
  0xb7   :  { %v245_v60 = vadd.f32 %v3901_v34, %v244_v59 }
  0xb9   :  { %v357_v63 = vmax.f32 %v245_v60, 0.0 }
  0xbb   :  { %v3934_v2 = vpack.c.bf16 %v357_v63, %v356_v62  ;;  %v103_v63 = vld [vmem:[%s5237_s0 + $0x110] sm:$0xff] }
  0xbe   :  { %v247_v4 = vpop.f32.mrf.mxu0 }
  0xbf   :  { %v248_v5 = vadd.f32 %v3901_v34, %v247_v4 }
  0xc1   :  { %3251 = vmatmul.msk.bf16.gmra.mxu0 %vm146_vm1, %v128_v3  ;;  %v358_v8 = vmax.f32 %v248_v5, 0.0  ;;  %v134_v3 = vpack.c.bf16 %v104_v0, %v103_v63 }
  0xc6   :  { %v249_v6 = vpop.f32.mrf.mxu0 }
  0xc7   :  { %v250_v7 = vadd.f32 %v3901_v34, %v249_v6 }
  0xc9   :  { %v359_v9 = vmax.f32 %v250_v7, 0.0 }
  0xcb   :  { %v3945_v12 = vpack.c.bf16 %v359_v9, %v358_v8 }
  0xce   :  { %v252_v14 = vpop.f32.mrf.mxu0 }
  0xcf   :  { %v253_v15 = vadd.f32 %v3901_v34, %v252_v14  ;;  %v135_v14 = vpack.c.bf16 %v106_v11, %v105_v10 }
  0xd1   :  { %3252 = vmatmul.msk.bf16.gmra.mxu0 %vm146_vm1, %v129_v13  ;;  %v360_v18 = vmax.f32 %v253_v15, 0.0 }
  0xd6   :  { %v254_v16 = vpop.f32.mrf.mxu0 }
  0xd7   :  { %v255_v17 = vadd.f32 %v3901_v34, %v254_v16 }
  0xd9   :  { %v361_v19 = vmax.f32 %v255_v17, 0.0 }
  0xdb   :  { %v404_v22 = vpack.c.bf16 %v361_v19, %v360_v18 }
  0xdd   :  { %520 = vmatmul.bf16.vlgmr.msra.gmra.mxu1 %v404_v22  ;;  %v108_v22 = vld [vmem:[%s5237_s0 + $0x138] sm:$0xff] }
  0xde   :  { %v257_v24 = vpop.f32.mrf.mxu0 }
  0xdf   :  { %v258_v25 = vadd.f32 %v3901_v34, %v257_v24  ;;  %v136_v24 = vpack.c.bf16 %v108_v22, %v107_v21 }
  0xe1   :  { %3253 = vmatmul.msk.bf16.gmra.mxu0 %vm146_vm1, %v130_v23  ;;  %v362_v28 = vmax.f32 %v258_v25, 0.0 }
  0xe6   :  { %v259_v26 = vpop.f32.mrf.mxu0 }
  0xe7   :  { %v260_v27 = vadd.f32 %v3901_v34, %v259_v26 }
  0xe9   :  { %v363_v29 = vmax.f32 %v260_v27, 0.0 }
  0xeb   :  { %v405_v32 = vpack.c.bf16 %v363_v29, %v362_v28 }
  0xed   :  { %525 = vmatmul.bf16.gmra.mxu1 %v405_v32  ;;  %v110_v32 = vld [vmem:[%s5237_s0 + $0x148] sm:$0xff] }
  0xee   :  { %v262_v35 = vpop.f32.mrf.mxu0 }
  0xef   :  { %v263_v36 = vadd.f32 %v3901_v34, %v262_v35  ;;  %v137_v35 = vpack.c.bf16 %v110_v32, %v109_v31 }
  0xf1   :  { %3254 = vmatmul.msk.bf16.gmra.mxu0 %vm146_vm1, %v131_v33  ;;  %v364_v39 = vmax.f32 %v263_v36, 0.0 }
  0xf6   :  { %v264_v37 = vpop.f32.mrf.mxu0 }
  0xf7   :  { %v265_v38 = vadd.f32 %v3901_v34, %v264_v37 }
  0xf9   :  { %v365_v40 = vmax.f32 %v265_v38, 0.0 }
  0xfb   :  { %v406_v44 = vpack.c.bf16 %v365_v40, %v364_v39 }
  0xfd   :  { %530 = vmatmul.bf16.gmra.mxu1 %v406_v44  ;;  %v111_v44 = vld [vmem:[%s5237_s0 + $0x150] sm:$0xff] }
  0xfe   :  { %v267_v46 = vpop.f32.mrf.mxu0 }
  0xff   :  { %v268_v47 = vadd.f32 %v3901_v34, %v267_v46 }
 0x101   :  { %3255 = vmatmul.msk.bf16.gmra.mxu0 %vm146_vm1, %v132_v45  ;;  %v366_v50 = vmax.f32 %v268_v47, 0.0  ;;  %v112_v45 = vld [vmem:[%s5237_s0 + $0x158] sm:$0xff] }
 0x102   :  { %v138_v47 = vpack.c.bf16 %v112_v45, %v111_v44 }
 0x106   :  { %v269_v48 = vpop.f32.mrf.mxu0 }
 0x107   :  { %v270_v49 = vadd.f32 %v3901_v34, %v269_v48 }
 0x109   :  { %v367_v51 = vmax.f32 %v270_v49, 0.0 }
 0x10b   :  { %v407_v55 = vpack.c.bf16 %v367_v51, %v366_v50 }
 0x10d   :  { %535 = vmatmul.bf16.gmra.mxu1 %v407_v55 }
 0x10e   :  { %v272_v57 = vpop.f32.mrf.mxu0 }
 0x10f   :  { %v273_v58 = vadd.f32 %v3901_v34, %v272_v57  ;;  %v113_v57 = vld [vmem:[%s5237_s0 + $0x160] sm:$0xff] }
 0x111   :  { %3256 = vmatmul.msk.bf16.gmra.mxu0 %vm146_vm1, %v133_v56  ;;  %v368_v61 = vmax.f32 %v273_v58, 0.0  ;;  %v114_v58 = vld [vmem:[%s5237_s0 + $0x168] sm:$0xff] }
 0x116   :  { %v274_v59 = vpop.f32.mrf.mxu0 }
 0x117   :  { %v275_v60 = vadd.f32 %v3901_v34, %v274_v59 }
 0x119   :  { %v369_v62 = vmax.f32 %v275_v60, 0.0  ;;  %v139_v60 = vpack.c.bf16 %v114_v58, %v113_v57 }
 0x11b   :  { %v408_v1 = vpack.c.bf16 %v369_v62, %v368_v61 }
 0x11d   :  { %540 = vmatmul.bf16.gmra.mxu1 %v408_v1 }
 0x11e   :  { %v277_v4 = vpop.f32.mrf.mxu0 }
 0x11f   :  { %v278_v5 = vadd.f32 %v3901_v34, %v277_v4 }
 0x121   :  { %3257 = vmatmul.msk.bf16.gmra.mxu0 %vm146_vm1, %v134_v3  ;;  %v370_v8 = vmax.f32 %v278_v5, 0.0 }
 0x126   :  { %v279_v6 = vpop.f32.mrf.mxu0 }
 0x127   :  { %v280_v7 = vadd.f32 %v3901_v34, %v279_v6  ;;  %v115_v6 = vld [vmem:[%s5237_s0 + $0x170] sm:$0xff] }
 0x129   :  { %v371_v9 = vmax.f32 %v280_v7, 0.0  ;;  %v116_v7 = vld [vmem:[%s5237_s0 + $0x178] sm:$0xff]  ;;  %s3224_s0 = sshll.u32 %s3769_s8, 4  ;;  %s3225_s0 = int_to_ptr.vmem [resolvable:$true] %s3224_s0 }
 0x12b   :  { %v409_v13 = vpack.c.bf16 %v371_v9, %v370_v8  ;;  %v140_v9 = vpack.c.bf16 %v116_v7, %v115_v6 }
 0x12d   :  { %545 = vmatmul.bf16.gmra.mxu1 %v409_v13 }
 0x12e   :  { %v282_v15 = vpop.f32.mrf.mxu0 }
 0x12f   :  { %v283_v16 = vadd.f32 %v3901_v34, %v282_v15 }
 0x131   :  { %3258 = vmatmul.msk.bf16.gmra.mxu0 %vm146_vm1, %v135_v14  ;;  %v372_v19 = vmax.f32 %v283_v16, 0.0 }
 0x136   :  { %v284_v17 = vpop.f32.mrf.mxu0 }
 0x137   :  { %v285_v18 = vadd.f32 %v3901_v34, %v284_v17 }
 0x139   :  { %v373_v20 = vmax.f32 %v285_v18, 0.0 }
 0x13b   :  { %v410_v23 = vpack.c.bf16 %v373_v20, %v372_v19 }
 0x13d   :  { %550 = vmatmul.bf16.gmra.mxu1 %v410_v23 }
 0x13e   :  { %v287_v25 = vpop.f32.mrf.mxu0 }
 0x13f   :  { %v288_v26 = vadd.f32 %v3901_v34, %v287_v25 }
 0x141   :  { %3259 = vmatmul.msk.bf16.gmra.mxu0 %vm146_vm1, %v136_v24  ;;  %v374_v29 = vmax.f32 %v288_v26, 0.0 }
 0x146   :  { %v289_v27 = vpop.f32.mrf.mxu0 }
 0x147   :  { %v290_v28 = vadd.f32 %v3901_v34, %v289_v27 }
 0x149   :  { %v375_v30 = vmax.f32 %v290_v28, 0.0 }
 0x14b   :  { %v411_v33 = vpack.c.bf16 %v375_v30, %v374_v29  ;;  %v4071_v30 = vld [vmem:[%s5241_s4] ss:$0 sm:$0xff] }
 0x14d   :  { %555 = vmatmul.bf16.gmra.mxu1 %v411_v33 }
 0x14e   :  { %v292_v36 = vpop.f32.mrf.mxu0 }
 0x14f   :  { %v293_v37 = vadd.f32 %v3901_v34, %v292_v36 }
 0x151   :  { %3260 = vmatmul.msk.bf16.gmra.mxu0 %vm146_vm1, %v137_v35  ;;  %v376_v40 = vmax.f32 %v293_v37, 0.0 }
 0x156   :  { %v294_v38 = vpop.f32.mrf.mxu0 }
 0x157   :  { %v295_v39 = vadd.f32 %v3901_v34, %v294_v38 }
 0x159   :  { %v377_v41 = vmax.f32 %v295_v39, 0.0 }
 0x15a   :  { %v4022_v43 = vpop.f32.mrf.mxu1 }
 0x15b   :  { %v412_v46 = vpack.c.bf16 %v377_v41, %v376_v40  ;;  %v3601_v41 = vld [vmem:[%s5242_s5 + $0x38] sm:$0xff] }
 0x15c   :  { %925 = vmatpush.bf16.msrb.mxu2 %v3601_v41 }
 0x15d   :  { %560 = vmatmul.bf16.vlgmr.msra.gmra.mxu2 %v412_v46 }
 0x15e   :  { %v297_v48 = vpop.f32.mrf.mxu0 }
 0x15f   :  { %v298_v50 = vadd.f32 %v3901_v34, %v297_v48 }
 0x161   :  { %3261 = vmatmul.msk.bf16.gmra.mxu0 %vm146_vm1, %v138_v47  ;;  %v378_v54 = vmax.f32 %v298_v50, 0.0 }
 0x162   :  { %v4031_v49 = vpop.f32.mrf.mxu1 }
 0x166   :  { %v299_v51 = vpop.f32.mrf.mxu0 }
 0x167   :  { %v300_v53 = vadd.f32 %v3901_v34, %v299_v51 }
 0x169   :  { %v379_v55 = vmax.f32 %v300_v53, 0.0 }
 0x16a   :  { %v4035_v56 = vpop.f32.mrf.mxu1 }
 0x16b   :  { %v413_v59 = vpack.c.bf16 %v379_v55, %v378_v54 }
 0x16d   :  { %565 = vmatmul.bf16.gmra.mxu2 %v413_v59 }
 0x16e   :  { %v302_v61 = vpop.f32.mrf.mxu0 }
 0x16f   :  { %v303_v63 = vadd.f32 %v3901_v34, %v302_v61 }
 0x171   :  { %3262 = vmatmul.msk.bf16.gmra.mxu0 %vm146_vm1, %v139_v60  ;;  %v380_v3 = vmax.f32 %v303_v63, 0.0  ;;  %v3600_v60 = vld [vmem:[%s5242_s5 + $0x30] sm:$0xff] }
 0x172   :  { %v4044_v62 = vpop.f32.mrf.mxu1  ;;  %926 = vmatpush.bf16.msrb.mxu2 %v3600_v60 }
 0x176   :  { %v304_v0 = vpop.f32.mrf.mxu0 }
 0x177   :  { %v305_v1 = vadd.f32 %v3901_v34, %v304_v0 }
 0x179   :  { %v381_v4 = vmax.f32 %v305_v1, 0.0 }
 0x17a   :  { %v4048_v5 = vpop.f32.mrf.mxu1 }
 0x17b   :  { %v414_v8 = vpack.c.bf16 %v381_v4, %v380_v3 }
 0x17d   :  { %570 = vmatmul.bf16.gmra.mxu2 %v414_v8 }
 0x17e   :  { %v307_v10 = vpop.f32.mrf.mxu0 }
 0x17f   :  { %v308_v13 = vadd.f32 %v3901_v34, %v307_v10 }
 0x181   :  { %3263 = vmatmul.msk.bf16.gmra.mxu0 %vm146_vm1, %v140_v9  ;;  %v382_v16 = vmax.f32 %v308_v13, 0.0  ;;  %v3599_v13 = vld [vmem:[%s5242_s5 + $0x28] sm:$0xff] }
 0x182   :  { %v4057_v11 = vpop.f32.mrf.mxu1  ;;  %927 = vmatpush.bf16.msrb.mxu2 %v3599_v13 }
 0x186   :  { %v309_v14 = vpop.f32.mrf.mxu0 }
 0x187   :  { %v310_v15 = vadd.f32 %v3901_v34, %v309_v14 }
 0x189   :  { %v383_v17 = vmax.f32 %v310_v15, 0.0 }
 0x18a   :  { %v4061_v18 = vpop.f32.mrf.mxu1 }
 0x18b   :  { %v415_v19 = vpack.c.bf16 %v383_v17, %v382_v16  ;;  %v3598_v16 = vld [vmem:[%s5242_s5 + $0x20] sm:$0xff] }
 0x18c   :  { %928 = vmatpush.bf16.msrb.mxu2 %v3598_v16 }
 0x18d   :  { %575 = vmatmul.bf16.gmra.mxu2 %v415_v19 }
 0x18e   :  { %v312_v20 = vpop.f32.mrf.mxu0 }
 0x18f   :  { %v313_v22 = vadd.f32 %v3901_v34, %v312_v20 }
 0x191   :  { %500 = vmatmul.bf16.vlgmr.msrb.gmra.mxu0 %v3912_v42  ;;  %v384_v25 = vmax.f32 %v313_v22, 0.0 }
 0x192   :  { %v4064_v21 = vpop.f32.mrf.mxu1 }
 0x196   :  { %v314_v23 = vpop.f32.mrf.mxu0 }
 0x197   :  { %v315_v24 = vadd.f32 %v3901_v34, %v314_v23 }
 0x199   :  { %v385_v26 = vmax.f32 %v315_v24, 0.0 }
 0x19a   :  { %v541_v27 = vpop.f32.mrf.mxu1 }
 0x19b   :  { %v416_v28 = vpack.c.bf16 %v385_v26, %v384_v25  ;;  %v4075_v42 = vadd.f32 %v4071_v30, %v541_v27 }
 0x19d   :  { %580 = vmatmul.bf16.gmra.mxu2 %v416_v28  ;;  %v637_v36 = vmax.f32 %v4075_v42, 0.0 }
 0x19e   :  { %v317_v29 = vpop.f32.mrf.mxu0 }
 0x19f   :  { %v318_v33 = vadd.f32 %v3901_v34, %v317_v29 }
 0x1a1   :  { %505 = vmatmul.bf16.gmra.mxu0 %v3923_v52  ;;  %v386_v39 = vmax.f32 %v318_v33, 0.0 }
 0x1a2   :  { %v543_v31 = vpop.f32.mrf.mxu1 }
 0x1a3   :  { %v4078_v32 = vadd.f32 %v4071_v30, %v543_v31 }
 0x1a5   :  { %v638_v35 = vmax.f32 %v4078_v32, 0.0 }
 0x1a6   :  { %v319_v37 = vpop.f32.mrf.mxu0 }
 0x1a7   :  { %v320_v38 = vadd.f32 %v3901_v34, %v319_v37  ;;  %v4088_v52 = vpack.c.bf16 %v638_v35, %v637_v36 }
 0x1a9   :  { %v387_v40 = vmax.f32 %v320_v38, 0.0 }
 0x1aa   :  { %v546_v44 = vpop.f32.mrf.mxu1 }
 0x1ab   :  { %v417_v45 = vpack.c.bf16 %v387_v40, %v386_v39  ;;  %v4095_v47 = vadd.f32 %v4071_v30, %v546_v44  ;;  %v3597_v39 = vld [vmem:[%s5242_s5 + $0x18] sm:$0xff] }
 0x1ac   :  { %929 = vmatpush.bf16.msrb.mxu2 %v3597_v39 }
 0x1ad   :  { %585 = vmatmul.bf16.gmra.mxu2 %v417_v45  ;;  %v639_v54 = vmax.f32 %v4095_v47, 0.0  ;;  %v3608_v47 = vld [vmem:[%s5243_s6 + $0x30] sm:$0xff] }
 0x1ae   :  { %v322_v46 = vpop.f32.mrf.mxu0 }
 0x1af   :  { %v323_v51 = vadd.f32 %v3901_v34, %v322_v46 }
 0x1b1   :  { %510 = vmatmul.bf16.gmra.mxu0 %v3934_v2  ;;  %v388_v58 = vmax.f32 %v323_v51, 0.0 }
 0x1b2   :  { %v548_v48 = vpop.f32.mrf.mxu1 }
 0x1b3   :  { %v4098_v50 = vadd.f32 %v4071_v30, %v548_v48 }
 0x1b5   :  { %v640_v53 = vmax.f32 %v4098_v50, 0.0 }
 0x1b6   :  { %v324_v55 = vpop.f32.mrf.mxu0 }
 0x1b7   :  { %v325_v57 = vadd.f32 %v3901_v34, %v324_v55  ;;  %v4108_v2 = vpack.c.bf16 %v640_v53, %v639_v54 }
 0x1b9   :  { %v389_v59 = vmax.f32 %v325_v57, 0.0 }
 0x1ba   :  { %v551_v61 = vpop.f32.mrf.mxu1 }
 0x1bb   :  { %v418_v63 = vpack.c.bf16 %v389_v59, %v388_v58  ;;  %v4114_v1 = vadd.f32 %v4071_v30, %v551_v61 }
 0x1bd   :  { %590 = vmatmul.bf16.vlgmr.msra.gmra.mxu3 %v418_v63  ;;  %v641_v6 = vmax.f32 %v4114_v1, 0.0  ;;  %v3596_v63 = vld [vmem:[%s5242_s5 + $0x10] sm:$0xff] }
 0x1be   :  { %v327_v0 = vpop.f32.mrf.mxu0  ;;  %930 = vmatpush.bf16.msrb.mxu2 %v3596_v63 }
 0x1bf   :  { %v328_v7 = vadd.f32 %v3901_v34, %v327_v0 }
 0x1c1   :  { %515 = vmatmul.bf16.gmra.mxu0 %v3945_v12  ;;  %v390_v14 = vmax.f32 %v328_v7, 0.0  ;;  %v3595_v7 = vld [vmem:[%s5242_s5 + $0x8] sm:$0xff] }
 0x1c2   :  { %v553_v3 = vpop.f32.mrf.mxu1  ;;  %931 = vmatpush.bf16.msrb.mxu2 %v3595_v7 }
 0x1c3   :  { %v4118_v4 = vadd.f32 %v4071_v30, %v553_v3 }
 0x1c5   :  { %v642_v8 = vmax.f32 %v4118_v4, 0.0 }
 0x1c6   :  { %v329_v9 = vpop.f32.mrf.mxu0 }
 0x1c7   :  { %v330_v10 = vadd.f32 %v3901_v34, %v329_v9  ;;  %v4131_v12 = vpack.c.bf16 %v642_v8, %v641_v6 }
 0x1c9   :  { %v391_v15 = vmax.f32 %v330_v10, 0.0 }
 0x1ca   :  { %v556_v17 = vpop.f32.mrf.mxu1 }
 0x1cb   :  { %v419_v19 = vpack.c.bf16 %v391_v15, %v390_v14  ;;  %v4137_v22 = vadd.f32 %v4071_v30, %v556_v17  ;;  %v3594_v17 = vld [vmem:[%s5242_s5] sm:$0xff] }
 0x1cc   :  { %932 = vmatpush.bf16.msrb.mxu2 %v3594_v17 }
 0x1cd   :  { %595 = vmatmul.bf16.gmra.mxu3 %v419_v19  ;;  %v643_v25 = vmax.f32 %v4137_v22, 0.0 }
 0x1ce   :  { %v332_v20 = vpop.f32.mrf.mxu0 }
 0x1cf   :  { %v333_v26 = vadd.f32 %v3901_v34, %v332_v20 }
 0x1d1   :  { %v392_v33 = vmax.f32 %v333_v26, 0.0 }
 0x1d2   :  { %v558_v23 = vpop.f32.mrf.mxu1 }
 0x1d3   :  { %v4140_v24 = vadd.f32 %v4071_v30, %v558_v23 }
 0x1d5   :  { %v644_v27 = vmax.f32 %v4140_v24, 0.0 }
 0x1d6   :  { %v334_v28 = vpop.f32.mrf.mxu0 }
 0x1d7   :  { %v335_v29 = vadd.f32 %v3901_v34, %v334_v28  ;;  %v4150_v31 = vpack.c.bf16 %v644_v27, %v643_v25 }
 0x1d9   :  { %v393_v37 = vmax.f32 %v335_v29, 0.0 }
 0x1db   :  { %v420_v38 = vpack.c.bf16 %v393_v37, %v392_v33 }
 0x1dd   :  { %600 = vmatmul.bf16.gmra.mxu3 %v420_v38 }
 0x1de   :  { %v337_v40 = vpop.f32.mrf.mxu0 }
 0x1df   :  { %v338_v44 = vadd.f32 %v3901_v34, %v337_v40 }
 0x1e0   :  { %v561_v41 = vpop.f32.mrf.mxu2 }
 0x1e1   :  { %v4157_v46 = vadd.f32 %v4071_v30, %v561_v41  ;;  %v394_v55 = vmax.f32 %v338_v44, 0.0 }
 0x1e3   :  { %v5260_v59 = vmax.f32 %v4157_v46, 0.0 }
 0x1e6   :  { %v339_v45 = vpop.f32.mrf.mxu0 }
 0x1e7   :  { %v340_v48 = vadd.f32 %v3901_v34, %v339_v45 }
 0x1e8   :  { %v563_v51 = vpop.f32.mrf.mxu2 }
 0x1e9   :  { %v395_v57 = vmax.f32 %v340_v48, 0.0  ;;  %v4161_v58 = vadd.f32 %v4071_v30, %v563_v51 }
 0x1eb   :  { %v646_v60 = vmax.f32 %v4161_v58, 0.0  ;;  %v421_v61 = vpack.c.bf16 %v395_v57, %v394_v55 }
 0x1ed   :  { %605 = vmatmul.bf16.gmra.mxu3 %v421_v61  ;;  %v4172_v0 = vpack.c.bf16 %v646_v60, %v5260_v59 }
 0x1ee   :  { %v342_v3 = vpop.f32.mrf.mxu0 }
 0x1ef   :  { %v343_v10 = vadd.f32 %v3901_v34, %v342_v3 }
 0x1f0   :  { %v566_v9 = vpop.f32.mrf.mxu2 }
 0x1f1   :  { %v4179_v14 = vadd.f32 %v4071_v30, %v566_v9  ;;  %v396_v19 = vmax.f32 %v343_v10, 0.0  ;;  %v4217_v10 = vadd.f32 %v4071_v30, %v4031_v49  ;;  %v4239_v49 = vadd.f32 %v4071_v30, %v4035_v56 }
 0x1f3   :  { %v5258_v26 = vmax.f32 %v4179_v14, 0.0 }
 0x1f6   :  { %v344_v13 = vpop.f32.mrf.mxu0 }
 0x1f7   :  { %v345_v15 = vadd.f32 %v3901_v34, %v344_v13  ;;  %v4221_v13 = vadd.f32 %v4071_v30, %v4044_v62 }
 0x1f8   :  { %v568_v16 = vpop.f32.mrf.mxu2 }
 0x1f9   :  { %v397_v20 = vmax.f32 %v345_v15, 0.0  ;;  %v4186_v23 = vadd.f32 %v4071_v30, %v568_v16  ;;  %v4225_v16 = vadd.f32 %v4071_v30, %v4057_v11 }
 0x1fb   :  { %v5259_v28 = vmax.f32 %v4186_v23, 0.0  ;;  %v422_v29 = vpack.c.bf16 %v397_v20, %v396_v19  ;;  %v4235_v20 = vadd.f32 %v4071_v30, %v4022_v43  ;;  %v5254_v43 = vmax.f32 %v4221_v13, 0.0 }
 0x1fd   :  { %610 = vmatmul.bf16.gmra.mxu3 %v422_v29  ;;  %v4194_v33 = vpack.c.bf16 %v5259_v28, %v5258_v26  ;;  %v4243_v29 = vadd.f32 %v4071_v30, %v4048_v5 }
 0x1fe   :  { %v347_v37 = vpop.f32.mrf.mxu0 }
 0x1ff   :  { %v348_v39 = vadd.f32 %v3901_v34, %v347_v37 }
 0x200   :  { %v571_v38 = vpop.f32.mrf.mxu2 }
 0x201   :  { %v4198_v41 = vadd.f32 %v4071_v30, %v571_v38  ;;  %v398_v48 = vmax.f32 %v348_v39, 0.0  ;;  %v5251_v39 = vmax.f32 %v4217_v10, 0.0 }
 0x203   :  { %v5250_v57 = vmax.f32 %v4198_v41, 0.0 }
 0x206   :  { %v349_v40 = vpop.f32.mrf.mxu0 }
 0x207   :  { %v350_v44 = vadd.f32 %v3901_v34, %v349_v40  ;;  %v5255_v40 = vmax.f32 %v4225_v16, 0.0 }
 0x208   :  { %v573_v45 = vpop.f32.mrf.mxu2 }
 0x209   :  { %v399_v51 = vmax.f32 %v350_v44, 0.0  ;;  %v4202_v55 = vadd.f32 %v4071_v30, %v573_v45  ;;  %v5252_v45 = vmax.f32 %v4235_v20, 0.0 }
 0x20b   :  { %v5253_v61 = vmax.f32 %v4202_v55, 0.0  ;;  %v423_v63 = vpack.c.bf16 %v399_v51, %v398_v48  ;;  %v5257_v48 = vmax.f32 %v4239_v49, 0.0  ;;  %v4263_v51 = vadd.f32 %v4071_v30, %v4064_v21 }
 0x20d   :  { %615 = vmatmul.bf16.gmra.mxu3 %v423_v63  ;;  %v4210_v3 = vpack.c.bf16 %v5253_v61, %v5250_v57  ;;  %v5256_v63 = vmax.f32 %v4243_v29, 0.0  ;;  %v704_v21 = vmax.f32 %v5257_v48, %v5254_v43  ;;  %v725_v43 = vmax.f32 %v637_v36, %v638_v35 }
 0x20e   :  { %v501_v7 = vpop.f32.mrf.mxu0 }
 0x20f   :  { %v4213_v9 = vadd.f32 %v4071_v30, %v501_v7  ;;  %v726_v36 = vrot.slane %v725_v43, 4 }
 0x210   :  { %v576_v34 = vpop.f32.mrf.mxu2 }
 0x211   :  { %v4228_v17 = vadd.f32 %v4071_v30, %v576_v34  ;;  %v621_v11 = vmax.f32 %v4213_v9, 0.0  ;;  %v697_v34 = vmax.f32 %v5252_v45, %v5251_v39  ;;  %v705_v39 = vrot.slane %v704_v21, 4 }
 0x212   :  { %v5275_v9 = vmax.f32 %v4157_v46, 0.0 }
 0x213   :  { %v5248_v56 = vmax.f32 %v4228_v17, 0.0  ;;  %v698_v57 = vrot.slane %v697_v34, 4  ;;  %v706_v28 = vmax.f32 %v704_v21, %v705_v39  ;;  %v5281_v46 = vmax.f32 %v4228_v17, 0.0 }
 0x215   :  { %v699_v26 = vmax.f32 %v697_v34, %v698_v57 }
 0x216   :  { %v503_v15 = vpop.f32.mrf.mxu0 }
 0x217   :  { %v4231_v19 = vadd.f32 %v4071_v30, %v503_v15  ;;  %v4282_v15 = vadd.f32 %v4071_v30, %v4061_v18  ;;  %v700_v39 = vrot.slane %v699_v26, 2 }
 0x218   :  { %v578_v62 = vpop.f32.mrf.mxu2 }
 0x219   :  { %v622_v37 = vmax.f32 %v4231_v19, 0.0  ;;  %v4248_v38 = vadd.f32 %v4071_v30, %v578_v62  ;;  %v5262_v45 = vmax.f32 %v4282_v15, 0.0  ;;  %v701_v4 = vmax.f32 %v699_v26, %v700_v39 }
 0x21a   :  { %v746_v26 = vmax.f32 %v643_v25, %v644_v27  ;;  %v753_v19 = vmax.f32 %v5275_v9, %v646_v60 }
 0x21b   :  { %v837_v5 = vpack.c.bf16 %v622_v37, %v621_v11  ;;  %v5249_v44 = vmax.f32 %v4248_v38, 0.0  ;;  %v5280_v58 = vmax.f32 %v4248_v38, 0.0 }
 0x21d   :  { %933 = vmatmul.bf16.vlgmr.msrb.gmra.mxu2 %v837_v5  ;;  %v4270_v7 = vpack.c.bf16 %v5249_v44, %v5248_v56  ;;  %v711_v5 = vmax.f32 %v5256_v63, %v5255_v40  ;;  %v5261_v56 = vmax.f32 %v4263_v51, 0.0  ;;  %v3609_v40 = vld [vmem:[%s5243_s6 + $0x38] sm:$0xff]  ;;  %v732_v63 = vmax.f32 %v639_v54, %v640_v53 }
 0x21e   :  { %v506_v62 = vpop.f32.mrf.mxu0  ;;  %1226 = vmatpush.bf16.msrb.mxu3 %v3609_v40  ;;  %v774_v60 = vmax.f32 %v5281_v46, %v5280_v58 }
 0x21f   :  { %v712_v61 = vrot.slane %v711_v5, 4  ;;  %v718_v18 = vmax.f32 %v5262_v45, %v5261_v56  ;;  %v507_v48 = vadd.f32 %v4071_v30, %v506_v62  ;;  %v733_v50 = vrot.slane %v732_v63, 4 }
 0x220   :  { %v581_v44 = vpop.f32.mrf.mxu2 }
 0x221   :  { %v713_v56 = vmax.f32 %v711_v5, %v712_v61  ;;  %v4307_v32 = vadd.f32 %v4071_v30, %v581_v44  ;;  %v719_v35 = vrot.slane %v718_v18, 4  ;;  %v623_v53 = vmax.f32 %v507_v48, 0.0 }
 0x222   :  { %v707_v61 = vrot.slane %v706_v28, 2  ;;  %1227 = vmatpush.bf16.msrb.mxu3 %v3608_v47  ;;  %v727_v48 = vmax.f32 %v725_v43, %v726_v36  ;;  %v734_v5 = vmax.f32 %v732_v63, %v733_v50  ;;  %v3606_v63 = vld [vmem:[%s5243_s6 + $0x20] sm:$0xff]  ;;  %v702_v50 = vrot.slane %v701_v4, 1 }
 0x223   :  { %v714_v40 = vrot.slane %v713_v56, 2  ;;  %v5263_v44 = vmax.f32 %v4307_v32, 0.0  ;;  %v720_v62 = vmax.f32 %v718_v18, %v719_v35 }
 0x224   :  { %v728_v43 = vrot.slane %v727_v48, 2  ;;  %v735_v36 = vrot.slane %v734_v5, 2 }
 0x225   :  { %v715_v47 = vmax.f32 %v713_v56, %v714_v40  ;;  %v721_v18 = vrot.slane %v720_v62, 2 }
 0x226   :  { %v508_v59 = vpop.f32.mrf.mxu0  ;;  %v729_v56 = vmax.f32 %v727_v48, %v728_v43  ;;  %v736_v40 = vmax.f32 %v734_v5, %v735_v36  ;;  %v669_v5 = vmax.f32 %v621_v11, %v622_v37  ;;  %v5276_v11 = vmax.f32 %v4186_v23, 0.0 }
 0x227   :  { %v509_v42 = vadd.f32 %v4071_v30, %v508_v59  ;;  %v739_v59 = vmax.f32 %v641_v6, %v642_v8  ;;  %v5277_v37 = vmax.f32 %v4179_v14, 0.0 }
 0x228   :  { %v583_v45 = vpop.f32.mrf.mxu2 }
 0x229   :  { %v624_v54 = vmax.f32 %v509_v42, 0.0  ;;  %v4314_v57 = vadd.f32 %v4071_v30, %v583_v45  ;;  %v3607_v45 = vld [vmem:[%s5243_s6 + $0x28] sm:$0xff]  ;;  %v740_v6 = vrot.slane %v739_v59, 4  ;;  %v708_v42 = vmax.f32 %v706_v28, %v707_v61  ;;  %v3605_v61 = vld [vmem:[%s5243_s6 + $0x18] sm:$0xff] }
 0x22a   :  { %1228 = vmatpush.bf16.msrb.mxu3 %v3607_v45  ;;  %v716_v45 = vrot.slane %v715_v47, 1  ;;  %v722_v28 = vmax.f32 %v720_v62, %v721_v18  ;;  %v730_v18 = vrot.slane %v729_v56, 1 }
 0x22b   :  { %v5264_v34 = vmax.f32 %v4314_v57, 0.0  ;;  %v838_v21 = vpack.c.bf16 %v624_v54, %v623_v53  ;;  %v709_v39 = vrot.slane %v708_v42, 1  ;;  %v676_v27 = vmax.f32 %v623_v53, %v624_v54 }
 0x22c   :  { %v4344_v25 = vmax.f32 %v715_v47, %v716_v45  ;;  %v723_v48 = vrot.slane %v722_v28, 1  ;;  %v737_v47 = vrot.slane %v736_v40, 1 }
 0x22d   :  { %938 = vmatmul.bf16.gmra.mxu2 %v838_v21  ;;  %v4329_v1 = vpack.c.bf16 %v5264_v34, %v5263_v44  ;;  %v741_v21 = vmax.f32 %v739_v59, %v740_v6  ;;  %v4342_v34 = vmax.f32 %v701_v4, %v702_v50  ;;  %v747_v6 = vrot.slane %v746_v26, 4 }
 0x22e   :  { %v511_v8 = vpop.f32.mrf.mxu0  ;;  %1229 = vmatpush.bf16.msrb.mxu3 %v3606_v63  ;;  %v710_v22 = vmax.f32 %v708_v42, %v709_v39  ;;  %v3604_v42 = vld [vmem:[%s5243_s6 + $0x10] sm:$0xff]  ;;  %v5278_v50 = vmax.f32 %v4202_v55, 0.0  ;;  %v677_v45 = vrot.slane %v676_v27, 4  ;;  %v3603_v55 = vld [vmem:[%s5243_s6 + $0x8] sm:$0xff] }
 0x22f   :  { %v512_v44 = vadd.f32 %v4071_v30, %v511_v8  ;;  %v742_v59 = vrot.slane %v741_v21, 2  ;;  %v748_v36 = vmax.f32 %v746_v26, %v747_v6  ;;  %v670_v26 = vrot.slane %v669_v5, 4 }
 0x230   :  { %v586_v35 = vpop.f32.mrf.mxu2  ;;  %v738_v6 = vmax.f32 %v736_v40, %v737_v47  ;;  %v1058_v38 = vpack.c.bf16 %v4342_v34, %v4342_v34  ;;  %v775_v40 = vrot.slane %v774_v60, 4  ;;  %v3602_v47 = vld [vmem:[%s5243_s6] sm:$0xff]  ;;  %v5284_v34 = vmax.f32 %v4217_v10, 0.0 }
 0x231   :  { %v4352_v4 = vadd.f32 %v4071_v30, %v586_v35  ;;  %v625_v43 = vmax.f32 %v512_v44, 0.0  ;;  %v743_v63 = vmax.f32 %v741_v21, %v742_v59  ;;  %v760_v35 = vmax.f32 %v5277_v37, %v5276_v11 }
 0x232   :  { %1230 = vmatpush.bf16.msrb.mxu3 %v3605_v61  ;;  %v5279_v44 = vmax.f32 %v4198_v41, 0.0  ;;  %v724_v59 = vmax.f32 %v722_v28, %v723_v48  ;;  %v731_v41 = vmax.f32 %v729_v56, %v730_v18  ;;  %v671_v56 = vmax.f32 %v669_v5, %v670_v26 }
 0x233   :  { %v655_v23 = vmax.f32 %v4352_v4, 0.0  ;;  %v1059_v4 = vpack.c.bf16 %v710_v22, %v710_v22  ;;  %v1060_v11 = vpack.c.bf16 %v4344_v25, %v4344_v25  ;;  %v4398_v26 = vunpack.c.l.b16 %v1058_v38 }
 0x234   :  { %v767_v39 = vmax.f32 %v5279_v44, %v5278_v50  ;;  %v1062_v37 = vpack.c.bf16 %v731_v41, %v731_v41  ;;  %v5283_v50 = vmax.f32 %v4235_v20, 0.0  ;;  %v1063_v44 = vpack.c.bf16 %v738_v6, %v738_v6 }
 0x235   :  { %v4400_v58 = vunpack.c.l.b16 %v1059_v4  ;;  %v776_v41 = vmax.f32 %v774_v60, %v775_v40 }
 0x236   :  { %v513_v24 = vpop.f32.mrf.mxu0  ;;  %1231 = vmatpush.bf16.msrb.mxu3 %v3604_v42  ;;  %v761_v42 = vrot.slane %v760_v35, 4  ;;  %v768_v28 = vrot.slane %v767_v39, 4  ;;  %v4396_v22 = vpack.c.bf16 %v5284_v34, %v5283_v50  ;;  %v1130_v10 = vunpack.c.l.b16 %v1062_v37 }
 0x237   :  { %v514_v62 = vadd.f32 %v4071_v30, %v513_v24 }
 0x238   :  { %v588_v8 = vpop.f32.mrf.mxu2  ;;  %v769_v25 = vmax.f32 %v767_v39, %v768_v28 }
 0x239   :  { %v626_v53 = vmax.f32 %v514_v62, 0.0  ;;  %v4358_v54 = vadd.f32 %v4071_v30, %v588_v8  ;;  %v749_v62 = vrot.slane %v748_v36, 2  ;;  %v754_v8 = vrot.slane %v753_v19, 4 }
 0x23a   :  { %1232 = vmatpush.bf16.msrb.mxu3 %v3603_v55  ;;  %v672_v55 = vrot.slane %v671_v56, 2  ;;  %v770_v38 = vrot.slane %v769_v25, 2 }
 0x23b   :  { %v683_v61 = vmax.f32 %v625_v43, %v626_v53  ;;  %v656_v21 = vmax.f32 %v4358_v54, 0.0  ;;  %v839_v14 = vpack.c.bf16 %v626_v53, %v625_v43  ;;  %v744_v43 = vrot.slane %v743_v63, 1 }
 0x23c   :  { %v678_v53 = vmax.f32 %v676_v27, %v677_v45  ;;  %v1061_v27 = vpack.c.bf16 %v724_v59, %v724_v59  ;;  %v750_v5 = vmax.f32 %v748_v36, %v749_v62  ;;  %v755_v45 = vmax.f32 %v753_v19, %v754_v8 }
 0x23d   :  { %v684_v24 = vrot.slane %v683_v61, 4  ;;  %943 = vmatmul.bf16.gmra.mxu2 %v839_v14  ;;  %v4383_v17 = vpack.c.bf16 %v656_v21, %v655_v23  ;;  %v745_v46 = vmax.f32 %v743_v63, %v744_v43  ;;  %v1131_v36 = vunpack.c.l.b16 %v1063_v44 }
 0x23e   :  { %v516_v9 = vpop.f32.mrf.mxu0  ;;  %1233 = vmatpush.bf16.msrb.mxu3 %v3602_v47  ;;  %v679_v14 = vrot.slane %v678_v53, 2  ;;  %v4405_v6 = vunpack.c.l.b16 %v1061_v27  ;;  %v751_v19 = vrot.slane %v750_v5, 1  ;;  %v673_v4 = vmax.f32 %v671_v56, %v672_v55 }
 0x23f   :  { %5282 = vst [vmem:[#allocation11_spill] sm:$0xff] %v4383_v17  ;;  %v685_v48 = vmax.f32 %v683_v61, %v684_v24  ;;  %v762_v61 = vmax.f32 %v760_v35, %v761_v42  ;;  %v4402_v24 = vunpack.c.l.b16 %v1060_v11  ;;  %v517_v59 = vadd.f32 %v4071_v30, %v516_v9 }
 0x240   :  { %v591_v18 = vpop.f32.mrf.mxu3  ;;  %v756_v35 = vrot.slane %v755_v45, 2  ;;  %v1064_v42 = vpack.c.bf16 %v745_v46, %v745_v46  ;;  %v680_v63 = vmax.f32 %v678_v53, %v679_v14  ;;  %v777_v43 = vrot.slane %v776_v41, 2 }
 0x241   :  { %v686_v20 = vrot.slane %v685_v48, 2  ;;  %v763_v62 = vrot.slane %v762_v61, 2  ;;  %v592_v39 = vadd.f32 %v4071_v30, %v591_v18  ;;  %v788_v9 = vmax.f32 %v655_v23, %v656_v21 }
 0x242   :  { %v627_v47 = vmax.f32 %v517_v59, 0.0  ;;  %v752_v50 = vmax.f32 %v750_v5, %v751_v19  ;;  %v757_v34 = vmax.f32 %v755_v45, %v756_v35  ;;  %v5285_v18 = vmax.f32 %v4314_v57, 0.0 }
 0x243   :  { %v687_v28 = vmax.f32 %v685_v48, %v686_v20  ;;  %v764_v53 = vmax.f32 %v762_v61, %v763_v62  ;;  %v5286_v27 = vmax.f32 %v4307_v32, 0.0  ;;  %v681_v56 = vrot.slane %v680_v63, 1 }
 0x244   :  { %v657_v46 = vmax.f32 %v592_v39, 0.0  ;;  %v771_v55 = vmax.f32 %v769_v25, %v770_v38  ;;  %v778_v20 = vmax.f32 %v776_v41, %v777_v43  ;;  %v674_v23 = vrot.slane %v673_v4, 1 }
 0x245   :  { %v781_v44 = vmax.f32 %v5286_v27, %v5285_v18  ;;  %v688_v54 = vrot.slane %v687_v28, 1  ;;  %v789_v59 = vrot.slane %v788_v9, 4  ;;  %v758_v5 = vrot.slane %v757_v34, 1 }
 0x246   :  { %v518_v8 = vpop.f32.mrf.mxu0  ;;  %v765_v45 = vrot.slane %v764_v53, 1  ;;  %v1065_v32 = vpack.c.bf16 %v752_v50, %v752_v50  ;;  %v682_v19 = vmax.f32 %v680_v63, %v681_v56  ;;  %v1132_v39 = vunpack.c.l.b16 %v1064_v42 }
 0x247   :  { %v519_v60 = vadd.f32 %v4071_v30, %v518_v8  ;;  %v782_v61 = vrot.slane %v781_v44, 4  ;;  %v779_v25 = vrot.slane %v778_v20, 1  ;;  %v689_v41 = vmax.f32 %v687_v28, %v688_v54 }
 0x248   :  { %v593_v40 = vpop.f32.mrf.mxu3  ;;  %v1160_v43 = vsel %vm1146_vm2, %v1131_v36, %v1130_v10  ;;  %v759_v18 = vmax.f32 %v757_v34, %v758_v5  ;;  %v766_v27 = vmax.f32 %v764_v53, %v765_v45 }
 0x249   :  { %v628_v11 = vmax.f32 %v519_v60, 0.0  ;;  %v594_v37 = vadd.f32 %v4071_v30, %v593_v40  ;;  %v772_v40 = vrot.slane %v771_v55, 1  ;;  %v783_v17 = vmax.f32 %v781_v44, %v782_v61 }
 0x24a   :  { %v1161_v63 = vsel %vm1148_vm3, %v1132_v39, %v1160_v43  ;;  %v780_v56 = vmax.f32 %v778_v20, %v779_v25  ;;  %v1066_v10 = vpack.c.bf16 %v759_v18, %v759_v18  ;;  %v1067_v36 = vpack.c.bf16 %v766_v27, %v766_v27 }
 0x24b   :  { %v690_v48 = vmax.f32 %v627_v47, %v628_v11  ;;  %v658_v14 = vmax.f32 %v594_v37, 0.0  ;;  %v840_v21 = vpack.c.bf16 %v628_v11, %v627_v47  ;;  %v675_v47 = vmax.f32 %v673_v4, %v674_v23 }
 0x24c   :  { %v790_v11 = vmax.f32 %v788_v9, %v789_v59  ;;  %v773_v42 = vmax.f32 %v771_v55, %v772_v40  ;;  %v784_v4 = vrot.slane %v783_v17, 2  ;;  %v1069_v55 = vpack.c.bf16 %v780_v56, %v780_v56 }
 0x24d   :  { %v691_v8 = vrot.slane %v690_v48, 4  ;;  %v795_v60 = vmax.f32 %v657_v46, %v658_v14  ;;  %948 = vmatmul.bf16.gmra.mxu2 %v840_v21  ;;  %v4416_v57 = vpack.c.bf16 %v658_v14, %v657_v46  ;;  %v1133_v46 = vunpack.c.l.b16 %v1065_v32 }
 0x24e   :  { %v1055_v14 = vpack.c.bf16 %v682_v19, %v682_v19  ;;  %v1054_v28 = vpack.c.bf16 %v675_v47, %v675_v47  ;;  %v791_v54 = vrot.slane %v790_v11, 2  ;;  %v1068_v59 = vpack.c.bf16 %v773_v42, %v773_v42 }
 0x24f   :  { %v692_v35 = vmax.f32 %v690_v48, %v691_v8  ;;  %v796_v62 = vrot.slane %v795_v60, 4  ;;  %v1056_v48 = vpack.c.bf16 %v689_v41, %v689_v41  ;;  %v1162_v23 = vsel %vm1150_vm4, %v1133_v46, %v1161_v63 }
 0x250   :  { %v596_v38 = vpop.f32.mrf.mxu3  ;;  %v1123_v34 = vunpack.c.l.b16 %v1055_v14  ;;  %v1122_v20 = vunpack.c.l.b16 %v1054_v28  ;;  %v792_v45 = vmax.f32 %v790_v11, %v791_v54  ;;  %v1134_v19 = vunpack.c.l.b16 %v1066_v10 }
 0x251   :  { %v693_v37 = vrot.slane %v692_v35, 2  ;;  %v797_v21 = vmax.f32 %v795_v60, %v796_v62  ;;  %v597_v44 = vadd.f32 %v4071_v30, %v596_v38  ;;  %v1124_v60 = vunpack.c.l.b16 %v1056_v48 }
 0x252   :  { %v785_v62 = vmax.f32 %v783_v17, %v784_v4  ;;  %v1147_v40 = vsel %vm1146_vm2, %v1123_v34, %v1122_v20  ;;  %v1136_v43 = vunpack.c.l.b16 %v1068_v59  ;;  %v793_v18 = vrot.slane %v792_v45, 1 }
 0x253   :  { %v694_v50 = vmax.f32 %v692_v35, %v693_v37  ;;  %v798_v9 = vrot.slane %v797_v21, 2  ;;  %v1135_v35 = vunpack.c.l.b16 %v1067_v36  ;;  %v659_v41 = vmax.f32 %v597_v44, 0.0 }
 0x254   :  { %v1149_v47 = vsel %vm1148_vm3, %v1124_v60, %v1147_v40  ;;  %v1137_v37 = vunpack.c.l.b16 %v1069_v55 }
 0x255   :  { %v695_v8 = vrot.slane %v694_v50, 1  ;;  %v799_v39 = vmax.f32 %v797_v21, %v798_v9  ;;  %v1163_v21 = vsel %vm1152_vm5, %v1134_v19, %v1162_v23 }
 0x256   :  { %v1164_v56 = vsel %vm1154_vm6, %v1135_v35, %v1163_v21  ;;  %v5287_v35 = vmax.f32 %v4239_v49, 0.0 }
 0x257   :  { %v696_v53 = vmax.f32 %v694_v50, %v695_v8  ;;  %v800_v14 = vrot.slane %v799_v39, 1  ;;  %v786_v50 = vrot.slane %v785_v62, 1  ;;  %v1165_v54 = vsel %vm1156_vm7, %v1136_v43, %v1164_v56 }
 0x258   :  { %v598_v5 = vpop.f32.mrf.mxu3  ;;  %v1166_v10 = vsel %vm1158_vm8, %v1137_v37, %v1165_v54 }
 0x259   :  { %v1057_v61 = vpack.c.bf16 %v696_v53, %v696_v53  ;;  %v599_v32 = vadd.f32 %v4071_v30, %v598_v5  ;;  %v801_v36 = vmax.f32 %v799_v39, %v800_v14  ;;  %v787_v9 = vmax.f32 %v785_v62, %v786_v50 }
 0x25a   :  { %v5288_v62 = vmax.f32 %v4221_v13, 0.0  ;;  %v5290_v14 = vmax.f32 %v4225_v16, 0.0 }
 0x25b   :  { %v1125_v25 = vunpack.c.l.b16 %v1057_v61  ;;  %v660_v38 = vmax.f32 %v599_v32, 0.0  ;;  %v1072_v44 = vpack.c.bf16 %v801_v36, %v801_v36  ;;  %v1070_v23 = vpack.c.bf16 %v787_v9, %v787_v9 }
 0x25c   :  { %v842_v39 = vpack.c.bf16 %v5288_v62, %v5287_v35 }
 0x25d   :  { %v802_v27 = vmax.f32 %v659_v41, %v660_v38  ;;  %v1151_v11 = vsel %vm1150_vm4, %v1125_v25, %v1149_v47  ;;  %v4426_v46 = vpack.c.bf16 %v660_v38, %v659_v41  ;;  %953 = vmatmul.bf16.gmra.mxu2 %v4396_v22  ;;  %v794_v22 = vmax.f32 %v792_v45, %v793_v18 }
 0x25e   :  { %v1153_v17 = vsel %vm1152_vm5, %v4398_v26, %v1151_v11  ;;  %v1138_v45 = vunpack.c.l.b16 %v1070_v23  ;;  %v5289_v11 = vmax.f32 %v4243_v29, 0.0  ;;  %v5292_v29 = vmax.f32 %v4263_v51, 0.0 }
 0x25f   :  { %v803_v63 = vrot.slane %v802_v27, 4  ;;  %v1155_v42 = vsel %vm1154_vm6, %v4400_v58, %v1153_v17  ;;  %v1071_v58 = vpack.c.bf16 %v794_v22, %v794_v22 }
 0x260   :  { %v601_v48 = vpop.f32.mrf.mxu3  ;;  %v1157_v28 = vsel %vm1156_vm7, %v4402_v24, %v1155_v42  ;;  %v843_v17 = vpack.c.bf16 %v5290_v14, %v5289_v11 }
 0x261   :  { %v804_v8 = vmax.f32 %v802_v27, %v803_v63  ;;  %v1159_v26 = vsel %vm1158_vm8, %v4405_v6, %v1157_v28  ;;  %v602_v24 = vadd.f32 %v4071_v30, %v601_v48  ;;  %v1139_v5 = vunpack.c.l.b16 %v1071_v58 }
 0x262   :  { %v1174_v4 = vpack.c.b16 %v1166_v10, %v1159_v26  ;;  %v1140_v6 = vunpack.c.l.b16 %v1072_v44  ;;  %v5291_v26 = vmax.f32 %v4282_v15, 0.0 }
 0x263   :  { %v805_v34 = vrot.slane %v804_v8, 2  ;;  %v661_v32 = vmax.f32 %v602_v24, 0.0  ;;  %v1167_v25 = vsel %vm1146_vm2, %v1139_v5, %v1138_v45 }
 0x264   :  { %1234 = vmatmul.bf16.vlgmr.msrb.gmra.mxu3 %v1174_v4  ;;  %v1168_v38 = vsel %vm1148_vm3, %v1140_v6, %v1167_v25  ;;  %v844_v16 = vpack.c.bf16 %v5292_v29, %v5291_v26  ;;  %v3617_v29 = vld [vmem:[%s5242_s5 + $0x78] sm:$0xff] }
 0x265   :  { %v806_v53 = vmax.f32 %v804_v8, %v805_v34  ;;  %1669 = vmatpush.bf16.msra.mxu3 %v3617_v29 }
 0x267   :  { %v807_v59 = vrot.slane %v806_v53, 1 }
 0x268   :  { %v603_v60 = vpop.f32.mrf.mxu3 }
 0x269   :  { %v808_v55 = vmax.f32 %v806_v53, %v807_v59  ;;  %v604_v20 = vadd.f32 %v4071_v30, %v603_v60 }
 0x26b   :  { %v1073_v61 = vpack.c.bf16 %v808_v55, %v808_v55  ;;  %v662_v19 = vmax.f32 %v604_v20, 0.0 }
 0x26d   :  { %v1141_v40 = vunpack.c.l.b16 %v1073_v61  ;;  %v4448_v41 = vpack.c.bf16 %v662_v19, %v661_v32  ;;  %958 = vmatmul.bf16.gmra.mxu2 %v842_v39  ;;  %v809_v42 = vmax.f32 %v661_v32, %v662_v19 }
 0x26f   :  { %v4452_v43 = vsel %vm1150_vm4, %v1141_v40, %v1168_v38  ;;  %v810_v8 = vrot.slane %v809_v42, 4 }
 0x270   :  { %v606_v47 = vpop.f32.mrf.mxu3 }
 0x271   :  { %v607_v37 = vadd.f32 %v4071_v30, %v606_v47  ;;  %v811_v34 = vmax.f32 %v809_v42, %v810_v8 }
 0x273   :  { %v663_v27 = vmax.f32 %v607_v37, 0.0  ;;  %v812_v23 = vrot.slane %v811_v34, 2 }
 0x275   :  { %v813_v5 = vmax.f32 %v811_v34, %v812_v23  ;;  %v3612_v34 = vld [vmem:[%s5242_s5 + $0x50] sm:$0xff] }
 0x277   :  { %v814_v61 = vrot.slane %v813_v5, 1 }
 0x278   :  { %v608_v18 = vpop.f32.mrf.mxu3 }
 0x279   :  { %v609_v49 = vadd.f32 %v4071_v30, %v608_v18  ;;  %v815_v40 = vmax.f32 %v813_v5, %v814_v61 }
 0x27b   :  { %v664_v13 = vmax.f32 %v609_v49, 0.0  ;;  %v1074_v49 = vpack.c.bf16 %v815_v40, %v815_v40 }
 0x27d   :  { %v4460_v21 = vpack.c.bf16 %v664_v13, %v663_v27  ;;  %963 = vmatmul.bf16.gmra.mxu2 %v843_v17  ;;  %v816_v48 = vmax.f32 %v663_v27, %v664_v13  ;;  %v1142_v14 = vunpack.c.l.b16 %v1074_v49 }
 0x27f   :  { %v817_v10 = vrot.slane %v816_v48, 4 }
 0x280   :  { %v611_v50 = vpop.f32.mrf.mxu3 }
 0x281   :  { %v612_v63 = vadd.f32 %v4071_v30, %v611_v50  ;;  %v818_v53 = vmax.f32 %v816_v48, %v817_v10  ;;  %v3614_v10 = vld [vmem:[%s5242_s5 + $0x60] sm:$0xff] }
 0x283   :  { %v665_v54 = vmax.f32 %v612_v63, 0.0  ;;  %v819_v59 = vrot.slane %v818_v53, 2 }
 0x285   :  { %v820_v55 = vmax.f32 %v818_v53, %v819_v59  ;;  %v3610_v53 = vld [vmem:[%s5242_s5 + $0x40] sm:$0xff] }
 0x287   :  { %v821_v32 = vrot.slane %v820_v55, 1 }
 0x288   :  { %v613_v56 = vpop.f32.mrf.mxu3 }
 0x289   :  { %v614_v28 = vadd.f32 %v4071_v30, %v613_v56  ;;  %v822_v38 = vmax.f32 %v820_v55, %v821_v32 }
 0x28b   :  { %v666_v22 = vmax.f32 %v614_v28, 0.0 }
 0x28d   :  { %v823_v36 = vmax.f32 %v665_v54, %v666_v22  ;;  %v4468_v4 = vpack.c.bf16 %v666_v22, %v665_v54  ;;  %968 = vmatmul.bf16.gmra.mxu2 %v844_v16 }
 0x28f   :  { %v824_v9 = vrot.slane %v823_v36, 4 }
 0x290   :  { %v616_v58 = vpop.f32.mrf.mxu3 }
 0x291   :  { %v825_v44 = vmax.f32 %v823_v36, %v824_v9  ;;  %v617_v60 = vadd.f32 %v4071_v30, %v616_v58  ;;  %v3613_v9 = vld [vmem:[%s5242_s5 + $0x58] sm:$0xff] }
 0x293   :  { %v826_v24 = vrot.slane %v825_v44, 2  ;;  %v667_v6 = vmax.f32 %v617_v60, 0.0 }
 0x295   :  { %v827_v20 = vmax.f32 %v825_v44, %v826_v24  ;;  %v4511_v24 = vld [vmem:[%s5244_s7] ss:$0 sm:$0xff] }
 0x297   :  { %v828_v62 = vrot.slane %v827_v20, 1 }
 0x298   :  { %v618_v15 = vpop.f32.mrf.mxu3 }
 0x299   :  { %v619_v51 = vadd.f32 %v4071_v30, %v618_v15  ;;  %v829_v37 = vmax.f32 %v827_v20, %v828_v62  ;;  %v1075_v30 = vpack.c.bf16 %v822_v38, %v822_v38 }
 0x29b   :  { %v668_v45 = vmax.f32 %v619_v51, 0.0  ;;  %v1076_v13 = vpack.c.bf16 %v829_v37, %v829_v37  ;;  %v1143_v63 = vunpack.c.l.b16 %v1075_v30 }
 0x29d   :  { %v830_v19 = vmax.f32 %v667_v6, %v668_v45  ;;  %v4472_v35 = vpack.c.bf16 %v668_v45, %v667_v6  ;;  %973 = vmatmul.bf16.gmra.mxu2 %v4088_v52  ;;  %v1144_v42 = vunpack.c.l.b16 %v1076_v13  ;;  %v1170_v52 = vsel %vm1152_vm5, %v1142_v14, %v4452_v43  ;;  %v3616_v43 = vld [vmem:[%s5242_s5 + $0x70] sm:$0xff] }
 0x29e   :  { %v1171_v28 = vsel %vm1154_vm6, %v1143_v63, %v1170_v52  ;;  %1670 = vmatpush.bf16.msra.mxu3 %v3616_v43 }
 0x29f   :  { %v831_v39 = vrot.slane %v830_v19, 4  ;;  %v1172_v54 = vsel %vm1156_vm7, %v1144_v42, %v1171_v28 }
 0x2a0   :  { %v934_v25 = vpop.f32.mrf.mxu2 }
 0x2a1   :  { %v832_v47 = vmax.f32 %v830_v19, %v831_v39 }
 0x2a3   :  { %v833_v18 = vrot.slane %v832_v47, 2 }
 0x2a5   :  { %v834_v27 = vmax.f32 %v832_v47, %v833_v18 }
 0x2a7   :  { %v835_v11 = vrot.slane %v834_v27, 1 }
 0x2a8   :  { %v936_v17 = vpop.f32.mrf.mxu2 }
 0x2a9   :  { %v836_v50 = vmax.f32 %v834_v27, %v835_v11 }
 0x2ab   :  { %v1077_v56 = vpack.c.bf16 %v836_v50, %v836_v50 }
 0x2ad   :  { %v1145_v48 = vunpack.c.l.b16 %v1077_v56  ;;  %978 = vmatmul.bf16.gmra.mxu2 %v4108_v2  ;;  %v3615_v2 = vld [vmem:[%s5242_s5 + $0x68] sm:$0xff] }
 0x2ae   :  { %1671 = vmatpush.bf16.msra.mxu3 %v3615_v2 }
 0x2af   :  { %v1173_v22 = vsel %vm1158_vm8, %v1145_v48, %v1172_v54 }
 0x2b0   :  { %v939_v8 = vpop.f32.mrf.mxu2  ;;  %v1175_v26 = vpack.c.b16 %v1173_v22, %v1173_v22 }
 0x2b2   :  { %1239 = vmatmul.bf16.gmra.mxu3 %v1175_v26 }
 0x2b3   :  { %1672 = vmatpush.bf16.msra.mxu3 %v3614_v10 }
 0x2b7   :  { %1673 = vmatpush.bf16.msra.mxu3 %v3613_v9 }
 0x2b8   :  { %v941_v16 = vpop.f32.mrf.mxu2 }
 0x2bb   :  { %1674 = vmatpush.bf16.msra.mxu3 %v3612_v34 }
 0x2bd   :  { %983 = vmatmul.bf16.gmra.mxu2 %v4131_v12  ;;  %v3611_v12 = vld [vmem:[%s5242_s5 + $0x48] sm:$0xff] }
 0x2bf   :  { %1675 = vmatpush.bf16.msra.mxu3 %v3611_v12 }
 0x2c0   :  { %v944_v36 = vpop.f32.mrf.mxu2 }
 0x2c3   :  { %1676 = vmatpush.bf16.msra.mxu3 %v3610_v53 }
 0x2c8   :  { %v946_v58 = vpop.f32.mrf.mxu2 }
 0x2cd   :  { %988 = vmatmul.bf16.gmra.mxu2 %v4150_v31 }
 0x2d0   :  { %v949_v44 = vpop.f32.mrf.mxu2 }
 0x2d8   :  { %v951_v23 = vpop.f32.mrf.mxu2 }
 0x2dd   :  { %993 = vmatmul.bf16.gmra.mxu2 %v4172_v0 }
 0x2e0   :  { %v954_v59 = vpop.f32.mrf.mxu2 }
 0x2e7   :  { %v1235_v60 = vpop.f32.mrf.mxu3 }
 0x2e8   :  { %v4514_v5 = vadd.f32 %v4511_v24, %v1235_v60  ;;  %v956_v31 = vpop.f32.mrf.mxu2 }
 0x2ea   :  { %v1250_v15 = vrot.slane %v4514_v5, 4  ;;  %v1268_v55 = vperm.slane %v4514_v5, 0  ;;  %v1247_v51 = vrot.slane %v4514_v5, 1  ;;  %v1248_v20 = vrot.slane %v4514_v5, 2 }
 0x2eb   :  { %v1251_v6 = vrot.slane %v4514_v5, 5  ;;  %v1249_v62 = vrot.slane %v4514_v5, 3 }
 0x2ec   :  { %v1272_v0 = vperm.slane %v1250_v15, 0  ;;  %v1316_v45 = vadd.f32 %v1268_v55, %v934_v25  ;;  %v1317_v61 = vadd.f32 %v1268_v55, %v936_v17  ;;  %v1269_v32 = vperm.slane %v1247_v51, 0 }
 0x2ed   :  { %v1270_v19 = vperm.slane %v1248_v20, 0  ;;  %998 = vmatmul.bf16.gmra.mxu2 %v4194_v33  ;;  %v1273_v11 = vperm.slane %v1251_v6, 0  ;;  %v1271_v22 = vperm.slane %v1249_v62, 0 }
 0x2ee   :  { %v1324_v39 = vadd.f32 %v1272_v0, %v954_v59  ;;  %v1325_v40 = vadd.f32 %v1272_v0, %v956_v31  ;;  %v1364_v38 = vmax.f32 %v1316_v45, 0.0  ;;  %v1365_v47 = vmax.f32 %v1317_v61, 0.0 }
 0x2ef   :  { %v1318_v37 = vadd.f32 %v1269_v32, %v939_v8  ;;  %v1319_v18 = vadd.f32 %v1269_v32, %v941_v16  ;;  %v1320_v49 = vadd.f32 %v1270_v19, %v944_v36  ;;  %v1321_v30 = vadd.f32 %v1270_v19, %v946_v58 }
 0x2f0   :  { %v1372_v27 = vmax.f32 %v1324_v39, 0.0  ;;  %v1373_v13 = vmax.f32 %v1325_v40, 0.0  ;;  %v1412_v14 = vmax.f32 %v1364_v38, %v1365_v47  ;;  %v959_v25 = vpop.f32.mrf.mxu2  ;;  %v1580_v17 = vpack.c.bf16 %v1365_v47, %v1364_v38 }
 0x2f1   :  { %v1366_v50 = vmax.f32 %v1318_v37, 0.0  ;;  %v1367_v63 = vmax.f32 %v1319_v18, 0.0  ;;  %v1368_v42 = vmax.f32 %v1320_v49, 0.0  ;;  %v1326_v52 = vadd.f32 %v1273_v11, %v959_v25 }
 0x2f2   :  { %v1440_v56 = vmax.f32 %v1372_v27, %v1373_v13  ;;  %v1413_v48 = vrot.slane %v1412_v14, 4  ;;  %v1369_v28 = vmax.f32 %v1321_v30, 0.0  ;;  %1677 = vmatmul.bf16.vlgmr.msra.gmra.mxu3 %v1580_v17  ;;  %v1322_v2 = vadd.f32 %v1271_v22, %v949_v44 }
 0x2f3   :  { %v1419_v33 = vmax.f32 %v1366_v50, %v1367_v63  ;;  %v1581_v54 = vpack.c.bf16 %v1367_v63, %v1366_v50  ;;  %v1323_v10 = vadd.f32 %v1271_v22, %v951_v23  ;;  %v4525_v59 = vpack.c.bf16 %v1373_v13, %v1372_v27 }
 0x2f4   :  { %v1441_v8 = vrot.slane %v1440_v56, 4  ;;  %v1414_v26 = vmax.f32 %v1412_v14, %v1413_v48  ;;  %v1426_v29 = vmax.f32 %v1368_v42, %v1369_v28  ;;  %v4523_v16 = vpack.c.bf16 %v1369_v28, %v1368_v42 }
 0x2f5   :  { %v1420_v43 = vrot.slane %v1419_v33, 4  ;;  %v1370_v12 = vmax.f32 %v1322_v2, 0.0  ;;  %v1371_v53 = vmax.f32 %v1323_v10, 0.0  ;;  %v1252_v61 = vrot.slane %v4514_v5, 6 }
 0x2f6   :  { %v1442_v36 = vmax.f32 %v1440_v56, %v1441_v8  ;;  %v1415_v9 = vrot.slane %v1414_v26, 2  ;;  %v1427_v34 = vrot.slane %v1426_v29, 4  ;;  %v1374_v62 = vmax.f32 %v1326_v52, 0.0 }
 0x2f7   :  { %v1421_v58 = vmax.f32 %v1419_v33, %v1420_v43  ;;  %v1433_v20 = vmax.f32 %v1370_v12, %v1371_v53  ;;  %v4527_v0 = vpack.c.bf16 %v1371_v53, %v1370_v12  ;;  %v1274_v17 = vperm.slane %v1252_v61, 0 }
 0x2f8   :  { %v1443_v60 = vrot.slane %v1442_v36, 2  ;;  %v1416_v31 = vmax.f32 %v1414_v26, %v1415_v9  ;;  %v1428_v15 = vmax.f32 %v1426_v29, %v1427_v34  ;;  %v961_v55 = vpop.f32.mrf.mxu2 }
 0x2f9   :  { %v1422_v51 = vrot.slane %v1421_v58, 2  ;;  %v1327_v44 = vadd.f32 %v1273_v11, %v961_v55  ;;  %v1434_v19 = vrot.slane %v1433_v20, 4 }
 0x2fa   :  { %v1444_v6 = vmax.f32 %v1442_v36, %v1443_v60  ;;  %v1417_v45 = vrot.slane %v1416_v31, 1  ;;  %v1429_v23 = vrot.slane %v1428_v15, 2 }
 0x2fb   :  { %v1423_v32 = vmax.f32 %v1421_v58, %v1422_v51  ;;  %v1375_v40 = vmax.f32 %v1327_v44, 0.0  ;;  %v1435_v37 = vmax.f32 %v1433_v20, %v1434_v19 }
 0x2fc   :  { %v1418_v39 = vmax.f32 %v1416_v31, %v1417_v45  ;;  %v1430_v38 = vmax.f32 %v1428_v15, %v1429_v23  ;;  %v1445_v18 = vrot.slane %v1444_v6, 1 }
 0x2fd   :  { %v1424_v47 = vrot.slane %v1423_v32, 1  ;;  %v1447_v49 = vmax.f32 %v1374_v62, %v1375_v40  ;;  %1003 = vmatmul.bf16.gmra.mxu2 %v4210_v3  ;;  %v1436_v14 = vrot.slane %v1435_v37, 2  ;;  %v4531_v11 = vpack.c.bf16 %v1375_v40, %v1374_v62 }
 0x2fe   :  { %v1431_v30 = vrot.slane %v1430_v38, 1  ;;  %v1798_v27 = vpack.c.bf16 %v1418_v39, %v1418_v39  ;;  %v1446_v52 = vmax.f32 %v1444_v6, %v1445_v18 }
 0x2ff   :  { %v1425_v13 = vmax.f32 %v1423_v32, %v1424_v47  ;;  %v1448_v25 = vrot.slane %v1447_v49, 4  ;;  %v1437_v56 = vmax.f32 %v1435_v37, %v1436_v14 }
 0x300   :  { %v1432_v50 = vmax.f32 %v1430_v38, %v1431_v30  ;;  %v964_v63 = vpop.f32.mrf.mxu2  ;;  %v1868_v22 = vunpack.c.l.b16 %v1798_v27  ;;  %v1802_v10 = vpack.c.bf16 %v1446_v52, %v1446_v52 }
 0x301   :  { %v1799_v42 = vpack.c.bf16 %v1425_v13, %v1425_v13  ;;  %v1449_v48 = vmax.f32 %v1447_v49, %v1448_v25  ;;  %v1328_v28 = vadd.f32 %v1274_v17, %v964_v63  ;;  %v1438_v3 = vrot.slane %v1437_v56, 1 }
 0x302   :  { %v1800_v33 = vpack.c.bf16 %v1432_v50, %v1432_v50  ;;  %1682 = vmatmul.bf16.gmra.mxu3 %v1581_v54  ;;  %v1872_v60 = vunpack.c.l.b16 %v1802_v10  ;;  %v1253_v54 = vrot.slane %v4514_v5, 7  ;;  %v1237_v50 = vpop.f32.mrf.mxu3 }
 0x303   :  { %v1869_v8 = vunpack.c.l.b16 %v1799_v42  ;;  %v1450_v26 = vrot.slane %v1449_v48, 2  ;;  %v1439_v2 = vmax.f32 %v1437_v56, %v1438_v3  ;;  %v1376_v20 = vmax.f32 %v1328_v28, 0.0 }
 0x304   :  { %v1870_v29 = vunpack.c.l.b16 %v1800_v33  ;;  %v1275_v19 = vperm.slane %v1253_v54, 0  ;;  %v4548_v56 = vadd.f32 %v4511_v24, %v1237_v50 }
 0x305   :  { %v1892_v43 = vsel %vm1146_vm2, %v1869_v8, %v1868_v22  ;;  %v1451_v36 = vmax.f32 %v1449_v48, %v1450_v26  ;;  %v1801_v34 = vpack.c.bf16 %v1439_v2, %v1439_v2 }
 0x306   :  { %v1893_v9 = vsel %vm1148_vm3, %v1870_v29, %v1892_v43  ;;  %v1276_v33 = vperm.slane %v4548_v56, 0 }
 0x307   :  { %v1452_v58 = vrot.slane %v1451_v36, 1  ;;  %v1871_v53 = vunpack.c.l.b16 %v1801_v34 }
 0x308   :  { %v966_v12 = vpop.f32.mrf.mxu2 }
 0x309   :  { %v1453_v31 = vmax.f32 %v1451_v36, %v1452_v58  ;;  %v1329_v15 = vadd.f32 %v1274_v17, %v966_v12  ;;  %v1894_v55 = vsel %vm1150_vm4, %v1871_v53, %v1893_v9  ;;  %v5293_v9 = vld [vmem:[#allocation11_spill] sm:$0xff]  ;;  %v1254_v53 = vrot.slane %v4548_v56, 1 }
 0x30a   :  { %v1895_v45 = vsel %vm1152_vm5, %v1872_v60, %v1894_v55 }
 0x30b   :  { %v1803_v51 = vpack.c.bf16 %v1453_v31, %v1453_v31  ;;  %v1377_v6 = vmax.f32 %v1329_v15, 0.0  ;;  %v1277_v15 = vperm.slane %v1254_v53, 0 }
 0x30d   :  { %v1873_v44 = vunpack.c.l.b16 %v1803_v51  ;;  %v1454_v23 = vmax.f32 %v1376_v20, %v1377_v6  ;;  %1008 = vmatmul.bf16.gmra.mxu2 %v4270_v7  ;;  %v4539_v61 = vpack.c.bf16 %v1377_v6, %v1376_v20 }
 0x30f   :  { %v1455_v32 = vrot.slane %v1454_v23, 4  ;;  %v1896_v62 = vsel %vm1154_vm6, %v1873_v44, %v1895_v45 }
 0x310   :  { %v969_v39 = vpop.f32.mrf.mxu2 }
 0x311   :  { %v1456_v40 = vmax.f32 %v1454_v23, %v1455_v32  ;;  %v1330_v5 = vadd.f32 %v1275_v19, %v969_v39 }
 0x312   :  { %1687 = vmatmul.bf16.gmra.mxu3 %v4523_v16 }
 0x313   :  { %v1457_v38 = vrot.slane %v1456_v40, 2  ;;  %v1378_v13 = vmax.f32 %v1330_v5, 0.0  ;;  %v1255_v5 = vrot.slane %v4548_v56, 2 }
 0x315   :  { %v1458_v47 = vmax.f32 %v1456_v40, %v1457_v38 }
 0x317   :  { %v1459_v37 = vrot.slane %v1458_v47, 1 }
 0x318   :  { %v971_v18 = vpop.f32.mrf.mxu2 }
 0x319   :  { %v1460_v49 = vmax.f32 %v1458_v47, %v1459_v37  ;;  %v1331_v30 = vadd.f32 %v1275_v19, %v971_v18  ;;  %v1278_v18 = vperm.slane %v1255_v5, 0 }
 0x31b   :  { %v1804_v27 = vpack.c.bf16 %v1460_v49, %v1460_v49  ;;  %v1379_v7 = vmax.f32 %v1331_v30, 0.0 }
 0x31d   :  { %v1874_v14 = vunpack.c.l.b16 %v1804_v27  ;;  %v1461_v25 = vmax.f32 %v1378_v13, %v1379_v7  ;;  %1013 = vmatmul.bf16.gmra.mxu2 %v4329_v1  ;;  %v4544_v17 = vpack.c.bf16 %v1379_v7, %v1378_v13 }
 0x31f   :  { %v1462_v63 = vrot.slane %v1461_v25, 4  ;;  %v1897_v42 = vsel %vm1156_vm7, %v1874_v14, %v1896_v62 }
 0x320   :  { %v974_v16 = vpop.f32.mrf.mxu2 }
 0x321   :  { %v1463_v52 = vmax.f32 %v1461_v25, %v1462_v63  ;;  %v1332_v8 = vadd.f32 %v1276_v33, %v974_v16 }
 0x322   :  { %1692 = vmatmul.bf16.gmra.mxu3 %v4527_v0 }
 0x323   :  { %v1464_v48 = vrot.slane %v1463_v52, 2  ;;  %v1380_v43 = vmax.f32 %v1332_v8, 0.0 }
 0x325   :  { %v1465_v28 = vmax.f32 %v1463_v52, %v1464_v48 }
 0x327   :  { %v1466_v22 = vrot.slane %v1465_v28, 1 }
 0x328   :  { %v976_v1 = vpop.f32.mrf.mxu2 }
 0x329   :  { %v1467_v3 = vmax.f32 %v1465_v28, %v1466_v22  ;;  %v1333_v26 = vadd.f32 %v1276_v33, %v976_v1  ;;  %v1256_v22 = vrot.slane %v4548_v56, 3 }
 0x32b   :  { %v1805_v29 = vpack.c.bf16 %v1467_v3, %v1467_v3  ;;  %v1381_v2 = vmax.f32 %v1333_v26, 0.0  ;;  %v1279_v3 = vperm.slane %v1256_v22, 0 }
 0x32d   :  { %v1875_v10 = vunpack.c.l.b16 %v1805_v29  ;;  %v1468_v36 = vmax.f32 %v1380_v43, %v1381_v2  ;;  %1018 = vmatmul.bf16.gmra.mxu2 %v5293_v9  ;;  %v4553_v34 = vpack.c.bf16 %v1381_v2, %v1380_v43 }
 0x32f   :  { %v4556_v0 = vsel %vm1158_vm8, %v1875_v10, %v1897_v42  ;;  %v1469_v12 = vrot.slane %v1468_v36, 4 }
 0x330   :  { %v979_v58 = vpop.f32.mrf.mxu2 }
 0x331   :  { %v1470_v31 = vmax.f32 %v1468_v36, %v1469_v12  ;;  %v1334_v54 = vadd.f32 %v1277_v15, %v979_v58 }
 0x332   :  { %1697 = vmatmul.bf16.gmra.mxu3 %v4525_v59 }
 0x333   :  { %v1471_v51 = vrot.slane %v1470_v31, 2  ;;  %v1382_v6 = vmax.f32 %v1334_v54, 0.0 }
 0x335   :  { %v4560_v60 = vpop.f32.mrf.mxu3  ;;  %v1472_v23 = vmax.f32 %v1470_v31, %v1471_v51  ;;  %v3625_v31 = vld [vmem:[%s5243_s6 + $0x78] sm:$0xff] }
 0x336   :  { %1965 = vmatpush.bf16.msra.mxu0 %v3625_v31 }
 0x337   :  { %v1473_v59 = vrot.slane %v1472_v23, 1 }
 0x338   :  { %v981_v55 = vpop.f32.mrf.mxu2 }
 0x339   :  { %v1335_v20 = vadd.f32 %v1277_v15, %v981_v55  ;;  %v1474_v47 = vmax.f32 %v1472_v23, %v1473_v59 }
 0x33b   :  { %v1383_v45 = vmax.f32 %v1335_v20, 0.0  ;;  %v1806_v13 = vpack.c.bf16 %v1474_v47, %v1474_v47 }
 0x33d   :  { %v1242_v44 = vpop.f32.mrf.mxu3  ;;  %v1475_v32 = vmax.f32 %v1382_v6, %v1383_v45  ;;  %1023 = vmatmul.bf16.gmra.mxu2 %v4416_v57  ;;  %v4563_v19 = vpack.c.bf16 %v1383_v45, %v1382_v6  ;;  %v1876_v63 = vunpack.c.l.b16 %v1806_v13 }
 0x33f   :  { %v1476_v62 = vrot.slane %v1475_v32, 4 }
 0x340   :  { %v984_v39 = vpop.f32.mrf.mxu2 }
 0x341   :  { %v1477_v40 = vmax.f32 %v1475_v32, %v1476_v62  ;;  %v1336_v30 = vadd.f32 %v1278_v18, %v984_v39  ;;  %v3624_v32 = vld [vmem:[%s5243_s6 + $0x70] sm:$0xff] }
 0x342   :  { %1702 = vmatmul.bf16.gmra.mxu3 %v4531_v11  ;;  %1966 = vmatpush.bf16.msra.mxu0 %v3624_v32  ;;  %v4662_v32 = vadd.f32 %v4511_v24, %v4560_v60 }
 0x343   :  { %v1478_v38 = vrot.slane %v1477_v40, 2  ;;  %v1384_v25 = vmax.f32 %v1336_v30, 0.0  ;;  %v1259_v30 = vrot.slane %v4548_v56, 6 }
 0x345   :  { %v1479_v37 = vmax.f32 %v1477_v40, %v1478_v38  ;;  %v1258_v40 = vrot.slane %v4548_v56, 5 }
 0x347   :  { %v1480_v49 = vrot.slane %v1479_v37, 1  ;;  %v1281_v47 = vperm.slane %v1258_v40, 0 }
 0x348   :  { %v986_v27 = vpop.f32.mrf.mxu2 }
 0x349   :  { %v1481_v7 = vmax.f32 %v1479_v37, %v1480_v49  ;;  %v1337_v57 = vadd.f32 %v1278_v18, %v986_v27  ;;  %v3622_v37 = vld [vmem:[%s5243_s6 + $0x60] sm:$0xff] }
 0x34b   :  { %v1807_v14 = vpack.c.bf16 %v1481_v7, %v1481_v7  ;;  %v1385_v50 = vmax.f32 %v1337_v57, 0.0 }
 0x34d   :  { %v1877_v42 = vunpack.c.l.b16 %v1807_v14  ;;  %v1482_v16 = vmax.f32 %v1384_v25, %v1385_v50  ;;  %1028 = vmatmul.bf16.gmra.mxu2 %v4426_v46  ;;  %v4568_v52 = vpack.c.bf16 %v1385_v50, %v1384_v25  ;;  %v1282_v14 = vperm.slane %v1259_v30, 0 }
 0x34f   :  { %v1899_v11 = vsel %vm1146_vm2, %v1877_v42, %v1876_v63  ;;  %v1483_v48 = vrot.slane %v1482_v16, 4 }
 0x350   :  { %v989_v28 = vpop.f32.mrf.mxu2 }
 0x351   :  { %v1484_v33 = vmax.f32 %v1482_v16, %v1483_v48  ;;  %v4573_v29 = vadd.f32 %v1279_v3, %v989_v28 }
 0x352   :  { %1707 = vmatmul.bf16.gmra.mxu3 %v4539_v61 }
 0x353   :  { %v1485_v8 = vrot.slane %v1484_v33, 2  ;;  %v1386_v36 = vmax.f32 %v4573_v29, 0.0 }
 0x355   :  { %v1486_v1 = vmax.f32 %v1484_v33, %v1485_v8 }
 0x357   :  { %v1487_v26 = vrot.slane %v1486_v1, 1 }
 0x358   :  { %v991_v43 = vpop.f32.mrf.mxu2 }
 0x359   :  { %v1488_v2 = vmax.f32 %v1486_v1, %v1487_v26  ;;  %v4575_v46 = vadd.f32 %v1279_v3, %v991_v43  ;;  %v3620_v26 = vld [vmem:[%s5243_s6 + $0x50] sm:$0xff] }
 0x35b   :  { %v1808_v10 = vpack.c.bf16 %v1488_v2, %v1488_v2  ;;  %v1387_v9 = vmax.f32 %v4575_v46, 0.0  ;;  %v3619_v2 = vld [vmem:[%s5243_s6 + $0x48] sm:$0xff] }
 0x35d   :  { %v1878_v58 = vunpack.c.l.b16 %v1808_v10  ;;  %v1489_v61 = vmax.f32 %v1386_v36, %v1387_v9  ;;  %1033 = vmatmul.bf16.gmra.mxu2 %v4448_v41  ;;  %v1591_v30 = vpack.c.bf16 %v1387_v9, %v1386_v36 }
 0x35f   :  { %v1900_v12 = vsel %vm1148_vm3, %v1878_v58, %v1899_v11  ;;  %v1490_v53 = vrot.slane %v1489_v61, 4 }
 0x360   :  { %v994_v15 = vpop.f32.mrf.mxu2 }
 0x361   :  { %v1491_v54 = vmax.f32 %v1489_v61, %v1490_v53 }
 0x362   :  { %1712 = vmatmul.bf16.gmra.mxu3 %v4544_v17  ;;  %v3623_v17 = vld [vmem:[%s5243_s6 + $0x68] sm:$0xff] }
 0x363   :  { %v1492_v55 = vrot.slane %v1491_v54, 2  ;;  %1967 = vmatpush.bf16.msra.mxu0 %v3623_v17 }
 0x365   :  { %v1493_v51 = vmax.f32 %v1491_v54, %v1492_v55 }
 0x367   :  { %v1494_v20 = vrot.slane %v1493_v51, 1  ;;  %1968 = vmatpush.bf16.msra.mxu0 %v3622_v37 }
 0x368   :  { %v996_v6 = vpop.f32.mrf.mxu2 }
 0x369   :  { %v1495_v45 = vmax.f32 %v1493_v51, %v1494_v20 }
 0x36b   :  { %v1809_v44 = vpack.c.bf16 %v1495_v45, %v1495_v45 }
 0x36d   :  { %v1879_v23 = vunpack.c.l.b16 %v1809_v44  ;;  %1038 = vmatmul.bf16.gmra.mxu2 %v4460_v21  ;;  %v1257_v21 = vrot.slane %v4548_v56, 4 }
 0x36f   :  { %v4591_v41 = vsel %vm1150_vm4, %v1879_v23, %v1900_v12  ;;  %v1280_v38 = vperm.slane %v1257_v21, 0  ;;  %v1260_v12 = vrot.slane %v4548_v56, 7 }
 0x370   :  { %v999_v62 = vpop.f32.mrf.mxu2 }
 0x371   :  { %v4610_v18 = vadd.f32 %v1280_v38, %v996_v6  ;;  %v4618_v27 = vadd.f32 %v1280_v38, %v994_v15  ;;  %v4621_v13 = vadd.f32 %v1281_v47, %v999_v62  ;;  %v1283_v15 = vperm.slane %v1260_v12, 0  ;;  %v3618_v38 = vld [vmem:[%s5243_s6 + $0x40] sm:$0xff] }
 0x372   :  { %1717 = vmatmul.bf16.gmra.mxu3 %v4553_v34 }
 0x373   :  { %v1389_v7 = vmax.f32 %v4610_v18, 0.0  ;;  %v1388_v50 = vmax.f32 %v4618_v27, 0.0  ;;  %v1390_v63 = vmax.f32 %v4621_v13, 0.0  ;;  %v1262_v27 = vrot.slane %v4662_v32, 2 }
 0x375   :  { %v4600_v39 = vpop.f32.mrf.mxu3 }
 0x378   :  { %v1001_v59 = vpop.f32.mrf.mxu2 }
 0x379   :  { %v4612_v49 = vadd.f32 %v1281_v47, %v1001_v59 }
 0x37b   :  { %v1391_v57 = vmax.f32 %v4612_v49, 0.0  ;;  %v1263_v49 = vrot.slane %v4662_v32, 3 }
 0x37d   :  { %1043 = vmatmul.bf16.gmra.mxu2 %v4468_v4  ;;  %v4605_v5 = vpop.f32.mrf.mxu3  ;;  %v3621_v4 = vld [vmem:[%s5243_s6 + $0x58] sm:$0xff]  ;;  %v1503_v11 = vmax.f32 %v1390_v63, %v1391_v57 }
 0x37e   :  { %1969 = vmatpush.bf16.msra.mxu0 %v3621_v4 }
 0x37f   :  { %v1504_v8 = vrot.slane %v1503_v11, 4 }
 0x380   :  { %v1004_v34 = vpop.f32.mrf.mxu2 }
 0x381   :  { %v4629_v42 = vadd.f32 %v1282_v14, %v1004_v34  ;;  %v1505_v61 = vmax.f32 %v1503_v11, %v1504_v8  ;;  %v1284_v34 = vperm.slane %v4662_v32, 0 }
 0x382   :  { %1722 = vmatmul.bf16.gmra.mxu3 %v4563_v19  ;;  %v1496_v19 = vmax.f32 %v1388_v50, %v1389_v7  ;;  %1970 = vmatpush.bf16.msra.mxu0 %v3620_v26 }
 0x383   :  { %v1392_v28 = vmax.f32 %v4629_v42, 0.0  ;;  %v1506_v31 = vrot.slane %v1505_v61, 2 }
 0x384   :  { %v1497_v22 = vrot.slane %v1496_v19, 4 }
 0x385   :  { %v4625_v25 = vpop.f32.mrf.mxu3  ;;  %v1507_v45 = vmax.f32 %v1505_v61, %v1506_v31 }
 0x386   :  { %v1498_v10 = vmax.f32 %v1496_v19, %v1497_v22  ;;  %1971 = vmatpush.bf16.msra.mxu0 %v3619_v2 }
 0x387   :  { %v1508_v17 = vrot.slane %v1507_v45, 1 }
 0x388   :  { %v1006_v16 = vpop.f32.mrf.mxu2 }
 0x389   :  { %v4639_v48 = vadd.f32 %v1282_v14, %v1006_v16  ;;  %v1509_v4 = vmax.f32 %v1507_v45, %v1508_v17 }
 0x38a   :  { %1972 = vmatpush.bf16.msra.mxu0 %v3618_v38 }
 0x38b   :  { %v1393_v33 = vmax.f32 %v4639_v48, 0.0  ;;  %v1811_v8 = vpack.c.bf16 %v1509_v4, %v1509_v4 }
 0x38d   :  { %v1510_v1 = vmax.f32 %v1392_v28, %v1393_v33  ;;  %1048 = vmatmul.bf16.gmra.mxu2 %v4472_v35  ;;  %v4648_v3 = vpop.f32.mrf.mxu3  ;;  %v1499_v35 = vrot.slane %v1498_v10, 2  ;;  %v1881_v61 = vunpack.c.l.b16 %v1811_v8 }
 0x38f   :  { %v1511_v43 = vrot.slane %v1510_v1, 4  ;;  %v1500_v20 = vmax.f32 %v1498_v10, %v1499_v35  ;;  %v1261_v35 = vrot.slane %v4662_v32, 1 }
 0x390   :  { %v1009_v58 = vpop.f32.mrf.mxu2 }
 0x391   :  { %v1512_v53 = vmax.f32 %v1510_v1, %v1511_v43  ;;  %v1346_v51 = vadd.f32 %v1283_v15, %v1009_v58 }
 0x392   :  { %1727 = vmatmul.bf16.gmra.mxu3 %v4568_v52  ;;  %v1501_v52 = vrot.slane %v1500_v20, 1 }
 0x393   :  { %v1513_v55 = vrot.slane %v1512_v53, 2  ;;  %v1394_v56 = vmax.f32 %v1346_v51, 0.0 }
 0x394   :  { %v1502_v24 = vmax.f32 %v1500_v20, %v1501_v52 }
 0x395   :  { %v4658_v54 = vpop.f32.mrf.mxu3  ;;  %v1514_v23 = vmax.f32 %v1512_v53, %v1513_v55 }
 0x396   :  { %v1810_v22 = vpack.c.bf16 %v1502_v24, %v1502_v24 }
 0x397   :  { %v1515_v47 = vrot.slane %v1514_v23, 1 }
 0x398   :  { %v1011_v6 = vpop.f32.mrf.mxu2  ;;  %v1880_v10 = vunpack.c.l.b16 %v1810_v22 }
 0x399   :  { %v1347_v44 = vadd.f32 %v1283_v15, %v1011_v6  ;;  %v1516_v16 = vmax.f32 %v1514_v23, %v1515_v47 }
 0x39a   :  { %v1902_v31 = vsel %vm1152_vm5, %v1880_v10, %v4591_v41  ;;  %v1592_v41 = vpack.c.bf16 %v1389_v7, %v1388_v50 }
 0x39b   :  { %v1395_v62 = vmax.f32 %v1347_v44, 0.0  ;;  %v1812_v43 = vpack.c.bf16 %v1516_v16, %v1516_v16  ;;  %v1903_v15 = vsel %vm1154_vm6, %v1881_v61, %v1902_v31  ;;  %v1285_v44 = vperm.slane %v1261_v35, 0 }
 0x39d   :  { %v1517_v59 = vmax.f32 %v1394_v56, %v1395_v62  ;;  %v4664_v21 = vpack.c.bf16 %v1395_v62, %v1394_v56  ;;  %v4666_v40 = vpop.f32.mrf.mxu3  ;;  %v1882_v46 = vunpack.c.l.b16 %v1812_v43  ;;  %v3633_v56 = vld [vmem:[%s5242_s5 + $0xb8] sm:$0xff] }
 0x39e   :  { %2408 = vmatpush.bf16.msrb.mxu1 %v3633_v56 }
 0x39f   :  { %v1518_v37 = vrot.slane %v1517_v59, 4  ;;  %v1904_v45 = vsel %vm1156_vm7, %v1882_v46, %v1903_v15 }
 0x3a0   :  { %v1014_v60 = vpop.f32.mrf.mxu2 }
 0x3a1   :  { %v1519_v14 = vmax.f32 %v1517_v59, %v1518_v37  ;;  %v1348_v19 = vadd.f32 %v1284_v34, %v1014_v60 }
 0x3a2   :  { %1732 = vmatmul.bf16.gmra.mxu3 %v1591_v30 }
 0x3a3   :  { %v1520_v11 = vrot.slane %v1519_v14, 2  ;;  %v1396_v9 = vmax.f32 %v1348_v19, 0.0  ;;  %v3632_v19 = vld [vmem:[%s5242_s5 + $0xb0] sm:$0xff] }
 0x3a4   :  { %2409 = vmatpush.bf16.msrb.mxu1 %v3632_v19 }
 0x3a5   :  { %v1521_v1 = vmax.f32 %v1519_v14, %v1520_v11  ;;  %v4676_v26 = vpop.f32.mrf.mxu3  ;;  %v1286_v14 = vperm.slane %v1262_v27, 0  ;;  %v1593_v11 = vpack.c.bf16 %v1391_v57, %v1390_v63 }
 0x3a7   :  { %v1522_v2 = vrot.slane %v1521_v1, 1 }
 0x3a8   :  { %v1016_v58 = vpop.f32.mrf.mxu2 }
 0x3a9   :  { %v1523_v29 = vmax.f32 %v1521_v1, %v1522_v2  ;;  %v1349_v12 = vadd.f32 %v1284_v34, %v1016_v58 }
 0x3ab   :  { %v1813_v36 = vpack.c.bf16 %v1523_v29, %v1523_v29  ;;  %v1397_v53 = vmax.f32 %v1349_v12, 0.0 }
 0x3ad   :  { %v1883_v55 = vunpack.c.l.b16 %v1813_v36  ;;  %v1524_v51 = vmax.f32 %v1396_v9, %v1397_v53  ;;  %v4682_v20 = vpack.c.bf16 %v1397_v53, %v1396_v9  ;;  %v4684_v6 = vpop.f32.mrf.mxu3 }
 0x3af   :  { %v1905_v23 = vsel %vm1158_vm8, %v1883_v55, %v1904_v45  ;;  %v1525_v17 = vrot.slane %v1524_v51, 4  ;;  %v3631_v55 = vld [vmem:[%s5242_s5 + $0xa8] sm:$0xff] }
 0x3b0   :  { %v1019_v62 = vpop.f32.mrf.mxu2  ;;  %v1913_v52 = vpack.c.b16 %v1905_v23, %v4556_v0  ;;  %2410 = vmatpush.bf16.msrb.mxu1 %v3631_v55  ;;  %v1594_v23 = vpack.c.bf16 %v1393_v33, %v1392_v28  ;;  %v3630_v28 = vld [vmem:[%s5242_s5 + $0xa0] sm:$0xff]  ;;  %v1265_v55 = vrot.slane %v4662_v32, 5 }
 0x3b1   :  { %v1350_v59 = vadd.f32 %v1285_v44, %v1019_v62  ;;  %v1526_v38 = vmax.f32 %v1524_v51, %v1525_v17 }
 0x3b2   :  { %1737 = vmatmul.bf16.gmra.mxu3 %v1592_v41  ;;  %1973 = vmatmul.bf16.vlgmr.msra.gmra.mxu0 %v1913_v52 }
 0x3b3   :  { %v1527_v34 = vrot.slane %v1526_v38, 2  ;;  %v1398_v60 = vmax.f32 %v1350_v59, 0.0 }
 0x3b4   :  { %2411 = vmatpush.bf16.msrb.mxu1 %v3630_v28 }
 0x3b5   :  { %v4696_v47 = vpop.f32.mrf.mxu3  ;;  %v1528_v4 = vmax.f32 %v1526_v38, %v1527_v34 }
 0x3b7   :  { %v1529_v22 = vrot.slane %v1528_v4, 1 }
 0x3b8   :  { %v1021_v37 = vpop.f32.mrf.mxu2 }
 0x3b9   :  { %v1351_v24 = vadd.f32 %v1285_v44, %v1021_v37  ;;  %v1530_v2 = vmax.f32 %v1528_v4, %v1529_v22  ;;  %v1287_v44 = vperm.slane %v1263_v49, 0 }
 0x3bb   :  { %v1399_v30 = vmax.f32 %v1351_v24, 0.0  ;;  %v1814_v12 = vpack.c.bf16 %v1530_v2, %v1530_v2 }
 0x3bd   :  { %v1531_v18 = vmax.f32 %v1398_v60, %v1399_v30  ;;  %v4699_v7 = vpack.c.bf16 %v1399_v30, %v1398_v60  ;;  %v4701_v0 = vpop.f32.mrf.mxu3  ;;  %v1884_v57 = vunpack.c.l.b16 %v1814_v12 }
 0x3bf   :  { %v1532_v50 = vrot.slane %v1531_v18, 4 }
 0x3c0   :  { %v1024_v16 = vpop.f32.mrf.mxu2 }
 0x3c1   :  { %v1533_v8 = vmax.f32 %v1531_v18, %v1532_v50  ;;  %v1352_v1 = vadd.f32 %v1286_v14, %v1024_v16  ;;  %v1264_v16 = vrot.slane %v4662_v32, 4 }
 0x3c2   :  { %1742 = vmatmul.bf16.gmra.mxu3 %v1593_v11 }
 0x3c3   :  { %v1534_v43 = vrot.slane %v1533_v8, 2  ;;  %v1400_v13 = vmax.f32 %v1352_v1, 0.0 }
 0x3c5   :  { %v1535_v10 = vmax.f32 %v1533_v8, %v1534_v43  ;;  %v4710_v58 = vpop.f32.mrf.mxu3  ;;  %v1288_v8 = vperm.slane %v1264_v16, 0 }
 0x3c7   :  { %v1536_v61 = vrot.slane %v1535_v10, 1 }
 0x3c8   :  { %v1026_v29 = vpop.f32.mrf.mxu2 }
 0x3c9   :  { %v1537_v46 = vmax.f32 %v1535_v10, %v1536_v61  ;;  %v1353_v36 = vadd.f32 %v1286_v14, %v1026_v29 }
 0x3cb   :  { %v1815_v9 = vpack.c.bf16 %v1537_v46, %v1537_v46  ;;  %v1401_v53 = vmax.f32 %v1353_v36, 0.0 }
 0x3cd   :  { %v1885_v63 = vunpack.c.l.b16 %v1815_v9  ;;  %v1538_v35 = vmax.f32 %v1400_v13, %v1401_v53  ;;  %v4713_v31 = vpack.c.bf16 %v1401_v53, %v1400_v13  ;;  %v4715_v15 = vpop.f32.mrf.mxu3  ;;  %v3629_v53 = vld [vmem:[%s5242_s5 + $0x98] sm:$0xff] }
 0x3ce   :  { %2412 = vmatpush.bf16.msrb.mxu1 %v3629_v53  ;;  %v3626_v53 = vld [vmem:[%s5242_s5 + $0x80] sm:$0xff] }
 0x3cf   :  { %v1906_v51 = vsel %vm1146_vm2, %v1885_v63, %v1884_v57  ;;  %v1539_v45 = vrot.slane %v1538_v35, 4 }
 0x3d0   :  { %v1029_v56 = vpop.f32.mrf.mxu2 }
 0x3d1   :  { %v1540_v62 = vmax.f32 %v1538_v35, %v1539_v45  ;;  %v1354_v41 = vadd.f32 %v1287_v44, %v1029_v56 }
 0x3d2   :  { %1747 = vmatmul.bf16.gmra.mxu3 %v1594_v23 }
 0x3d3   :  { %v1541_v52 = vrot.slane %v1540_v62, 2  ;;  %v1402_v30 = vmax.f32 %v1354_v41, 0.0 }
 0x3d5   :  { %v1542_v17 = vmax.f32 %v1540_v62, %v1541_v52  ;;  %v4725_v59 = vpop.f32.mrf.mxu3 }
 0x3d7   :  { %v1543_v38 = vrot.slane %v1542_v17, 1 }
 0x3d8   :  { %v1031_v37 = vpop.f32.mrf.mxu2 }
 0x3d9   :  { %v1544_v34 = vmax.f32 %v1542_v17, %v1543_v38  ;;  %v1355_v24 = vadd.f32 %v1287_v44, %v1031_v37  ;;  %v1289_v44 = vperm.slane %v1265_v55, 0 }
 0x3db   :  { %v1816_v60 = vpack.c.bf16 %v1544_v34, %v1544_v34  ;;  %v1403_v27 = vmax.f32 %v1355_v24, 0.0 }
 0x3dd   :  { %v1886_v4 = vunpack.c.l.b16 %v1816_v60  ;;  %v1545_v42 = vmax.f32 %v1402_v30, %v1403_v27  ;;  %v4727_v18 = vpack.c.bf16 %v1403_v27, %v1402_v30  ;;  %v4729_v48 = vpop.f32.mrf.mxu3  ;;  %v3641_v30 = vld [vmem:[%s5243_s6 + $0xb8] sm:$0xff]  ;;  %v3628_v27 = vld [vmem:[%s5242_s5 + $0x90] sm:$0xff] }
 0x3de   :  { %2704 = vmatpush.bf16.msra.mxu2 %v3641_v30  ;;  %2413 = vmatpush.bf16.msrb.mxu1 %v3628_v27 }
 0x3df   :  { %v1907_v33 = vsel %vm1148_vm3, %v1886_v4, %v1906_v51  ;;  %v1546_v50 = vrot.slane %v1545_v42, 4 }
 0x3e0   :  { %v1034_v14 = vpop.f32.mrf.mxu2 }
 0x3e1   :  { %v1547_v19 = vmax.f32 %v1545_v42, %v1546_v50  ;;  %v4739_v2 = vadd.f32 %v1288_v8, %v1034_v14  ;;  %v1266_v50 = vrot.slane %v4662_v32, 6 }
 0x3e2   :  { %1752 = vmatmul.bf16.gmra.mxu3 %v4664_v21 }
 0x3e3   :  { %v1548_v11 = vrot.slane %v1547_v19, 2  ;;  %v1404_v46 = vmax.f32 %v4739_v2, 0.0  ;;  %v1290_v16 = vperm.slane %v1266_v50, 0 }
 0x3e5   :  { %v1549_v22 = vmax.f32 %v1547_v19, %v1548_v11  ;;  %v4737_v1 = vpop.f32.mrf.mxu3 }
 0x3e7   :  { %v1550_v43 = vrot.slane %v1549_v22, 1 }
 0x3e8   :  { %v1036_v10 = vpop.f32.mrf.mxu2 }
 0x3e9   :  { %v1551_v61 = vmax.f32 %v1549_v22, %v1550_v43  ;;  %v4741_v29 = vadd.f32 %v1288_v8, %v1036_v10 }
 0x3eb   :  { %v1817_v12 = vpack.c.bf16 %v1551_v61, %v1551_v61  ;;  %v1405_v36 = vmax.f32 %v4741_v29, 0.0 }
 0x3ed   :  { %v1887_v9 = vunpack.c.l.b16 %v1817_v12  ;;  %v1552_v21 = vmax.f32 %v1404_v46, %v1405_v36  ;;  %v4749_v13 = vpop.f32.mrf.mxu3  ;;  %v3627_v12 = vld [vmem:[%s5242_s5 + $0x88] sm:$0xff] }
 0x3ee   :  { %2414 = vmatpush.bf16.msrb.mxu1 %v3627_v12 }
 0x3ef   :  { %v1553_v49 = vrot.slane %v1552_v21, 4  ;;  %v1908_v57 = vsel %vm1150_vm4, %v1887_v9, %v1907_v33 }
 0x3f0   :  { %v1039_v63 = vpop.f32.mrf.mxu2 }
 0x3f1   :  { %v1554_v35 = vmax.f32 %v1552_v21, %v1553_v49  ;;  %v4759_v62 = vadd.f32 %v1289_v44, %v1039_v63 }
 0x3f2   :  { %1757 = vmatmul.bf16.gmra.mxu3 %v4682_v20  ;;  %2415 = vmatpush.bf16.msrb.mxu1 %v3626_v53 }
 0x3f3   :  { %v1555_v51 = vrot.slane %v1554_v35, 2  ;;  %v1406_v37 = vmax.f32 %v4759_v62, 0.0 }
 0x3f5   :  { %v1556_v45 = vmax.f32 %v1554_v35, %v1555_v51  ;;  %v4757_v23 = vpop.f32.mrf.mxu3 }
 0x3f7   :  { %v1557_v56 = vrot.slane %v1556_v45, 1 }
 0x3f8   :  { %v1041_v41 = vpop.f32.mrf.mxu2 }
 0x3f9   :  { %v1558_v52 = vmax.f32 %v1556_v45, %v1557_v56  ;;  %v4761_v17 = vadd.f32 %v1289_v44, %v1041_v41  ;;  %v1267_v44 = vrot.slane %v4662_v32, 7 }
 0x3fb   :  { %v1818_v38 = vpack.c.bf16 %v1558_v52, %v1558_v52  ;;  %v1407_v34 = vmax.f32 %v4761_v17, 0.0  ;;  %v1291_v52 = vperm.slane %v1267_v44, 0 }
 0x3fd   :  { %v1888_v24 = vunpack.c.l.b16 %v1818_v38  ;;  %v1559_v20 = vmax.f32 %v1406_v37, %v1407_v34  ;;  %v4769_v60 = vpop.f32.mrf.mxu3 }
 0x3ff   :  { %v1560_v4 = vrot.slane %v1559_v20, 4  ;;  %v1909_v42 = vsel %vm1152_vm5, %v1888_v24, %v1908_v57 }
 0x400   :  { %v1044_v28 = vpop.f32.mrf.mxu2 }
 0x401   :  { %v1561_v33 = vmax.f32 %v1559_v20, %v1560_v4  ;;  %v4782_v8 = vadd.f32 %v1290_v16, %v1044_v28 }
 0x402   :  { %1762 = vmatmul.bf16.gmra.mxu3 %v4699_v7 }
 0x403   :  { %v1562_v14 = vrot.slane %v1561_v33, 2  ;;  %v1408_v21 = vmax.f32 %v4782_v8, 0.0 }
 0x405   :  { %v1563_v19 = vmax.f32 %v1561_v33, %v1562_v14  ;;  %v4780_v11 = vpop.f32.mrf.mxu3 }
 0x407   :  { %v1564_v22 = vrot.slane %v1563_v19, 1 }
 0x408   :  { %v1046_v43 = vpop.f32.mrf.mxu2 }
 0x409   :  { %v1565_v10 = vmax.f32 %v1563_v19, %v1564_v22  ;;  %v4784_v61 = vadd.f32 %v1290_v16, %v1046_v43 }
 0x40b   :  { %v1819_v9 = vpack.c.bf16 %v1565_v10, %v1565_v10  ;;  %v1409_v7 = vmax.f32 %v4784_v61, 0.0 }
 0x40d   :  { %v1889_v49 = vunpack.c.l.b16 %v1819_v9  ;;  %v1566_v57 = vmax.f32 %v1408_v21, %v1409_v7  ;;  %v4798_v63 = vpop.f32.mrf.mxu3 }
 0x40f   :  { %v1567_v35 = vrot.slane %v1566_v57, 4  ;;  %v1910_v55 = vsel %vm1154_vm6, %v1889_v49, %v1909_v42 }
 0x410   :  { %v1049_v51 = vpop.f32.mrf.mxu2 }
 0x411   :  { %v1568_v45 = vmax.f32 %v1566_v57, %v1567_v35  ;;  %v1362_v20 = vadd.f32 %v1291_v52, %v1049_v51  ;;  %v4815_v35 = vld [vmem:[%s5244_s7 + $0x1] ss:$0 sm:$0xff] }
 0x412   :  { %1767 = vmatmul.bf16.gmra.mxu3 %v4713_v31  ;;  %v3640_v31 = vld [vmem:[%s5243_s6 + $0xb0] sm:$0xff] }
 0x413   :  { %v1569_v56 = vrot.slane %v1568_v45, 2  ;;  %v1410_v33 = vmax.f32 %v1362_v20, 0.0  ;;  %2705 = vmatpush.bf16.msra.mxu2 %v3640_v31 }
 0x415   :  { %v1570_v41 = vmax.f32 %v1568_v45, %v1569_v56  ;;  %v4803_v38 = vpop.f32.mrf.mxu3 }
 0x417   :  { %v1571_v24 = vrot.slane %v1570_v41, 1 }
 0x418   :  { %v1051_v30 = vpop.f32.mrf.mxu2 }
 0x419   :  { %v1572_v27 = vmax.f32 %v1570_v41, %v1571_v24  ;;  %v1363_v4 = vadd.f32 %v1291_v52, %v1051_v30 }
 0x41b   :  { %v1820_v28 = vpack.c.bf16 %v1572_v27, %v1572_v27  ;;  %v1411_v50 = vmax.f32 %v1363_v4, 0.0 }
 0x41d   :  { %v1890_v42 = vunpack.c.l.b16 %v1820_v28  ;;  %v1573_v14 = vmax.f32 %v1410_v33, %v1411_v50  ;;  %v4805_v19 = vpack.c.bf16 %v1411_v50, %v1410_v33  ;;  %v1730_v32 = vpop.f32.mrf.mxu3 }
 0x41f   :  { %v1574_v16 = vrot.slane %v1573_v14, 4  ;;  %v1911_v22 = vsel %vm1156_vm7, %v1890_v42, %v1910_v55 }
 0x421   :  { %v1575_v43 = vmax.f32 %v1573_v14, %v1574_v16 }
 0x422   :  { %1772 = vmatmul.bf16.gmra.mxu3 %v4727_v18  ;;  %v1600_v18 = vpack.c.bf16 %v1405_v36, %v1404_v46 }
 0x423   :  { %v1576_v10 = vrot.slane %v1575_v43, 2 }
 0x425   :  { %v1577_v12 = vmax.f32 %v1575_v43, %v1576_v10  ;;  %v1733_v9 = vpop.f32.mrf.mxu3 }
 0x427   :  { %v1578_v53 = vrot.slane %v1577_v12, 1 }
 0x429   :  { %v1579_v49 = vmax.f32 %v1577_v12, %v1578_v53 }
 0x42b   :  { %v1821_v57 = vpack.c.bf16 %v1579_v49, %v1579_v49 }
 0x42d   :  { %v1735_v51 = vpop.f32.mrf.mxu3  ;;  %v1891_v45 = vunpack.c.l.b16 %v1821_v57 }
 0x42f   :  { %v1974_v44 = vpop.f32.mrf.mxu0  ;;  %v1912_v55 = vsel %vm1158_vm8, %v1891_v45, %v1911_v22 }
 0x430   :  { %v4823_v56 = vadd.f32 %v4815_v35, %v1974_v44  ;;  %v1914_v41 = vpack.c.b16 %v1912_v55, %v1912_v55 }
 0x432   :  { %1777 = vmatmul.bf16.gmra.mxu3 %v1600_v18  ;;  %1978 = vmatmul.bf16.gmra.mxu0 %v1914_v41  ;;  %v2007_v52 = vperm.slane %v4823_v56, 0  ;;  %v1986_v27 = vrot.slane %v4823_v56, 1  ;;  %v1987_v62 = vrot.slane %v4823_v56, 2 }
 0x434   :  { %v2055_v24 = vadd.f32 %v2007_v52, %v4600_v39  ;;  %v2056_v20 = vadd.f32 %v2007_v52, %v4605_v5  ;;  %v2008_v36 = vperm.slane %v1986_v27, 0  ;;  %v1601_v5 = vpack.c.bf16 %v1407_v34, %v1406_v37 }
 0x435   :  { %v1738_v30 = vpop.f32.mrf.mxu3  ;;  %v2009_v27 = vperm.slane %v1987_v62, 0 }
 0x436   :  { %v2103_v4 = vmax.f32 %v2055_v24, 0.0  ;;  %v2104_v2 = vmax.f32 %v2056_v20, 0.0  ;;  %v2057_v49 = vadd.f32 %v2008_v36, %v4625_v25  ;;  %v2058_v25 = vadd.f32 %v2008_v36, %v4648_v3 }
 0x437   :  { %v1976_v28 = vpop.f32.mrf.mxu0 }
 0x438   :  { %v4830_v29 = vadd.f32 %v4815_v35, %v1976_v28  ;;  %v2319_v46 = vpack.c.bf16 %v2104_v2, %v2103_v4  ;;  %v2105_v28 = vmax.f32 %v2057_v49, 0.0  ;;  %v1990_v49 = vrot.slane %v4823_v56, 5 }
 0x43a   :  { %v1993_v33 = vrot.slane %v4830_v29, 1  ;;  %v1994_v50 = vrot.slane %v4830_v29, 2  ;;  %v1995_v42 = vrot.slane %v4830_v29, 3  ;;  %v2015_v39 = vperm.slane %v4830_v29, 0  ;;  %2416 = vmatmul.bf16.vlgmr.msrb.gmra.mxu1 %v2319_v46 }
 0x43b   :  { %v1996_v14 = vrot.slane %v4830_v29, 4  ;;  %v2106_v46 = vmax.f32 %v2058_v25, 0.0 }
 0x43c   :  { %v2016_v31 = vperm.slane %v1993_v33, 0  ;;  %v2017_v16 = vperm.slane %v1994_v50, 0  ;;  %v4842_v22 = vadd.f32 %v2015_v39, %v4757_v23  ;;  %v4845_v43 = vadd.f32 %v2015_v39, %v4769_v60 }
 0x43d   :  { %v1740_v10 = vpop.f32.mrf.mxu3  ;;  %v2018_v12 = vperm.slane %v1995_v42, 0  ;;  %v2019_v53 = vperm.slane %v1996_v14, 0  ;;  %v1602_v39 = vpack.c.bf16 %v1409_v7, %v1408_v21  ;;  %v2158_v25 = vmax.f32 %v2105_v28, %v2106_v46 }
 0x43e   :  { %v4850_v17 = vadd.f32 %v2016_v31, %v4780_v11  ;;  %v4853_v37 = vadd.f32 %v2016_v31, %v4798_v63  ;;  %v4856_v34 = vadd.f32 %v2017_v16, %v4803_v38  ;;  %v4858_v23 = vadd.f32 %v2017_v16, %v1730_v32 }
 0x43f   :  { %v4860_v60 = vadd.f32 %v2018_v12, %v1733_v9  ;;  %v4862_v57 = vadd.f32 %v2018_v12, %v1735_v51  ;;  %v4864_v45 = vadd.f32 %v2019_v53, %v1738_v30  ;;  %v4867_v44 = vadd.f32 %v2019_v53, %v1740_v10 }
 0x440   :  { %v2119_v11 = vmax.f32 %v4842_v22, 0.0  ;;  %v5271_v63 = vmax.f32 %v4845_v43, 0.0  ;;  %v5270_v55 = vmax.f32 %v4850_v17, 0.0  ;;  %v2151_v38 = vmax.f32 %v2103_v4, %v2104_v2 }
 0x441   :  { %v5269_v32 = vmax.f32 %v4853_v37, 0.0  ;;  %v5268_v9 = vmax.f32 %v4856_v34, 0.0  ;;  %v5267_v51 = vmax.f32 %v4858_v23, 0.0  ;;  %v5266_v18 = vmax.f32 %v4860_v60, 0.0 }
 0x442   :  { %v5265_v41 = vmax.f32 %v4862_v57, 0.0  ;;  %v2127_v3 = vmax.f32 %v4864_v45, 0.0  ;;  %v2128_v52 = vmax.f32 %v4867_v44, 0.0  ;;  %1782 = vmatmul.bf16.gmra.mxu3 %v1601_v5  ;;  %v2207_v24 = vmax.f32 %v2119_v11, %v5271_v63 }
 0x443   :  { %v2214_v20 = vmax.f32 %v5270_v55, %v5269_v32  ;;  %v2221_v30 = vmax.f32 %v5268_v9, %v5267_v51  ;;  %v2152_v5 = vrot.slane %v2151_v38, 4  ;;  %v1997_v31 = vrot.slane %v4830_v29, 5 }
 0x444   :  { %v2228_v4 = vmax.f32 %v5266_v18, %v5265_v41  ;;  %v4899_v2 = vpack.c.bf16 %v2128_v52, %v2127_v3  ;;  %v2208_v36 = vrot.slane %v2207_v24, 4  ;;  %v1988_v53 = vrot.slane %v4823_v56, 3 }
 0x445   :  { %v2215_v33 = vrot.slane %v2214_v20, 4  ;;  %v2222_v50 = vrot.slane %v2221_v30, 4  ;;  %v1743_v42 = vpop.f32.mrf.mxu3  ;;  %v4909_v41 = vadd.f32 %v2009_v27, %v4658_v54  ;;  %v4912_v21 = vadd.f32 %v2009_v27, %v4666_v40 }
 0x446   :  { %v2229_v14 = vrot.slane %v2228_v4, 4  ;;  %v2209_v16 = vmax.f32 %v2207_v24, %v2208_v36  ;;  %v2153_v7 = vmax.f32 %v2151_v38, %v2152_v5  ;;  %v2020_v24 = vperm.slane %v1997_v31, 0 }
 0x447   :  { %v2216_v10 = vmax.f32 %v2214_v20, %v2215_v33  ;;  %v2223_v12 = vmax.f32 %v2221_v30, %v2222_v50  ;;  %v2320_v20 = vpack.c.bf16 %v2106_v46, %v2105_v28  ;;  %v2010_v50 = vperm.slane %v1988_v53, 0 }
 0x448   :  { %v2230_v62 = vmax.f32 %v2228_v4, %v2229_v14  ;;  %v2210_v8 = vrot.slane %v2209_v16, 2  ;;  %v4914_v4 = vadd.f32 %v2020_v24, %v1743_v42  ;;  %v2159_v14 = vrot.slane %v2158_v25, 4 }
 0x449   :  { %v2217_v18 = vrot.slane %v2216_v10, 2  ;;  %v2224_v61 = vrot.slane %v2223_v12, 2  ;;  %v2107_v54 = vmax.f32 %v4909_v41, 0.0  ;;  %v2108_v38 = vmax.f32 %v4912_v21, 0.0 }
 0x44a   :  { %v2231_v51 = vrot.slane %v2230_v62, 2  ;;  %v2211_v30 = vmax.f32 %v2209_v16, %v2210_v8  ;;  %2421 = vmatmul.bf16.gmra.mxu1 %v2320_v20  ;;  %v2154_v27 = vrot.slane %v2153_v7, 2  ;;  %v4920_v42 = vadd.f32 %v2010_v50, %v4676_v26 }
 0x44b   :  { %v2218_v36 = vmax.f32 %v2216_v10, %v2217_v18  ;;  %v2225_v33 = vmax.f32 %v2223_v12, %v2224_v61  ;;  %v1989_v18 = vrot.slane %v4823_v56, 4  ;;  %v2129_v41 = vmax.f32 %v4914_v4, 0.0 }
 0x44c   :  { %v2232_v9 = vmax.f32 %v2230_v62, %v2231_v51  ;;  %v2212_v32 = vrot.slane %v2211_v30, 1  ;;  %v2160_v10 = vmax.f32 %v2158_v25, %v2159_v14  ;;  %v2165_v61 = vmax.f32 %v2107_v54, %v2108_v38  ;;  %v3639_v25 = vld [vmem:[%s5243_s6 + $0xa8] sm:$0xff] }
 0x44d   :  { %v2219_v55 = vrot.slane %v2218_v36, 1  ;;  %v2226_v63 = vrot.slane %v2225_v33, 1  ;;  %v1745_v40 = vpop.f32.mrf.mxu3  ;;  %v2155_v21 = vmax.f32 %v2153_v7, %v2154_v27  ;;  %2706 = vmatpush.bf16.msra.mxu2 %v3639_v25  ;;  %v2012_v27 = vperm.slane %v1990_v49, 0 }
 0x44e   :  { %v2233_v5 = vrot.slane %v2232_v9, 1  ;;  %v2082_v28 = vadd.f32 %v2020_v24, %v1745_v40  ;;  %v2213_v46 = vmax.f32 %v2211_v30, %v2212_v32  ;;  %v4924_v24 = vadd.f32 %v2010_v50, %v4684_v6 }
 0x44f   :  { %v2220_v31 = vmax.f32 %v2218_v36, %v2219_v55  ;;  %v2227_v51 = vmax.f32 %v2225_v33, %v2226_v63  ;;  %v2011_v55 = vperm.slane %v1989_v18, 0  ;;  %v2109_v36 = vmax.f32 %v4920_v42, 0.0  ;;  %v3635_v42 = vld [vmem:[%s5243_s6 + $0x88] sm:$0xff] }
 0x450   :  { %v2234_v16 = vmax.f32 %v2232_v9, %v2233_v5  ;;  %v2130_v12 = vmax.f32 %v2082_v28, 0.0  ;;  %v2545_v53 = vpack.c.bf16 %v2213_v46, %v2213_v46  ;;  %v2161_v9 = vrot.slane %v2160_v10, 2 }
 0x451   :  { %v2546_v62 = vpack.c.bf16 %v2220_v31, %v2220_v31  ;;  %v2547_v8 = vpack.c.bf16 %v2227_v51, %v2227_v51  ;;  %v1998_v6 = vrot.slane %v4830_v29, 6  ;;  %v2166_v50 = vrot.slane %v2165_v61, 4 }
 0x452   :  { %v2548_v20 = vpack.c.bf16 %v2234_v16, %v2234_v16  ;;  %1787 = vmatmul.bf16.gmra.mxu3 %v1602_v39  ;;  %v2615_v63 = vunpack.c.l.b16 %v2545_v53  ;;  %v4926_v30 = vpack.c.bf16 %v2130_v12, %v2129_v41  ;;  %v2110_v14 = vmax.f32 %v4924_v24, 0.0 }
 0x453   :  { %v2616_v32 = vunpack.c.l.b16 %v2546_v62  ;;  %v2617_v26 = vunpack.c.l.b16 %v2547_v8  ;;  %v1991_v40 = vrot.slane %v4823_v56, 6  ;;  %v2156_v5 = vrot.slane %v2155_v21, 1 }
 0x454   :  { %v2618_v33 = vunpack.c.l.b16 %v2548_v20  ;;  %v4941_v18 = vadd.f32 %v2011_v55, %v4696_v47  ;;  %v2235_v46 = vmax.f32 %v2127_v3, %v2128_v52  ;;  %v2162_v31 = vmax.f32 %v2160_v10, %v2161_v9 }
 0x455   :  { %v2638_v7 = vsel %vm1146_vm2, %v2616_v32, %v2615_v63  ;;  %v1748_v39 = vpop.f32.mrf.mxu3  ;;  %v2172_v51 = vmax.f32 %v2109_v36, %v2110_v14  ;;  %v2021_v16 = vperm.slane %v1998_v6, 0  ;;  %v2167_v49 = vmax.f32 %v2165_v61, %v2166_v50 }
 0x456   :  { %v2639_v4 = vsel %vm1148_vm3, %v2617_v26, %v2638_v7  ;;  %v4952_v53 = vadd.f32 %v2011_v55, %v4701_v0  ;;  %v2111_v62 = vmax.f32 %v4941_v18, 0.0  ;;  %v2321_v47 = vpack.c.bf16 %v2108_v38, %v2107_v54 }
 0x457   :  { %v4938_v28 = vsel %vm1150_vm4, %v2618_v33, %v2639_v4  ;;  %v2173_v8 = vrot.slane %v2172_v51, 4  ;;  %v1992_v44 = vrot.slane %v4823_v56, 7  ;;  %v2013_v20 = vperm.slane %v1991_v40, 0 }
 0x458   :  { %v4956_v45 = vmax.f32 %v2155_v21, %v2156_v5  ;;  %v2112_v3 = vmax.f32 %v4952_v53, 0.0  ;;  %v4960_v52 = vadd.f32 %v2012_v27, %v4710_v58  ;;  %v2242_v10 = vmax.f32 %v2129_v41, %v2130_v12  ;;  %v3638_v5 = vld [vmem:[%s5243_s6 + $0xa0] sm:$0xff] }
 0x459   :  { %v2083_v63 = vadd.f32 %v2021_v16, %v1748_v39  ;;  %v2014_v61 = vperm.slane %v1992_v44, 0  ;;  %v4963_v0 = vadd.f32 %v2012_v27, %v4715_v15  ;;  %v2168_v55 = vrot.slane %v2167_v49, 2  ;;  %2707 = vmatpush.bf16.msra.mxu2 %v3638_v5 }
 0x45a   :  { %2426 = vmatmul.bf16.gmra.mxu1 %v2321_v47  ;;  %v2179_v56 = vmax.f32 %v2111_v62, %v2112_v3  ;;  %v4970_v38 = vadd.f32 %v2013_v20, %v4725_v59  ;;  %v4973_v58 = vadd.f32 %v2013_v20, %v4729_v48  ;;  %v2236_v41 = vrot.slane %v2235_v46, 4 }
 0x45b   :  { %v2163_v12 = vrot.slane %v2162_v31, 1  ;;  %v2174_v32 = vmax.f32 %v2172_v51, %v2173_v8  ;;  %v4976_v15 = vadd.f32 %v2014_v61, %v4737_v1  ;;  %v4979_v9 = vadd.f32 %v2014_v61, %v4749_v13 }
 0x45c   :  { %v2180_v26 = vrot.slane %v2179_v56, 4  ;;  %v2113_v25 = vmax.f32 %v4960_v52, 0.0  ;;  %v2243_v33 = vrot.slane %v2242_v10, 4  ;;  %v2131_v7 = vmax.f32 %v2083_v63, 0.0 }
 0x45d   :  { %v1750_v54 = vpop.f32.mrf.mxu3  ;;  %v2114_v39 = vmax.f32 %v4963_v0, 0.0  ;;  %v2169_v48 = vmax.f32 %v2167_v49, %v2168_v55  ;;  %v5273_v50 = vmax.f32 %v4970_v38, 0.0  ;;  %v5272_v4 = vmax.f32 %v4973_v58, 0.0 }
 0x45e   :  { %v2084_v21 = vadd.f32 %v2021_v16, %v1750_v54  ;;  %v2181_v6 = vmax.f32 %v2179_v56, %v2180_v26  ;;  %v2237_v40 = vmax.f32 %v2235_v46, %v2236_v41  ;;  %v2175_v13 = vrot.slane %v2174_v32, 2 }
 0x45f   :  { %v2164_v51 = vmax.f32 %v2162_v31, %v2163_v12  ;;  %v2117_v16 = vmax.f32 %v4976_v15, 0.0  ;;  %v5274_v49 = vmax.f32 %v4979_v9, 0.0  ;;  %v2186_v46 = vmax.f32 %v2113_v25, %v2114_v39 }
 0x460   :  { %v2132_v59 = vmax.f32 %v2084_v21, 0.0  ;;  %v2244_v47 = vmax.f32 %v2242_v10, %v2243_v33  ;;  %v1999_v44 = vrot.slane %v4830_v29, 7  ;;  %v2193_v31 = vmax.f32 %v5273_v50, %v5272_v4 }
 0x461   :  { %v2170_v20 = vrot.slane %v2169_v48, 1  ;;  %v2182_v61 = vrot.slane %v2181_v6, 2  ;;  %v2187_v55 = vrot.slane %v2186_v46, 4  ;;  %v2200_v10 = vmax.f32 %v2117_v16, %v5274_v49 }
 0x462   :  { %v2249_v27 = vmax.f32 %v2131_v7, %v2132_v59  ;;  %v4985_v1 = vpack.c.bf16 %v2132_v59, %v2131_v7  ;;  %1792 = vmatmul.bf16.gmra.mxu3 %v4805_v19  ;;  %v3637_v19 = vld [vmem:[%s5243_s6 + $0x98] sm:$0xff]  ;;  %v2176_v29 = vmax.f32 %v2174_v32, %v2175_v13  ;;  %v2194_v54 = vrot.slane %v2193_v31, 4  ;;  %v3636_v59 = vld [vmem:[%s5243_s6 + $0x90] sm:$0xff] }
 0x463   :  { %v2537_v56 = vpack.c.bf16 %v4956_v45, %v4956_v45  ;;  %v2188_v12 = vmax.f32 %v2186_v46, %v2187_v55  ;;  %v2201_v21 = vrot.slane %v2200_v10, 4  ;;  %v2238_v26 = vrot.slane %v2237_v40, 2  ;;  %2708 = vmatpush.bf16.msra.mxu2 %v3637_v19 }
 0x464   :  { %v2250_v8 = vrot.slane %v2249_v27, 4  ;;  %v2538_v33 = vpack.c.bf16 %v2164_v51, %v2164_v51  ;;  %v2022_v7 = vperm.slane %v1999_v44, 0  ;;  %v2195_v5 = vmax.f32 %v2193_v31, %v2194_v54 }
 0x465   :  { %v1753_v63 = vpop.f32.mrf.mxu3  ;;  %v2245_v4 = vrot.slane %v2244_v47, 2  ;;  %v2171_v50 = vmax.f32 %v2169_v48, %v2170_v20  ;;  %v2183_v49 = vmax.f32 %v2181_v6, %v2182_v61  ;;  %v2189_v32 = vrot.slane %v2188_v12, 2 }
 0x466   :  { %v2251_v41 = vmax.f32 %v2249_v27, %v2250_v8  ;;  %v2177_v13 = vrot.slane %v2176_v29, 1  ;;  %v2322_v45 = vpack.c.bf16 %v2110_v14, %v2109_v36  ;;  %v2202_v27 = vmax.f32 %v2200_v10, %v2201_v21 }
 0x467   :  { %v5294_v51 = vmax.f32 %v4845_v43, 0.0  ;;  %v2085_v44 = vadd.f32 %v2022_v7, %v1753_v63  ;;  %v2196_v19 = vrot.slane %v2195_v5, 2  ;;  %v5295_v48 = vmax.f32 %v4850_v17, 0.0  ;;  %2709 = vmatpush.bf16.msra.mxu2 %v3636_v59 }
 0x468   :  { %v2252_v8 = vrot.slane %v2251_v41, 2  ;;  %v5296_v6 = vmax.f32 %v4853_v37, 0.0  ;;  %v2190_v22 = vmax.f32 %v2188_v12, %v2189_v32  ;;  %v5297_v43 = vmax.f32 %v4856_v34, 0.0 }
 0x469   :  { %v5022_v46 = vpack.c.bf16 %v5294_v51, %v2119_v11  ;;  %v5298_v11 = vmax.f32 %v4858_v23, 0.0  ;;  %v5299_v36 = vmax.f32 %v4860_v60, 0.0  ;;  %v5300_v17 = vmax.f32 %v4862_v57, 0.0  ;;  %v3634_v60 = vld [vmem:[%s5243_s6 + $0x80] sm:$0xff] }
 0x46a   :  { %v5028_v31 = vpack.c.bf16 %v5296_v6, %v5295_v48  ;;  %2431 = vmatmul.bf16.gmra.mxu1 %v2322_v45  ;;  %v2608_v14 = vunpack.c.l.b16 %v2538_v33  ;;  %v2246_v20 = vmax.f32 %v2244_v47, %v2245_v4  ;;  %v2539_v63 = vpack.c.bf16 %v2171_v50, %v2171_v50 }
 0x46b   :  { %v5037_v24 = vpack.c.bf16 %v5298_v11, %v5297_v43  ;;  %v5043_v37 = vpack.c.bf16 %v5300_v17, %v5299_v36  ;;  %v2184_v55 = vrot.slane %v2183_v49, 1  ;;  %v2178_v10 = vmax.f32 %v2176_v29, %v2177_v13  ;;  %2710 = vmatpush.bf16.msra.mxu2 %v3635_v42 }
 0x46c   :  { %v2203_v12 = vrot.slane %v2202_v27, 2  ;;  %v2607_v21 = vunpack.c.l.b16 %v2537_v56  ;;  %v2239_v34 = vmax.f32 %v2237_v40, %v2238_v26  ;;  %v2253_v59 = vmax.f32 %v2251_v41, %v2252_v8 }
 0x46d   :  { %v1755_v61 = vpop.f32.mrf.mxu3  ;;  %v2197_v23 = vmax.f32 %v2195_v5, %v2196_v19  ;;  %v2133_v32 = vmax.f32 %v2085_v44, 0.0  ;;  %v2191_v57 = vrot.slane %v2190_v22, 1  ;;  %v2247_v50 = vrot.slane %v2246_v20, 1 }
 0x46e   :  { %v2086_v54 = vadd.f32 %v2022_v7, %v1755_v61  ;;  %v2631_v4 = vsel %vm1146_vm2, %v2608_v14, %v2607_v21  ;;  %v2609_v47 = vunpack.c.l.b16 %v2539_v63  ;;  %v2185_v33 = vmax.f32 %v2183_v49, %v2184_v55 }
 0x46f   :  { %v2540_v29 = vpack.c.bf16 %v2178_v10, %v2178_v10  ;;  %v2204_v40 = vmax.f32 %v2202_v27, %v2203_v12  ;;  %v2240_v56 = vrot.slane %v2239_v34, 1  ;;  %v2254_v41 = vrot.slane %v2253_v59, 1  ;;  %2711 = vmatpush.bf16.msra.mxu2 %v3634_v60 }
 0x470   :  { %v2134_v45 = vmax.f32 %v2086_v54, 0.0  ;;  %v2198_v26 = vrot.slane %v2197_v23, 1  ;;  %v2192_v51 = vmax.f32 %v2190_v22, %v2191_v57  ;;  %v2632_v8 = vsel %vm1148_vm3, %v2609_v47, %v2631_v4 }
 0x471   :  { %v2541_v19 = vpack.c.bf16 %v2185_v33, %v2185_v33  ;;  %v2248_v48 = vmax.f32 %v2246_v20, %v2247_v50  ;;  %v2610_v6 = vunpack.c.l.b16 %v2540_v29  ;;  %v2205_v49 = vrot.slane %v2204_v40, 1 }
 0x472   :  { %v2256_v7 = vmax.f32 %v2133_v32, %v2134_v45  ;;  %v5049_v13 = vpack.c.bf16 %v2134_v45, %v2133_v32  ;;  %v2241_v43 = vmax.f32 %v2239_v34, %v2240_v56  ;;  %v2255_v11 = vmax.f32 %v2253_v59, %v2254_v41 }
 0x473   :  { %v2199_v36 = vmax.f32 %v2197_v23, %v2198_v26  ;;  %v2633_v27 = vsel %vm1150_vm4, %v2610_v6, %v2632_v8  ;;  %v2542_v14 = vpack.c.bf16 %v2192_v51, %v2192_v51  ;;  %v2611_v63 = vunpack.c.l.b16 %v2541_v19 }
 0x474   :  { %v2257_v5 = vrot.slane %v2256_v7, 4  ;;  %v2550_v61 = vpack.c.bf16 %v2248_v48, %v2248_v48  ;;  %v2323_v22 = vpack.c.bf16 %v2112_v3, %v2111_v62  ;;  %v2206_v10 = vmax.f32 %v2204_v40, %v2205_v49 }
 0x475   :  { %v5052_v44 = vpop.f32.mrf.mxu3  ;;  %v2549_v20 = vpack.c.bf16 %v2241_v43, %v2241_v43  ;;  %v2551_v54 = vpack.c.bf16 %v2255_v11, %v2255_v11  ;;  %v2634_v12 = vsel %vm1152_vm5, %v2611_v63, %v2633_v27  ;;  %v2543_v21 = vpack.c.bf16 %v2199_v36, %v2199_v36 }
 0x476   :  { %v2258_v42 = vmax.f32 %v2256_v7, %v2257_v5  ;;  %v2612_v59 = vunpack.c.l.b16 %v2542_v14  ;;  %v2620_v32 = vunpack.c.l.b16 %v2550_v61  ;;  %v2544_v60 = vpack.c.bf16 %v2206_v10, %v2206_v10 }
 0x477   :  { %v2619_v4 = vunpack.c.l.b16 %v2549_v20  ;;  %v2621_v18 = vunpack.c.l.b16 %v2551_v54  ;;  %v2613_v50 = vunpack.c.l.b16 %v2543_v21  ;;  %v5301_v8 = vmax.f32 %v4970_v38, 0.0 }
 0x478   :  { %v2259_v17 = vrot.slane %v2258_v42, 2  ;;  %v2635_v57 = vsel %vm1154_vm6, %v2612_v59, %v2634_v12  ;;  %v2614_v29 = vunpack.c.l.b16 %v2544_v60  ;;  %v5302_v19 = vmax.f32 %v4973_v58, 0.0 }
 0x479   :  { %v2641_v62 = vsel %vm1152_vm5, %v2619_v4, %v4938_v28  ;;  %v2636_v3 = vsel %vm1156_vm7, %v2613_v50, %v2635_v57  ;;  %v2324_v28 = vpack.c.bf16 %v2114_v39, %v2113_v25  ;;  %v5303_v49 = vmax.f32 %v4979_v9, 0.0 }
 0x47a   :  { %v2260_v55 = vmax.f32 %v2258_v42, %v2259_v17  ;;  %2436 = vmatmul.bf16.gmra.mxu1 %v2323_v22  ;;  %v2642_v47 = vsel %vm1154_vm6, %v2620_v32, %v2641_v62  ;;  %v2637_v40 = vsel %vm1158_vm8, %v2614_v29, %v2636_v3  ;;  %v2325_v48 = vpack.c.bf16 %v5302_v19, %v5301_v8 }
 0x47b   :  { %v2643_v7 = vsel %vm1156_vm7, %v2621_v18, %v2642_v47  ;;  %v2326_v43 = vpack.c.bf16 %v5303_v49, %v2117_v16 }
 0x47c   :  { %v2261_v34 = vrot.slane %v2260_v55, 1 }
 0x47d   :  { %v1760_v23 = vpop.f32.mrf.mxu3 }
 0x47e   :  { %v2262_v45 = vmax.f32 %v2260_v55, %v2261_v34 }
 0x480   :  { %v2552_v53 = vpack.c.bf16 %v2262_v45, %v2262_v45 }
 0x482   :  { %v2622_v33 = vunpack.c.l.b16 %v2552_v53 }
 0x484   :  { %v2644_v56 = vsel %vm1158_vm8, %v2622_v33, %v2643_v7 }
 0x485   :  { %v1763_v41 = vpop.f32.mrf.mxu3  ;;  %v2652_v26 = vpack.c.b16 %v2644_v56, %v2637_v40 }
 0x487   :  { %2712 = vmatmul.bf16.vlgmr.msra.gmra.mxu2 %v2652_v26 }
 0x48a   :  { %2441 = vmatmul.bf16.gmra.mxu1 %v2324_v28 }
 0x48d   :  { %v1765_v5 = vpop.f32.mrf.mxu3 }
 0x495   :  { %v1768_v51 = vpop.f32.mrf.mxu3 }
 0x49a   :  { %2446 = vmatmul.bf16.gmra.mxu1 %v2325_v48 }
 0x49d   :  { %v1770_v6 = vpop.f32.mrf.mxu3 }
 0x4a5   :  { %v1773_v42 = vpop.f32.mrf.mxu3 }
 0x4aa   :  { %2451 = vmatmul.bf16.gmra.mxu1 %v2326_v43 }
 0x4ad   :  { %v1775_v52 = vpop.f32.mrf.mxu3 }
 0x4af   :  { %v1979_v0 = vpop.f32.mrf.mxu0 }
 0x4b0   :  { %v5081_v25 = vadd.f32 %v4815_v35, %v1979_v0 }
 0x4b2   :  { %v2003_v39 = vrot.slane %v5081_v25, 4  ;;  %v2000_v15 = vrot.slane %v5081_v25, 1  ;;  %v2023_v35 = vperm.slane %v5081_v25, 0  ;;  %v2001_v55 = vrot.slane %v5081_v25, 2 }
 0x4b3   :  { %v2002_v22 = vrot.slane %v5081_v25, 3  ;;  %v2004_v60 = vrot.slane %v5081_v25, 5 }
 0x4b4   :  { %v2027_v36 = vperm.slane %v2003_v39, 0  ;;  %v2024_v61 = vperm.slane %v2000_v15, 0  ;;  %v2025_v10 = vperm.slane %v2001_v55, 0  ;;  %v2087_v54 = vadd.f32 %v2023_v35, %v5052_v44 }
 0x4b5   :  { %v1778_v38 = vpop.f32.mrf.mxu3  ;;  %v2026_v20 = vperm.slane %v2002_v22, 0  ;;  %v2088_v12 = vadd.f32 %v2023_v35, %v1760_v23  ;;  %v2028_v40 = vperm.slane %v2004_v60, 0 }
 0x4b6   :  { %v5086_v27 = vadd.f32 %v2027_v36, %v1778_v38  ;;  %v2089_v34 = vadd.f32 %v2024_v61, %v1763_v41  ;;  %v2090_v59 = vadd.f32 %v2024_v61, %v1765_v5  ;;  %v2091_v32 = vadd.f32 %v2025_v10, %v1768_v51 }
 0x4b7   :  { %v1981_v11 = vpop.f32.mrf.mxu0  ;;  %v5084_v58 = vpop.f32.mrf.mxu1  ;;  %v2092_v45 = vadd.f32 %v2025_v10, %v1770_v6  ;;  %v2093_v57 = vadd.f32 %v2026_v20, %v1773_v42  ;;  %v2094_v4 = vadd.f32 %v2026_v20, %v1775_v52  ;;  %v2135_v18 = vmax.f32 %v2087_v54, 0.0 }
 0x4b8   :  { %v2143_v14 = vmax.f32 %v5086_v27, 0.0  ;;  %v2136_v50 = vmax.f32 %v2088_v12, 0.0  ;;  %v2137_v53 = vmax.f32 %v2089_v34, 0.0  ;;  %v2138_v62 = vmax.f32 %v2090_v59, 0.0 }
 0x4b9   :  { %v2139_v3 = vmax.f32 %v2091_v32, 0.0  ;;  %v2140_v47 = vmax.f32 %v2092_v45, 0.0  ;;  %v2141_v29 = vmax.f32 %v2093_v57, 0.0  ;;  %v2142_v44 = vmax.f32 %v2094_v4, 0.0 }
 0x4ba   :  { %2456 = vmatmul.bf16.gmra.mxu1 %v5022_v46  ;;  %v2263_v23 = vmax.f32 %v2135_v18, %v2136_v50  ;;  %v2270_v7 = vmax.f32 %v2137_v53, %v2138_v62  ;;  %v5109_v41 = vpack.c.bf16 %v2136_v50, %v2135_v18  ;;  %v5111_v26 = vpack.c.bf16 %v2138_v62, %v2137_v53 }
 0x4bb   :  { %v2277_v56 = vmax.f32 %v2139_v3, %v2140_v47  ;;  %v2284_v51 = vmax.f32 %v2141_v29, %v2142_v44  ;;  %v5113_v8 = vpack.c.bf16 %v2140_v47, %v2139_v3  ;;  %v5116_v6 = vpack.c.bf16 %v2142_v44, %v2141_v29 }
 0x4bc   :  { %v2264_v28 = vrot.slane %v2263_v23, 4  ;;  %v2271_v5 = vrot.slane %v2270_v7, 4  ;;  %v2005_v57 = vrot.slane %v5081_v25, 6  ;;  %v2006_v27 = vrot.slane %v5081_v25, 7 }
 0x4bd   :  { %v1780_v9 = vpop.f32.mrf.mxu3  ;;  %v2278_v48 = vrot.slane %v2277_v56, 4  ;;  %v2285_v52 = vrot.slane %v2284_v51, 4 }
 0x4be   :  { %v5090_v16 = vadd.f32 %v2027_v36, %v1780_v9  ;;  %v2265_v49 = vmax.f32 %v2263_v23, %v2264_v28  ;;  %v2272_v43 = vmax.f32 %v2270_v7, %v2271_v5  ;;  %v2029_v23 = vperm.slane %v2005_v57, 0 }
 0x4bf   :  { %v5092_v17 = vpop.f32.mrf.mxu1  ;;  %v2279_v39 = vmax.f32 %v2277_v56, %v2278_v48  ;;  %v2286_v36 = vmax.f32 %v2284_v51, %v2285_v52 }
 0x4c0   :  { %v2144_v63 = vmax.f32 %v5090_v16, 0.0  ;;  %v2266_v38 = vrot.slane %v2265_v49, 2  ;;  %v2273_v11 = vrot.slane %v2272_v43, 2 }
 0x4c1   :  { %v2280_v35 = vrot.slane %v2279_v39, 2 }
 0x4c2   :  { %v5103_v46 = vpack.c.bf16 %v2144_v63, %v2143_v14  ;;  %v2267_v55 = vmax.f32 %v2265_v49, %v2266_v38  ;;  %v2274_v22 = vmax.f32 %v2272_v43, %v2273_v11  ;;  %v2291_v51 = vmax.f32 %v2143_v14, %v2144_v63 }
 0x4c3   :  { %v2281_v20 = vmax.f32 %v2279_v39, %v2280_v35 }
 0x4c4   :  { %v2268_v54 = vrot.slane %v2267_v55, 1  ;;  %v2275_v12 = vrot.slane %v2274_v22, 1 }
 0x4c5   :  { %v1783_v21 = vpop.f32.mrf.mxu3  ;;  %v2282_v34 = vrot.slane %v2281_v20, 1 }
 0x4c6   :  { %v2097_v19 = vadd.f32 %v2028_v40, %v1783_v21  ;;  %v2269_v32 = vmax.f32 %v2267_v55, %v2268_v54  ;;  %v2276_v45 = vmax.f32 %v2274_v22, %v2275_v12 }
 0x4c7   :  { %v5107_v33 = vpop.f32.mrf.mxu1  ;;  %v2283_v4 = vmax.f32 %v2281_v20, %v2282_v34 }
 0x4c8   :  { %v2145_v15 = vmax.f32 %v2097_v19, 0.0  ;;  %v2553_v50 = vpack.c.bf16 %v2269_v32, %v2269_v32  ;;  %v2554_v53 = vpack.c.bf16 %v2276_v45, %v2276_v45 }
 0x4c9   :  { %v2555_v62 = vpack.c.bf16 %v2283_v4, %v2283_v4 }
 0x4ca   :  { %2461 = vmatmul.bf16.gmra.mxu1 %v5028_v31  ;;  %v2287_v31 = vrot.slane %v2286_v36, 2  ;;  %v2623_v29 = vunpack.c.l.b16 %v2553_v50  ;;  %v2624_v44 = vunpack.c.l.b16 %v2554_v53 }
 0x4cb   :  { %v2625_v7 = vunpack.c.l.b16 %v2555_v62 }
 0x4cc   :  { %v2288_v21 = vmax.f32 %v2286_v36, %v2287_v31  ;;  %v2645_v56 = vsel %vm1146_vm2, %v2624_v44, %v2623_v29 }
 0x4cd   :  { %v1785_v42 = vpop.f32.mrf.mxu3  ;;  %v2646_v5 = vsel %vm1148_vm3, %v2625_v7, %v2645_v56 }
 0x4ce   :  { %v2098_v0 = vadd.f32 %v2028_v40, %v1785_v42  ;;  %v2289_v60 = vrot.slane %v2288_v21, 1 }
 0x4cf   :  { %v5118_v61 = vpop.f32.mrf.mxu1 }
 0x4d0   :  { %v2146_v9 = vmax.f32 %v2098_v0, 0.0  ;;  %v2290_v18 = vmax.f32 %v2288_v21, %v2289_v60  ;;  %v2292_v0 = vrot.slane %v2291_v51, 4 }
 0x4d2   :  { %v5120_v10 = vpack.c.bf16 %v2146_v9, %v2145_v15  ;;  %v2556_v47 = vpack.c.bf16 %v2290_v18, %v2290_v18  ;;  %v2298_v42 = vmax.f32 %v2145_v15, %v2146_v9  ;;  %v2293_v35 = vmax.f32 %v2291_v51, %v2292_v0 }
 0x4d3   :  { %v2030_v9 = vperm.slane %v2006_v27, 0 }
 0x4d4   :  { %v2626_v40 = vunpack.c.l.b16 %v2556_v47  ;;  %v2299_v38 = vrot.slane %v2298_v42, 4  ;;  %v2294_v63 = vrot.slane %v2293_v35, 2 }
 0x4d5   :  { %v1788_v59 = vpop.f32.mrf.mxu3 }
 0x4d6   :  { %v2099_v28 = vadd.f32 %v2029_v23, %v1788_v59  ;;  %v2647_v48 = vsel %vm1150_vm4, %v2626_v40, %v2646_v5  ;;  %v2300_v55 = vmax.f32 %v2298_v42, %v2299_v38  ;;  %v2295_v54 = vmax.f32 %v2293_v35, %v2294_v63 }
 0x4d7   :  { %v5123_v3 = vpop.f32.mrf.mxu1 }
 0x4d8   :  { %v2147_v43 = vmax.f32 %v2099_v28, 0.0  ;;  %v2301_v15 = vrot.slane %v2300_v55, 2  ;;  %v2296_v60 = vrot.slane %v2295_v54, 1 }
 0x4da   :  { %2466 = vmatmul.bf16.gmra.mxu1 %v5037_v24  ;;  %v2302_v21 = vmax.f32 %v2300_v55, %v2301_v15  ;;  %v2297_v62 = vmax.f32 %v2295_v54, %v2296_v60 }
 0x4dc   :  { %v2303_v25 = vrot.slane %v2302_v21, 1 }
 0x4dd   :  { %v1790_v19 = vpop.f32.mrf.mxu3 }
 0x4de   :  { %v2100_v49 = vadd.f32 %v2029_v23, %v1790_v19  ;;  %v2304_v47 = vmax.f32 %v2302_v21, %v2303_v25  ;;  %v2557_v23 = vpack.c.bf16 %v2297_v62, %v2297_v62 }
 0x4df   :  { %v5133_v39 = vpop.f32.mrf.mxu1 }
 0x4e0   :  { %v2148_v52 = vmax.f32 %v2100_v49, 0.0  ;;  %v2558_v40 = vpack.c.bf16 %v2304_v47, %v2304_v47  ;;  %v2627_v51 = vunpack.c.l.b16 %v2557_v23 }
 0x4e2   :  { %v2305_v11 = vmax.f32 %v2147_v43, %v2148_v52  ;;  %v5135_v24 = vpack.c.bf16 %v2148_v52, %v2147_v43  ;;  %v2628_v19 = vunpack.c.l.b16 %v2558_v40  ;;  %v2648_v0 = vsel %vm1152_vm5, %v2627_v51, %v2647_v48 }
 0x4e4   :  { %v2306_v36 = vrot.slane %v2305_v11, 4 }
 0x4e5   :  { %v1793_v16 = vpop.f32.mrf.mxu3 }
 0x4e6   :  { %v2307_v14 = vmax.f32 %v2305_v11, %v2306_v36  ;;  %v2101_v20 = vadd.f32 %v2030_v9, %v1793_v16  ;;  %v2649_v11 = vsel %vm1154_vm6, %v2628_v19, %v2648_v0 }
 0x4e7   :  { %v5138_v22 = vpop.f32.mrf.mxu1 }
 0x4e8   :  { %v2308_v31 = vrot.slane %v2307_v14, 2  ;;  %v2149_v32 = vmax.f32 %v2101_v20, 0.0 }
 0x4ea   :  { %2471 = vmatmul.bf16.gmra.mxu1 %v5043_v37  ;;  %v2309_v59 = vmax.f32 %v2307_v14, %v2308_v31 }
 0x4ec   :  { %v2310_v50 = vrot.slane %v2309_v59, 1 }
 0x4ed   :  { %v1795_v12 = vpop.f32.mrf.mxu3 }
 0x4ee   :  { %v2102_v34 = vadd.f32 %v2030_v9, %v1795_v12  ;;  %v2311_v44 = vmax.f32 %v2309_v59, %v2310_v50 }
 0x4ef   :  { %v2434_v57 = vpop.f32.mrf.mxu1 }
 0x4f0   :  { %v2150_v45 = vmax.f32 %v2102_v34, 0.0  ;;  %v2559_v28 = vpack.c.bf16 %v2311_v44, %v2311_v44 }
 0x4f2   :  { %v2312_v4 = vmax.f32 %v2149_v32, %v2150_v45  ;;  %v5141_v18 = vpack.c.bf16 %v2150_v45, %v2149_v32  ;;  %v2629_v49 = vunpack.c.l.b16 %v2559_v28 }
 0x4f4   :  { %v2313_v53 = vrot.slane %v2312_v4, 4  ;;  %v2650_v36 = vsel %vm1156_vm7, %v2629_v49, %v2649_v11 }
 0x4f6   :  { %v2314_v29 = vmax.f32 %v2312_v4, %v2313_v53 }
 0x4f7   :  { %v2437_v7 = vpop.f32.mrf.mxu1 }
 0x4f8   :  { %v2315_v37 = vrot.slane %v2314_v29, 2 }
 0x4fa   :  { %v2316_v56 = vmax.f32 %v2314_v29, %v2315_v37  ;;  %2476 = vmatmul.bf16.gmra.mxu1 %v4899_v2  ;;  %v5151_v2 = vld [vmem:[%s5244_s7 + $0x2] ss:$0 sm:$0xff] }
 0x4fc   :  { %v2317_v5 = vrot.slane %v2316_v56, 1 }
 0x4fe   :  { %v2318_v42 = vmax.f32 %v2316_v56, %v2317_v5 }
 0x4ff   :  { %v2439_v52 = vpop.f32.mrf.mxu1 }
 0x500   :  { %v2560_v43 = vpack.c.bf16 %v2318_v42, %v2318_v42 }
 0x502   :  { %v2630_v38 = vunpack.c.l.b16 %v2560_v43 }
 0x504   :  { %v2651_v35 = vsel %vm1158_vm8, %v2630_v38, %v2650_v36 }
 0x505   :  { %v2653_v16 = vpack.c.b16 %v2651_v35, %v2651_v35 }
 0x507   :  { %2717 = vmatmul.bf16.gmra.mxu2 %v2653_v16  ;;  %v2442_v55 = vpop.f32.mrf.mxu1 }
 0x50a   :  { %v2713_v27 = vpop.f32.mrf.mxu2  ;;  %2481 = vmatmul.bf16.gmra.mxu1 %v4926_v30 }
 0x50b   :  { %v5154_v14 = vadd.f32 %v5151_v2, %v2713_v27 }
 0x50d   :  { %v2725_v48 = vrot.slane %v5154_v14, 1  ;;  %v2726_v63 = vrot.slane %v5154_v14, 2  ;;  %v2727_v15 = vrot.slane %v5154_v14, 3  ;;  %v2728_v9 = vrot.slane %v5154_v14, 4 }
 0x50e   :  { %v2746_v31 = vperm.slane %v5154_v14, 0  ;;  %v2729_v20 = vrot.slane %v5154_v14, 5  ;;  %v2730_v27 = vrot.slane %v5154_v14, 6 }
 0x50f   :  { %v2747_v54 = vperm.slane %v2725_v48, 0  ;;  %v2748_v12 = vperm.slane %v2726_v63, 0  ;;  %v2749_v21 = vperm.slane %v2727_v15, 0  ;;  %v2750_v34 = vperm.slane %v2728_v9, 0  ;;  %v2444_v50 = vpop.f32.mrf.mxu1 }
 0x510   :  { %v2794_v59 = vadd.f32 %v2746_v31, %v5084_v58  ;;  %v2795_v30 = vadd.f32 %v2746_v31, %v5092_v17  ;;  %v2751_v32 = vperm.slane %v2729_v20, 0 }
 0x511   :  { %v2796_v45 = vadd.f32 %v2747_v54, %v5107_v33  ;;  %v2797_v60 = vadd.f32 %v2747_v54, %v5118_v61  ;;  %v2798_v25 = vadd.f32 %v2748_v12, %v5123_v3  ;;  %v2799_v4 = vadd.f32 %v2748_v12, %v5133_v39 }
 0x512   :  { %v2842_v53 = vmax.f32 %v2794_v59, %v2795_v30  ;;  %v2800_v62 = vadd.f32 %v2749_v21, %v5138_v22  ;;  %v2801_v47 = vadd.f32 %v2749_v21, %v2434_v57  ;;  %v2802_v29 = vadd.f32 %v2750_v34, %v2437_v7 }
 0x513   :  { %v2803_v44 = vadd.f32 %v2750_v34, %v2439_v52  ;;  %v2804_v37 = vadd.f32 %v2751_v32, %v2442_v55  ;;  %v2805_v58 = vadd.f32 %v2751_v32, %v2444_v50  ;;  %v2849_v23 = vmax.f32 %v2796_v45, %v2797_v60 }
 0x514   :  { %v2843_v17 = vrot.slane %v2842_v53, 4  ;;  %v2856_v40 = vmax.f32 %v2798_v25, %v2799_v4  ;;  %v2863_v56 = vmax.f32 %v2800_v62, %v2801_v47  ;;  %v2752_v32 = vperm.slane %v2730_v27, 0 }
 0x515   :  { %v2850_v33 = vrot.slane %v2849_v23, 4  ;;  %v2870_v28 = vmax.f32 %v2802_v29, %v2803_v44  ;;  %v2877_v61 = vmax.f32 %v2804_v37, %v2805_v58 }
 0x516   :  { %v2844_v5 = vmax.f32 %v2842_v53, %v2843_v17  ;;  %v2857_v3 = vrot.slane %v2856_v40, 4  ;;  %v2864_v51 = vrot.slane %v2863_v56, 4 }
 0x517   :  { %v2851_v39 = vmax.f32 %v2849_v23, %v2850_v33  ;;  %v2871_v19 = vrot.slane %v2870_v28, 4  ;;  %v2878_v42 = vrot.slane %v2877_v61, 4  ;;  %v2447_v0 = vpop.f32.mrf.mxu1 }
 0x518   :  { %v2845_v49 = vrot.slane %v2844_v5, 2  ;;  %v2858_v22 = vmax.f32 %v2856_v40, %v2857_v3  ;;  %v2865_v57 = vmax.f32 %v2863_v56, %v2864_v51  ;;  %v2806_v62 = vadd.f32 %v2752_v32, %v2447_v0 }
 0x519   :  { %v2852_v7 = vrot.slane %v2851_v39, 2  ;;  %v2872_v43 = vmax.f32 %v2870_v28, %v2871_v19  ;;  %v2879_v52 = vmax.f32 %v2877_v61, %v2878_v42 }
 0x51a   :  { %v2846_v38 = vmax.f32 %v2844_v5, %v2845_v49  ;;  %v2859_v11 = vrot.slane %v2858_v22, 2  ;;  %v2866_v36 = vrot.slane %v2865_v57, 2  ;;  %2486 = vmatmul.bf16.gmra.mxu1 %v4985_v1 }
 0x51b   :  { %v2853_v35 = vmax.f32 %v2851_v39, %v2852_v7  ;;  %v2873_v16 = vrot.slane %v2872_v43, 2  ;;  %v2880_v55 = vrot.slane %v2879_v52, 2 }
 0x51c   :  { %v2847_v48 = vrot.slane %v2846_v38, 1  ;;  %v2860_v63 = vmax.f32 %v2858_v22, %v2859_v11  ;;  %v2867_v15 = vmax.f32 %v2865_v57, %v2866_v36  ;;  %v2731_v36 = vrot.slane %v5154_v14, 7 }
 0x51d   :  { %v2854_v9 = vrot.slane %v2853_v35, 1  ;;  %v2874_v31 = vmax.f32 %v2872_v43, %v2873_v16  ;;  %v2881_v20 = vmax.f32 %v2879_v52, %v2880_v55 }
 0x51e   :  { %v2848_v54 = vmax.f32 %v2846_v38, %v2847_v48  ;;  %v2861_v12 = vrot.slane %v2860_v63, 1  ;;  %v2868_v21 = vrot.slane %v2867_v15, 1  ;;  %v2753_v16 = vperm.slane %v2731_v36, 0 }
 0x51f   :  { %v2855_v34 = vmax.f32 %v2853_v35, %v2854_v9  ;;  %v2875_v59 = vrot.slane %v2874_v31, 1  ;;  %v2882_v30 = vrot.slane %v2881_v20, 1  ;;  %v2449_v47 = vpop.f32.mrf.mxu1 }
 0x520   :  { %v2862_v45 = vmax.f32 %v2860_v63, %v2861_v12  ;;  %v2869_v60 = vmax.f32 %v2867_v15, %v2868_v21  ;;  %v3010_v25 = vmax.f32 %v2848_v54, 0.0  ;;  %v2807_v37 = vadd.f32 %v2752_v32, %v2449_v47  ;;  %v2715_v54 = vpop.f32.mrf.mxu2 }
 0x521   :  { %v2876_v4 = vmax.f32 %v2874_v31, %v2875_v59  ;;  %v2883_v50 = vmax.f32 %v2881_v20, %v2882_v30  ;;  %v3011_v53 = vmax.f32 %v2855_v34, 0.0  ;;  %v5180_v59 = vadd.f32 %v5151_v2, %v2715_v54 }
 0x522   :  { %v3012_v29 = vmax.f32 %v2862_v45, 0.0  ;;  %v3013_v1 = vmax.f32 %v2869_v60, 0.0  ;;  %v3034_v44 = vpack.c.bf16 %v3010_v25, %v3010_v25  ;;  %v2884_v33 = vmax.f32 %v2806_v62, %v2807_v37 }
 0x523   :  { %v3014_v58 = vmax.f32 %v2876_v4, 0.0  ;;  %v3015_v23 = vmax.f32 %v2883_v50, 0.0  ;;  %v3035_v17 = vpack.c.bf16 %v3011_v53, %v3011_v53  ;;  %v2754_v30 = vperm.slane %v5180_v59, 0 }
 0x524   :  { %v3036_v40 = vpack.c.bf16 %v3012_v29, %v3012_v29  ;;  %v3037_v56 = vpack.c.bf16 %v3013_v1, %v3013_v1  ;;  %v3102_v5 = vunpack.c.l.b16 %v3034_v44  ;;  %v2885_v39 = vrot.slane %v2884_v33, 4 }
 0x525   :  { %v3038_v28 = vpack.c.bf16 %v3014_v58, %v3014_v58  ;;  %v3039_v61 = vpack.c.bf16 %v3015_v23, %v3015_v23  ;;  %v3103_v3 = vunpack.c.l.b16 %v3035_v17  ;;  %v2732_v37 = vrot.slane %v5180_v59, 1 }
 0x526   :  { %v3104_v51 = vunpack.c.l.b16 %v3036_v40  ;;  %v3105_v19 = vunpack.c.l.b16 %v3037_v56  ;;  %v2886_v57 = vmax.f32 %v2884_v33, %v2885_v39  ;;  %v2734_v54 = vrot.slane %v5180_v59, 3 }
 0x527   :  { %v3126_v42 = vsel %vm1146_vm2, %v3103_v3, %v3102_v5  ;;  %v3106_v49 = vunpack.c.l.b16 %v3038_v28  ;;  %v3107_v7 = vunpack.c.l.b16 %v3039_v61  ;;  %v2452_v52 = vpop.f32.mrf.mxu1  ;;  %v2755_v23 = vperm.slane %v2732_v37, 0 }
 0x528   :  { %v3127_v22 = vsel %vm1148_vm3, %v3104_v51, %v3126_v42  ;;  %v2887_v38 = vrot.slane %v2886_v57, 2  ;;  %v2808_v48 = vadd.f32 %v2753_v16, %v2452_v52 }
 0x529   :  { %v3128_v43 = vsel %vm1150_vm4, %v3105_v19, %v3127_v22 }
 0x52a   :  { %v3129_v0 = vsel %vm1152_vm5, %v3106_v49, %v3128_v43  ;;  %2491 = vmatmul.bf16.gmra.mxu1 %v5049_v13  ;;  %v2888_v35 = vmax.f32 %v2886_v57, %v2887_v38 }
 0x52b   :  { %v3130_v11 = vsel %vm1154_vm6, %v3107_v7, %v3129_v0 }
 0x52c   :  { %v2889_v55 = vrot.slane %v2888_v35, 1 }
 0x52e   :  { %v2890_v9 = vmax.f32 %v2888_v35, %v2889_v55 }
 0x52f   :  { %v2454_v27 = vpop.f32.mrf.mxu1 }
 0x530   :  { %v2809_v63 = vadd.f32 %v2753_v16, %v2454_v27  ;;  %v3016_v12 = vmax.f32 %v2890_v9, 0.0 }
 0x532   :  { %v2891_v15 = vmax.f32 %v2808_v48, %v2809_v63  ;;  %v3040_v13 = vpack.c.bf16 %v3016_v12, %v3016_v12 }
 0x534   :  { %v2892_v31 = vrot.slane %v2891_v15, 4  ;;  %v3108_v32 = vunpack.c.l.b16 %v3040_v13 }
 0x536   :  { %v2893_v20 = vmax.f32 %v2891_v15, %v2892_v31  ;;  %v3131_v62 = vsel %vm1156_vm7, %v3108_v32, %v3130_v11 }
 0x537   :  { %v2457_v21 = vpop.f32.mrf.mxu1 }
 0x538   :  { %v2894_v34 = vrot.slane %v2893_v20, 2  ;;  %v2810_v25 = vadd.f32 %v2754_v30, %v2457_v21 }
 0x53a   :  { %2496 = vmatmul.bf16.gmra.mxu1 %v5109_v41  ;;  %v2895_v14 = vmax.f32 %v2893_v20, %v2894_v34  ;;  %v2757_v34 = vperm.slane %v2734_v54, 0  ;;  %v3645_v54 = vld [vmem:[#allocation5 + $0x18] sm:$0xff] }
 0x53c   :  { %v2896_v45 = vrot.slane %v2895_v14, 1 }
 0x53e   :  { %v2897_v53 = vmax.f32 %v2895_v14, %v2896_v45 }
 0x53f   :  { %v2459_v60 = vpop.f32.mrf.mxu1 }
 0x540   :  { %v2811_v4 = vadd.f32 %v2754_v30, %v2459_v60  ;;  %v3017_v29 = vmax.f32 %v2897_v53, 0.0 }
 0x542   :  { %v2898_v50 = vmax.f32 %v2810_v25, %v2811_v4  ;;  %v3041_v41 = vpack.c.bf16 %v3017_v29, %v3017_v29 }
 0x544   :  { %v2899_v47 = vrot.slane %v2898_v50, 4  ;;  %v3109_v17 = vunpack.c.l.b16 %v3041_v41 }
 0x546   :  { %v2900_v44 = vmax.f32 %v2898_v50, %v2899_v47  ;;  %v5188_v5 = vsel %vm1158_vm8, %v3109_v17, %v3131_v62 }
 0x547   :  { %v2462_v1 = vpop.f32.mrf.mxu1 }
 0x548   :  { %v2901_v58 = vrot.slane %v2900_v44, 2  ;;  %v2812_v33 = vadd.f32 %v2755_v23, %v2462_v1 }
 0x54a   :  { %2501 = vmatmul.bf16.gmra.mxu1 %v5111_v26  ;;  %v2902_v56 = vmax.f32 %v2900_v44, %v2901_v58  ;;  %v2733_v26 = vrot.slane %v5180_v59, 2 }
 0x54c   :  { %v2903_v3 = vrot.slane %v2902_v56, 1  ;;  %v2756_v52 = vperm.slane %v2733_v26, 0 }
 0x54e   :  { %v2904_v42 = vmax.f32 %v2902_v56, %v2903_v3 }
 0x54f   :  { %v2464_v40 = vpop.f32.mrf.mxu1 }
 0x550   :  { %v2813_v28 = vadd.f32 %v2755_v23, %v2464_v40  ;;  %v3018_v57 = vmax.f32 %v2904_v42, 0.0 }
 0x552   :  { %v2905_v61 = vmax.f32 %v2812_v33, %v2813_v28  ;;  %v3042_v38 = vpack.c.bf16 %v3018_v57, %v3018_v57  ;;  %v2735_v28 = vrot.slane %v5180_v59, 4  ;;  %v2737_v57 = vrot.slane %v5180_v59, 6 }
 0x554   :  { %v2906_v51 = vrot.slane %v2905_v61, 4  ;;  %v3110_v27 = vunpack.c.l.b16 %v3042_v38 }
 0x556   :  { %v2907_v39 = vmax.f32 %v2905_v61, %v2906_v51  ;;  %v2736_v61 = vrot.slane %v5180_v59, 5  ;;  %v3649_v51 = vld [vmem:[#allocation5 + $0x38] sm:$0xff] }
 0x557   :  { %v2467_v19 = vpop.f32.mrf.mxu1  ;;  %3199 = vmatpush.bf16.msrb.mxu0 %v3649_v51 }
 0x558   :  { %v2908_v49 = vrot.slane %v2907_v39, 2  ;;  %v2814_v36 = vadd.f32 %v2756_v52, %v2467_v19  ;;  %v2759_v3 = vperm.slane %v2736_v61, 0 }
 0x55a   :  { %v2909_v22 = vmax.f32 %v2907_v39, %v2908_v49  ;;  %2506 = vmatmul.bf16.gmra.mxu1 %v5113_v8  ;;  %v3648_v49 = vld [vmem:[#allocation5 + $0x30] sm:$0xff] }
 0x55b   :  { %3200 = vmatpush.bf16.msrb.mxu0 %v3648_v49 }
 0x55c   :  { %v2910_v7 = vrot.slane %v2909_v22, 1 }
 0x55e   :  { %v2911_v43 = vmax.f32 %v2909_v22, %v2910_v7 }
 0x55f   :  { %v2469_v0 = vpop.f32.mrf.mxu1 }
 0x560   :  { %v3019_v11 = vmax.f32 %v2911_v43, 0.0  ;;  %v2815_v35 = vadd.f32 %v2756_v52, %v2469_v0  ;;  %v2760_v43 = vperm.slane %v2737_v57, 0 }
 0x562   :  { %v3043_v16 = vpack.c.bf16 %v3019_v11, %v3019_v11  ;;  %v2912_v55 = vmax.f32 %v2814_v36, %v2815_v35 }
 0x564   :  { %v3111_v48 = vunpack.c.l.b16 %v3043_v16  ;;  %v2913_v63 = vrot.slane %v2912_v55, 4 }
 0x566   :  { %v3133_v15 = vsel %vm1146_vm2, %v3111_v48, %v3110_v27  ;;  %v2914_v9 = vmax.f32 %v2912_v55, %v2913_v63  ;;  %v3647_v48 = vld [vmem:[#allocation5 + $0x28] sm:$0xff] }
 0x567   :  { %v2472_v31 = vpop.f32.mrf.mxu1  ;;  %3201 = vmatpush.bf16.msrb.mxu0 %v3647_v48 }
 0x568   :  { %v2915_v20 = vrot.slane %v2914_v9, 2  ;;  %v2816_v30 = vadd.f32 %v2757_v34, %v2472_v31 }
 0x56a   :  { %v2916_v8 = vmax.f32 %v2914_v9, %v2915_v20  ;;  %2511 = vmatmul.bf16.gmra.mxu1 %v5116_v6 }
 0x56c   :  { %v2917_v12 = vrot.slane %v2916_v8, 1 }
 0x56e   :  { %v2918_v21 = vmax.f32 %v2916_v8, %v2917_v12  ;;  %v2738_v8 = vrot.slane %v5180_v59, 7 }
 0x56f   :  { %v2474_v13 = vpop.f32.mrf.mxu1 }
 0x570   :  { %v3020_v14 = vmax.f32 %v2918_v21, 0.0  ;;  %v2817_v32 = vadd.f32 %v2757_v34, %v2474_v13  ;;  %v2761_v13 = vperm.slane %v2738_v8, 0 }
 0x572   :  { %v3044_v45 = vpack.c.bf16 %v3020_v14, %v3020_v14  ;;  %v2919_v60 = vmax.f32 %v2816_v30, %v2817_v32  ;;  %v3644_v14 = vld [vmem:[#allocation5 + $0x10] sm:$0xff] }
 0x574   :  { %v3112_v25 = vunpack.c.l.b16 %v3044_v45  ;;  %v2920_v4 = vrot.slane %v2919_v60, 4 }
 0x576   :  { %v3134_v50 = vsel %vm1148_vm3, %v3112_v25, %v3133_v15  ;;  %v2921_v53 = vmax.f32 %v2919_v60, %v2920_v4  ;;  %v3646_v15 = vld [vmem:[#allocation5 + $0x20] sm:$0xff] }
 0x577   :  { %v2477_v62 = vpop.f32.mrf.mxu1  ;;  %3202 = vmatpush.bf16.msrb.mxu0 %v3646_v15 }
 0x578   :  { %v2922_v47 = vrot.slane %v2921_v53, 2 }
 0x57a   :  { %v2923_v29 = vmax.f32 %v2921_v53, %v2922_v47  ;;  %2516 = vmatmul.bf16.gmra.mxu1 %v5103_v46  ;;  %v2758_v46 = vperm.slane %v2735_v28, 0  ;;  %v3643_v47 = vld [vmem:[#allocation5 + $0x8] sm:$0xff] }
 0x57b   :  { %3203 = vmatpush.bf16.msrb.mxu0 %v3645_v54 }
 0x57c   :  { %v2924_v6 = vrot.slane %v2923_v29, 1  ;;  %v2818_v22 = vadd.f32 %v2758_v46, %v2477_v62 }
 0x57e   :  { %v2925_v1 = vmax.f32 %v2923_v29, %v2924_v6 }
 0x57f   :  { %v2479_v44 = vpop.f32.mrf.mxu1  ;;  %3204 = vmatpush.bf16.msrb.mxu0 %v3644_v14 }
 0x580   :  { %v3021_v37 = vmax.f32 %v2925_v1, 0.0  ;;  %v2819_v39 = vadd.f32 %v2758_v46, %v2479_v44  ;;  %v3642_v44 = vld [vmem:[#allocation5] sm:$0xff] }
 0x582   :  { %v3045_v41 = vpack.c.bf16 %v3021_v37, %v3021_v37 }
 0x583   :  { %3205 = vmatpush.bf16.msrb.mxu0 %v3643_v47 }
 0x584   :  { %v3113_v58 = vunpack.c.l.b16 %v3045_v41 }
 0x586   :  { %v5198_v23 = vsel %vm1150_vm4, %v3113_v58, %v3134_v50 }
 0x587   :  { %v2482_v17 = vpop.f32.mrf.mxu1  ;;  %3206 = vmatpush.bf16.msrb.mxu0 %v3642_v44 }
 0x588   :  { %v2820_v26 = vadd.f32 %v2759_v3, %v2482_v17 }
 0x58a   :  { %v2718_v40 = vpop.f32.mrf.mxu2  ;;  %2521 = vmatmul.bf16.gmra.mxu1 %v5120_v10  ;;  %v2926_v10 = vmax.f32 %v2818_v22, %v2819_v39 }
 0x58b   :  { %v5208_v50 = vadd.f32 %v5151_v2, %v2718_v40 }
 0x58c   :  { %v2927_v52 = vrot.slane %v2926_v10, 4 }
 0x58d   :  { %v2762_v1 = vperm.slane %v5208_v50, 0 }
 0x58e   :  { %v2928_v16 = vmax.f32 %v2926_v10, %v2927_v52  ;;  %v2739_v10 = vrot.slane %v5208_v50, 1 }
 0x58f   :  { %v2484_v56 = vpop.f32.mrf.mxu1 }
 0x590   :  { %v2821_v42 = vadd.f32 %v2759_v3, %v2484_v56  ;;  %v2929_v9 = vrot.slane %v2928_v16, 2 }
 0x592   :  { %v2720_v33 = vpop.f32.mrf.mxu2  ;;  %v2933_v7 = vmax.f32 %v2820_v26, %v2821_v42  ;;  %v2930_v12 = vmax.f32 %v2928_v16, %v2929_v9 }
 0x594   :  { %v2934_v38 = vrot.slane %v2933_v7, 4  ;;  %v2931_v30 = vrot.slane %v2930_v12, 1 }
 0x596   :  { %v2935_v55 = vmax.f32 %v2933_v7, %v2934_v38 }
 0x597   :  { %v2487_v19 = vpop.f32.mrf.mxu1 }
 0x598   :  { %v2822_v11 = vadd.f32 %v2760_v43, %v2487_v19 }
 0x59a   :  { %2526 = vmatmul.bf16.gmra.mxu1 %v5135_v24  ;;  %v2936_v24 = vrot.slane %v2935_v55, 2 }
 0x59c   :  { %v2937_v21 = vmax.f32 %v2935_v55, %v2936_v24 }
 0x59e   :  { %v2938_v45 = vrot.slane %v2937_v21, 1 }
 0x59f   :  { %v2489_v0 = vpop.f32.mrf.mxu1 }
 0x5a0   :  { %v2823_v36 = vadd.f32 %v2760_v43, %v2489_v0  ;;  %v2939_v53 = vmax.f32 %v2937_v21, %v2938_v45 }
 0x5a2   :  { %v2940_v35 = vmax.f32 %v2822_v11, %v2823_v36  ;;  %v3023_v58 = vmax.f32 %v2939_v53, 0.0  ;;  %v2763_v11 = vperm.slane %v2739_v10, 0  ;;  %v2741_v53 = vrot.slane %v5208_v50, 3 }
 0x5a4   :  { %v2941_v27 = vrot.slane %v2940_v35, 4  ;;  %v3047_v28 = vpack.c.bf16 %v3023_v58, %v3023_v58  ;;  %v2765_v44 = vperm.slane %v2741_v53, 0 }
 0x5a6   :  { %v2942_v63 = vmax.f32 %v2940_v35, %v2941_v27  ;;  %v3115_v19 = vunpack.c.l.b16 %v3047_v28 }
 0x5a7   :  { %v2492_v31 = vpop.f32.mrf.mxu1 }
 0x5a8   :  { %v2943_v20 = vrot.slane %v2942_v63, 2  ;;  %v2824_v60 = vadd.f32 %v2761_v13, %v2492_v31  ;;  %v2740_v31 = vrot.slane %v5208_v50, 2 }
 0x5aa   :  { %2531 = vmatmul.bf16.gmra.mxu1 %v5141_v18  ;;  %v2944_v34 = vmax.f32 %v2942_v63, %v2943_v20  ;;  %v2932_v18 = vmax.f32 %v2930_v12, %v2931_v30  ;;  %v2764_v54 = vperm.slane %v2740_v31, 0 }
 0x5ac   :  { %v2945_v4 = vrot.slane %v2944_v34, 1  ;;  %v3022_v37 = vmax.f32 %v2932_v18, 0.0 }
 0x5ae   :  { %v2946_v29 = vmax.f32 %v2944_v34, %v2945_v4  ;;  %v3046_v40 = vpack.c.bf16 %v3022_v37, %v3022_v37 }
 0x5af   :  { %v2494_v32 = vpop.f32.mrf.mxu1 }
 0x5b0   :  { %v2825_v25 = vadd.f32 %v2761_v13, %v2494_v32  ;;  %v3024_v33 = vmax.f32 %v2946_v29, 0.0  ;;  %v3114_v51 = vunpack.c.l.b16 %v3046_v40 }
 0x5b2   :  { %v2947_v59 = vmax.f32 %v2824_v60, %v2825_v25  ;;  %v3048_v46 = vpack.c.bf16 %v3024_v33, %v3024_v33  ;;  %v3136_v7 = vsel %vm1152_vm5, %v3114_v51, %v5198_v23 }
 0x5b3   :  { %v3137_v43 = vsel %vm1154_vm6, %v3115_v19, %v3136_v7 }
 0x5b4   :  { %v2948_v62 = vrot.slane %v2947_v59, 4  ;;  %v3116_v22 = vunpack.c.l.b16 %v3048_v46 }
 0x5b6   :  { %v2949_v6 = vmax.f32 %v2947_v59, %v2948_v62  ;;  %v3138_v38 = vsel %vm1156_vm7, %v3116_v22, %v3137_v43  ;;  %v2742_v22 = vrot.slane %v5208_v50, 4 }
 0x5b7   :  { %v2497_v41 = vpop.f32.mrf.mxu1 }
 0x5b8   :  { %v2950_v17 = vrot.slane %v2949_v6, 2  ;;  %v2826_v56 = vadd.f32 %v2762_v1, %v2497_v41 }
 0x5ba   :  { %v2951_v2 = vmax.f32 %v2949_v6, %v2950_v17 }
 0x5bc   :  { %v2952_v61 = vrot.slane %v2951_v2, 1 }
 0x5be   :  { %v2953_v3 = vmax.f32 %v2951_v2, %v2952_v61 }
 0x5bf   :  { %v2499_v39 = vpop.f32.mrf.mxu1 }
 0x5c0   :  { %v3025_v42 = vmax.f32 %v2953_v3, 0.0  ;;  %v2827_v49 = vadd.f32 %v2762_v1, %v2499_v39 }
 0x5c2   :  { %v3049_v26 = vpack.c.bf16 %v3025_v42, %v3025_v42  ;;  %v2954_v57 = vmax.f32 %v2826_v56, %v2827_v49 }
 0x5c4   :  { %v3117_v52 = vunpack.c.l.b16 %v3049_v26  ;;  %v2955_v0 = vrot.slane %v2954_v57, 4 }
 0x5c6   :  { %v3139_v36 = vsel %vm1158_vm8, %v3117_v52, %v3138_v38  ;;  %v2956_v55 = vmax.f32 %v2954_v57, %v2955_v0  ;;  %v2766_v57 = vperm.slane %v2742_v22, 0 }
 0x5c7   :  { %v2502_v35 = vpop.f32.mrf.mxu1  ;;  %v3147_v16 = vpack.c.b16 %v3139_v36, %v5188_v5 }
 0x5c8   :  { %v2828_v27 = vadd.f32 %v2763_v11, %v2502_v35  ;;  %v2957_v48 = vrot.slane %v2956_v55, 2 }
 0x5c9   :  { %3207 = vmatmul.bf16.vlgmr.msrb.gmra.mxu0 %v3147_v16 }
 0x5ca   :  { %v2958_v15 = vmax.f32 %v2956_v55, %v2957_v48 }
 0x5cc   :  { %v2959_v24 = vrot.slane %v2958_v15, 1 }
 0x5ce   :  { %v2960_v21 = vmax.f32 %v2958_v15, %v2959_v24 }
 0x5cf   :  { %v2504_v63 = vpop.f32.mrf.mxu1 }
 0x5d0   :  { %v2829_v9 = vadd.f32 %v2763_v11, %v2504_v63  ;;  %v3026_v5 = vmax.f32 %v2960_v21, 0.0 }
 0x5d2   :  { %v2961_v23 = vmax.f32 %v2828_v27, %v2829_v9  ;;  %v3050_v60 = vpack.c.bf16 %v3026_v5, %v3026_v5  ;;  %v2743_v27 = vrot.slane %v5208_v50, 5 }
 0x5d4   :  { %v2962_v20 = vrot.slane %v2961_v23, 4  ;;  %v3118_v62 = vunpack.c.l.b16 %v3050_v60  ;;  %v2767_v15 = vperm.slane %v2743_v27, 0 }
 0x5d6   :  { %v2963_v8 = vmax.f32 %v2961_v23, %v2962_v20 }
 0x5d7   :  { %v2507_v12 = vpop.f32.mrf.mxu1 }
 0x5d8   :  { %v2964_v34 = vrot.slane %v2963_v8, 2  ;;  %v2830_v13 = vadd.f32 %v2764_v54, %v2507_v12 }
 0x5da   :  { %v2965_v14 = vmax.f32 %v2963_v8, %v2964_v34 }
 0x5dc   :  { %v2966_v30 = vrot.slane %v2965_v14, 1 }
 0x5de   :  { %v2967_v32 = vmax.f32 %v2965_v14, %v2966_v30 }
 0x5df   :  { %v2509_v45 = vpop.f32.mrf.mxu1 }
 0x5e0   :  { %v3027_v25 = vmax.f32 %v2967_v32, 0.0  ;;  %v2831_v4 = vadd.f32 %v2764_v54, %v2509_v45  ;;  %v2744_v32 = vrot.slane %v5208_v50, 6 }
 0x5e2   :  { %v3051_v59 = vpack.c.bf16 %v3027_v25, %v3027_v25  ;;  %v2968_v18 = vmax.f32 %v2830_v13, %v2831_v4  ;;  %v2768_v4 = vperm.slane %v2744_v32, 0 }
 0x5e4   :  { %v3119_v47 = vunpack.c.l.b16 %v3051_v59  ;;  %v2969_v29 = vrot.slane %v2968_v18, 4 }
 0x5e6   :  { %v3140_v6 = vsel %vm1146_vm2, %v3119_v47, %v3118_v62  ;;  %v2970_v1 = vmax.f32 %v2968_v18, %v2969_v29 }
 0x5e7   :  { %v2512_v37 = vpop.f32.mrf.mxu1 }
 0x5e8   :  { %v2971_v41 = vrot.slane %v2970_v1, 2  ;;  %v2832_v58 = vadd.f32 %v2765_v44, %v2512_v37 }
 0x5ea   :  { %v2972_v17 = vmax.f32 %v2970_v1, %v2971_v41 }
 0x5ec   :  { %v2973_v56 = vrot.slane %v2972_v17, 1 }
 0x5ee   :  { %v2974_v33 = vmax.f32 %v2972_v17, %v2973_v56 }
 0x5ef   :  { %v2514_v2 = vpop.f32.mrf.mxu1 }
 0x5f0   :  { %v3028_v40 = vmax.f32 %v2974_v33, 0.0  ;;  %v2833_v28 = vadd.f32 %v2765_v44, %v2514_v2  ;;  %v2745_v2 = vrot.slane %v5208_v50, 7 }
 0x5f2   :  { %v3052_v61 = vpack.c.bf16 %v3028_v40, %v3028_v40  ;;  %v2975_v46 = vmax.f32 %v2832_v58, %v2833_v28 }
 0x5f4   :  { %v3120_v3 = vunpack.c.l.b16 %v3052_v61  ;;  %v2976_v51 = vrot.slane %v2975_v46, 4  ;;  %v2769_v61 = vperm.slane %v2745_v2, 0 }
 0x5f6   :  { %v3141_v39 = vsel %vm1148_vm3, %v3120_v3, %v3140_v6  ;;  %v2977_v19 = vmax.f32 %v2975_v46, %v2976_v51 }
 0x5f7   :  { %v2517_v42 = vpop.f32.mrf.mxu1 }
 0x5f8   :  { %v2978_v49 = vrot.slane %v2977_v19, 2  ;;  %v2834_v43 = vadd.f32 %v2766_v57, %v2517_v42 }
 0x5fa   :  { %v2979_v26 = vmax.f32 %v2977_v19, %v2978_v49 }
 0x5fc   :  { %v2980_v10 = vrot.slane %v2979_v26, 1 }
 0x5fe   :  { %v2981_v38 = vmax.f32 %v2979_v26, %v2980_v10 }
 0x5ff   :  { %v2519_v7 = vpop.f32.mrf.mxu1 }
 0x600   :  { %v2835_v52 = vadd.f32 %v2766_v57, %v2519_v7  ;;  %v3029_v35 = vmax.f32 %v2981_v38, 0.0  ;;  %v3686_v38 = vld [vmem:[%s5246_s9] ss:$0 sm:$0xff]  ;;  %s3770_s9 = smov 128  }
 0x602   :  { %v2982_v0 = vmax.f32 %v2834_v43, %v2835_v52  ;;  %v3053_v48 = vpack.c.bf16 %v3029_v35, %v3029_v35 }
 0x604   :  { %v2983_v11 = vrot.slane %v2982_v0, 4  ;;  %v3121_v9 = vunpack.c.l.b16 %v3053_v48 }
 0x606   :  { %v2984_v36 = vmax.f32 %v2982_v0, %v2983_v11  ;;  %v3142_v12 = vsel %vm1150_vm4, %v3121_v9, %v3141_v39 }
 0x607   :  { %v2522_v16 = vpop.f32.mrf.mxu1 }
 0x608   :  { %v2985_v55 = vrot.slane %v2984_v36, 2  ;;  %v2836_v24 = vadd.f32 %v2767_v15, %v2522_v16 }
 0x60a   :  { %v2986_v63 = vmax.f32 %v2984_v36, %v2985_v55 }
 0x60c   :  { %v2987_v23 = vrot.slane %v2986_v63, 1 }
 0x60e   :  { %v2988_v54 = vmax.f32 %v2986_v63, %v2987_v23 }
 0x60f   :  { %v2524_v31 = vpop.f32.mrf.mxu1 }
 0x610   :  { %v2837_v20 = vadd.f32 %v2767_v15, %v2524_v31  ;;  %v3030_v13 = vmax.f32 %v2988_v54, 0.0 }
 0x612   :  { %v2989_v8 = vmax.f32 %v2836_v24, %v2837_v20  ;;  %v3054_v45 = vpack.c.bf16 %v3030_v13, %v3030_v13 }
 0x614   :  { %v2990_v21 = vrot.slane %v2989_v8, 4  ;;  %v3122_v59 = vunpack.c.l.b16 %v3054_v45 }
 0x616   :  { %v2991_v34 = vmax.f32 %v2989_v8, %v2990_v21  ;;  %v3143_v1 = vsel %vm1152_vm5, %v3122_v59, %v3142_v12 }
 0x617   :  { %v2527_v14 = vpop.f32.mrf.mxu1 }
 0x618   :  { %v2992_v5 = vrot.slane %v2991_v34, 2  ;;  %v2838_v62 = vadd.f32 %v2768_v4, %v2527_v14 }
 0x61a   :  { %v2993_v30 = vmax.f32 %v2991_v34, %v2992_v5 }
 0x61c   :  { %v2994_v60 = vrot.slane %v2993_v30, 1 }
 0x61e   :  { %v2995_v25 = vmax.f32 %v2993_v30, %v2994_v60 }
 0x61f   :  { %v2529_v18 = vpop.f32.mrf.mxu1 }
 0x620   :  { %v3031_v53 = vmax.f32 %v2995_v25, 0.0  ;;  %v2839_v47 = vadd.f32 %v2768_v4, %v2529_v18 }
 0x622   :  { %v3055_v29 = vpack.c.bf16 %v3031_v53, %v3031_v53  ;;  %v2996_v6 = vmax.f32 %v2838_v62, %v2839_v47 }
 0x624   :  { %v2997_v44 = vrot.slane %v2996_v6, 4  ;;  %v3123_v37 = vunpack.c.l.b16 %v3055_v29 }
 0x626   :  { %v2998_v41 = vmax.f32 %v2996_v6, %v2997_v44  ;;  %v3144_v56 = vsel %vm1154_vm6, %v3123_v37, %v3143_v1 }
 0x627   :  { %v2532_v58 = vpop.f32.mrf.mxu1 }
 0x628   :  { %v2999_v17 = vrot.slane %v2998_v41, 2  ;;  %v2840_v51 = vadd.f32 %v2769_v61, %v2532_v58 }
 0x62a   :  { %v3000_v33 = vmax.f32 %v2998_v41, %v2999_v17 }
 0x62c   :  { %v3001_v40 = vrot.slane %v3000_v33, 1 }
 0x62e   :  { %v3002_v28 = vmax.f32 %v3000_v33, %v3001_v40 }
 0x62f   :  { %v2534_v46 = vpop.f32.mrf.mxu1 }
 0x630   :  { %v3032_v3 = vmax.f32 %v3002_v28, 0.0  ;;  %v2841_v39 = vadd.f32 %v2769_v61, %v2534_v46 }
 0x632   :  { %v3056_v19 = vpack.c.bf16 %v3032_v3, %v3032_v3  ;;  %v3003_v42 = vmax.f32 %v2840_v51, %v2841_v39 }
 0x634   :  { %v3124_v49 = vunpack.c.l.b16 %v3056_v19  ;;  %v3004_v22 = vrot.slane %v3003_v42, 4 }
 0x636   :  { %v3005_v26 = vmax.f32 %v3003_v42, %v3004_v22  ;;  %v3145_v57 = vsel %vm1156_vm7, %v3124_v49, %v3144_v56 }
 0x638   :  { %v3006_v10 = vrot.slane %v3005_v26, 2 }
 0x63a   :  { %v3007_v7 = vmax.f32 %v3005_v26, %v3006_v10 }
 0x63c   :  { %v3008_v43 = vrot.slane %v3007_v7, 1 }
 0x63e   :  { %v3009_v52 = vmax.f32 %v3007_v7, %v3008_v43 }
 0x640   :  { %v3033_v0 = vmax.f32 %v3009_v52, 0.0 }
 0x642   :  { %v3057_v50 = vpack.c.bf16 %v3033_v0, %v3033_v0 }
 0x644   :  { %v3125_v11 = vunpack.c.l.b16 %v3057_v50 }
 0x646   :  { %v3208_v36 = vpop.f32.mrf.mxu0  ;;  %v3146_v35 = vsel %vm1158_vm8, %v3125_v11, %v3145_v57 }
 0x647   :  { %v3209_v16 = vadd.f32 %v3686_v38, %v3208_v36  ;;  %v3148_v55 = vpack.c.b16 %v3146_v35, %v3146_v35 }
 0x649   :  { %3217 = vst [vmem:[#allocation7] sm:$0xff] %v3209_v16  ;;  %3212 = vmatmul.bf16.gmra.mxu0 %v3148_v55 }
 0x64e   :  { %v3210_v27 = vpop.f32.mrf.mxu0 }
 0x64f   :  { %v3211_v48 = vadd.f32 %v3686_v38, %v3210_v27 }
 0x651   :  { %3218 = vst [vmem:[#allocation7 + $0x8] sm:$0xff] %v3211_v48 }
 0x6c6   :  { %v3213_v63 = vpop.f32.mrf.mxu0 }
 0x6c7   :  { %v3214_v15 = vadd.f32 %v3686_v38, %v3213_v63 }
 0x6c9   :  { %3219 = vst [vmem:[#allocation7 + $0x10] sm:$0xff] %v3214_v15 }
 0x6ca   :  { %3232 = dma.vmem_to_hbm [thread:$0]  %s3225_s0, 384, %s3227_s1, [#allocation4], %s3770_s9, %s3770_s9, %s3771_s29  }
 0x6ce   :  { %v3215_v9 = vpop.f32.mrf.mxu0 }
 0x6cf   :  { %3763 = dma.done.wait [#allocation4], 384  }
 0x6d0   :  { %3764 = vsyncadd [#allocation4], 4294966912 }
 0x6d1   :  { %3237 = vsyncpa [#allocation3], 1 }
 0x6d2   :  { %3238 = vsyncpa [#allocation6], 1 }
 0x6d3   :  { %3239 = vsyncpa [#allocation4], 1 }

</bundles_post_ra>
